<compile_context>
chip_gen: v5e
topology: v5e:2x2
jax: 0.10.0
libtpu: 0.0.40
codegen_flags: <defaults>
</compile_context>

<pallas_src>
import math

import jax
import jax.numpy as jnp
from jax import lax
from jax.experimental import pallas as pl
from jax.experimental.pallas import tpu as pltpu


# Padded tile sizes (TPU (8,128) vreg friendly).
BP = 8       # padded batch rows (sublane multiple)
HP = 128     # padded hidden size for every layer (lane multiple)
DIN_P = 8    # padded input feature dim for layer 1 (true Din = 1)
CP = 128     # padded number of classes for a lane-dense output store


# ---------------------------------------------------------------------------
# Fused kernel: 3 LSTM layers + mean over time + FC, all state in VMEM.
# ---------------------------------------------------------------------------
def _make_fused_kernel(T, Bp, Hp):
    Gp = 4 * Hp

    def kernel(x_ref,                              # (T*Bp, DIN_P)
               wih1_ref, whh1_ref, b1_ref,         # (DIN_P,Gp) (Hp,Gp) (1,Gp)
               wih2_ref, whh2_ref, b2_ref,         # (Hp,Gp)   (Hp,Gp) (1,Gp)
               wih3_ref, whh3_ref, b3_ref,         # (Hp,Gp)   (Hp,Gp) (1,Gp)
               wfc_ref, bfc_ref,                   # (Hp,CP)   (1,CP)
               o_ref,                              # (Bp, CP)
               h_scr, c_scr,                       # (Bp, Hp) each
               seq_scr,                            # (T*Bp, Hp)  current layer's h sequence
               gx_scr):                            # (T*Bp, Gp)  precomputed input gates

        def run_layer(whh_ref):
            # zero initial (h, c); recurrence reads gx_scr, writes h seq to seq_scr
            h_scr[...] = jnp.zeros_like(h_scr)
            c_scr[...] = jnp.zeros_like(c_scr)

            def step(t, carry):
                off = pl.multiple_of(t * Bp, Bp)
                gates = (gx_scr[pl.ds(off, Bp), :]
                         + jnp.dot(h_scr[...], whh_ref[...],
                                   preferred_element_type=jnp.float32))   # (Bp, 4Hp)
                # gate layout is [i | f | o | g], each 128-lane aligned
                ifo = jax.nn.sigmoid(gates[:, 0:3 * Hp])
                g_g = jnp.tanh(gates[:, 3 * Hp:4 * Hp])
                i_g = ifo[:, 0:Hp]
                f_g = ifo[:, Hp:2 * Hp]
                o_g = ifo[:, 2 * Hp:3 * Hp]
                c_new = f_g * c_scr[...] + i_g * g_g
                h_new = o_g * jnp.tanh(c_new)
                c_scr[...] = c_new
                h_scr[...] = h_new
                seq_scr[pl.ds(off, Bp), :] = h_new
                return carry

            lax.fori_loop(0, T, step, 0, unroll=True)

        # ---- layer 1: hoisted input projection (one matmul over all T steps) ----
        gx_scr[...] = (jnp.dot(x_ref[...], wih1_ref[...],
                               preferred_element_type=jnp.float32) + b1_ref[...])
        run_layer(whh1_ref)

        # ---- layer 2 ----
        gx_scr[...] = (jnp.dot(seq_scr[...], wih2_ref[...],
                               preferred_element_type=jnp.float32) + b2_ref[...])
        run_layer(whh2_ref)

        # ---- layer 3 ----
        gx_scr[...] = (jnp.dot(seq_scr[...], wih3_ref[...],
                               preferred_element_type=jnp.float32) + b3_ref[...])
        run_layer(whh3_ref)

        # ---- mean over time (all in VMEM) + final Linear ----
        acc = seq_scr[0:Bp, :]
        for t in range(1, T):                       # T=8, static slices, tiny
            acc = acc + seq_scr[t * Bp:(t + 1) * Bp, :]
        hmean = acc * (1.0 / T)                     # (Bp, Hp)
        o_ref[...] = (jnp.dot(hmean, wfc_ref[...],
                              preferred_element_type=jnp.float32) + bfc_ref[...])

    return kernel


# ---------------------------------------------------------------------------
# Weight padding / re-layout:
#   PyTorch weights (4H, Din) with gate order [i,f,g,o]  ->
#   (Din_pad, 4*Hp) with gate blocks [i | f | o | g], each 128 lanes wide,
#   zero-padded everywhere else (so padding is numerically exact).
# ---------------------------------------------------------------------------
def _pad_lstm_params(w_ih, w_hh, b_ih, b_hh, din_pad, Hp):
    H = w_hh.shape[1]
    Din = w_ih.shape[1]
    Gp = 4 * Hp
    wih_t = jnp.transpose(w_ih).astype(jnp.float32)   # (Din, 4H)
    whh_t = jnp.transpose(w_hh).astype(jnp.float32)   # (H, 4H)
    b = (b_ih + b_hh).astype(jnp.float32)             # (4H,)

    wih_p = jnp.zeros((din_pad, Gp), jnp.float32)
    whh_p = jnp.zeros((Hp, Gp), jnp.float32)
    b_p = jnp.zeros((1, Gp), jnp.float32)
    # torch gate blocks: i=0, f=1, g=2, o=3 ; target blocks: [i, f, o, g]
    for dst, src in enumerate((0, 1, 3, 2)):
        wih_p = wih_p.at[:Din, dst * Hp:dst * Hp + H].set(wih_t[:, src * H:(src + 1) * H])
        whh_p = whh_p.at[:H, dst * Hp:dst * Hp + H].set(whh_t[:, src * H:(src + 1) * H])
        b_p = b_p.at[0, dst * Hp:dst * Hp + H].set(b[src * H:(src + 1) * H])
    return wih_p, whh_p, b_p


def lstm_net_forward(x_bt, params):
    """x_bt: (B, T) float32 (torch forward does x.unsqueeze(2))."""
    B, T = x_bt.shape
    num_class = params["fc_b"].shape[0]

    # time-major, batch padded to BP, input-feature dim padded to DIN_P
    x_tb = jnp.transpose(x_bt).astype(jnp.float32)                     # (T, B)
    x_pad = jnp.zeros((T, BP, DIN_P), jnp.float32).at[:, :B, 0].set(x_tb)
    x_pad = x_pad.reshape(T * BP, DIN_P)

    l1, l2, l3 = params["lstm"]
    wih1, whh1, b1 = _pad_lstm_params(l1["w_ih"], l1["w_hh"], l1["b_ih"], l1["b_hh"], DIN_P, HP)
    wih2, whh2, b2 = _pad_lstm_params(l2["w_ih"], l2["w_hh"], l2["b_ih"], l2["b_hh"], HP, HP)
    wih3, whh3, b3 = _pad_lstm_params(l3["w_ih"], l3["w_hh"], l3["b_ih"], l3["b_hh"], HP, HP)

    wfc_p = jnp.zeros((HP, CP), jnp.float32).at[:, :num_class].set(
        jnp.transpose(params["fc_w"]).astype(jnp.float32))
    bfc_p = jnp.zeros((1, CP), jnp.float32).at[0, :num_class].set(
        params["fc_b"].astype(jnp.float32))

    kernel = _make_fused_kernel(T, BP, HP)
    out_pad = pl.pallas_call(
        kernel,
        out_shape=jax.ShapeDtypeStruct((BP, CP), jnp.float32),
        scratch_shapes=[
            pltpu.VMEM((BP, HP), jnp.float32),          # h state
            pltpu.VMEM((BP, HP), jnp.float32),          # c state
            pltpu.VMEM((T * BP, HP), jnp.float32),      # current layer's h sequence
            pltpu.VMEM((T * BP, 4 * HP), jnp.float32),  # hoisted input gates
        ],
    )(x_pad, wih1, whh1, b1, wih2, whh2, b2, wih3, whh3, b3, wfc_p, bfc_p)

    return out_pad[:B, :num_class]


# ---------------------------------------------------------------------------
# parameter init (PyTorch default: U(-1/sqrt(H), 1/sqrt(H)))
# ---------------------------------------------------------------------------
def init_params(key, num_class):
    sizes = [(1, 32), (32, 64), (64, 128)]
    params = {"lstm": []}
    for (din, h) in sizes:
        key, k1, k2, k3, k4 = jax.random.split(key, 5)
        bound = 1.0 / math.sqrt(h)
        params["lstm"].append({
            "w_ih": jax.random.uniform(k1, (4 * h, din), jnp.float32, -bound, bound),
            "w_hh": jax.random.uniform(k2, (4 * h, h), jnp.float32, -bound, bound),
            "b_ih": jax.random.uniform(k3, (4 * h,), jnp.float32, -bound, bound),
            "b_hh": jax.random.uniform(k4, (4 * h,), jnp.float32, -bound, bound),
        })
    key, k1, k2 = jax.random.split(key, 3)
    bound = 1.0 / math.sqrt(128)
    params["fc_w"] = jax.random.uniform(k1, (num_class, 128), jnp.float32, -bound, bound)
    params["fc_b"] = jax.random.uniform(k2, (num_class,), jnp.float32, -bound, bound)
    return params


# ---------------------------------------------------------------------------
# pure-JAX reference for verification
# ---------------------------------------------------------------------------
def lstm_layer_ref(x_tbd, w_ih, w_hh, b_ih, b_hh):
    T, B, D = x_tbd.shape
    H = w_hh.shape[1]

    def step(carry, x_t):
        h, c = carry
        gates = x_t @ w_ih.T + h @ w_hh.T + b_ih + b_hh
        i, f, g, o = jnp.split(gates, 4, axis=-1)
        c = jax.nn.sigmoid(f) * c + jax.nn.sigmoid(i) * jnp.tanh(g)
        h = jax.nn.sigmoid(o) * jnp.tanh(c)
        return (h, c), h

    init = (jnp.zeros((B, H), jnp.float32), jnp.zeros((B, H), jnp.float32))
    _, ys = jax.lax.scan(step, init, x_tbd)
    return ys


def lstm_net_ref(x_bt, params):
    x = jnp.transpose(x_bt)[:, :, None]
    for p in params["lstm"]:
        x = lstm_layer_ref(x, p["w_ih"], p["w_hh"], p["b_ih"], p["b_hh"])
    return jnp.mean(x, axis=0) @ params["fc_w"].T + params["fc_b"]


if __name__ == "__main__":
    B, T, NUM_CLASS = 2, 8, 10
    key = jax.random.PRNGKey(0)
    kx, kp = jax.random.split(key)
    x = jax.random.normal(kx, (B, T), jnp.float32)
    params = init_params(kp, NUM_CLASS)

    out = lstm_net_forward(x, params)
    out = jax.block_until_ready(out)

    ref = lstm_net_ref(x, params)
    assert out.shape == (B, NUM_CLASS)
    assert jnp.allclose(out, ref, rtol=1e-4, atol=1e-4), (out, ref)

    print("KERNEL_OK")
</pallas_src>

<mosaic_0001>
module attributes {stable_mosaic.version = 11 : i64} {
  func.func @kernel(%arg0: memref<64x8xf32, #tpu.memory_space<vmem>>, %arg1: memref<8x512xf32, #tpu.memory_space<vmem>>, %arg2: memref<128x512xf32, #tpu.memory_space<vmem>>, %arg3: memref<1x512xf32, #tpu.memory_space<vmem>>, %arg4: memref<128x512xf32, #tpu.memory_space<vmem>>, %arg5: memref<128x512xf32, #tpu.memory_space<vmem>>, %arg6: memref<1x512xf32, #tpu.memory_space<vmem>>, %arg7: memref<128x512xf32, #tpu.memory_space<vmem>>, %arg8: memref<128x512xf32, #tpu.memory_space<vmem>>, %arg9: memref<1x512xf32, #tpu.memory_space<vmem>>, %arg10: memref<128x128xf32, #tpu.memory_space<vmem>>, %arg11: memref<1x128xf32, #tpu.memory_space<vmem>>, %arg12: memref<8x128xf32, #tpu.memory_space<vmem>>, %arg13: memref<8x128xf32, #tpu.memory_space<vmem>>, %arg14: memref<8x128xf32, #tpu.memory_space<vmem>>, %arg15: memref<64x128xf32, #tpu.memory_space<vmem>>, %arg16: memref<64x512xf32, #tpu.memory_space<vmem>>) attributes {dimension_semantics = [], scalar_prefetch = 0 : i64, scratch_operands = 4 : i64, tpu.core_type = #tpu.core_type<tc>} {
    %c0 = arith.constant 0 : index
    %c0_0 = arith.constant 0 : index
    %0 = vector.load %arg0[%c0, %c0_0] : memref<64x8xf32, #tpu.memory_space<vmem>>, vector<64x8xf32>
    %c0_1 = arith.constant 0 : index
    %c0_2 = arith.constant 0 : index
    %1 = vector.load %arg1[%c0_1, %c0_2] : memref<8x512xf32, #tpu.memory_space<vmem>>, vector<8x512xf32>
    %cst = arith.constant dense<0.000000e+00> : vector<64x512xf32>
    %2 = tpu.matmul %0, %1, %cst {dimension_numbers = #tpu.dot_dimension_numbers<[1], [0], [0], [1], [0, 0, 1, 1], [], []>} : vector<64x8xf32>, vector<8x512xf32>, vector<64x512xf32> -> vector<64x512xf32>
    %c0_3 = arith.constant 0 : index
    %c0_4 = arith.constant 0 : index
    %3 = vector.load %arg3[%c0_3, %c0_4] : memref<1x512xf32, #tpu.memory_space<vmem>>, vector<1x512xf32>
    %4 = vector.broadcast %3 : vector<1x512xf32> to vector<64x512xf32>
    %5 = arith.addf %2, %4 : vector<64x512xf32>
    %c0_5 = arith.constant 0 : index
    %c0_6 = arith.constant 0 : index
    %6 = vector.load %arg16[%c0_5, %c0_6] : memref<64x512xf32, #tpu.memory_space<vmem>>, vector<64x512xf32>
    tpu.vector_store %arg16[%c0_5, %c0_6], %5 {strides = array<i32>} : memref<64x512xf32, #tpu.memory_space<vmem>>, vector<64x512xf32>,
    %cst_7 = arith.constant 0.000000e+00 : f32
    %7 = vector.broadcast %cst_7 : f32 to vector<8x128xf32>
    %c0_8 = arith.constant 0 : index
    %c0_9 = arith.constant 0 : index
    %8 = vector.load %arg13[%c0_8, %c0_9] : memref<8x128xf32, #tpu.memory_space<vmem>>, vector<8x128xf32>
    tpu.vector_store %arg13[%c0_8, %c0_9], %7 {strides = array<i32>} : memref<8x128xf32, #tpu.memory_space<vmem>>, vector<8x128xf32>,
    %cst_10 = arith.constant 0.000000e+00 : f32
    %9 = vector.broadcast %cst_10 : f32 to vector<8x128xf32>
    %c0_11 = arith.constant 0 : index
    %c0_12 = arith.constant 0 : index
    %10 = vector.load %arg14[%c0_11, %c0_12] : memref<8x128xf32, #tpu.memory_space<vmem>>, vector<8x128xf32>
    tpu.vector_store %arg14[%c0_11, %c0_12], %9 {strides = array<i32>} : memref<8x128xf32, #tpu.memory_space<vmem>>, vector<8x128xf32>,
    %c0_i32 = arith.constant 0 : i32
    %c8_i32 = arith.constant 8 : i32
    %11 = arith.muli %c0_i32, %c8_i32 : i32
    %12 = tpu.assume_multiple %11, 8 : i32
    %13 = arith.index_cast %12 : i32 to index
    %c0_13 = arith.constant 0 : index
    %14 = vector.load %arg16[%13, %c0_13] : memref<64x512xf32, #tpu.memory_space<vmem>>, vector<8x512xf32>
    %c0_14 = arith.constant 0 : index
    %c0_15 = arith.constant 0 : index
    %15 = vector.load %arg13[%c0_14, %c0_15] : memref<8x128xf32, #tpu.memory_space<vmem>>, vector<8x128xf32>
    %c0_16 = arith.constant 0 : index
    %c0_17 = arith.constant 0 : index
    %16 = vector.load %arg2[%c0_16, %c0_17] : memref<128x512xf32, #tpu.memory_space<vmem>>, vector<128x512xf32>
    %cst_18 = arith.constant dense<0.000000e+00> : vector<8x512xf32>
    %17 = tpu.matmul %15, %16, %cst_18 {dimension_numbers = #tpu.dot_dimension_numbers<[1], [0], [0], [1], [0, 0, 1, 1], [], []>} : vector<8x128xf32>, vector<128x512xf32>, vector<8x512xf32> -> vector<8x512xf32>
    %18 = arith.addf %14, %17 : vector<8x512xf32>
    %19 = vector.extract_strided_slice %18 {offsets = [0, 0], sizes = [8, 384], strides = [1, 1]} : vector<8x512xf32> to vector<8x384xf32>
    %20 = arith.negf %19 : vector<8x384xf32>
    %21 = math.exp %20 : vector<8x384xf32>
    %cst_19 = arith.constant 1.000000e+00 : f32
    %22 = vector.broadcast %cst_19 : f32 to vector<8x384xf32>
    %23 = arith.addf %22, %21 : vector<8x384xf32>
    %24 = arith.divf %22, %23 : vector<8x384xf32>
    %25 = vector.extract_strided_slice %18 {offsets = [0, 384], sizes = [8, 128], strides = [1, 1]} : vector<8x512xf32> to vector<8x128xf32>
    %26 = math.tanh %25 : vector<8x128xf32>
    %27 = vector.extract_strided_slice %24 {offsets = [0, 0], sizes = [8, 128], strides = [1, 1]} : vector<8x384xf32> to vector<8x128xf32>
    %28 = vector.extract_strided_slice %24 {offsets = [0, 128], sizes = [8, 128], strides = [1, 1]} : vector<8x384xf32> to vector<8x128xf32>
    %29 = vector.extract_strided_slice %24 {offsets = [0, 256], sizes = [8, 128], strides = [1, 1]} : vector<8x384xf32> to vector<8x128xf32>
    %c0_20 = arith.constant 0 : index
    %c0_21 = arith.constant 0 : index
    %30 = vector.load %arg14[%c0_20, %c0_21] : memref<8x128xf32, #tpu.memory_space<vmem>>, vector<8x128xf32>
    %31 = arith.mulf %28, %30 : vector<8x128xf32>
    %32 = arith.mulf %27, %26 : vector<8x128xf32>
    %33 = arith.addf %31, %32 : vector<8x128xf32>
    %34 = math.tanh %33 : vector<8x128xf32>
    %35 = arith.mulf %29, %34 : vector<8x128xf32>
    %c0_22 = arith.constant 0 : index
    %c0_23 = arith.constant 0 : index
    %36 = vector.load %arg14[%c0_22, %c0_23] : memref<8x128xf32, #tpu.memory_space<vmem>>, vector<8x128xf32>
    tpu.vector_store %arg14[%c0_22, %c0_23], %33 {strides = array<i32>} : memref<8x128xf32, #tpu.memory_space<vmem>>, vector<8x128xf32>,
    %c0_24 = arith.constant 0 : index
    %c0_25 = arith.constant 0 : index
    %37 = vector.load %arg13[%c0_24, %c0_25] : memref<8x128xf32, #tpu.memory_space<vmem>>, vector<8x128xf32>
    tpu.vector_store %arg13[%c0_24, %c0_25], %35 {strides = array<i32>} : memref<8x128xf32, #tpu.memory_space<vmem>>, vector<8x128xf32>,
    %38 = arith.index_cast %12 : i32 to index
    %c0_26 = arith.constant 0 : index
    %39 = vector.load %arg15[%38, %c0_26] : memref<64x128xf32, #tpu.memory_space<vmem>>, vector<8x128xf32>
    tpu.vector_store %arg15[%38, %c0_26], %35 {strides = array<i32>} : memref<64x128xf32, #tpu.memory_space<vmem>>, vector<8x128xf32>,
    %c1_i32 = arith.constant 1 : i32
    %c8_i32_27 = arith.constant 8 : i32
    %40 = arith.muli %c1_i32, %c8_i32_27 : i32
    %41 = tpu.assume_multiple %40, 8 : i32
    %42 = arith.index_cast %41 : i32 to index
    %c0_28 = arith.constant 0 : index
    %43 = vector.load %arg16[%42, %c0_28] : memref<64x512xf32, #tpu.memory_space<vmem>>, vector<8x512xf32>
    %c0_29 = arith.constant 0 : index
    %c0_30 = arith.constant 0 : index
    %44 = vector.load %arg13[%c0_29, %c0_30] : memref<8x128xf32, #tpu.memory_space<vmem>>, vector<8x128xf32>
    %c0_31 = arith.constant 0 : index
    %c0_32 = arith.constant 0 : index
    %45 = vector.load %arg2[%c0_31, %c0_32] : memref<128x512xf32, #tpu.memory_space<vmem>>, vector<128x512xf32>
    %cst_33 = arith.constant dense<0.000000e+00> : vector<8x512xf32>
    %46 = tpu.matmul %44, %45, %cst_33 {dimension_numbers = #tpu.dot_dimension_numbers<[1], [0], [0], [1], [0, 0, 1, 1], [], []>} : vector<8x128xf32>, vector<128x512xf32>, vector<8x512xf32> -> vector<8x512xf32>
    %47 = arith.addf %43, %46 : vector<8x512xf32>
    %48 = vector.extract_strided_slice %47 {offsets = [0, 0], sizes = [8, 384], strides = [1, 1]} : vector<8x512xf32> to vector<8x384xf32>
    %49 = arith.negf %48 : vector<8x384xf32>
    %50 = math.exp %49 : vector<8x384xf32>
    %cst_34 = arith.constant 1.000000e+00 : f32
    %51 = vector.broadcast %cst_34 : f32 to vector<8x384xf32>
    %52 = arith.addf %51, %50 : vector<8x384xf32>
    %53 = arith.divf %51, %52 : vector<8x384xf32>
    %54 = vector.extract_strided_slice %47 {offsets = [0, 384], sizes = [8, 128], strides = [1, 1]} : vector<8x512xf32> to vector<8x128xf32>
    %55 = math.tanh %54 : vector<8x128xf32>
    %56 = vector.extract_strided_slice %53 {offsets = [0, 0], sizes = [8, 128], strides = [1, 1]} : vector<8x384xf32> to vector<8x128xf32>
    %57 = vector.extract_strided_slice %53 {offsets = [0, 128], sizes = [8, 128], strides = [1, 1]} : vector<8x384xf32> to vector<8x128xf32>
    %58 = vector.extract_strided_slice %53 {offsets = [0, 256], sizes = [8, 128], strides = [1, 1]} : vector<8x384xf32> to vector<8x128xf32>
    %c0_35 = arith.constant 0 : index
    %c0_36 = arith.constant 0 : index
    %59 = vector.load %arg14[%c0_35, %c0_36] : memref<8x128xf32, #tpu.memory_space<vmem>>, vector<8x128xf32>
    %60 = arith.mulf %57, %59 : vector<8x128xf32>
    %61 = arith.mulf %56, %55 : vector<8x128xf32>
    %62 = arith.addf %60, %61 : vector<8x128xf32>
    %63 = math.tanh %62 : vector<8x128xf32>
    %64 = arith.mulf %58, %63 : vector<8x128xf32>
    %c0_37 = arith.constant 0 : index
    %c0_38 = arith.constant 0 : index
    %65 = vector.load %arg14[%c0_37, %c0_38] : memref<8x128xf32, #tpu.memory_space<vmem>>, vector<8x128xf32>
    tpu.vector_store %arg14[%c0_37, %c0_38], %62 {strides = array<i32>} : memref<8x128xf32, #tpu.memory_space<vmem>>, vector<8x128xf32>,
    %c0_39 = arith.constant 0 : index
    %c0_40 = arith.constant 0 : index
    %66 = vector.load %arg13[%c0_39, %c0_40] : memref<8x128xf32, #tpu.memory_space<vmem>>, vector<8x128xf32>
    tpu.vector_store %arg13[%c0_39, %c0_40], %64 {strides = array<i32>} : memref<8x128xf32, #tpu.memory_space<vmem>>, vector<8x128xf32>,
    %67 = arith.index_cast %41 : i32 to index
    %c0_41 = arith.constant 0 : index
    %68 = vector.load %arg15[%67, %c0_41] : memref<64x128xf32, #tpu.memory_space<vmem>>, vector<8x128xf32>
    tpu.vector_store %arg15[%67, %c0_41], %64 {strides = array<i32>} : memref<64x128xf32, #tpu.memory_space<vmem>>, vector<8x128xf32>,
    %c2_i32 = arith.constant 2 : i32
    %c8_i32_42 = arith.constant 8 : i32
    %69 = arith.muli %c2_i32, %c8_i32_42 : i32
    %70 = tpu.assume_multiple %69, 8 : i32
    %71 = arith.index_cast %70 : i32 to index
    %c0_43 = arith.constant 0 : index
    %72 = vector.load %arg16[%71, %c0_43] : memref<64x512xf32, #tpu.memory_space<vmem>>, vector<8x512xf32>
    %c0_44 = arith.constant 0 : index
    %c0_45 = arith.constant 0 : index
    %73 = vector.load %arg13[%c0_44, %c0_45] : memref<8x128xf32, #tpu.memory_space<vmem>>, vector<8x128xf32>
    %c0_46 = arith.constant 0 : index
    %c0_47 = arith.constant 0 : index
    %74 = vector.load %arg2[%c0_46, %c0_47] : memref<128x512xf32, #tpu.memory_space<vmem>>, vector<128x512xf32>
    %cst_48 = arith.constant dense<0.000000e+00> : vector<8x512xf32>
    %75 = tpu.matmul %73, %74, %cst_48 {dimension_numbers = #tpu.dot_dimension_numbers<[1], [0], [0], [1], [0, 0, 1, 1], [], []>} : vector<8x128xf32>, vector<128x512xf32>, vector<8x512xf32> -> vector<8x512xf32>
    %76 = arith.addf %72, %75 : vector<8x512xf32>
    %77 = vector.extract_strided_slice %76 {offsets = [0, 0], sizes = [8, 384], strides = [1, 1]} : vector<8x512xf32> to vector<8x384xf32>
    %78 = arith.negf %77 : vector<8x384xf32>
    %79 = math.exp %78 : vector<8x384xf32>
    %cst_49 = arith.constant 1.000000e+00 : f32
    %80 = vector.broadcast %cst_49 : f32 to vector<8x384xf32>
    %81 = arith.addf %80, %79 : vector<8x384xf32>
    %82 = arith.divf %80, %81 : vector<8x384xf32>
    %83 = vector.extract_strided_slice %76 {offsets = [0, 384], sizes = [8, 128], strides = [1, 1]} : vector<8x512xf32> to vector<8x128xf32>
    %84 = math.tanh %83 : vector<8x128xf32>
    %85 = vector.extract_strided_slice %82 {offsets = [0, 0], sizes = [8, 128], strides = [1, 1]} : vector<8x384xf32> to vector<8x128xf32>
    %86 = vector.extract_strided_slice %82 {offsets = [0, 128], sizes = [8, 128], strides = [1, 1]} : vector<8x384xf32> to vector<8x128xf32>
    %87 = vector.extract_strided_slice %82 {offsets = [0, 256], sizes = [8, 128], strides = [1, 1]} : vector<8x384xf32> to vector<8x128xf32>
    %c0_50 = arith.constant 0 : index
    %c0_51 = arith.constant 0 : index
    %88 = vector.load %arg14[%c0_50, %c0_51] : memref<8x128xf32, #tpu.memory_space<vmem>>, vector<8x128xf32>
    %89 = arith.mulf %86, %88 : vector<8x128xf32>
    %90 = arith.mulf %85, %84 : vector<8x128xf32>
    %91 = arith.addf %89, %90 : vector<8x128xf32>
    %92 = math.tanh %91 : vector<8x128xf32>
    %93 = arith.mulf %87, %92 : vector<8x128xf32>
    %c0_52 = arith.constant 0 : index
    %c0_53 = arith.constant 0 : index
    %94 = vector.load %arg14[%c0_52, %c0_53] : memref<8x128xf32, #tpu.memory_space<vmem>>, vector<8x128xf32>
    tpu.vector_store %arg14[%c0_52, %c0_53], %91 {strides = array<i32>} : memref<8x128xf32, #tpu.memory_space<vmem>>, vector<8x128xf32>,
    %c0_54 = arith.constant 0 : index
    %c0_55 = arith.constant 0 : index
    %95 = vector.load %arg13[%c0_54, %c0_55] : memref<8x128xf32, #tpu.memory_space<vmem>>, vector<8x128xf32>
    tpu.vector_store %arg13[%c0_54, %c0_55], %93 {strides = array<i32>} : memref<8x128xf32, #tpu.memory_space<vmem>>, vector<8x128xf32>,
    %96 = arith.index_cast %70 : i32 to index
    %c0_56 = arith.constant 0 : index
    %97 = vector.load %arg15[%96, %c0_56] : memref<64x128xf32, #tpu.memory_space<vmem>>, vector<8x128xf32>
    tpu.vector_store %arg15[%96, %c0_56], %93 {strides = array<i32>} : memref<64x128xf32, #tpu.memory_space<vmem>>, vector<8x128xf32>,
    %c3_i32 = arith.constant 3 : i32
    %c8_i32_57 = arith.constant 8 : i32
    %98 = arith.muli %c3_i32, %c8_i32_57 : i32
    %99 = tpu.assume_multiple %98, 8 : i32
    %100 = arith.index_cast %99 : i32 to index
    %c0_58 = arith.constant 0 : index
    %101 = vector.load %arg16[%100, %c0_58] : memref<64x512xf32, #tpu.memory_space<vmem>>, vector<8x512xf32>
    %c0_59 = arith.constant 0 : index
    %c0_60 = arith.constant 0 : index
    %102 = vector.load %arg13[%c0_59, %c0_60] : memref<8x128xf32, #tpu.memory_space<vmem>>, vector<8x128xf32>
    %c0_61 = arith.constant 0 : index
    %c0_62 = arith.constant 0 : index
    %103 = vector.load %arg2[%c0_61, %c0_62] : memref<128x512xf32, #tpu.memory_space<vmem>>, vector<128x512xf32>
    %cst_63 = arith.constant dense<0.000000e+00> : vector<8x512xf32>
    %104 = tpu.matmul %102, %103, %cst_63 {dimension_numbers = #tpu.dot_dimension_numbers<[1], [0], [0], [1], [0, 0, 1, 1], [], []>} : vector<8x128xf32>, vector<128x512xf32>, vector<8x512xf32> -> vector<8x512xf32>
    %105 = arith.addf %101, %104 : vector<8x512xf32>
    %106 = vector.extract_strided_slice %105 {offsets = [0, 0], sizes = [8, 384], strides = [1, 1]} : vector<8x512xf32> to vector<8x384xf32>
    %107 = arith.negf %106 : vector<8x384xf32>
    %108 = math.exp %107 : vector<8x384xf32>
    %cst_64 = arith.constant 1.000000e+00 : f32
    %109 = vector.broadcast %cst_64 : f32 to vector<8x384xf32>
    %110 = arith.addf %109, %108 : vector<8x384xf32>
    %111 = arith.divf %109, %110 : vector<8x384xf32>
    %112 = vector.extract_strided_slice %105 {offsets = [0, 384], sizes = [8, 128], strides = [1, 1]} : vector<8x512xf32> to vector<8x128xf32>
    %113 = math.tanh %112 : vector<8x128xf32>
    %114 = vector.extract_strided_slice %111 {offsets = [0, 0], sizes = [8, 128], strides = [1, 1]} : vector<8x384xf32> to vector<8x128xf32>
    %115 = vector.extract_strided_slice %111 {offsets = [0, 128], sizes = [8, 128], strides = [1, 1]} : vector<8x384xf32> to vector<8x128xf32>
    %116 = vector.extract_strided_slice %111 {offsets = [0, 256], sizes = [8, 128], strides = [1, 1]} : vector<8x384xf32> to vector<8x128xf32>
    %c0_65 = arith.constant 0 : index
    %c0_66 = arith.constant 0 : index
    %117 = vector.load %arg14[%c0_65, %c0_66] : memref<8x128xf32, #tpu.memory_space<vmem>>, vector<8x128xf32>
    %118 = arith.mulf %115, %117 : vector<8x128xf32>
    %119 = arith.mulf %114, %113 : vector<8x128xf32>
    %120 = arith.addf %118, %119 : vector<8x128xf32>
    %121 = math.tanh %120 : vector<8x128xf32>
    %122 = arith.mulf %116, %121 : vector<8x128xf32>
    %c0_67 = arith.constant 0 : index
    %c0_68 = arith.constant 0 : index
    %123 = vector.load %arg14[%c0_67, %c0_68] : memref<8x128xf32, #tpu.memory_space<vmem>>, vector<8x128xf32>
    tpu.vector_store %arg14[%c0_67, %c0_68], %120 {strides = array<i32>} : memref<8x128xf32, #tpu.memory_space<vmem>>, vector<8x128xf32>,
    %c0_69 = arith.constant 0 : index
    %c0_70 = arith.constant 0 : index
    %124 = vector.load %arg13[%c0_69, %c0_70] : memref<8x128xf32, #tpu.memory_space<vmem>>, vector<8x128xf32>
    tpu.vector_store %arg13[%c0_69, %c0_70], %122 {strides = array<i32>} : memref<8x128xf32, #tpu.memory_space<vmem>>, vector<8x128xf32>,
    %125 = arith.index_cast %99 : i32 to index
    %c0_71 = arith.constant 0 : index
    %126 = vector.load %arg15[%125, %c0_71] : memref<64x128xf32, #tpu.memory_space<vmem>>, vector<8x128xf32>
    tpu.vector_store %arg15[%125, %c0_71], %122 {strides = array<i32>} : memref<64x128xf32, #tpu.memory_space<vmem>>, vector<8x128xf32>,
    %c4_i32 = arith.constant 4 : i32
    %c8_i32_72 = arith.constant 8 : i32
    %127 = arith.muli %c4_i32, %c8_i32_72 : i32
    %128 = tpu.assume_multiple %127, 8 : i32
    %129 = arith.index_cast %128 : i32 to index
    %c0_73 = arith.constant 0 : index
    %130 = vector.load %arg16[%129, %c0_73] : memref<64x512xf32, #tpu.memory_space<vmem>>, vector<8x512xf32>
    %c0_74 = arith.constant 0 : index
    %c0_75 = arith.constant 0 : index
    %131 = vector.load %arg13[%c0_74, %c0_75] : memref<8x128xf32, #tpu.memory_space<vmem>>, vector<8x128xf32>
    %c0_76 = arith.constant 0 : index
    %c0_77 = arith.constant 0 : index
    %132 = vector.load %arg2[%c0_76, %c0_77] : memref<128x512xf32, #tpu.memory_space<vmem>>, vector<128x512xf32>
    %cst_78 = arith.constant dense<0.000000e+00> : vector<8x512xf32>
    %133 = tpu.matmul %131, %132, %cst_78 {dimension_numbers = #tpu.dot_dimension_numbers<[1], [0], [0], [1], [0, 0, 1, 1], [], []>} : vector<8x128xf32>, vector<128x512xf32>, vector<8x512xf32> -> vector<8x512xf32>
    %134 = arith.addf %130, %133 : vector<8x512xf32>
    %135 = vector.extract_strided_slice %134 {offsets = [0, 0], sizes = [8, 384], strides = [1, 1]} : vector<8x512xf32> to vector<8x384xf32>
    %136 = arith.negf %135 : vector<8x384xf32>
    %137 = math.exp %136 : vector<8x384xf32>
    %cst_79 = arith.constant 1.000000e+00 : f32
    %138 = vector.broadcast %cst_79 : f32 to vector<8x384xf32>
    %139 = arith.addf %138, %137 : vector<8x384xf32>
    %140 = arith.divf %138, %139 : vector<8x384xf32>
    %141 = vector.extract_strided_slice %134 {offsets = [0, 384], sizes = [8, 128], strides = [1, 1]} : vector<8x512xf32> to vector<8x128xf32>
    %142 = math.tanh %141 : vector<8x128xf32>
    %143 = vector.extract_strided_slice %140 {offsets = [0, 0], sizes = [8, 128], strides = [1, 1]} : vector<8x384xf32> to vector<8x128xf32>
    %144 = vector.extract_strided_slice %140 {offsets = [0, 128], sizes = [8, 128], strides = [1, 1]} : vector<8x384xf32> to vector<8x128xf32>
    %145 = vector.extract_strided_slice %140 {offsets = [0, 256], sizes = [8, 128], strides = [1, 1]} : vector<8x384xf32> to vector<8x128xf32>
    %c0_80 = arith.constant 0 : index
    %c0_81 = arith.constant 0 : index
    %146 = vector.load %arg14[%c0_80, %c0_81] : memref<8x128xf32, #tpu.memory_space<vmem>>, vector<8x128xf32>
    %147 = arith.mulf %144, %146 : vector<8x128xf32>
    %148 = arith.mulf %143, %142 : vector<8x128xf32>
    %149 = arith.addf %147, %148 : vector<8x128xf32>
    %150 = math.tanh %149 : vector<8x128xf32>
    %151 = arith.mulf %145, %150 : vector<8x128xf32>
    %c0_82 = arith.constant 0 : index
    %c0_83 = arith.constant 0 : index
    %152 = vector.load %arg14[%c0_82, %c0_83] : memref<8x128xf32, #tpu.memory_space<vmem>>, vector<8x128xf32>
    tpu.vector_store %arg14[%c0_82, %c0_83], %149 {strides = array<i32>} : memref<8x128xf32, #tpu.memory_space<vmem>>, vector<8x128xf32>,
    %c0_84 = arith.constant 0 : index
    %c0_85 = arith.constant 0 : index
    %153 = vector.load %arg13[%c0_84, %c0_85] : memref<8x128xf32, #tpu.memory_space<vmem>>, vector<8x128xf32>
    tpu.vector_store %arg13[%c0_84, %c0_85], %151 {strides = array<i32>} : memref<8x128xf32, #tpu.memory_space<vmem>>, vector<8x128xf32>,
    %154 = arith.index_cast %128 : i32 to index
    %c0_86 = arith.constant 0 : index
    %155 = vector.load %arg15[%154, %c0_86] : memref<64x128xf32, #tpu.memory_space<vmem>>, vector<8x128xf32>
    tpu.vector_store %arg15[%154, %c0_86], %151 {strides = array<i32>} : memref<64x128xf32, #tpu.memory_space<vmem>>, vector<8x128xf32>,
    %c5_i32 = arith.constant 5 : i32
    %c8_i32_87 = arith.constant 8 : i32
    %156 = arith.muli %c5_i32, %c8_i32_87 : i32
    %157 = tpu.assume_multiple %156, 8 : i32
    %158 = arith.index_cast %157 : i32 to index
    %c0_88 = arith.constant 0 : index
    %159 = vector.load %arg16[%158, %c0_88] : memref<64x512xf32, #tpu.memory_space<vmem>>, vector<8x512xf32>
    %c0_89 = arith.constant 0 : index
    %c0_90 = arith.constant 0 : index
    %160 = vector.load %arg13[%c0_89, %c0_90] : memref<8x128xf32, #tpu.memory_space<vmem>>, vector<8x128xf32>
    %c0_91 = arith.constant 0 : index
    %c0_92 = arith.constant 0 : index
    %161 = vector.load %arg2[%c0_91, %c0_92] : memref<128x512xf32, #tpu.memory_space<vmem>>, vector<128x512xf32>
    %cst_93 = arith.constant dense<0.000000e+00> : vector<8x512xf32>
    %162 = tpu.matmul %160, %161, %cst_93 {dimension_numbers = #tpu.dot_dimension_numbers<[1], [0], [0], [1], [0, 0, 1, 1], [], []>} : vector<8x128xf32>, vector<128x512xf32>, vector<8x512xf32> -> vector<8x512xf32>
    %163 = arith.addf %159, %162 : vector<8x512xf32>
    %164 = vector.extract_strided_slice %163 {offsets = [0, 0], sizes = [8, 384], strides = [1, 1]} : vector<8x512xf32> to vector<8x384xf32>
    %165 = arith.negf %164 : vector<8x384xf32>
    %166 = math.exp %165 : vector<8x384xf32>
    %cst_94 = arith.constant 1.000000e+00 : f32
    %167 = vector.broadcast %cst_94 : f32 to vector<8x384xf32>
    %168 = arith.addf %167, %166 : vector<8x384xf32>
    %169 = arith.divf %167, %168 : vector<8x384xf32>
    %170 = vector.extract_strided_slice %163 {offsets = [0, 384], sizes = [8, 128], strides = [1, 1]} : vector<8x512xf32> to vector<8x128xf32>
    %171 = math.tanh %170 : vector<8x128xf32>
    %172 = vector.extract_strided_slice %169 {offsets = [0, 0], sizes = [8, 128], strides = [1, 1]} : vector<8x384xf32> to vector<8x128xf32>
    %173 = vector.extract_strided_slice %169 {offsets = [0, 128], sizes = [8, 128], strides = [1, 1]} : vector<8x384xf32> to vector<8x128xf32>
    %174 = vector.extract_strided_slice %169 {offsets = [0, 256], sizes = [8, 128], strides = [1, 1]} : vector<8x384xf32> to vector<8x128xf32>
    %c0_95 = arith.constant 0 : index
    %c0_96 = arith.constant 0 : index
    %175 = vector.load %arg14[%c0_95, %c0_96] : memref<8x128xf32, #tpu.memory_space<vmem>>, vector<8x128xf32>
    %176 = arith.mulf %173, %175 : vector<8x128xf32>
    %177 = arith.mulf %172, %171 : vector<8x128xf32>
    %178 = arith.addf %176, %177 : vector<8x128xf32>
    %179 = math.tanh %178 : vector<8x128xf32>
    %180 = arith.mulf %174, %179 : vector<8x128xf32>
    %c0_97 = arith.constant 0 : index
    %c0_98 = arith.constant 0 : index
    %181 = vector.load %arg14[%c0_97, %c0_98] : memref<8x128xf32, #tpu.memory_space<vmem>>, vector<8x128xf32>
    tpu.vector_store %arg14[%c0_97, %c0_98], %178 {strides = array<i32>} : memref<8x128xf32, #tpu.memory_space<vmem>>, vector<8x128xf32>,
    %c0_99 = arith.constant 0 : index
    %c0_100 = arith.constant 0 : index
    %182 = vector.load %arg13[%c0_99, %c0_100] : memref<8x128xf32, #tpu.memory_space<vmem>>, vector<8x128xf32>
    tpu.vector_store %arg13[%c0_99, %c0_100], %180 {strides = array<i32>} : memref<8x128xf32, #tpu.memory_space<vmem>>, vector<8x128xf32>,
    %183 = arith.index_cast %157 : i32 to index
    %c0_101 = arith.constant 0 : index
    %184 = vector.load %arg15[%183, %c0_101] : memref<64x128xf32, #tpu.memory_space<vmem>>, vector<8x128xf32>
    tpu.vector_store %arg15[%183, %c0_101], %180 {strides = array<i32>} : memref<64x128xf32, #tpu.memory_space<vmem>>, vector<8x128xf32>,
    %c6_i32 = arith.constant 6 : i32
    %c8_i32_102 = arith.constant 8 : i32
    %185 = arith.muli %c6_i32, %c8_i32_102 : i32
    %186 = tpu.assume_multiple %185, 8 : i32
    %187 = arith.index_cast %186 : i32 to index
    %c0_103 = arith.constant 0 : index
    %188 = vector.load %arg16[%187, %c0_103] : memref<64x512xf32, #tpu.memory_space<vmem>>, vector<8x512xf32>
    %c0_104 = arith.constant 0 : index
    %c0_105 = arith.constant 0 : index
    %189 = vector.load %arg13[%c0_104, %c0_105] : memref<8x128xf32, #tpu.memory_space<vmem>>, vector<8x128xf32>
    %c0_106 = arith.constant 0 : index
    %c0_107 = arith.constant 0 : index
    %190 = vector.load %arg2[%c0_106, %c0_107] : memref<128x512xf32, #tpu.memory_space<vmem>>, vector<128x512xf32>
    %cst_108 = arith.constant dense<0.000000e+00> : vector<8x512xf32>
    %191 = tpu.matmul %189, %190, %cst_108 {dimension_numbers = #tpu.dot_dimension_numbers<[1], [0], [0], [1], [0, 0, 1, 1], [], []>} : vector<8x128xf32>, vector<128x512xf32>, vector<8x512xf32> -> vector<8x512xf32>
    %192 = arith.addf %188, %191 : vector<8x512xf32>
    %193 = vector.extract_strided_slice %192 {offsets = [0, 0], sizes = [8, 384], strides = [1, 1]} : vector<8x512xf32> to vector<8x384xf32>
    %194 = arith.negf %193 : vector<8x384xf32>
    %195 = math.exp %194 : vector<8x384xf32>
    %cst_109 = arith.constant 1.000000e+00 : f32
    %196 = vector.broadcast %cst_109 : f32 to vector<8x384xf32>
    %197 = arith.addf %196, %195 : vector<8x384xf32>
    %198 = arith.divf %196, %197 : vector<8x384xf32>
    %199 = vector.extract_strided_slice %192 {offsets = [0, 384], sizes = [8, 128], strides = [1, 1]} : vector<8x512xf32> to vector<8x128xf32>
    %200 = math.tanh %199 : vector<8x128xf32>
    %201 = vector.extract_strided_slice %198 {offsets = [0, 0], sizes = [8, 128], strides = [1, 1]} : vector<8x384xf32> to vector<8x128xf32>
    %202 = vector.extract_strided_slice %198 {offsets = [0, 128], sizes = [8, 128], strides = [1, 1]} : vector<8x384xf32> to vector<8x128xf32>
    %203 = vector.extract_strided_slice %198 {offsets = [0, 256], sizes = [8, 128], strides = [1, 1]} : vector<8x384xf32> to vector<8x128xf32>
    %c0_110 = arith.constant 0 : index
    %c0_111 = arith.constant 0 : index
    %204 = vector.load %arg14[%c0_110, %c0_111] : memref<8x128xf32, #tpu.memory_space<vmem>>, vector<8x128xf32>
    %205 = arith.mulf %202, %204 : vector<8x128xf32>
    %206 = arith.mulf %201, %200 : vector<8x128xf32>
    %207 = arith.addf %205, %206 : vector<8x128xf32>
    %208 = math.tanh %207 : vector<8x128xf32>
    %209 = arith.mulf %203, %208 : vector<8x128xf32>
    %c0_112 = arith.constant 0 : index
    %c0_113 = arith.constant 0 : index
    %210 = vector.load %arg14[%c0_112, %c0_113] : memref<8x128xf32, #tpu.memory_space<vmem>>, vector<8x128xf32>
    tpu.vector_store %arg14[%c0_112, %c0_113], %207 {strides = array<i32>} : memref<8x128xf32, #tpu.memory_space<vmem>>, vector<8x128xf32>,
    %c0_114 = arith.constant 0 : index
    %c0_115 = arith.constant 0 : index
    %211 = vector.load %arg13[%c0_114, %c0_115] : memref<8x128xf32, #tpu.memory_space<vmem>>, vector<8x128xf32>
    tpu.vector_store %arg13[%c0_114, %c0_115], %209 {strides = array<i32>} : memref<8x128xf32, #tpu.memory_space<vmem>>, vector<8x128xf32>,
    %212 = arith.index_cast %186 : i32 to index
    %c0_116 = arith.constant 0 : index
    %213 = vector.load %arg15[%212, %c0_116] : memref<64x128xf32, #tpu.memory_space<vmem>>, vector<8x128xf32>
    tpu.vector_store %arg15[%212, %c0_116], %209 {strides = array<i32>} : memref<64x128xf32, #tpu.memory_space<vmem>>, vector<8x128xf32>,
    %c7_i32 = arith.constant 7 : i32
    %c8_i32_117 = arith.constant 8 : i32
    %214 = arith.muli %c7_i32, %c8_i32_117 : i32
    %215 = tpu.assume_multiple %214, 8 : i32
    %216 = arith.index_cast %215 : i32 to index
    %c0_118 = arith.constant 0 : index
    %217 = vector.load %arg16[%216, %c0_118] : memref<64x512xf32, #tpu.memory_space<vmem>>, vector<8x512xf32>
    %c0_119 = arith.constant 0 : index
    %c0_120 = arith.constant 0 : index
    %218 = vector.load %arg13[%c0_119, %c0_120] : memref<8x128xf32, #tpu.memory_space<vmem>>, vector<8x128xf32>
    %c0_121 = arith.constant 0 : index
    %c0_122 = arith.constant 0 : index
    %219 = vector.load %arg2[%c0_121, %c0_122] : memref<128x512xf32, #tpu.memory_space<vmem>>, vector<128x512xf32>
    %cst_123 = arith.constant dense<0.000000e+00> : vector<8x512xf32>
    %220 = tpu.matmul %218, %219, %cst_123 {dimension_numbers = #tpu.dot_dimension_numbers<[1], [0], [0], [1], [0, 0, 1, 1], [], []>} : vector<8x128xf32>, vector<128x512xf32>, vector<8x512xf32> -> vector<8x512xf32>
    %221 = arith.addf %217, %220 : vector<8x512xf32>
    %222 = vector.extract_strided_slice %221 {offsets = [0, 0], sizes = [8, 384], strides = [1, 1]} : vector<8x512xf32> to vector<8x384xf32>
    %223 = arith.negf %222 : vector<8x384xf32>
    %224 = math.exp %223 : vector<8x384xf32>
    %cst_124 = arith.constant 1.000000e+00 : f32
    %225 = vector.broadcast %cst_124 : f32 to vector<8x384xf32>
    %226 = arith.addf %225, %224 : vector<8x384xf32>
    %227 = arith.divf %225, %226 : vector<8x384xf32>
    %228 = vector.extract_strided_slice %221 {offsets = [0, 384], sizes = [8, 128], strides = [1, 1]} : vector<8x512xf32> to vector<8x128xf32>
    %229 = math.tanh %228 : vector<8x128xf32>
    %230 = vector.extract_strided_slice %227 {offsets = [0, 0], sizes = [8, 128], strides = [1, 1]} : vector<8x384xf32> to vector<8x128xf32>
    %231 = vector.extract_strided_slice %227 {offsets = [0, 128], sizes = [8, 128], strides = [1, 1]} : vector<8x384xf32> to vector<8x128xf32>
    %232 = vector.extract_strided_slice %227 {offsets = [0, 256], sizes = [8, 128], strides = [1, 1]} : vector<8x384xf32> to vector<8x128xf32>
    %c0_125 = arith.constant 0 : index
    %c0_126 = arith.constant 0 : index
    %233 = vector.load %arg14[%c0_125, %c0_126] : memref<8x128xf32, #tpu.memory_space<vmem>>, vector<8x128xf32>
    %234 = arith.mulf %231, %233 : vector<8x128xf32>
    %235 = arith.mulf %230, %229 : vector<8x128xf32>
    %236 = arith.addf %234, %235 : vector<8x128xf32>
    %237 = math.tanh %236 : vector<8x128xf32>
    %238 = arith.mulf %232, %237 : vector<8x128xf32>
    %c0_127 = arith.constant 0 : index
    %c0_128 = arith.constant 0 : index
    %239 = vector.load %arg14[%c0_127, %c0_128] : memref<8x128xf32, #tpu.memory_space<vmem>>, vector<8x128xf32>
    tpu.vector_store %arg14[%c0_127, %c0_128], %236 {strides = array<i32>} : memref<8x128xf32, #tpu.memory_space<vmem>>, vector<8x128xf32>,
    %c0_129 = arith.constant 0 : index
    %c0_130 = arith.constant 0 : index
    %240 = vector.load %arg13[%c0_129, %c0_130] : memref<8x128xf32, #tpu.memory_space<vmem>>, vector<8x128xf32>
    tpu.vector_store %arg13[%c0_129, %c0_130], %238 {strides = array<i32>} : memref<8x128xf32, #tpu.memory_space<vmem>>, vector<8x128xf32>,
    %241 = arith.index_cast %215 : i32 to index
    %c0_131 = arith.constant 0 : index
    %242 = vector.load %arg15[%241, %c0_131] : memref<64x128xf32, #tpu.memory_space<vmem>>, vector<8x128xf32>
    tpu.vector_store %arg15[%241, %c0_131], %238 {strides = array<i32>} : memref<64x128xf32, #tpu.memory_space<vmem>>, vector<8x128xf32>,
    %c8_i32_132 = arith.constant 8 : i32
    %c0_133 = arith.constant 0 : index
    %c0_134 = arith.constant 0 : index
    %243 = vector.load %arg15[%c0_133, %c0_134] : memref<64x128xf32, #tpu.memory_space<vmem>>, vector<64x128xf32>
    %c0_135 = arith.constant 0 : index
    %c0_136 = arith.constant 0 : index
    %244 = vector.load %arg4[%c0_135, %c0_136] : memref<128x512xf32, #tpu.memory_space<vmem>>, vector<128x512xf32>
    %cst_137 = arith.constant dense<0.000000e+00> : vector<64x512xf32>
    %245 = tpu.matmul %243, %244, %cst_137 {dimension_numbers = #tpu.dot_dimension_numbers<[1], [0], [0], [1], [0, 0, 1, 1], [], []>} : vector<64x128xf32>, vector<128x512xf32>, vector<64x512xf32> -> vector<64x512xf32>
    %c0_138 = arith.constant 0 : index
    %c0_139 = arith.constant 0 : index
    %246 = vector.load %arg6[%c0_138, %c0_139] : memref<1x512xf32, #tpu.memory_space<vmem>>, vector<1x512xf32>
    %247 = vector.broadcast %246 : vector<1x512xf32> to vector<64x512xf32>
    %248 = arith.addf %245, %247 : vector<64x512xf32>
    %c0_140 = arith.constant 0 : index
    %c0_141 = arith.constant 0 : index
    %249 = vector.load %arg16[%c0_140, %c0_141] : memref<64x512xf32, #tpu.memory_space<vmem>>, vector<64x512xf32>
    tpu.vector_store %arg16[%c0_140, %c0_141], %248 {strides = array<i32>} : memref<64x512xf32, #tpu.memory_space<vmem>>, vector<64x512xf32>,
    %cst_142 = arith.constant 0.000000e+00 : f32
    %250 = vector.broadcast %cst_142 : f32 to vector<8x128xf32>
    %c0_143 = arith.constant 0 : index
    %c0_144 = arith.constant 0 : index
    %251 = vector.load %arg13[%c0_143, %c0_144] : memref<8x128xf32, #tpu.memory_space<vmem>>, vector<8x128xf32>
    tpu.vector_store %arg13[%c0_143, %c0_144], %250 {strides = array<i32>} : memref<8x128xf32, #tpu.memory_space<vmem>>, vector<8x128xf32>,
    %cst_145 = arith.constant 0.000000e+00 : f32
    %252 = vector.broadcast %cst_145 : f32 to vector<8x128xf32>
    %c0_146 = arith.constant 0 : index
    %c0_147 = arith.constant 0 : index
    %253 = vector.load %arg14[%c0_146, %c0_147] : memref<8x128xf32, #tpu.memory_space<vmem>>, vector<8x128xf32>
    tpu.vector_store %arg14[%c0_146, %c0_147], %252 {strides = array<i32>} : memref<8x128xf32, #tpu.memory_space<vmem>>, vector<8x128xf32>,
    %c0_i32_148 = arith.constant 0 : i32
    %c8_i32_149 = arith.constant 8 : i32
    %254 = arith.muli %c0_i32_148, %c8_i32_149 : i32
    %255 = tpu.assume_multiple %254, 8 : i32
    %256 = arith.index_cast %255 : i32 to index
    %c0_150 = arith.constant 0 : index
    %257 = vector.load %arg16[%256, %c0_150] : memref<64x512xf32, #tpu.memory_space<vmem>>, vector<8x512xf32>
    %c0_151 = arith.constant 0 : index
    %c0_152 = arith.constant 0 : index
    %258 = vector.load %arg13[%c0_151, %c0_152] : memref<8x128xf32, #tpu.memory_space<vmem>>, vector<8x128xf32>
    %c0_153 = arith.constant 0 : index
    %c0_154 = arith.constant 0 : index
    %259 = vector.load %arg5[%c0_153, %c0_154] : memref<128x512xf32, #tpu.memory_space<vmem>>, vector<128x512xf32>
    %cst_155 = arith.constant dense<0.000000e+00> : vector<8x512xf32>
    %260 = tpu.matmul %258, %259, %cst_155 {dimension_numbers = #tpu.dot_dimension_numbers<[1], [0], [0], [1], [0, 0, 1, 1], [], []>} : vector<8x128xf32>, vector<128x512xf32>, vector<8x512xf32> -> vector<8x512xf32>
    %261 = arith.addf %257, %260 : vector<8x512xf32>
    %262 = vector.extract_strided_slice %261 {offsets = [0, 0], sizes = [8, 384], strides = [1, 1]} : vector<8x512xf32> to vector<8x384xf32>
    %263 = arith.negf %262 : vector<8x384xf32>
    %264 = math.exp %263 : vector<8x384xf32>
    %cst_156 = arith.constant 1.000000e+00 : f32
    %265 = vector.broadcast %cst_156 : f32 to vector<8x384xf32>
    %266 = arith.addf %265, %264 : vector<8x384xf32>
    %267 = arith.divf %265, %266 : vector<8x384xf32>
    %268 = vector.extract_strided_slice %261 {offsets = [0, 384], sizes = [8, 128], strides = [1, 1]} : vector<8x512xf32> to vector<8x128xf32>
    %269 = math.tanh %268 : vector<8x128xf32>
    %270 = vector.extract_strided_slice %267 {offsets = [0, 0], sizes = [8, 128], strides = [1, 1]} : vector<8x384xf32> to vector<8x128xf32>
    %271 = vector.extract_strided_slice %267 {offsets = [0, 128], sizes = [8, 128], strides = [1, 1]} : vector<8x384xf32> to vector<8x128xf32>
    %272 = vector.extract_strided_slice %267 {offsets = [0, 256], sizes = [8, 128], strides = [1, 1]} : vector<8x384xf32> to vector<8x128xf32>
    %c0_157 = arith.constant 0 : index
    %c0_158 = arith.constant 0 : index
    %273 = vector.load %arg14[%c0_157, %c0_158] : memref<8x128xf32, #tpu.memory_space<vmem>>, vector<8x128xf32>
    %274 = arith.mulf %271, %273 : vector<8x128xf32>
    %275 = arith.mulf %270, %269 : vector<8x128xf32>
    %276 = arith.addf %274, %275 : vector<8x128xf32>
    %277 = math.tanh %276 : vector<8x128xf32>
    %278 = arith.mulf %272, %277 : vector<8x128xf32>
    %c0_159 = arith.constant 0 : index
    %c0_160 = arith.constant 0 : index
    %279 = vector.load %arg14[%c0_159, %c0_160] : memref<8x128xf32, #tpu.memory_space<vmem>>, vector<8x128xf32>
    tpu.vector_store %arg14[%c0_159, %c0_160], %276 {strides = array<i32>} : memref<8x128xf32, #tpu.memory_space<vmem>>, vector<8x128xf32>,
    %c0_161 = arith.constant 0 : index
    %c0_162 = arith.constant 0 : index
    %280 = vector.load %arg13[%c0_161, %c0_162] : memref<8x128xf32, #tpu.memory_space<vmem>>, vector<8x128xf32>
    tpu.vector_store %arg13[%c0_161, %c0_162], %278 {strides = array<i32>} : memref<8x128xf32, #tpu.memory_space<vmem>>, vector<8x128xf32>,
    %281 = arith.index_cast %255 : i32 to index
    %c0_163 = arith.constant 0 : index
    %282 = vector.load %arg15[%281, %c0_163] : memref<64x128xf32, #tpu.memory_space<vmem>>, vector<8x128xf32>
    tpu.vector_store %arg15[%281, %c0_163], %278 {strides = array<i32>} : memref<64x128xf32, #tpu.memory_space<vmem>>, vector<8x128xf32>,
    %c1_i32_164 = arith.constant 1 : i32
    %c8_i32_165 = arith.constant 8 : i32
    %283 = arith.muli %c1_i32_164, %c8_i32_165 : i32
    %284 = tpu.assume_multiple %283, 8 : i32
    %285 = arith.index_cast %284 : i32 to index
    %c0_166 = arith.constant 0 : index
    %286 = vector.load %arg16[%285, %c0_166] : memref<64x512xf32, #tpu.memory_space<vmem>>, vector<8x512xf32>
    %c0_167 = arith.constant 0 : index
    %c0_168 = arith.constant 0 : index
    %287 = vector.load %arg13[%c0_167, %c0_168] : memref<8x128xf32, #tpu.memory_space<vmem>>, vector<8x128xf32>
    %c0_169 = arith.constant 0 : index
    %c0_170 = arith.constant 0 : index
    %288 = vector.load %arg5[%c0_169, %c0_170] : memref<128x512xf32, #tpu.memory_space<vmem>>, vector<128x512xf32>
    %cst_171 = arith.constant dense<0.000000e+00> : vector<8x512xf32>
    %289 = tpu.matmul %287, %288, %cst_171 {dimension_numbers = #tpu.dot_dimension_numbers<[1], [0], [0], [1], [0, 0, 1, 1], [], []>} : vector<8x128xf32>, vector<128x512xf32>, vector<8x512xf32> -> vector<8x512xf32>
    %290 = arith.addf %286, %289 : vector<8x512xf32>
    %291 = vector.extract_strided_slice %290 {offsets = [0, 0], sizes = [8, 384], strides = [1, 1]} : vector<8x512xf32> to vector<8x384xf32>
    %292 = arith.negf %291 : vector<8x384xf32>
    %293 = math.exp %292 : vector<8x384xf32>
    %cst_172 = arith.constant 1.000000e+00 : f32
    %294 = vector.broadcast %cst_172 : f32 to vector<8x384xf32>
    %295 = arith.addf %294, %293 : vector<8x384xf32>
    %296 = arith.divf %294, %295 : vector<8x384xf32>
    %297 = vector.extract_strided_slice %290 {offsets = [0, 384], sizes = [8, 128], strides = [1, 1]} : vector<8x512xf32> to vector<8x128xf32>
    %298 = math.tanh %297 : vector<8x128xf32>
    %299 = vector.extract_strided_slice %296 {offsets = [0, 0], sizes = [8, 128], strides = [1, 1]} : vector<8x384xf32> to vector<8x128xf32>
    %300 = vector.extract_strided_slice %296 {offsets = [0, 128], sizes = [8, 128], strides = [1, 1]} : vector<8x384xf32> to vector<8x128xf32>
    %301 = vector.extract_strided_slice %296 {offsets = [0, 256], sizes = [8, 128], strides = [1, 1]} : vector<8x384xf32> to vector<8x128xf32>
    %c0_173 = arith.constant 0 : index
    %c0_174 = arith.constant 0 : index
    %302 = vector.load %arg14[%c0_173, %c0_174] : memref<8x128xf32, #tpu.memory_space<vmem>>, vector<8x128xf32>
    %303 = arith.mulf %300, %302 : vector<8x128xf32>
    %304 = arith.mulf %299, %298 : vector<8x128xf32>
    %305 = arith.addf %303, %304 : vector<8x128xf32>
    %306 = math.tanh %305 : vector<8x128xf32>
    %307 = arith.mulf %301, %306 : vector<8x128xf32>
    %c0_175 = arith.constant 0 : index
    %c0_176 = arith.constant 0 : index
    %308 = vector.load %arg14[%c0_175, %c0_176] : memref<8x128xf32, #tpu.memory_space<vmem>>, vector<8x128xf32>
    tpu.vector_store %arg14[%c0_175, %c0_176], %305 {strides = array<i32>} : memref<8x128xf32, #tpu.memory_space<vmem>>, vector<8x128xf32>,
    %c0_177 = arith.constant 0 : index
    %c0_178 = arith.constant 0 : index
    %309 = vector.load %arg13[%c0_177, %c0_178] : memref<8x128xf32, #tpu.memory_space<vmem>>, vector<8x128xf32>
    tpu.vector_store %arg13[%c0_177, %c0_178], %307 {strides = array<i32>} : memref<8x128xf32, #tpu.memory_space<vmem>>, vector<8x128xf32>,
    %310 = arith.index_cast %284 : i32 to index
    %c0_179 = arith.constant 0 : index
    %311 = vector.load %arg15[%310, %c0_179] : memref<64x128xf32, #tpu.memory_space<vmem>>, vector<8x128xf32>
    tpu.vector_store %arg15[%310, %c0_179], %307 {strides = array<i32>} : memref<64x128xf32, #tpu.memory_space<vmem>>, vector<8x128xf32>,
    %c2_i32_180 = arith.constant 2 : i32
    %c8_i32_181 = arith.constant 8 : i32
    %312 = arith.muli %c2_i32_180, %c8_i32_181 : i32
    %313 = tpu.assume_multiple %312, 8 : i32
    %314 = arith.index_cast %313 : i32 to index
    %c0_182 = arith.constant 0 : index
    %315 = vector.load %arg16[%314, %c0_182] : memref<64x512xf32, #tpu.memory_space<vmem>>, vector<8x512xf32>
    %c0_183 = arith.constant 0 : index
    %c0_184 = arith.constant 0 : index
    %316 = vector.load %arg13[%c0_183, %c0_184] : memref<8x128xf32, #tpu.memory_space<vmem>>, vector<8x128xf32>
    %c0_185 = arith.constant 0 : index
    %c0_186 = arith.constant 0 : index
    %317 = vector.load %arg5[%c0_185, %c0_186] : memref<128x512xf32, #tpu.memory_space<vmem>>, vector<128x512xf32>
    %cst_187 = arith.constant dense<0.000000e+00> : vector<8x512xf32>
    %318 = tpu.matmul %316, %317, %cst_187 {dimension_numbers = #tpu.dot_dimension_numbers<[1], [0], [0], [1], [0, 0, 1, 1], [], []>} : vector<8x128xf32>, vector<128x512xf32>, vector<8x512xf32> -> vector<8x512xf32>
    %319 = arith.addf %315, %318 : vector<8x512xf32>
    %320 = vector.extract_strided_slice %319 {offsets = [0, 0], sizes = [8, 384], strides = [1, 1]} : vector<8x512xf32> to vector<8x384xf32>
    %321 = arith.negf %320 : vector<8x384xf32>
    %322 = math.exp %321 : vector<8x384xf32>
    %cst_188 = arith.constant 1.000000e+00 : f32
    %323 = vector.broadcast %cst_188 : f32 to vector<8x384xf32>
    %324 = arith.addf %323, %322 : vector<8x384xf32>
    %325 = arith.divf %323, %324 : vector<8x384xf32>
    %326 = vector.extract_strided_slice %319 {offsets = [0, 384], sizes = [8, 128], strides = [1, 1]} : vector<8x512xf32> to vector<8x128xf32>
    %327 = math.tanh %326 : vector<8x128xf32>
    %328 = vector.extract_strided_slice %325 {offsets = [0, 0], sizes = [8, 128], strides = [1, 1]} : vector<8x384xf32> to vector<8x128xf32>
    %329 = vector.extract_strided_slice %325 {offsets = [0, 128], sizes = [8, 128], strides = [1, 1]} : vector<8x384xf32> to vector<8x128xf32>
    %330 = vector.extract_strided_slice %325 {offsets = [0, 256], sizes = [8, 128], strides = [1, 1]} : vector<8x384xf32> to vector<8x128xf32>
    %c0_189 = arith.constant 0 : index
    %c0_190 = arith.constant 0 : index
    %331 = vector.load %arg14[%c0_189, %c0_190] : memref<8x128xf32, #tpu.memory_space<vmem>>, vector<8x128xf32>
    %332 = arith.mulf %329, %331 : vector<8x128xf32>
    %333 = arith.mulf %328, %327 : vector<8x128xf32>
    %334 = arith.addf %332, %333 : vector<8x128xf32>
    %335 = math.tanh %334 : vector<8x128xf32>
    %336 = arith.mulf %330, %335 : vector<8x128xf32>
    %c0_191 = arith.constant 0 : index
    %c0_192 = arith.constant 0 : index
    %337 = vector.load %arg14[%c0_191, %c0_192] : memref<8x128xf32, #tpu.memory_space<vmem>>, vector<8x128xf32>
    tpu.vector_store %arg14[%c0_191, %c0_192], %334 {strides = array<i32>} : memref<8x128xf32, #tpu.memory_space<vmem>>, vector<8x128xf32>,
    %c0_193 = arith.constant 0 : index
    %c0_194 = arith.constant 0 : index
    %338 = vector.load %arg13[%c0_193, %c0_194] : memref<8x128xf32, #tpu.memory_space<vmem>>, vector<8x128xf32>
    tpu.vector_store %arg13[%c0_193, %c0_194], %336 {strides = array<i32>} : memref<8x128xf32, #tpu.memory_space<vmem>>, vector<8x128xf32>,
    %339 = arith.index_cast %313 : i32 to index
    %c0_195 = arith.constant 0 : index
    %340 = vector.load %arg15[%339, %c0_195] : memref<64x128xf32, #tpu.memory_space<vmem>>, vector<8x128xf32>
    tpu.vector_store %arg15[%339, %c0_195], %336 {strides = array<i32>} : memref<64x128xf32, #tpu.memory_space<vmem>>, vector<8x128xf32>,
    %c3_i32_196 = arith.constant 3 : i32
    %c8_i32_197 = arith.constant 8 : i32
    %341 = arith.muli %c3_i32_196, %c8_i32_197 : i32
    %342 = tpu.assume_multiple %341, 8 : i32
    %343 = arith.index_cast %342 : i32 to index
    %c0_198 = arith.constant 0 : index
    %344 = vector.load %arg16[%343, %c0_198] : memref<64x512xf32, #tpu.memory_space<vmem>>, vector<8x512xf32>
    %c0_199 = arith.constant 0 : index
    %c0_200 = arith.constant 0 : index
    %345 = vector.load %arg13[%c0_199, %c0_200] : memref<8x128xf32, #tpu.memory_space<vmem>>, vector<8x128xf32>
    %c0_201 = arith.constant 0 : index
    %c0_202 = arith.constant 0 : index
    %346 = vector.load %arg5[%c0_201, %c0_202] : memref<128x512xf32, #tpu.memory_space<vmem>>, vector<128x512xf32>
    %cst_203 = arith.constant dense<0.000000e+00> : vector<8x512xf32>
    %347 = tpu.matmul %345, %346, %cst_203 {dimension_numbers = #tpu.dot_dimension_numbers<[1], [0], [0], [1], [0, 0, 1, 1], [], []>} : vector<8x128xf32>, vector<128x512xf32>, vector<8x512xf32> -> vector<8x512xf32>
    %348 = arith.addf %344, %347 : vector<8x512xf32>
    %349 = vector.extract_strided_slice %348 {offsets = [0, 0], sizes = [8, 384], strides = [1, 1]} : vector<8x512xf32> to vector<8x384xf32>
    %350 = arith.negf %349 : vector<8x384xf32>
    %351 = math.exp %350 : vector<8x384xf32>
    %cst_204 = arith.constant 1.000000e+00 : f32
    %352 = vector.broadcast %cst_204 : f32 to vector<8x384xf32>
    %353 = arith.addf %352, %351 : vector<8x384xf32>
    %354 = arith.divf %352, %353 : vector<8x384xf32>
    %355 = vector.extract_strided_slice %348 {offsets = [0, 384], sizes = [8, 128], strides = [1, 1]} : vector<8x512xf32> to vector<8x128xf32>
    %356 = math.tanh %355 : vector<8x128xf32>
    %357 = vector.extract_strided_slice %354 {offsets = [0, 0], sizes = [8, 128], strides = [1, 1]} : vector<8x384xf32> to vector<8x128xf32>
    %358 = vector.extract_strided_slice %354 {offsets = [0, 128], sizes = [8, 128], strides = [1, 1]} : vector<8x384xf32> to vector<8x128xf32>
    %359 = vector.extract_strided_slice %354 {offsets = [0, 256], sizes = [8, 128], strides = [1, 1]} : vector<8x384xf32> to vector<8x128xf32>
    %c0_205 = arith.constant 0 : index
    %c0_206 = arith.constant 0 : index
    %360 = vector.load %arg14[%c0_205, %c0_206] : memref<8x128xf32, #tpu.memory_space<vmem>>, vector<8x128xf32>
    %361 = arith.mulf %358, %360 : vector<8x128xf32>
    %362 = arith.mulf %357, %356 : vector<8x128xf32>
    %363 = arith.addf %361, %362 : vector<8x128xf32>
    %364 = math.tanh %363 : vector<8x128xf32>
    %365 = arith.mulf %359, %364 : vector<8x128xf32>
    %c0_207 = arith.constant 0 : index
    %c0_208 = arith.constant 0 : index
    %366 = vector.load %arg14[%c0_207, %c0_208] : memref<8x128xf32, #tpu.memory_space<vmem>>, vector<8x128xf32>
    tpu.vector_store %arg14[%c0_207, %c0_208], %363 {strides = array<i32>} : memref<8x128xf32, #tpu.memory_space<vmem>>, vector<8x128xf32>,
    %c0_209 = arith.constant 0 : index
    %c0_210 = arith.constant 0 : index
    %367 = vector.load %arg13[%c0_209, %c0_210] : memref<8x128xf32, #tpu.memory_space<vmem>>, vector<8x128xf32>
    tpu.vector_store %arg13[%c0_209, %c0_210], %365 {strides = array<i32>} : memref<8x128xf32, #tpu.memory_space<vmem>>, vector<8x128xf32>,
    %368 = arith.index_cast %342 : i32 to index
    %c0_211 = arith.constant 0 : index
    %369 = vector.load %arg15[%368, %c0_211] : memref<64x128xf32, #tpu.memory_space<vmem>>, vector<8x128xf32>
    tpu.vector_store %arg15[%368, %c0_211], %365 {strides = array<i32>} : memref<64x128xf32, #tpu.memory_space<vmem>>, vector<8x128xf32>,
    %c4_i32_212 = arith.constant 4 : i32
    %c8_i32_213 = arith.constant 8 : i32
    %370 = arith.muli %c4_i32_212, %c8_i32_213 : i32
    %371 = tpu.assume_multiple %370, 8 : i32
    %372 = arith.index_cast %371 : i32 to index
    %c0_214 = arith.constant 0 : index
    %373 = vector.load %arg16[%372, %c0_214] : memref<64x512xf32, #tpu.memory_space<vmem>>, vector<8x512xf32>
    %c0_215 = arith.constant 0 : index
    %c0_216 = arith.constant 0 : index
    %374 = vector.load %arg13[%c0_215, %c0_216] : memref<8x128xf32, #tpu.memory_space<vmem>>, vector<8x128xf32>
    %c0_217 = arith.constant 0 : index
    %c0_218 = arith.constant 0 : index
    %375 = vector.load %arg5[%c0_217, %c0_218] : memref<128x512xf32, #tpu.memory_space<vmem>>, vector<128x512xf32>
    %cst_219 = arith.constant dense<0.000000e+00> : vector<8x512xf32>
    %376 = tpu.matmul %374, %375, %cst_219 {dimension_numbers = #tpu.dot_dimension_numbers<[1], [0], [0], [1], [0, 0, 1, 1], [], []>} : vector<8x128xf32>, vector<128x512xf32>, vector<8x512xf32> -> vector<8x512xf32>
    %377 = arith.addf %373, %376 : vector<8x512xf32>
    %378 = vector.extract_strided_slice %377 {offsets = [0, 0], sizes = [8, 384], strides = [1, 1]} : vector<8x512xf32> to vector<8x384xf32>
    %379 = arith.negf %378 : vector<8x384xf32>
    %380 = math.exp %379 : vector<8x384xf32>
    %cst_220 = arith.constant 1.000000e+00 : f32
    %381 = vector.broadcast %cst_220 : f32 to vector<8x384xf32>
    %382 = arith.addf %381, %380 : vector<8x384xf32>
    %383 = arith.divf %381, %382 : vector<8x384xf32>
    %384 = vector.extract_strided_slice %377 {offsets = [0, 384], sizes = [8, 128], strides = [1, 1]} : vector<8x512xf32> to vector<8x128xf32>
    %385 = math.tanh %384 : vector<8x128xf32>
    %386 = vector.extract_strided_slice %383 {offsets = [0, 0], sizes = [8, 128], strides = [1, 1]} : vector<8x384xf32> to vector<8x128xf32>
    %387 = vector.extract_strided_slice %383 {offsets = [0, 128], sizes = [8, 128], strides = [1, 1]} : vector<8x384xf32> to vector<8x128xf32>
    %388 = vector.extract_strided_slice %383 {offsets = [0, 256], sizes = [8, 128], strides = [1, 1]} : vector<8x384xf32> to vector<8x128xf32>
    %c0_221 = arith.constant 0 : index
    %c0_222 = arith.constant 0 : index
    %389 = vector.load %arg14[%c0_221, %c0_222] : memref<8x128xf32, #tpu.memory_space<vmem>>, vector<8x128xf32>
    %390 = arith.mulf %387, %389 : vector<8x128xf32>
    %391 = arith.mulf %386, %385 : vector<8x128xf32>
    %392 = arith.addf %390, %391 : vector<8x128xf32>
    %393 = math.tanh %392 : vector<8x128xf32>
    %394 = arith.mulf %388, %393 : vector<8x128xf32>
    %c0_223 = arith.constant 0 : index
    %c0_224 = arith.constant 0 : index
    %395 = vector.load %arg14[%c0_223, %c0_224] : memref<8x128xf32, #tpu.memory_space<vmem>>, vector<8x128xf32>
    tpu.vector_store %arg14[%c0_223, %c0_224], %392 {strides = array<i32>} : memref<8x128xf32, #tpu.memory_space<vmem>>, vector<8x128xf32>,
    %c0_225 = arith.constant 0 : index
    %c0_226 = arith.constant 0 : index
    %396 = vector.load %arg13[%c0_225, %c0_226] : memref<8x128xf32, #tpu.memory_space<vmem>>, vector<8x128xf32>
    tpu.vector_store %arg13[%c0_225, %c0_226], %394 {strides = array<i32>} : memref<8x128xf32, #tpu.memory_space<vmem>>, vector<8x128xf32>,
    %397 = arith.index_cast %371 : i32 to index
    %c0_227 = arith.constant 0 : index
    %398 = vector.load %arg15[%397, %c0_227] : memref<64x128xf32, #tpu.memory_space<vmem>>, vector<8x128xf32>
    tpu.vector_store %arg15[%397, %c0_227], %394 {strides = array<i32>} : memref<64x128xf32, #tpu.memory_space<vmem>>, vector<8x128xf32>,
    %c5_i32_228 = arith.constant 5 : i32
    %c8_i32_229 = arith.constant 8 : i32
    %399 = arith.muli %c5_i32_228, %c8_i32_229 : i32
    %400 = tpu.assume_multiple %399, 8 : i32
    %401 = arith.index_cast %400 : i32 to index
    %c0_230 = arith.constant 0 : index
    %402 = vector.load %arg16[%401, %c0_230] : memref<64x512xf32, #tpu.memory_space<vmem>>, vector<8x512xf32>
    %c0_231 = arith.constant 0 : index
    %c0_232 = arith.constant 0 : index
    %403 = vector.load %arg13[%c0_231, %c0_232] : memref<8x128xf32, #tpu.memory_space<vmem>>, vector<8x128xf32>
    %c0_233 = arith.constant 0 : index
    %c0_234 = arith.constant 0 : index
    %404 = vector.load %arg5[%c0_233, %c0_234] : memref<128x512xf32, #tpu.memory_space<vmem>>, vector<128x512xf32>
    %cst_235 = arith.constant dense<0.000000e+00> : vector<8x512xf32>
    %405 = tpu.matmul %403, %404, %cst_235 {dimension_numbers = #tpu.dot_dimension_numbers<[1], [0], [0], [1], [0, 0, 1, 1], [], []>} : vector<8x128xf32>, vector<128x512xf32>, vector<8x512xf32> -> vector<8x512xf32>
    %406 = arith.addf %402, %405 : vector<8x512xf32>
    %407 = vector.extract_strided_slice %406 {offsets = [0, 0], sizes = [8, 384], strides = [1, 1]} : vector<8x512xf32> to vector<8x384xf32>
    %408 = arith.negf %407 : vector<8x384xf32>
    %409 = math.exp %408 : vector<8x384xf32>
    %cst_236 = arith.constant 1.000000e+00 : f32
    %410 = vector.broadcast %cst_236 : f32 to vector<8x384xf32>
    %411 = arith.addf %410, %409 : vector<8x384xf32>
    %412 = arith.divf %410, %411 : vector<8x384xf32>
    %413 = vector.extract_strided_slice %406 {offsets = [0, 384], sizes = [8, 128], strides = [1, 1]} : vector<8x512xf32> to vector<8x128xf32>
    %414 = math.tanh %413 : vector<8x128xf32>
    %415 = vector.extract_strided_slice %412 {offsets = [0, 0], sizes = [8, 128], strides = [1, 1]} : vector<8x384xf32> to vector<8x128xf32>
    %416 = vector.extract_strided_slice %412 {offsets = [0, 128], sizes = [8, 128], strides = [1, 1]} : vector<8x384xf32> to vector<8x128xf32>
    %417 = vector.extract_strided_slice %412 {offsets = [0, 256], sizes = [8, 128], strides = [1, 1]} : vector<8x384xf32> to vector<8x128xf32>
    %c0_237 = arith.constant 0 : index
    %c0_238 = arith.constant 0 : index
    %418 = vector.load %arg14[%c0_237, %c0_238] : memref<8x128xf32, #tpu.memory_space<vmem>>, vector<8x128xf32>
    %419 = arith.mulf %416, %418 : vector<8x128xf32>
    %420 = arith.mulf %415, %414 : vector<8x128xf32>
    %421 = arith.addf %419, %420 : vector<8x128xf32>
    %422 = math.tanh %421 : vector<8x128xf32>
    %423 = arith.mulf %417, %422 : vector<8x128xf32>
    %c0_239 = arith.constant 0 : index
    %c0_240 = arith.constant 0 : index
    %424 = vector.load %arg14[%c0_239, %c0_240] : memref<8x128xf32, #tpu.memory_space<vmem>>, vector<8x128xf32>
    tpu.vector_store %arg14[%c0_239, %c0_240], %421 {strides = array<i32>} : memref<8x128xf32, #tpu.memory_space<vmem>>, vector<8x128xf32>,
    %c0_241 = arith.constant 0 : index
    %c0_242 = arith.constant 0 : index
    %425 = vector.load %arg13[%c0_241, %c0_242] : memref<8x128xf32, #tpu.memory_space<vmem>>, vector<8x128xf32>
    tpu.vector_store %arg13[%c0_241, %c0_242], %423 {strides = array<i32>} : memref<8x128xf32, #tpu.memory_space<vmem>>, vector<8x128xf32>,
    %426 = arith.index_cast %400 : i32 to index
    %c0_243 = arith.constant 0 : index
    %427 = vector.load %arg15[%426, %c0_243] : memref<64x128xf32, #tpu.memory_space<vmem>>, vector<8x128xf32>
    tpu.vector_store %arg15[%426, %c0_243], %423 {strides = array<i32>} : memref<64x128xf32, #tpu.memory_space<vmem>>, vector<8x128xf32>,
    %c6_i32_244 = arith.constant 6 : i32
    %c8_i32_245 = arith.constant 8 : i32
    %428 = arith.muli %c6_i32_244, %c8_i32_245 : i32
    %429 = tpu.assume_multiple %428, 8 : i32
    %430 = arith.index_cast %429 : i32 to index
    %c0_246 = arith.constant 0 : index
    %431 = vector.load %arg16[%430, %c0_246] : memref<64x512xf32, #tpu.memory_space<vmem>>, vector<8x512xf32>
    %c0_247 = arith.constant 0 : index
    %c0_248 = arith.constant 0 : index
    %432 = vector.load %arg13[%c0_247, %c0_248] : memref<8x128xf32, #tpu.memory_space<vmem>>, vector<8x128xf32>
    %c0_249 = arith.constant 0 : index
    %c0_250 = arith.constant 0 : index
    %433 = vector.load %arg5[%c0_249, %c0_250] : memref<128x512xf32, #tpu.memory_space<vmem>>, vector<128x512xf32>
    %cst_251 = arith.constant dense<0.000000e+00> : vector<8x512xf32>
    %434 = tpu.matmul %432, %433, %cst_251 {dimension_numbers = #tpu.dot_dimension_numbers<[1], [0], [0], [1], [0, 0, 1, 1], [], []>} : vector<8x128xf32>, vector<128x512xf32>, vector<8x512xf32> -> vector<8x512xf32>
    %435 = arith.addf %431, %434 : vector<8x512xf32>
    %436 = vector.extract_strided_slice %435 {offsets = [0, 0], sizes = [8, 384], strides = [1, 1]} : vector<8x512xf32> to vector<8x384xf32>
    %437 = arith.negf %436 : vector<8x384xf32>
    %438 = math.exp %437 : vector<8x384xf32>
    %cst_252 = arith.constant 1.000000e+00 : f32
    %439 = vector.broadcast %cst_252 : f32 to vector<8x384xf32>
    %440 = arith.addf %439, %438 : vector<8x384xf32>
    %441 = arith.divf %439, %440 : vector<8x384xf32>
    %442 = vector.extract_strided_slice %435 {offsets = [0, 384], sizes = [8, 128], strides = [1, 1]} : vector<8x512xf32> to vector<8x128xf32>
    %443 = math.tanh %442 : vector<8x128xf32>
    %444 = vector.extract_strided_slice %441 {offsets = [0, 0], sizes = [8, 128], strides = [1, 1]} : vector<8x384xf32> to vector<8x128xf32>
    %445 = vector.extract_strided_slice %441 {offsets = [0, 128], sizes = [8, 128], strides = [1, 1]} : vector<8x384xf32> to vector<8x128xf32>
    %446 = vector.extract_strided_slice %441 {offsets = [0, 256], sizes = [8, 128], strides = [1, 1]} : vector<8x384xf32> to vector<8x128xf32>
    %c0_253 = arith.constant 0 : index
    %c0_254 = arith.constant 0 : index
    %447 = vector.load %arg14[%c0_253, %c0_254] : memref<8x128xf32, #tpu.memory_space<vmem>>, vector<8x128xf32>
    %448 = arith.mulf %445, %447 : vector<8x128xf32>
    %449 = arith.mulf %444, %443 : vector<8x128xf32>
    %450 = arith.addf %448, %449 : vector<8x128xf32>
    %451 = math.tanh %450 : vector<8x128xf32>
    %452 = arith.mulf %446, %451 : vector<8x128xf32>
    %c0_255 = arith.constant 0 : index
    %c0_256 = arith.constant 0 : index
    %453 = vector.load %arg14[%c0_255, %c0_256] : memref<8x128xf32, #tpu.memory_space<vmem>>, vector<8x128xf32>
    tpu.vector_store %arg14[%c0_255, %c0_256], %450 {strides = array<i32>} : memref<8x128xf32, #tpu.memory_space<vmem>>, vector<8x128xf32>,
    %c0_257 = arith.constant 0 : index
    %c0_258 = arith.constant 0 : index
    %454 = vector.load %arg13[%c0_257, %c0_258] : memref<8x128xf32, #tpu.memory_space<vmem>>, vector<8x128xf32>
    tpu.vector_store %arg13[%c0_257, %c0_258], %452 {strides = array<i32>} : memref<8x128xf32, #tpu.memory_space<vmem>>, vector<8x128xf32>,
    %455 = arith.index_cast %429 : i32 to index
    %c0_259 = arith.constant 0 : index
    %456 = vector.load %arg15[%455, %c0_259] : memref<64x128xf32, #tpu.memory_space<vmem>>, vector<8x128xf32>
    tpu.vector_store %arg15[%455, %c0_259], %452 {strides = array<i32>} : memref<64x128xf32, #tpu.memory_space<vmem>>, vector<8x128xf32>,
    %c7_i32_260 = arith.constant 7 : i32
    %c8_i32_261 = arith.constant 8 : i32
    %457 = arith.muli %c7_i32_260, %c8_i32_261 : i32
    %458 = tpu.assume_multiple %457, 8 : i32
    %459 = arith.index_cast %458 : i32 to index
    %c0_262 = arith.constant 0 : index
    %460 = vector.load %arg16[%459, %c0_262] : memref<64x512xf32, #tpu.memory_space<vmem>>, vector<8x512xf32>
    %c0_263 = arith.constant 0 : index
    %c0_264 = arith.constant 0 : index
    %461 = vector.load %arg13[%c0_263, %c0_264] : memref<8x128xf32, #tpu.memory_space<vmem>>, vector<8x128xf32>
    %c0_265 = arith.constant 0 : index
    %c0_266 = arith.constant 0 : index
    %462 = vector.load %arg5[%c0_265, %c0_266] : memref<128x512xf32, #tpu.memory_space<vmem>>, vector<128x512xf32>
    %cst_267 = arith.constant dense<0.000000e+00> : vector<8x512xf32>
    %463 = tpu.matmul %461, %462, %cst_267 {dimension_numbers = #tpu.dot_dimension_numbers<[1], [0], [0], [1], [0, 0, 1, 1], [], []>} : vector<8x128xf32>, vector<128x512xf32>, vector<8x512xf32> -> vector<8x512xf32>
    %464 = arith.addf %460, %463 : vector<8x512xf32>
    %465 = vector.extract_strided_slice %464 {offsets = [0, 0], sizes = [8, 384], strides = [1, 1]} : vector<8x512xf32> to vector<8x384xf32>
    %466 = arith.negf %465 : vector<8x384xf32>
    %467 = math.exp %466 : vector<8x384xf32>
    %cst_268 = arith.constant 1.000000e+00 : f32
    %468 = vector.broadcast %cst_268 : f32 to vector<8x384xf32>
    %469 = arith.addf %468, %467 : vector<8x384xf32>
    %470 = arith.divf %468, %469 : vector<8x384xf32>
    %471 = vector.extract_strided_slice %464 {offsets = [0, 384], sizes = [8, 128], strides = [1, 1]} : vector<8x512xf32> to vector<8x128xf32>
    %472 = math.tanh %471 : vector<8x128xf32>
    %473 = vector.extract_strided_slice %470 {offsets = [0, 0], sizes = [8, 128], strides = [1, 1]} : vector<8x384xf32> to vector<8x128xf32>
    %474 = vector.extract_strided_slice %470 {offsets = [0, 128], sizes = [8, 128], strides = [1, 1]} : vector<8x384xf32> to vector<8x128xf32>
    %475 = vector.extract_strided_slice %470 {offsets = [0, 256], sizes = [8, 128], strides = [1, 1]} : vector<8x384xf32> to vector<8x128xf32>
    %c0_269 = arith.constant 0 : index
    %c0_270 = arith.constant 0 : index
    %476 = vector.load %arg14[%c0_269, %c0_270] : memref<8x128xf32, #tpu.memory_space<vmem>>, vector<8x128xf32>
    %477 = arith.mulf %474, %476 : vector<8x128xf32>
    %478 = arith.mulf %473, %472 : vector<8x128xf32>
    %479 = arith.addf %477, %478 : vector<8x128xf32>
    %480 = math.tanh %479 : vector<8x128xf32>
    %481 = arith.mulf %475, %480 : vector<8x128xf32>
    %c0_271 = arith.constant 0 : index
    %c0_272 = arith.constant 0 : index
    %482 = vector.load %arg14[%c0_271, %c0_272] : memref<8x128xf32, #tpu.memory_space<vmem>>, vector<8x128xf32>
    tpu.vector_store %arg14[%c0_271, %c0_272], %479 {strides = array<i32>} : memref<8x128xf32, #tpu.memory_space<vmem>>, vector<8x128xf32>,
    %c0_273 = arith.constant 0 : index
    %c0_274 = arith.constant 0 : index
    %483 = vector.load %arg13[%c0_273, %c0_274] : memref<8x128xf32, #tpu.memory_space<vmem>>, vector<8x128xf32>
    tpu.vector_store %arg13[%c0_273, %c0_274], %481 {strides = array<i32>} : memref<8x128xf32, #tpu.memory_space<vmem>>, vector<8x128xf32>,
    %484 = arith.index_cast %458 : i32 to index
    %c0_275 = arith.constant 0 : index
    %485 = vector.load %arg15[%484, %c0_275] : memref<64x128xf32, #tpu.memory_space<vmem>>, vector<8x128xf32>
    tpu.vector_store %arg15[%484, %c0_275], %481 {strides = array<i32>} : memref<64x128xf32, #tpu.memory_space<vmem>>, vector<8x128xf32>,
    %c8_i32_276 = arith.constant 8 : i32
    %c0_277 = arith.constant 0 : index
    %c0_278 = arith.constant 0 : index
    %486 = vector.load %arg15[%c0_277, %c0_278] : memref<64x128xf32, #tpu.memory_space<vmem>>, vector<64x128xf32>
    %c0_279 = arith.constant 0 : index
    %c0_280 = arith.constant 0 : index
    %487 = vector.load %arg7[%c0_279, %c0_280] : memref<128x512xf32, #tpu.memory_space<vmem>>, vector<128x512xf32>
    %cst_281 = arith.constant dense<0.000000e+00> : vector<64x512xf32>
    %488 = tpu.matmul %486, %487, %cst_281 {dimension_numbers = #tpu.dot_dimension_numbers<[1], [0], [0], [1], [0, 0, 1, 1], [], []>} : vector<64x128xf32>, vector<128x512xf32>, vector<64x512xf32> -> vector<64x512xf32>
    %c0_282 = arith.constant 0 : index
    %c0_283 = arith.constant 0 : index
    %489 = vector.load %arg9[%c0_282, %c0_283] : memref<1x512xf32, #tpu.memory_space<vmem>>, vector<1x512xf32>
    %490 = vector.broadcast %489 : vector<1x512xf32> to vector<64x512xf32>
    %491 = arith.addf %488, %490 : vector<64x512xf32>
    %c0_284 = arith.constant 0 : index
    %c0_285 = arith.constant 0 : index
    %492 = vector.load %arg16[%c0_284, %c0_285] : memref<64x512xf32, #tpu.memory_space<vmem>>, vector<64x512xf32>
    tpu.vector_store %arg16[%c0_284, %c0_285], %491 {strides = array<i32>} : memref<64x512xf32, #tpu.memory_space<vmem>>, vector<64x512xf32>,
    %cst_286 = arith.constant 0.000000e+00 : f32
    %493 = vector.broadcast %cst_286 : f32 to vector<8x128xf32>
    %c0_287 = arith.constant 0 : index
    %c0_288 = arith.constant 0 : index
    %494 = vector.load %arg13[%c0_287, %c0_288] : memref<8x128xf32, #tpu.memory_space<vmem>>, vector<8x128xf32>
    tpu.vector_store %arg13[%c0_287, %c0_288], %493 {strides = array<i32>} : memref<8x128xf32, #tpu.memory_space<vmem>>, vector<8x128xf32>,
    %cst_289 = arith.constant 0.000000e+00 : f32
    %495 = vector.broadcast %cst_289 : f32 to vector<8x128xf32>
    %c0_290 = arith.constant 0 : index
    %c0_291 = arith.constant 0 : index
    %496 = vector.load %arg14[%c0_290, %c0_291] : memref<8x128xf32, #tpu.memory_space<vmem>>, vector<8x128xf32>
    tpu.vector_store %arg14[%c0_290, %c0_291], %495 {strides = array<i32>} : memref<8x128xf32, #tpu.memory_space<vmem>>, vector<8x128xf32>,
    %c0_i32_292 = arith.constant 0 : i32
    %c8_i32_293 = arith.constant 8 : i32
    %497 = arith.muli %c0_i32_292, %c8_i32_293 : i32
    %498 = tpu.assume_multiple %497, 8 : i32
    %499 = arith.index_cast %498 : i32 to index
    %c0_294 = arith.constant 0 : index
    %500 = vector.load %arg16[%499, %c0_294] : memref<64x512xf32, #tpu.memory_space<vmem>>, vector<8x512xf32>
    %c0_295 = arith.constant 0 : index
    %c0_296 = arith.constant 0 : index
    %501 = vector.load %arg13[%c0_295, %c0_296] : memref<8x128xf32, #tpu.memory_space<vmem>>, vector<8x128xf32>
    %c0_297 = arith.constant 0 : index
    %c0_298 = arith.constant 0 : index
    %502 = vector.load %arg8[%c0_297, %c0_298] : memref<128x512xf32, #tpu.memory_space<vmem>>, vector<128x512xf32>
    %cst_299 = arith.constant dense<0.000000e+00> : vector<8x512xf32>
    %503 = tpu.matmul %501, %502, %cst_299 {dimension_numbers = #tpu.dot_dimension_numbers<[1], [0], [0], [1], [0, 0, 1, 1], [], []>} : vector<8x128xf32>, vector<128x512xf32>, vector<8x512xf32> -> vector<8x512xf32>
    %504 = arith.addf %500, %503 : vector<8x512xf32>
    %505 = vector.extract_strided_slice %504 {offsets = [0, 0], sizes = [8, 384], strides = [1, 1]} : vector<8x512xf32> to vector<8x384xf32>
    %506 = arith.negf %505 : vector<8x384xf32>
    %507 = math.exp %506 : vector<8x384xf32>
    %cst_300 = arith.constant 1.000000e+00 : f32
    %508 = vector.broadcast %cst_300 : f32 to vector<8x384xf32>
    %509 = arith.addf %508, %507 : vector<8x384xf32>
    %510 = arith.divf %508, %509 : vector<8x384xf32>
    %511 = vector.extract_strided_slice %504 {offsets = [0, 384], sizes = [8, 128], strides = [1, 1]} : vector<8x512xf32> to vector<8x128xf32>
    %512 = math.tanh %511 : vector<8x128xf32>
    %513 = vector.extract_strided_slice %510 {offsets = [0, 0], sizes = [8, 128], strides = [1, 1]} : vector<8x384xf32> to vector<8x128xf32>
    %514 = vector.extract_strided_slice %510 {offsets = [0, 128], sizes = [8, 128], strides = [1, 1]} : vector<8x384xf32> to vector<8x128xf32>
    %515 = vector.extract_strided_slice %510 {offsets = [0, 256], sizes = [8, 128], strides = [1, 1]} : vector<8x384xf32> to vector<8x128xf32>
    %c0_301 = arith.constant 0 : index
    %c0_302 = arith.constant 0 : index
    %516 = vector.load %arg14[%c0_301, %c0_302] : memref<8x128xf32, #tpu.memory_space<vmem>>, vector<8x128xf32>
    %517 = arith.mulf %514, %516 : vector<8x128xf32>
    %518 = arith.mulf %513, %512 : vector<8x128xf32>
    %519 = arith.addf %517, %518 : vector<8x128xf32>
    %520 = math.tanh %519 : vector<8x128xf32>
    %521 = arith.mulf %515, %520 : vector<8x128xf32>
    %c0_303 = arith.constant 0 : index
    %c0_304 = arith.constant 0 : index
    %522 = vector.load %arg14[%c0_303, %c0_304] : memref<8x128xf32, #tpu.memory_space<vmem>>, vector<8x128xf32>
    tpu.vector_store %arg14[%c0_303, %c0_304], %519 {strides = array<i32>} : memref<8x128xf32, #tpu.memory_space<vmem>>, vector<8x128xf32>,
    %c0_305 = arith.constant 0 : index
    %c0_306 = arith.constant 0 : index
    %523 = vector.load %arg13[%c0_305, %c0_306] : memref<8x128xf32, #tpu.memory_space<vmem>>, vector<8x128xf32>
    tpu.vector_store %arg13[%c0_305, %c0_306], %521 {strides = array<i32>} : memref<8x128xf32, #tpu.memory_space<vmem>>, vector<8x128xf32>,
    %524 = arith.index_cast %498 : i32 to index
    %c0_307 = arith.constant 0 : index
    %525 = vector.load %arg15[%524, %c0_307] : memref<64x128xf32, #tpu.memory_space<vmem>>, vector<8x128xf32>
    tpu.vector_store %arg15[%524, %c0_307], %521 {strides = array<i32>} : memref<64x128xf32, #tpu.memory_space<vmem>>, vector<8x128xf32>,
    %c1_i32_308 = arith.constant 1 : i32
    %c8_i32_309 = arith.constant 8 : i32
    %526 = arith.muli %c1_i32_308, %c8_i32_309 : i32
    %527 = tpu.assume_multiple %526, 8 : i32
    %528 = arith.index_cast %527 : i32 to index
    %c0_310 = arith.constant 0 : index
    %529 = vector.load %arg16[%528, %c0_310] : memref<64x512xf32, #tpu.memory_space<vmem>>, vector<8x512xf32>
    %c0_311 = arith.constant 0 : index
    %c0_312 = arith.constant 0 : index
    %530 = vector.load %arg13[%c0_311, %c0_312] : memref<8x128xf32, #tpu.memory_space<vmem>>, vector<8x128xf32>
    %c0_313 = arith.constant 0 : index
    %c0_314 = arith.constant 0 : index
    %531 = vector.load %arg8[%c0_313, %c0_314] : memref<128x512xf32, #tpu.memory_space<vmem>>, vector<128x512xf32>
    %cst_315 = arith.constant dense<0.000000e+00> : vector<8x512xf32>
    %532 = tpu.matmul %530, %531, %cst_315 {dimension_numbers = #tpu.dot_dimension_numbers<[1], [0], [0], [1], [0, 0, 1, 1], [], []>} : vector<8x128xf32>, vector<128x512xf32>, vector<8x512xf32> -> vector<8x512xf32>
    %533 = arith.addf %529, %532 : vector<8x512xf32>
    %534 = vector.extract_strided_slice %533 {offsets = [0, 0], sizes = [8, 384], strides = [1, 1]} : vector<8x512xf32> to vector<8x384xf32>
    %535 = arith.negf %534 : vector<8x384xf32>
    %536 = math.exp %535 : vector<8x384xf32>
    %cst_316 = arith.constant 1.000000e+00 : f32
    %537 = vector.broadcast %cst_316 : f32 to vector<8x384xf32>
    %538 = arith.addf %537, %536 : vector<8x384xf32>
    %539 = arith.divf %537, %538 : vector<8x384xf32>
    %540 = vector.extract_strided_slice %533 {offsets = [0, 384], sizes = [8, 128], strides = [1, 1]} : vector<8x512xf32> to vector<8x128xf32>
    %541 = math.tanh %540 : vector<8x128xf32>
    %542 = vector.extract_strided_slice %539 {offsets = [0, 0], sizes = [8, 128], strides = [1, 1]} : vector<8x384xf32> to vector<8x128xf32>
    %543 = vector.extract_strided_slice %539 {offsets = [0, 128], sizes = [8, 128], strides = [1, 1]} : vector<8x384xf32> to vector<8x128xf32>
    %544 = vector.extract_strided_slice %539 {offsets = [0, 256], sizes = [8, 128], strides = [1, 1]} : vector<8x384xf32> to vector<8x128xf32>
    %c0_317 = arith.constant 0 : index
    %c0_318 = arith.constant 0 : index
    %545 = vector.load %arg14[%c0_317, %c0_318] : memref<8x128xf32, #tpu.memory_space<vmem>>, vector<8x128xf32>
    %546 = arith.mulf %543, %545 : vector<8x128xf32>
    %547 = arith.mulf %542, %541 : vector<8x128xf32>
    %548 = arith.addf %546, %547 : vector<8x128xf32>
    %549 = math.tanh %548 : vector<8x128xf32>
    %550 = arith.mulf %544, %549 : vector<8x128xf32>
    %c0_319 = arith.constant 0 : index
    %c0_320 = arith.constant 0 : index
    %551 = vector.load %arg14[%c0_319, %c0_320] : memref<8x128xf32, #tpu.memory_space<vmem>>, vector<8x128xf32>
    tpu.vector_store %arg14[%c0_319, %c0_320], %548 {strides = array<i32>} : memref<8x128xf32, #tpu.memory_space<vmem>>, vector<8x128xf32>,
    %c0_321 = arith.constant 0 : index
    %c0_322 = arith.constant 0 : index
    %552 = vector.load %arg13[%c0_321, %c0_322] : memref<8x128xf32, #tpu.memory_space<vmem>>, vector<8x128xf32>
    tpu.vector_store %arg13[%c0_321, %c0_322], %550 {strides = array<i32>} : memref<8x128xf32, #tpu.memory_space<vmem>>, vector<8x128xf32>,
    %553 = arith.index_cast %527 : i32 to index
    %c0_323 = arith.constant 0 : index
    %554 = vector.load %arg15[%553, %c0_323] : memref<64x128xf32, #tpu.memory_space<vmem>>, vector<8x128xf32>
    tpu.vector_store %arg15[%553, %c0_323], %550 {strides = array<i32>} : memref<64x128xf32, #tpu.memory_space<vmem>>, vector<8x128xf32>,
    %c2_i32_324 = arith.constant 2 : i32
    %c8_i32_325 = arith.constant 8 : i32
    %555 = arith.muli %c2_i32_324, %c8_i32_325 : i32
    %556 = tpu.assume_multiple %555, 8 : i32
    %557 = arith.index_cast %556 : i32 to index
    %c0_326 = arith.constant 0 : index
    %558 = vector.load %arg16[%557, %c0_326] : memref<64x512xf32, #tpu.memory_space<vmem>>, vector<8x512xf32>
    %c0_327 = arith.constant 0 : index
    %c0_328 = arith.constant 0 : index
    %559 = vector.load %arg13[%c0_327, %c0_328] : memref<8x128xf32, #tpu.memory_space<vmem>>, vector<8x128xf32>
    %c0_329 = arith.constant 0 : index
    %c0_330 = arith.constant 0 : index
    %560 = vector.load %arg8[%c0_329, %c0_330] : memref<128x512xf32, #tpu.memory_space<vmem>>, vector<128x512xf32>
    %cst_331 = arith.constant dense<0.000000e+00> : vector<8x512xf32>
    %561 = tpu.matmul %559, %560, %cst_331 {dimension_numbers = #tpu.dot_dimension_numbers<[1], [0], [0], [1], [0, 0, 1, 1], [], []>} : vector<8x128xf32>, vector<128x512xf32>, vector<8x512xf32> -> vector<8x512xf32>
    %562 = arith.addf %558, %561 : vector<8x512xf32>
    %563 = vector.extract_strided_slice %562 {offsets = [0, 0], sizes = [8, 384], strides = [1, 1]} : vector<8x512xf32> to vector<8x384xf32>
    %564 = arith.negf %563 : vector<8x384xf32>
    %565 = math.exp %564 : vector<8x384xf32>
    %cst_332 = arith.constant 1.000000e+00 : f32
    %566 = vector.broadcast %cst_332 : f32 to vector<8x384xf32>
    %567 = arith.addf %566, %565 : vector<8x384xf32>
    %568 = arith.divf %566, %567 : vector<8x384xf32>
    %569 = vector.extract_strided_slice %562 {offsets = [0, 384], sizes = [8, 128], strides = [1, 1]} : vector<8x512xf32> to vector<8x128xf32>
    %570 = math.tanh %569 : vector<8x128xf32>
    %571 = vector.extract_strided_slice %568 {offsets = [0, 0], sizes = [8, 128], strides = [1, 1]} : vector<8x384xf32> to vector<8x128xf32>
    %572 = vector.extract_strided_slice %568 {offsets = [0, 128], sizes = [8, 128], strides = [1, 1]} : vector<8x384xf32> to vector<8x128xf32>
    %573 = vector.extract_strided_slice %568 {offsets = [0, 256], sizes = [8, 128], strides = [1, 1]} : vector<8x384xf32> to vector<8x128xf32>
    %c0_333 = arith.constant 0 : index
    %c0_334 = arith.constant 0 : index
    %574 = vector.load %arg14[%c0_333, %c0_334] : memref<8x128xf32, #tpu.memory_space<vmem>>, vector<8x128xf32>
    %575 = arith.mulf %572, %574 : vector<8x128xf32>
    %576 = arith.mulf %571, %570 : vector<8x128xf32>
    %577 = arith.addf %575, %576 : vector<8x128xf32>
    %578 = math.tanh %577 : vector<8x128xf32>
    %579 = arith.mulf %573, %578 : vector<8x128xf32>
    %c0_335 = arith.constant 0 : index
    %c0_336 = arith.constant 0 : index
    %580 = vector.load %arg14[%c0_335, %c0_336] : memref<8x128xf32, #tpu.memory_space<vmem>>, vector<8x128xf32>
    tpu.vector_store %arg14[%c0_335, %c0_336], %577 {strides = array<i32>} : memref<8x128xf32, #tpu.memory_space<vmem>>, vector<8x128xf32>,
    %c0_337 = arith.constant 0 : index
    %c0_338 = arith.constant 0 : index
    %581 = vector.load %arg13[%c0_337, %c0_338] : memref<8x128xf32, #tpu.memory_space<vmem>>, vector<8x128xf32>
    tpu.vector_store %arg13[%c0_337, %c0_338], %579 {strides = array<i32>} : memref<8x128xf32, #tpu.memory_space<vmem>>, vector<8x128xf32>,
    %582 = arith.index_cast %556 : i32 to index
    %c0_339 = arith.constant 0 : index
    %583 = vector.load %arg15[%582, %c0_339] : memref<64x128xf32, #tpu.memory_space<vmem>>, vector<8x128xf32>
    tpu.vector_store %arg15[%582, %c0_339], %579 {strides = array<i32>} : memref<64x128xf32, #tpu.memory_space<vmem>>, vector<8x128xf32>,
    %c3_i32_340 = arith.constant 3 : i32
    %c8_i32_341 = arith.constant 8 : i32
    %584 = arith.muli %c3_i32_340, %c8_i32_341 : i32
    %585 = tpu.assume_multiple %584, 8 : i32
    %586 = arith.index_cast %585 : i32 to index
    %c0_342 = arith.constant 0 : index
    %587 = vector.load %arg16[%586, %c0_342] : memref<64x512xf32, #tpu.memory_space<vmem>>, vector<8x512xf32>
    %c0_343 = arith.constant 0 : index
    %c0_344 = arith.constant 0 : index
    %588 = vector.load %arg13[%c0_343, %c0_344] : memref<8x128xf32, #tpu.memory_space<vmem>>, vector<8x128xf32>
    %c0_345 = arith.constant 0 : index
    %c0_346 = arith.constant 0 : index
    %589 = vector.load %arg8[%c0_345, %c0_346] : memref<128x512xf32, #tpu.memory_space<vmem>>, vector<128x512xf32>
    %cst_347 = arith.constant dense<0.000000e+00> : vector<8x512xf32>
    %590 = tpu.matmul %588, %589, %cst_347 {dimension_numbers = #tpu.dot_dimension_numbers<[1], [0], [0], [1], [0, 0, 1, 1], [], []>} : vector<8x128xf32>, vector<128x512xf32>, vector<8x512xf32> -> vector<8x512xf32>
    %591 = arith.addf %587, %590 : vector<8x512xf32>
    %592 = vector.extract_strided_slice %591 {offsets = [0, 0], sizes = [8, 384], strides = [1, 1]} : vector<8x512xf32> to vector<8x384xf32>
    %593 = arith.negf %592 : vector<8x384xf32>
    %594 = math.exp %593 : vector<8x384xf32>
    %cst_348 = arith.constant 1.000000e+00 : f32
    %595 = vector.broadcast %cst_348 : f32 to vector<8x384xf32>
    %596 = arith.addf %595, %594 : vector<8x384xf32>
    %597 = arith.divf %595, %596 : vector<8x384xf32>
    %598 = vector.extract_strided_slice %591 {offsets = [0, 384], sizes = [8, 128], strides = [1, 1]} : vector<8x512xf32> to vector<8x128xf32>
    %599 = math.tanh %598 : vector<8x128xf32>
    %600 = vector.extract_strided_slice %597 {offsets = [0, 0], sizes = [8, 128], strides = [1, 1]} : vector<8x384xf32> to vector<8x128xf32>
    %601 = vector.extract_strided_slice %597 {offsets = [0, 128], sizes = [8, 128], strides = [1, 1]} : vector<8x384xf32> to vector<8x128xf32>
    %602 = vector.extract_strided_slice %597 {offsets = [0, 256], sizes = [8, 128], strides = [1, 1]} : vector<8x384xf32> to vector<8x128xf32>
    %c0_349 = arith.constant 0 : index
    %c0_350 = arith.constant 0 : index
    %603 = vector.load %arg14[%c0_349, %c0_350] : memref<8x128xf32, #tpu.memory_space<vmem>>, vector<8x128xf32>
    %604 = arith.mulf %601, %603 : vector<8x128xf32>
    %605 = arith.mulf %600, %599 : vector<8x128xf32>
    %606 = arith.addf %604, %605 : vector<8x128xf32>
    %607 = math.tanh %606 : vector<8x128xf32>
    %608 = arith.mulf %602, %607 : vector<8x128xf32>
    %c0_351 = arith.constant 0 : index
    %c0_352 = arith.constant 0 : index
    %609 = vector.load %arg14[%c0_351, %c0_352] : memref<8x128xf32, #tpu.memory_space<vmem>>, vector<8x128xf32>
    tpu.vector_store %arg14[%c0_351, %c0_352], %606 {strides = array<i32>} : memref<8x128xf32, #tpu.memory_space<vmem>>, vector<8x128xf32>,
    %c0_353 = arith.constant 0 : index
    %c0_354 = arith.constant 0 : index
    %610 = vector.load %arg13[%c0_353, %c0_354] : memref<8x128xf32, #tpu.memory_space<vmem>>, vector<8x128xf32>
    tpu.vector_store %arg13[%c0_353, %c0_354], %608 {strides = array<i32>} : memref<8x128xf32, #tpu.memory_space<vmem>>, vector<8x128xf32>,
    %611 = arith.index_cast %585 : i32 to index
    %c0_355 = arith.constant 0 : index
    %612 = vector.load %arg15[%611, %c0_355] : memref<64x128xf32, #tpu.memory_space<vmem>>, vector<8x128xf32>
    tpu.vector_store %arg15[%611, %c0_355], %608 {strides = array<i32>} : memref<64x128xf32, #tpu.memory_space<vmem>>, vector<8x128xf32>,
    %c4_i32_356 = arith.constant 4 : i32
    %c8_i32_357 = arith.constant 8 : i32
    %613 = arith.muli %c4_i32_356, %c8_i32_357 : i32
    %614 = tpu.assume_multiple %613, 8 : i32
    %615 = arith.index_cast %614 : i32 to index
    %c0_358 = arith.constant 0 : index
    %616 = vector.load %arg16[%615, %c0_358] : memref<64x512xf32, #tpu.memory_space<vmem>>, vector<8x512xf32>
    %c0_359 = arith.constant 0 : index
    %c0_360 = arith.constant 0 : index
    %617 = vector.load %arg13[%c0_359, %c0_360] : memref<8x128xf32, #tpu.memory_space<vmem>>, vector<8x128xf32>
    %c0_361 = arith.constant 0 : index
    %c0_362 = arith.constant 0 : index
    %618 = vector.load %arg8[%c0_361, %c0_362] : memref<128x512xf32, #tpu.memory_space<vmem>>, vector<128x512xf32>
    %cst_363 = arith.constant dense<0.000000e+00> : vector<8x512xf32>
    %619 = tpu.matmul %617, %618, %cst_363 {dimension_numbers = #tpu.dot_dimension_numbers<[1], [0], [0], [1], [0, 0, 1, 1], [], []>} : vector<8x128xf32>, vector<128x512xf32>, vector<8x512xf32> -> vector<8x512xf32>
    %620 = arith.addf %616, %619 : vector<8x512xf32>
    %621 = vector.extract_strided_slice %620 {offsets = [0, 0], sizes = [8, 384], strides = [1, 1]} : vector<8x512xf32> to vector<8x384xf32>
    %622 = arith.negf %621 : vector<8x384xf32>
    %623 = math.exp %622 : vector<8x384xf32>
    %cst_364 = arith.constant 1.000000e+00 : f32
    %624 = vector.broadcast %cst_364 : f32 to vector<8x384xf32>
    %625 = arith.addf %624, %623 : vector<8x384xf32>
    %626 = arith.divf %624, %625 : vector<8x384xf32>
    %627 = vector.extract_strided_slice %620 {offsets = [0, 384], sizes = [8, 128], strides = [1, 1]} : vector<8x512xf32> to vector<8x128xf32>
    %628 = math.tanh %627 : vector<8x128xf32>
    %629 = vector.extract_strided_slice %626 {offsets = [0, 0], sizes = [8, 128], strides = [1, 1]} : vector<8x384xf32> to vector<8x128xf32>
    %630 = vector.extract_strided_slice %626 {offsets = [0, 128], sizes = [8, 128], strides = [1, 1]} : vector<8x384xf32> to vector<8x128xf32>
    %631 = vector.extract_strided_slice %626 {offsets = [0, 256], sizes = [8, 128], strides = [1, 1]} : vector<8x384xf32> to vector<8x128xf32>
    %c0_365 = arith.constant 0 : index
    %c0_366 = arith.constant 0 : index
    %632 = vector.load %arg14[%c0_365, %c0_366] : memref<8x128xf32, #tpu.memory_space<vmem>>, vector<8x128xf32>
    %633 = arith.mulf %630, %632 : vector<8x128xf32>
    %634 = arith.mulf %629, %628 : vector<8x128xf32>
    %635 = arith.addf %633, %634 : vector<8x128xf32>
    %636 = math.tanh %635 : vector<8x128xf32>
    %637 = arith.mulf %631, %636 : vector<8x128xf32>
    %c0_367 = arith.constant 0 : index
    %c0_368 = arith.constant 0 : index
    %638 = vector.load %arg14[%c0_367, %c0_368] : memref<8x128xf32, #tpu.memory_space<vmem>>, vector<8x128xf32>
    tpu.vector_store %arg14[%c0_367, %c0_368], %635 {strides = array<i32>} : memref<8x128xf32, #tpu.memory_space<vmem>>, vector<8x128xf32>,
    %c0_369 = arith.constant 0 : index
    %c0_370 = arith.constant 0 : index
    %639 = vector.load %arg13[%c0_369, %c0_370] : memref<8x128xf32, #tpu.memory_space<vmem>>, vector<8x128xf32>
    tpu.vector_store %arg13[%c0_369, %c0_370], %637 {strides = array<i32>} : memref<8x128xf32, #tpu.memory_space<vmem>>, vector<8x128xf32>,
    %640 = arith.index_cast %614 : i32 to index
    %c0_371 = arith.constant 0 : index
    %641 = vector.load %arg15[%640, %c0_371] : memref<64x128xf32, #tpu.memory_space<vmem>>, vector<8x128xf32>
    tpu.vector_store %arg15[%640, %c0_371], %637 {strides = array<i32>} : memref<64x128xf32, #tpu.memory_space<vmem>>, vector<8x128xf32>,
    %c5_i32_372 = arith.constant 5 : i32
    %c8_i32_373 = arith.constant 8 : i32
    %642 = arith.muli %c5_i32_372, %c8_i32_373 : i32
    %643 = tpu.assume_multiple %642, 8 : i32
    %644 = arith.index_cast %643 : i32 to index
    %c0_374 = arith.constant 0 : index
    %645 = vector.load %arg16[%644, %c0_374] : memref<64x512xf32, #tpu.memory_space<vmem>>, vector<8x512xf32>
    %c0_375 = arith.constant 0 : index
    %c0_376 = arith.constant 0 : index
    %646 = vector.load %arg13[%c0_375, %c0_376] : memref<8x128xf32, #tpu.memory_space<vmem>>, vector<8x128xf32>
    %c0_377 = arith.constant 0 : index
    %c0_378 = arith.constant 0 : index
    %647 = vector.load %arg8[%c0_377, %c0_378] : memref<128x512xf32, #tpu.memory_space<vmem>>, vector<128x512xf32>
    %cst_379 = arith.constant dense<0.000000e+00> : vector<8x512xf32>
    %648 = tpu.matmul %646, %647, %cst_379 {dimension_numbers = #tpu.dot_dimension_numbers<[1], [0], [0], [1], [0, 0, 1, 1], [], []>} : vector<8x128xf32>, vector<128x512xf32>, vector<8x512xf32> -> vector<8x512xf32>
    %649 = arith.addf %645, %648 : vector<8x512xf32>
    %650 = vector.extract_strided_slice %649 {offsets = [0, 0], sizes = [8, 384], strides = [1, 1]} : vector<8x512xf32> to vector<8x384xf32>
    %651 = arith.negf %650 : vector<8x384xf32>
    %652 = math.exp %651 : vector<8x384xf32>
    %cst_380 = arith.constant 1.000000e+00 : f32
    %653 = vector.broadcast %cst_380 : f32 to vector<8x384xf32>
    %654 = arith.addf %653, %652 : vector<8x384xf32>
    %655 = arith.divf %653, %654 : vector<8x384xf32>
    %656 = vector.extract_strided_slice %649 {offsets = [0, 384], sizes = [8, 128], strides = [1, 1]} : vector<8x512xf32> to vector<8x128xf32>
    %657 = math.tanh %656 : vector<8x128xf32>
    %658 = vector.extract_strided_slice %655 {offsets = [0, 0], sizes = [8, 128], strides = [1, 1]} : vector<8x384xf32> to vector<8x128xf32>
    %659 = vector.extract_strided_slice %655 {offsets = [0, 128], sizes = [8, 128], strides = [1, 1]} : vector<8x384xf32> to vector<8x128xf32>
    %660 = vector.extract_strided_slice %655 {offsets = [0, 256], sizes = [8, 128], strides = [1, 1]} : vector<8x384xf32> to vector<8x128xf32>
    %c0_381 = arith.constant 0 : index
    %c0_382 = arith.constant 0 : index
    %661 = vector.load %arg14[%c0_381, %c0_382] : memref<8x128xf32, #tpu.memory_space<vmem>>, vector<8x128xf32>
    %662 = arith.mulf %659, %661 : vector<8x128xf32>
    %663 = arith.mulf %658, %657 : vector<8x128xf32>
    %664 = arith.addf %662, %663 : vector<8x128xf32>
    %665 = math.tanh %664 : vector<8x128xf32>
    %666 = arith.mulf %660, %665 : vector<8x128xf32>
    %c0_383 = arith.constant 0 : index
    %c0_384 = arith.constant 0 : index
    %667 = vector.load %arg14[%c0_383, %c0_384] : memref<8x128xf32, #tpu.memory_space<vmem>>, vector<8x128xf32>
    tpu.vector_store %arg14[%c0_383, %c0_384], %664 {strides = array<i32>} : memref<8x128xf32, #tpu.memory_space<vmem>>, vector<8x128xf32>,
    %c0_385 = arith.constant 0 : index
    %c0_386 = arith.constant 0 : index
    %668 = vector.load %arg13[%c0_385, %c0_386] : memref<8x128xf32, #tpu.memory_space<vmem>>, vector<8x128xf32>
    tpu.vector_store %arg13[%c0_385, %c0_386], %666 {strides = array<i32>} : memref<8x128xf32, #tpu.memory_space<vmem>>, vector<8x128xf32>,
    %669 = arith.index_cast %643 : i32 to index
    %c0_387 = arith.constant 0 : index
    %670 = vector.load %arg15[%669, %c0_387] : memref<64x128xf32, #tpu.memory_space<vmem>>, vector<8x128xf32>
    tpu.vector_store %arg15[%669, %c0_387], %666 {strides = array<i32>} : memref<64x128xf32, #tpu.memory_space<vmem>>, vector<8x128xf32>,
    %c6_i32_388 = arith.constant 6 : i32
    %c8_i32_389 = arith.constant 8 : i32
    %671 = arith.muli %c6_i32_388, %c8_i32_389 : i32
    %672 = tpu.assume_multiple %671, 8 : i32
    %673 = arith.index_cast %672 : i32 to index
    %c0_390 = arith.constant 0 : index
    %674 = vector.load %arg16[%673, %c0_390] : memref<64x512xf32, #tpu.memory_space<vmem>>, vector<8x512xf32>
    %c0_391 = arith.constant 0 : index
    %c0_392 = arith.constant 0 : index
    %675 = vector.load %arg13[%c0_391, %c0_392] : memref<8x128xf32, #tpu.memory_space<vmem>>, vector<8x128xf32>
    %c0_393 = arith.constant 0 : index
    %c0_394 = arith.constant 0 : index
    %676 = vector.load %arg8[%c0_393, %c0_394] : memref<128x512xf32, #tpu.memory_space<vmem>>, vector<128x512xf32>
    %cst_395 = arith.constant dense<0.000000e+00> : vector<8x512xf32>
    %677 = tpu.matmul %675, %676, %cst_395 {dimension_numbers = #tpu.dot_dimension_numbers<[1], [0], [0], [1], [0, 0, 1, 1], [], []>} : vector<8x128xf32>, vector<128x512xf32>, vector<8x512xf32> -> vector<8x512xf32>
    %678 = arith.addf %674, %677 : vector<8x512xf32>
    %679 = vector.extract_strided_slice %678 {offsets = [0, 0], sizes = [8, 384], strides = [1, 1]} : vector<8x512xf32> to vector<8x384xf32>
    %680 = arith.negf %679 : vector<8x384xf32>
    %681 = math.exp %680 : vector<8x384xf32>
    %cst_396 = arith.constant 1.000000e+00 : f32
    %682 = vector.broadcast %cst_396 : f32 to vector<8x384xf32>
    %683 = arith.addf %682, %681 : vector<8x384xf32>
    %684 = arith.divf %682, %683 : vector<8x384xf32>
    %685 = vector.extract_strided_slice %678 {offsets = [0, 384], sizes = [8, 128], strides = [1, 1]} : vector<8x512xf32> to vector<8x128xf32>
    %686 = math.tanh %685 : vector<8x128xf32>
    %687 = vector.extract_strided_slice %684 {offsets = [0, 0], sizes = [8, 128], strides = [1, 1]} : vector<8x384xf32> to vector<8x128xf32>
    %688 = vector.extract_strided_slice %684 {offsets = [0, 128], sizes = [8, 128], strides = [1, 1]} : vector<8x384xf32> to vector<8x128xf32>
    %689 = vector.extract_strided_slice %684 {offsets = [0, 256], sizes = [8, 128], strides = [1, 1]} : vector<8x384xf32> to vector<8x128xf32>
    %c0_397 = arith.constant 0 : index
    %c0_398 = arith.constant 0 : index
    %690 = vector.load %arg14[%c0_397, %c0_398] : memref<8x128xf32, #tpu.memory_space<vmem>>, vector<8x128xf32>
    %691 = arith.mulf %688, %690 : vector<8x128xf32>
    %692 = arith.mulf %687, %686 : vector<8x128xf32>
    %693 = arith.addf %691, %692 : vector<8x128xf32>
    %694 = math.tanh %693 : vector<8x128xf32>
    %695 = arith.mulf %689, %694 : vector<8x128xf32>
    %c0_399 = arith.constant 0 : index
    %c0_400 = arith.constant 0 : index
    %696 = vector.load %arg14[%c0_399, %c0_400] : memref<8x128xf32, #tpu.memory_space<vmem>>, vector<8x128xf32>
    tpu.vector_store %arg14[%c0_399, %c0_400], %693 {strides = array<i32>} : memref<8x128xf32, #tpu.memory_space<vmem>>, vector<8x128xf32>,
    %c0_401 = arith.constant 0 : index
    %c0_402 = arith.constant 0 : index
    %697 = vector.load %arg13[%c0_401, %c0_402] : memref<8x128xf32, #tpu.memory_space<vmem>>, vector<8x128xf32>
    tpu.vector_store %arg13[%c0_401, %c0_402], %695 {strides = array<i32>} : memref<8x128xf32, #tpu.memory_space<vmem>>, vector<8x128xf32>,
    %698 = arith.index_cast %672 : i32 to index
    %c0_403 = arith.constant 0 : index
    %699 = vector.load %arg15[%698, %c0_403] : memref<64x128xf32, #tpu.memory_space<vmem>>, vector<8x128xf32>
    tpu.vector_store %arg15[%698, %c0_403], %695 {strides = array<i32>} : memref<64x128xf32, #tpu.memory_space<vmem>>, vector<8x128xf32>,
    %c7_i32_404 = arith.constant 7 : i32
    %c8_i32_405 = arith.constant 8 : i32
    %700 = arith.muli %c7_i32_404, %c8_i32_405 : i32
    %701 = tpu.assume_multiple %700, 8 : i32
    %702 = arith.index_cast %701 : i32 to index
    %c0_406 = arith.constant 0 : index
    %703 = vector.load %arg16[%702, %c0_406] : memref<64x512xf32, #tpu.memory_space<vmem>>, vector<8x512xf32>
    %c0_407 = arith.constant 0 : index
    %c0_408 = arith.constant 0 : index
    %704 = vector.load %arg13[%c0_407, %c0_408] : memref<8x128xf32, #tpu.memory_space<vmem>>, vector<8x128xf32>
    %c0_409 = arith.constant 0 : index
    %c0_410 = arith.constant 0 : index
    %705 = vector.load %arg8[%c0_409, %c0_410] : memref<128x512xf32, #tpu.memory_space<vmem>>, vector<128x512xf32>
    %cst_411 = arith.constant dense<0.000000e+00> : vector<8x512xf32>
    %706 = tpu.matmul %704, %705, %cst_411 {dimension_numbers = #tpu.dot_dimension_numbers<[1], [0], [0], [1], [0, 0, 1, 1], [], []>} : vector<8x128xf32>, vector<128x512xf32>, vector<8x512xf32> -> vector<8x512xf32>
    %707 = arith.addf %703, %706 : vector<8x512xf32>
    %708 = vector.extract_strided_slice %707 {offsets = [0, 0], sizes = [8, 384], strides = [1, 1]} : vector<8x512xf32> to vector<8x384xf32>
    %709 = arith.negf %708 : vector<8x384xf32>
    %710 = math.exp %709 : vector<8x384xf32>
    %cst_412 = arith.constant 1.000000e+00 : f32
    %711 = vector.broadcast %cst_412 : f32 to vector<8x384xf32>
    %712 = arith.addf %711, %710 : vector<8x384xf32>
    %713 = arith.divf %711, %712 : vector<8x384xf32>
    %714 = vector.extract_strided_slice %707 {offsets = [0, 384], sizes = [8, 128], strides = [1, 1]} : vector<8x512xf32> to vector<8x128xf32>
    %715 = math.tanh %714 : vector<8x128xf32>
    %716 = vector.extract_strided_slice %713 {offsets = [0, 0], sizes = [8, 128], strides = [1, 1]} : vector<8x384xf32> to vector<8x128xf32>
    %717 = vector.extract_strided_slice %713 {offsets = [0, 128], sizes = [8, 128], strides = [1, 1]} : vector<8x384xf32> to vector<8x128xf32>
    %718 = vector.extract_strided_slice %713 {offsets = [0, 256], sizes = [8, 128], strides = [1, 1]} : vector<8x384xf32> to vector<8x128xf32>
    %c0_413 = arith.constant 0 : index
    %c0_414 = arith.constant 0 : index
    %719 = vector.load %arg14[%c0_413, %c0_414] : memref<8x128xf32, #tpu.memory_space<vmem>>, vector<8x128xf32>
    %720 = arith.mulf %717, %719 : vector<8x128xf32>
    %721 = arith.mulf %716, %715 : vector<8x128xf32>
    %722 = arith.addf %720, %721 : vector<8x128xf32>
    %723 = math.tanh %722 : vector<8x128xf32>
    %724 = arith.mulf %718, %723 : vector<8x128xf32>
    %c0_415 = arith.constant 0 : index
    %c0_416 = arith.constant 0 : index
    %725 = vector.load %arg14[%c0_415, %c0_416] : memref<8x128xf32, #tpu.memory_space<vmem>>, vector<8x128xf32>
    tpu.vector_store %arg14[%c0_415, %c0_416], %722 {strides = array<i32>} : memref<8x128xf32, #tpu.memory_space<vmem>>, vector<8x128xf32>,
    %c0_417 = arith.constant 0 : index
    %c0_418 = arith.constant 0 : index
    %726 = vector.load %arg13[%c0_417, %c0_418] : memref<8x128xf32, #tpu.memory_space<vmem>>, vector<8x128xf32>
    tpu.vector_store %arg13[%c0_417, %c0_418], %724 {strides = array<i32>} : memref<8x128xf32, #tpu.memory_space<vmem>>, vector<8x128xf32>,
    %727 = arith.index_cast %701 : i32 to index
    %c0_419 = arith.constant 0 : index
    %728 = vector.load %arg15[%727, %c0_419] : memref<64x128xf32, #tpu.memory_space<vmem>>, vector<8x128xf32>
    tpu.vector_store %arg15[%727, %c0_419], %724 {strides = array<i32>} : memref<64x128xf32, #tpu.memory_space<vmem>>, vector<8x128xf32>,
    %c8_i32_420 = arith.constant 8 : i32
    %c0_421 = arith.constant 0 : index
    %c0_422 = arith.constant 0 : index
    %729 = vector.load %arg15[%c0_421, %c0_422] : memref<64x128xf32, #tpu.memory_space<vmem>>, vector<8x128xf32>
    %c8 = arith.constant 8 : index
    %c0_423 = arith.constant 0 : index
    %730 = vector.load %arg15[%c8, %c0_423] : memref<64x128xf32, #tpu.memory_space<vmem>>, vector<8x128xf32>
    %731 = arith.addf %729, %730 : vector<8x128xf32>
    %c16 = arith.constant 16 : index
    %c0_424 = arith.constant 0 : index
    %732 = vector.load %arg15[%c16, %c0_424] : memref<64x128xf32, #tpu.memory_space<vmem>>, vector<8x128xf32>
    %733 = arith.addf %731, %732 : vector<8x128xf32>
    %c24 = arith.constant 24 : index
    %c0_425 = arith.constant 0 : index
    %734 = vector.load %arg15[%c24, %c0_425] : memref<64x128xf32, #tpu.memory_space<vmem>>, vector<8x128xf32>
    %735 = arith.addf %733, %734 : vector<8x128xf32>
    %c32 = arith.constant 32 : index
    %c0_426 = arith.constant 0 : index
    %736 = vector.load %arg15[%c32, %c0_426] : memref<64x128xf32, #tpu.memory_space<vmem>>, vector<8x128xf32>
    %737 = arith.addf %735, %736 : vector<8x128xf32>
    %c40 = arith.constant 40 : index
    %c0_427 = arith.constant 0 : index
    %738 = vector.load %arg15[%c40, %c0_427] : memref<64x128xf32, #tpu.memory_space<vmem>>, vector<8x128xf32>
    %739 = arith.addf %737, %738 : vector<8x128xf32>
    %c48 = arith.constant 48 : index
    %c0_428 = arith.constant 0 : index
    %740 = vector.load %arg15[%c48, %c0_428] : memref<64x128xf32, #tpu.memory_space<vmem>>, vector<8x128xf32>
    %741 = arith.addf %739, %740 : vector<8x128xf32>
    %c56 = arith.constant 56 : index
    %c0_429 = arith.constant 0 : index
    %742 = vector.load %arg15[%c56, %c0_429] : memref<64x128xf32, #tpu.memory_space<vmem>>, vector<8x128xf32>
    %743 = arith.addf %741, %742 : vector<8x128xf32>
    %cst_430 = arith.constant 1.250000e-01 : f32
    %744 = vector.broadcast %cst_430 : f32 to vector<8x128xf32>
    %745 = arith.mulf %743, %744 : vector<8x128xf32>
    %c0_431 = arith.constant 0 : index
    %c0_432 = arith.constant 0 : index
    %746 = vector.load %arg10[%c0_431, %c0_432] : memref<128x128xf32, #tpu.memory_space<vmem>>, vector<128x128xf32>
    %cst_433 = arith.constant dense<0.000000e+00> : vector<8x128xf32>
    %747 = tpu.matmul %745, %746, %cst_433 {dimension_numbers = #tpu.dot_dimension_numbers<[1], [0], [0], [1], [0, 0, 1, 1], [], []>} : vector<8x128xf32>, vector<128x128xf32>, vector<8x128xf32> -> vector<8x128xf32>
    %c0_434 = arith.constant 0 : index
    %c0_435 = arith.constant 0 : index
    %748 = vector.load %arg11[%c0_434, %c0_435] : memref<1x128xf32, #tpu.memory_space<vmem>>, vector<1x128xf32>
    %749 = vector.broadcast %748 : vector<1x128xf32> to vector<8x128xf32>
    %750 = arith.addf %747, %749 : vector<8x128xf32>
    %c0_436 = arith.constant 0 : index
    %c0_437 = arith.constant 0 : index
    %751 = vector.load %arg12[%c0_436, %c0_437] : memref<8x128xf32, #tpu.memory_space<vmem>>, vector<8x128xf32>
    tpu.vector_store %arg12[%c0_436, %c0_437], %750 {strides = array<i32>} : memref<8x128xf32, #tpu.memory_space<vmem>>, vector<8x128xf32>,
    return
  }
}

</mosaic_0001>

<bundles_post_ra>
// kernel: tpu_custom_call.1
= control target key start
LH: loop header
LB: loop body
LE: loop exit
PB: predicated region body
PF: predicated region fallthrough
CT: control target
= control target key end

     0   :  { %17 = vsyncpa [#allocation7], 0  ;;  %s10802_s0 = inlined_call_operand.vmem [shape: f32[64,8], index: 0, kind: input, shape index: {}]   ;;  %s10803_s1 = inlined_call_operand.vmem [shape: f32[8,512], index: 1, kind: input, shape index: {}]   ;;  %s10804_s2 = inlined_call_operand.hbm [shape: f32[128,512], index: 2, kind: input, shape index: {}]   ;;  %s10805_s3 = inlined_call_operand.vmem [shape: f32[1,512], index: 3, kind: input, shape index: {}]   ;;  %s10806_s4 = inlined_call_operand.hbm [shape: f32[128,512], index: 4, kind: input, shape index: {}]   ;;  %s10807_s5 = inlined_call_operand.hbm [shape: f32[128,512], index: 5, kind: input, shape index: {}]   ;;  %s10808_s6 = inlined_call_operand.vmem [shape: f32[1,512], index: 6, kind: input, shape index: {}]   ;;  %s10809_s7 = inlined_call_operand.hbm [shape: f32[128,512], index: 7, kind: input, shape index: {}]   ;;  %s10810_s8 = inlined_call_operand.hbm [shape: f32[128,512], index: 8, kind: input, shape index: {}]   ;;  %s10811_s9 = inlined_call_operand.vmem [shape: f32[1,512], index: 9, kind: input, shape index: {}]   ;;  %s10812_s10 = inlined_call_operand.hbm [shape: f32[128,128], index: 10, kind: input, shape index: {}]   ;;  %s10813_s11 = inlined_call_operand.vmem [shape: f32[1,128], index: 11, kind: input, shape index: {}]   ;;  %s10814_s12 = inlined_call_operand.hbm [shape: f32[8,128], index: 12, kind: output, shape index: {}]  }
   0x1   :  { %18 = vsyncpa [#allocation10], 0 }
   0x2   :  { %19 = vsyncpa [#allocation13], 0 }
   0x3   :  { %20 = vsyncpa [#allocation16], 0 }
   0x4   :  { %21 = vsyncpa [#allocation8], 0  ;;  %s45_s23 = sshll.u32 %s10806_s4, 4  ;;  %s7018_s24 = smov [#allocation9]   ;;  %s46_s23 = int_to_ptr.hbm [resolvable:$true] %s45_s23 }
   0x5   :  { %s47_s25 = sshll.u32 %s7018_s24, 4  ;;  %s73_s28 = sshll.u32 %s10809_s7, 4  ;;  %s48_s25 = int_to_ptr.vmem [resolvable:$true] %s47_s25  ;;  %s74_s28 = int_to_ptr.hbm [resolvable:$true] %s73_s28 }
   0x6   :  { %s7019_s29 = smov 512   ;;  %s7020_s30 = smov 32  }
   0x7   :  { %53 = dma.hbm_to_vmem [thread:$0]  %s46_s23, 8192, %s48_s25, [#allocation10], %s7019_s29, %s7019_s29, %s7020_s30  }
   0x8   :  { %s7021_s13 = smov [#allocation12]   ;;  %s30_s4 = sshll.u32 %s10804_s2, 4  ;;  %s31_s4 = int_to_ptr.hbm [resolvable:$true] %s30_s4 }
   0x9   :  { %s75_s14 = sshll.u32 %s7021_s13, 4  ;;  %s58_s18 = sshll.u32 %s10807_s5, 4  ;;  %s76_s14 = int_to_ptr.vmem [resolvable:$true] %s75_s14  ;;  %s59_s18 = int_to_ptr.hbm [resolvable:$true] %s58_s18 }
   0xa   :  { %81 = dma.hbm_to_vmem [thread:$0]  %s74_s28, 8192, %s76_s14, [#allocation13], %s7019_s29, %s7019_s29, %s7020_s30  }
   0xb   :  { %s7022_s19 = smov [#allocation6]   ;;  %s7023_s21 = smov [#allocation11]  }
   0xc   :  { %s32_s20 = sshll.u32 %s7022_s19, 4  ;;  %s60_s2 = sshll.u32 %s7023_s21, 4  ;;  %s33_s20 = int_to_ptr.vmem [resolvable:$true] %s32_s20  ;;  %s61_s2 = int_to_ptr.vmem [resolvable:$true] %s60_s2 }
   0xd   :  { %38 = dma.hbm_to_vmem [thread:$0]  %s31_s4, 8192, %s33_s20, [#allocation7], %s7019_s29, %s7019_s29, %s7020_s30  }
   0xe   :  { %s86_s24 = sshll.u32 %s10810_s8, 4  ;;  %s101_s26 = sshll.u32 %s10812_s10, 4  ;;  %s87_s24 = int_to_ptr.hbm [resolvable:$true] %s86_s24  ;;  %s102_s26 = int_to_ptr.hbm [resolvable:$true] %s101_s26 }
   0xf   :  { %66 = dma.hbm_to_vmem [thread:$0]  %s59_s18, 8192, %s61_s2, [#allocation10], %s7019_s29, %s7019_s29, %s7020_s30  }
  0x10   :  { %s7024_s27 = smov [#allocation14]   ;;  %s7025_s13 = smov [#allocation15]  }
  0x11   :  { %s88_s28 = sshll.u32 %s7024_s27, 4  ;;  %s103_s8 = sshll.u32 %s7025_s13, 4  ;;  %s89_s28 = int_to_ptr.vmem [resolvable:$true] %s88_s28  ;;  %s104_s8 = int_to_ptr.vmem [resolvable:$true] %s103_s8 }
  0x12   :  { %94 = dma.hbm_to_vmem [thread:$0]  %s87_s24, 8192, %s89_s28, [#allocation13], %s7019_s29, %s7019_s29, %s7020_s30  }
  0x13   :  { %s7026_s14 = smov 128   ;;  %s7027_s15 = smov 8  }
  0x14   :  { %109 = dma.hbm_to_vmem [thread:$0]  %s102_s26, 2048, %s104_s8, [#allocation16], %s7026_s14, %s7026_s14, %s7027_s15  }
  0x15   :  { %7008 = dma.done.wait [#allocation7], 8192  }
  0x16   :  { %7009 = vsyncadd [#allocation7], 4294959104 }
  0x17   :  { %7010 = dma.done.wait [#allocation10], 16384  }
  0x18   :  { %7011 = vsyncadd [#allocation10], 4294950912 }
  0x19   :  { %7012 = dma.done.wait [#allocation13], 16384  }
  0x1a   :  { %7013 = vsyncadd [#allocation13], 4294950912 }
  0x1b   :  { %7014 = dma.done.wait [#allocation16], 2048  }
  0x1c   :  { %7015 = vsyncadd [#allocation16], 4294965248  ;;  %v144_v0 = vld [vmem:[%s10803_s1] sm:$0xff]  ;;  %vm158_vm0 = vcmask 64512   ;;  %v7137_v2 = vld [vmem:[%s10802_s0 + $0x28] sm:$0xff]  ;;  %s7029_s29 = smov [#allocation17]  }
  0x1d   :  { %v136_v1 = vld [vmem:[%s10802_s0] sm:$0xff]  ;;  %198 = vmatpush.msra.mxu0 %v144_v0  ;;  %6440 = vmatpush.msra.mxu1 %v144_v0  ;;  %v7142_v3 = vld [vmem:[%s10802_s0 + $0x30] sm:$0xff]  ;;  %v7147_v4 = vld [vmem:[%s10802_s0 + $0x38] sm:$0xff]  ;;  %s6314_s30 = sshll.u32 %s7029_s29, 4  ;;  %s6316_s18 = sshll.u32 %s10814_s12, 4  ;;  %s6315_s30 = int_to_ptr.vmem [resolvable:$true] %s6314_s30  ;;  %s6317_s18 = int_to_ptr.hbm [resolvable:$true] %s6316_s18 }
  0x1e   :  { %6441 = vmatpush.msra.mxu2 %v144_v0  ;;  %6442 = vmatpush.msra.mxu3 %v144_v0  ;;  %v145_v5 = vld [vmem:[%s10803_s1 + $0x8] sm:$0xff]  ;;  %v146_v6 = vld [vmem:[%s10803_s1 + $0x10] sm:$0xff]  ;;  %v147_v7 = vld [vmem:[%s10803_s1 + $0x18] sm:$0xff] }
  0x1f   :  { %6336 = vmatmul.msk.f32.vlgmr.msra.gmra.mxu0 %vm158_vm0, %v136_v1  ;;  %6341 = vmatmul.msk.f32.vlgmr.msra.gmra.mxu1 %vm158_vm0, %v7137_v2  ;;  %v7161_v8 = vld [vmem:[#allocation6 + $0x1e8] sm:$0xff]  ;;  %v7167_v9 = vld [vmem:[#allocation6 + $0x1e0] sm:$0xff]  ;;  %v7169_v10 = vld [vmem:[#allocation6 + $0x1f0] sm:$0xff] }
  0x20   :  { %6342 = vmatmul.msk.f32.vlgmr.msra.gmra.mxu2 %vm158_vm0, %v7142_v3  ;;  %6343 = vmatmul.msk.f32.vlgmr.msra.gmra.mxu3 %vm158_vm0, %v7147_v4  ;;  %v7171_v11 = vld [vmem:[#allocation6 + $0x1c8] sm:$0xff]  ;;  %v7174_v12 = vld [vmem:[#allocation6 + $0x1c0] sm:$0xff]  ;;  %v7176_v13 = vld [vmem:[#allocation6 + $0x1d0] sm:$0xff] }
  0x21   :  { %239 = vmatpush.msrb.mxu1 %v145_v5  ;;  %280 = vmatpush.msrb.mxu2 %v146_v6  ;;  %v7180_v14 = vld [vmem:[#allocation6 + $0x1a8] sm:$0xff]  ;;  %v7186_v16 = vld [vmem:[#allocation6 + $0x1f8] sm:$0xff]  ;;  %v7190_v17 = vld [vmem:[#allocation6 + $0x1a0] sm:$0xff] }
  0x22   :  { %321 = vmatpush.msrb.mxu3 %v147_v7  ;;  %453 = vmatpush.msrb.mxu0 %v7167_v9  ;;  %v137_v15 = vld [vmem:[%s10802_s0 + $0x8] sm:$0xff]  ;;  %v7198_v19 = vld [vmem:[#allocation6 + $0x1b0] sm:$0xff]  ;;  %v7200_v20 = vld [vmem:[#allocation6 + $0x1d8] sm:$0xff] }
  0x23   :  { %473 = vmatpush.msra.mxu1 %v7161_v8  ;;  %493 = vmatpush.msra.mxu2 %v7169_v10  ;;  %v7193_v18 = vld [vmem:[#allocation6 + $0x188] sm:$0xff]  ;;  %v7204_v21 = vld [vmem:[#allocation6 + $0x180] sm:$0xff]  ;;  %v7210_v23 = vld [vmem:[#allocation6 + $0x190] sm:$0xff] }
  0x24   :  { %454 = vmatpush.msrb.mxu0 %v7174_v12  ;;  %513 = vmatpush.msra.mxu3 %v7186_v16  ;;  %v7206_v22 = vld [vmem:[#allocation6 + $0x168] sm:$0xff]  ;;  %v7212_v24 = vld [vmem:[#allocation6 + $0x1b8] sm:$0xff]  ;;  %v7214_v25 = vld [vmem:[#allocation6 + $0x160] sm:$0xff] }
  0x25   :  { %474 = vmatpush.msra.mxu1 %v7171_v11  ;;  %494 = vmatpush.msra.mxu2 %v7176_v13  ;;  %v7218_v26 = vld [vmem:[#allocation6 + $0x148] sm:$0xff]  ;;  %v7222_v27 = vld [vmem:[#allocation6 + $0x170] sm:$0xff]  ;;  %v7224_v28 = vld [vmem:[#allocation6 + $0x198] sm:$0xff] }
  0x26   :  { %455 = vmatpush.msrb.mxu0 %v7190_v17  ;;  %514 = vmatpush.msra.mxu3 %v7200_v20  ;;  %v138_v29 = vld [vmem:[%s10802_s0 + $0x10] sm:$0xff]  ;;  %v7233_v30 = vld [vmem:[#allocation6 + $0x140] sm:$0xff]  ;;  %v7236_v31 = vld [vmem:[#allocation6 + $0x128] sm:$0xff] }
  0x27   :  { %475 = vmatpush.msra.mxu1 %v7180_v14  ;;  %6337 = vmatmul.msk.f32.gmra.mxu0 %vm158_vm0, %v137_v15  ;;  %v7241_v32 = vld [vmem:[#allocation6 + $0x150] sm:$0xff]  ;;  %v7243_v33 = vld [vmem:[#allocation6 + $0x178] sm:$0xff]  ;;  %v7247_v34 = vld [vmem:[#allocation6 + $0x120] sm:$0xff] }
  0x28   :  { %6344 = vmatmul.msk.f32.vlgmr.msrb.gmra.mxu1 %vm158_vm0, %v136_v1  ;;  %6352 = vmatmul.msk.f32.vlgmr.msrb.gmra.mxu2 %vm158_vm0, %v136_v1  ;;  %v7249_v35 = vld [vmem:[#allocation6 + $0x108] sm:$0xff]  ;;  %v7253_v36 = vld [vmem:[#allocation6 + $0x130] sm:$0xff]  ;;  %v7255_v37 = vld [vmem:[#allocation6 + $0x158] sm:$0xff] }
  0x29   :  { %6360 = vmatmul.msk.f32.vlgmr.msrb.gmra.mxu3 %vm158_vm0, %v136_v1  ;;  %476 = vmatpush.msra.mxu1 %v7193_v18  ;;  %v7257_v38 = vld [vmem:[#allocation6 + $0x100] sm:$0xff]  ;;  %v7261_v39 = vld [vmem:[#allocation6 + $0xe8] sm:$0xff]  ;;  %v7265_v40 = vld [vmem:[#allocation6 + $0x110] sm:$0xff] }
  0x2a   :  { %495 = vmatpush.msra.mxu2 %v7198_v19  ;;  %456 = vmatpush.msrb.mxu0 %v7204_v21  ;;  %v7267_v41 = vld [vmem:[#allocation6 + $0x138] sm:$0xff]  ;;  %v7276_v43 = vld [vmem:[#allocation6 + $0xe0] sm:$0xff]  ;;  %v7279_v44 = vld [vmem:[#allocation6 + $0xc8] sm:$0xff] }
  0x2b   :  { %477 = vmatpush.msra.mxu1 %v7206_v22  ;;  %515 = vmatpush.msra.mxu3 %v7212_v24  ;;  %v139_v42 = vld [vmem:[%s10802_s0 + $0x18] sm:$0xff]  ;;  %v7284_v45 = vld [vmem:[#allocation6 + $0xf0] sm:$0xff]  ;;  %v7290_v47 = vld [vmem:[#allocation6 + $0xc0] sm:$0xff] }
  0x2c   :  { %496 = vmatpush.msra.mxu2 %v7210_v23  ;;  %457 = vmatpush.msrb.mxu0 %v7214_v25  ;;  %v7286_v46 = vld [vmem:[#allocation6 + $0x118] sm:$0xff]  ;;  %v7292_v48 = vld [vmem:[#allocation6 + $0xa8] sm:$0xff]  ;;  %v7296_v49 = vld [vmem:[#allocation6 + $0xd0] sm:$0xff] }
  0x2d   :  { %478 = vmatpush.msra.mxu1 %v7218_v26  ;;  %516 = vmatpush.msra.mxu3 %v7224_v28  ;;  %v7298_v50 = vld [vmem:[#allocation6 + $0xf8] sm:$0xff]  ;;  %v7300_v51 = vld [vmem:[#allocation6 + $0xa0] sm:$0xff]  ;;  %v7304_v52 = vld [vmem:[#allocation6 + $0x88] sm:$0xff] }
  0x2e   :  { %497 = vmatpush.msra.mxu2 %v7222_v27  ;;  %458 = vmatpush.msrb.mxu0 %v7233_v30  ;;  %v7308_v53 = vld [vmem:[#allocation6 + $0xb0] sm:$0xff]  ;;  %v7310_v54 = vld [vmem:[#allocation6 + $0xd8] sm:$0xff]  ;;  %v7312_v55 = vld [vmem:[#allocation6 + $0x80] sm:$0xff] }
  0x2f   :  { %6338 = vmatmul.msk.f32.gmra.mxu0 %vm158_vm0, %v138_v29  ;;  %479 = vmatpush.msra.mxu1 %v7236_v31  ;;  %v140_v56 = vld [vmem:[%s10802_s0 + $0x20] sm:$0xff]  ;;  %v7327_v58 = vld [vmem:[#allocation6 + $0x68] sm:$0xff]  ;;  %v7329_v59 = vld [vmem:[#allocation6 + $0x90] sm:$0xff] }
  0x30   :  { %6345 = vmatmul.msk.f32.gmra.mxu1 %vm158_vm0, %v137_v15  ;;  %6353 = vmatmul.msk.f32.gmra.mxu2 %vm158_vm0, %v137_v15  ;;  %v7321_v57 = vld [vmem:[#allocation6 + $0x60] sm:$0xff]  ;;  %v7335_v61 = vld [vmem:[#allocation6 + $0xb8] sm:$0xff]  ;;  %v7339_v62 = vld [vmem:[#allocation6 + $0x48] sm:$0xff] }
  0x31   :  { %6361 = vmatmul.msk.f32.gmra.mxu3 %vm158_vm0, %v137_v15  ;;  %498 = vmatpush.msra.mxu2 %v7241_v32  ;;  %v7333_v60 = vld [vmem:[#allocation6 + $0x40] sm:$0xff]  ;;  %11027 = vst [vmem:[#allocation23_spill] sm:$0xff] %v7339_v62  ;;  %v7341_v63 = vld [vmem:[#allocation6 + $0x70] sm:$0xff]  ;;  %v7347_v1 = vld [vmem:[#allocation6 + $0x98] sm:$0xff] }
  0x32   :  { %517 = vmatpush.msra.mxu3 %v7243_v33  ;;  %459 = vmatpush.msrb.mxu0 %v7247_v34  ;;  %v7343_v0 = vld [vmem:[#allocation6 + $0x20] sm:$0xff]  ;;  %v7351_v5 = vld [vmem:[#allocation6 + $0x28] sm:$0xff]  ;;  %v7353_v6 = vld [vmem:[#allocation6 + $0x50] sm:$0xff] }
  0x33   :  { %480 = vmatpush.msra.mxu1 %v7249_v35  ;;  %499 = vmatpush.msra.mxu2 %v7253_v36  ;;  %11028 = vst [vmem:[#allocation24_spill] sm:$0xff] %v7343_v0  ;;  %v7355_v7 = vld [vmem:[#allocation6] sm:$0xff]  ;;  %v7363_v15 = vld [vmem:[#allocation6 + $0x8] sm:$0xff] }
  0x34   :  { %518 = vmatpush.msra.mxu3 %v7255_v37  ;;  %460 = vmatpush.msrb.mxu0 %v7257_v38  ;;  %11029 = vst [vmem:[#allocation25_spill] sm:$0xff] %v7351_v5 }
  0x35   :  { %481 = vmatpush.msra.mxu1 %v7261_v39  ;;  %500 = vmatpush.msra.mxu2 %v7265_v40  ;;  %11030 = vst [vmem:[#allocation26_spill] sm:$0xff] %v7355_v7 }
  0x36   :  { %519 = vmatpush.msra.mxu3 %v7267_v41  ;;  %461 = vmatpush.msrb.mxu0 %v7276_v43 }
  0x37   :  { %6339 = vmatmul.msk.f32.gmra.mxu0 %vm158_vm0, %v139_v42  ;;  %482 = vmatpush.msra.mxu1 %v7279_v44 }
  0x38   :  { %6346 = vmatmul.msk.f32.gmra.mxu1 %vm158_vm0, %v138_v29  ;;  %6354 = vmatmul.msk.f32.gmra.mxu2 %vm158_vm0, %v138_v29 }
  0x39   :  { %6362 = vmatmul.msk.f32.gmra.mxu3 %vm158_vm0, %v138_v29  ;;  %501 = vmatpush.msra.mxu2 %v7284_v45  ;;  %v7367_v29 = vld [vmem:[#allocation6 + $0x78] sm:$0xff] }
  0x3a   :  { %520 = vmatpush.msra.mxu3 %v7286_v46  ;;  %462 = vmatpush.msrb.mxu0 %v7290_v47 }
  0x3b   :  { %483 = vmatpush.msra.mxu1 %v7292_v48  ;;  %502 = vmatpush.msra.mxu2 %v7296_v49 }
  0x3c   :  { %521 = vmatpush.msra.mxu3 %v7298_v50  ;;  %463 = vmatpush.msrb.mxu0 %v7300_v51 }
  0x3d   :  { %484 = vmatpush.msra.mxu1 %v7304_v52  ;;  %503 = vmatpush.msra.mxu2 %v7308_v53 }
  0x3e   :  { %522 = vmatpush.msra.mxu3 %v7310_v54  ;;  %464 = vmatpush.msrb.mxu0 %v7312_v55 }
  0x3f   :  { %6340 = vmatmul.msk.f32.gmra.mxu0 %vm158_vm0, %v140_v56  ;;  %485 = vmatpush.msra.mxu1 %v7327_v58 }
  0x40   :  { %6347 = vmatmul.msk.f32.gmra.mxu1 %vm158_vm0, %v139_v42  ;;  %6355 = vmatmul.msk.f32.gmra.mxu2 %vm158_vm0, %v139_v42 }
  0x41   :  { %6363 = vmatmul.msk.f32.gmra.mxu3 %vm158_vm0, %v139_v42  ;;  %465 = vmatpush.msrb.mxu0 %v7321_v57  ;;  %v7369_v42 = vld [vmem:[#allocation6 + $0x30] sm:$0xff] }
  0x42   :  { %504 = vmatpush.msra.mxu2 %v7329_v59  ;;  %523 = vmatpush.msra.mxu3 %v7335_v61 }
  0x43   :  { %466 = vmatpush.msrb.mxu0 %v7333_v60  ;;  %486 = vmatpush.msra.mxu1 %v7339_v62  ;;  %v10821_v62 = vmov 0.0  }
  0x44   :  { %505 = vmatpush.msra.mxu2 %v7341_v63  ;;  %524 = vmatpush.msra.mxu3 %v7347_v1 }
  0x45   :  { %467 = vmatpush.msrb.mxu0 %v7343_v0  ;;  %487 = vmatpush.msra.mxu1 %v7351_v5  ;;  %v7374_v5 = vld [vmem:[#allocation6 + $0x58] sm:$0xff]  ;;  %v7377_v0 = vld [vmem:[#allocation6 + $0x10] sm:$0xff] }
  0x46   :  { %506 = vmatpush.msra.mxu2 %v7353_v6  ;;  %525 = vmatpush.msra.mxu3 %v7367_v29 }
  0x47   :  { %468 = vmatpush.msrb.mxu0 %v7355_v7  ;;  %488 = vmatpush.msra.mxu1 %v7363_v15  ;;  %v7381_v7 = vld [vmem:[#allocation6 + $0x38] sm:$0xff] }
  0x48   :  { %6348 = vmatmul.msk.f32.gmra.mxu1 %vm158_vm0, %v140_v56  ;;  %6356 = vmatmul.msk.f32.gmra.mxu2 %vm158_vm0, %v140_v56 }
  0x49   :  { %469 = vmatmul.f32.vlgmr.msrb.gmra.mxu0 %v10821_v62  ;;  %6364 = vmatmul.msk.f32.gmra.mxu3 %vm158_vm0, %v140_v56  ;;  %v7387_v56 = vld [vmem:[#allocation6 + $0x18] sm:$0xff] }
  0x4a   :  { %507 = vmatpush.msra.mxu2 %v7369_v42  ;;  %676 = vmatpush.msra.mxu0 %v7167_v9 }
  0x4b   :  { %696 = vmatpush.msrb.mxu1 %v7161_v8  ;;  %526 = vmatpush.msra.mxu3 %v7374_v5 }
  0x4c   :  { %508 = vmatpush.msra.mxu2 %v7377_v0  ;;  %677 = vmatpush.msra.mxu0 %v7174_v12 }
  0x4d   :  { %527 = vmatpush.msra.mxu3 %v7381_v7  ;;  %697 = vmatpush.msrb.mxu1 %v7171_v11 }
  0x4e   :  { %716 = vmatpush.msrb.mxu2 %v7169_v10  ;;  %678 = vmatpush.msra.mxu0 %v7190_v17 }
  0x4f   :  { %528 = vmatpush.msra.mxu3 %v7387_v56  ;;  %698 = vmatpush.msrb.mxu1 %v7180_v14 }
  0x50   :  { %6349 = vmatmul.msk.f32.gmra.mxu1 %vm158_vm0, %v7137_v2  ;;  %717 = vmatpush.msrb.mxu2 %v7176_v13 }
  0x51   :  { %6357 = vmatmul.msk.f32.gmra.mxu2 %vm158_vm0, %v7137_v2  ;;  %6365 = vmatmul.msk.f32.gmra.mxu3 %vm158_vm0, %v7137_v2  ;;  %v11031_v2 = vld [vmem:[#allocation23_spill] sm:$0xff] }
  0x52   :  { %736 = vmatpush.msrb.mxu3 %v7186_v16  ;;  %718 = vmatpush.msrb.mxu2 %v7198_v19 }
  0x53   :  { %679 = vmatpush.msra.mxu0 %v7204_v21  ;;  %699 = vmatpush.msrb.mxu1 %v7193_v18 }
  0x54   :  { %737 = vmatpush.msrb.mxu3 %v7200_v20  ;;  %719 = vmatpush.msrb.mxu2 %v7210_v23 }
  0x55   :  { %680 = vmatpush.msra.mxu0 %v7214_v25  ;;  %700 = vmatpush.msrb.mxu1 %v7206_v22 }
  0x56   :  { %738 = vmatpush.msrb.mxu3 %v7212_v24  ;;  %720 = vmatpush.msrb.mxu2 %v7222_v27 }
  0x57   :  { %681 = vmatpush.msra.mxu0 %v7233_v30  ;;  %701 = vmatpush.msrb.mxu1 %v7218_v26 }
  0x58   :  { %6350 = vmatmul.msk.f32.gmra.mxu1 %vm158_vm0, %v7142_v3  ;;  %739 = vmatpush.msrb.mxu3 %v7224_v28 }
  0x59   :  { %6358 = vmatmul.msk.f32.gmra.mxu2 %vm158_vm0, %v7142_v3  ;;  %6366 = vmatmul.msk.f32.gmra.mxu3 %vm158_vm0, %v7142_v3  ;;  %v11032_v3 = vld [vmem:[#allocation24_spill] sm:$0xff] }
  0x5a   :  { %740 = vmatpush.msrb.mxu3 %v7243_v33  ;;  %721 = vmatpush.msrb.mxu2 %v7241_v32 }
  0x5b   :  { %682 = vmatpush.msra.mxu0 %v7247_v34  ;;  %702 = vmatpush.msrb.mxu1 %v7236_v31 }
  0x5c   :  { %741 = vmatpush.msrb.mxu3 %v7255_v37  ;;  %722 = vmatpush.msrb.mxu2 %v7253_v36 }
  0x5d   :  { %683 = vmatpush.msra.mxu0 %v7257_v38  ;;  %703 = vmatpush.msrb.mxu1 %v7249_v35  ;;  %v11034_v38 = vld [vmem:[#allocation26_spill] sm:$0xff] }
  0x5e   :  { %742 = vmatpush.msrb.mxu3 %v7267_v41  ;;  %723 = vmatpush.msrb.mxu2 %v7265_v40 }
  0x5f   :  { %684 = vmatpush.msra.mxu0 %v7276_v43  ;;  %704 = vmatpush.msrb.mxu1 %v7261_v39 }
  0x60   :  { %6351 = vmatmul.msk.f32.gmra.mxu1 %vm158_vm0, %v7147_v4  ;;  %743 = vmatpush.msrb.mxu3 %v7286_v46 }
  0x61   :  { %6359 = vmatmul.msk.f32.gmra.mxu2 %vm158_vm0, %v7147_v4  ;;  %6367 = vmatmul.msk.f32.gmra.mxu3 %vm158_vm0, %v7147_v4  ;;  %v11033_v4 = vld [vmem:[#allocation25_spill] sm:$0xff] }
  0x62   :  { %724 = vmatpush.msrb.mxu2 %v7284_v45  ;;  %744 = vmatpush.msrb.mxu3 %v7298_v50 }
  0x63   :  { %685 = vmatpush.msra.mxu0 %v7290_v47  ;;  %705 = vmatpush.msrb.mxu1 %v7279_v44 }
  0x64   :  { %725 = vmatpush.msrb.mxu2 %v7296_v49  ;;  %745 = vmatpush.msrb.mxu3 %v7310_v54 }
  0x65   :  { %686 = vmatpush.msra.mxu0 %v7300_v51  ;;  %706 = vmatpush.msrb.mxu1 %v7292_v48 }
  0x66   :  { %726 = vmatpush.msrb.mxu2 %v7308_v53  ;;  %746 = vmatpush.msrb.mxu3 %v7335_v61 }
  0x67   :  { %687 = vmatpush.msra.mxu0 %v7312_v55  ;;  %707 = vmatpush.msrb.mxu1 %v7304_v52 }
  0x68   :  { %489 = vmatmul.f32.vlgmr.msra.gmra.mxu1 %v10821_v62  ;;  %727 = vmatpush.msrb.mxu2 %v7329_v59 }
  0x69   :  { %509 = vmatmul.f32.vlgmr.msra.gmra.mxu2 %v10821_v62  ;;  %529 = vmatmul.f32.vlgmr.msra.gmra.mxu3 %v10821_v62  ;;  %v7724_v62 = vld [vmem:[#allocation6 + $0x120] sm:$0xff] }
  0x6a   :  { %747 = vmatpush.msrb.mxu3 %v7347_v1  ;;  %688 = vmatpush.msra.mxu0 %v7321_v57  ;;  %11072 = vst [vmem:[#allocation60_spill] sm:$0xff] %v7724_v62 }
  0x6b   :  { %708 = vmatpush.msrb.mxu1 %v7327_v58  ;;  %728 = vmatpush.msrb.mxu2 %v7341_v63 }
  0x6c   :  { %748 = vmatpush.msrb.mxu3 %v7367_v29  ;;  %689 = vmatpush.msra.mxu0 %v7333_v60 }
  0x6d   :  { %709 = vmatpush.msrb.mxu1 %v11031_v2  ;;  %729 = vmatpush.msrb.mxu2 %v7353_v6 }
  0x6e   :  { %749 = vmatpush.msrb.mxu3 %v7374_v5  ;;  %690 = vmatpush.msra.mxu0 %v11032_v3 }
  0x6f   :  { %710 = vmatpush.msrb.mxu1 %v11033_v4  ;;  %730 = vmatpush.msrb.mxu2 %v7369_v42 }
  0x70   :  { %750 = vmatpush.msrb.mxu3 %v7381_v7  ;;  %691 = vmatpush.msra.mxu0 %v11034_v38 }
  0x71   :  { %711 = vmatpush.msrb.mxu1 %v7363_v15  ;;  %731 = vmatpush.msrb.mxu2 %v7377_v0 }
  0x72   :  { %751 = vmatpush.msrb.mxu3 %v7387_v56  ;;  %900 = vmatpush.msrb.mxu0 %v7167_v9 }
  0x73   :  { %920 = vmatpush.msra.mxu1 %v7161_v8  ;;  %940 = vmatpush.msra.mxu2 %v7169_v10 }
  0x74   :  { %960 = vmatpush.msra.mxu3 %v7186_v16  ;;  %901 = vmatpush.msrb.mxu0 %v7174_v12 }
  0x75   :  { %921 = vmatpush.msra.mxu1 %v7171_v11  ;;  %941 = vmatpush.msra.mxu2 %v7176_v13 }
  0x76   :  { %961 = vmatpush.msra.mxu3 %v7200_v20  ;;  %902 = vmatpush.msrb.mxu0 %v7190_v17 }
  0x77   :  { %922 = vmatpush.msra.mxu1 %v7180_v14  ;;  %942 = vmatpush.msra.mxu2 %v7198_v19 }
  0x78   :  { %962 = vmatpush.msra.mxu3 %v7212_v24  ;;  %903 = vmatpush.msrb.mxu0 %v7204_v21 }
  0x79   :  { %923 = vmatpush.msra.mxu1 %v7193_v18  ;;  %943 = vmatpush.msra.mxu2 %v7210_v23 }
  0x7a   :  { %963 = vmatpush.msra.mxu3 %v7224_v28  ;;  %904 = vmatpush.msrb.mxu0 %v7214_v25 }
  0x7b   :  { %924 = vmatpush.msra.mxu1 %v7206_v22  ;;  %944 = vmatpush.msra.mxu2 %v7222_v27 }
  0x7c   :  { %964 = vmatpush.msra.mxu3 %v7243_v33  ;;  %905 = vmatpush.msrb.mxu0 %v7233_v30 }
  0x7d   :  { %925 = vmatpush.msra.mxu1 %v7218_v26  ;;  %945 = vmatpush.msra.mxu2 %v7241_v32 }
  0x7e   :  { %965 = vmatpush.msra.mxu3 %v7255_v37  ;;  %906 = vmatpush.msrb.mxu0 %v7247_v34 }
  0x7f   :  { %926 = vmatpush.msra.mxu1 %v7236_v31  ;;  %946 = vmatpush.msra.mxu2 %v7253_v36  ;;  %v148_v31 = vld [vmem:[%s10805_s3] sm:$0xf] }
  0x80   :  { %966 = vmatpush.msra.mxu3 %v7267_v41  ;;  %v7592_v57 = vperm.slane %v148_v31, 2 }
  0x81   :  { %927 = vmatpush.msra.mxu1 %v7249_v35  ;;  %947 = vmatpush.msra.mxu2 %v7265_v40  ;;  %v7572_v35 = vperm.slane %v148_v31, 0 }
  0x82   :  { %967 = vmatpush.msra.mxu3 %v7286_v46  ;;  %11056 = vst [vmem:[#allocation44_spill] sm:$0xff] %v7592_v57 }
  0x83   :  { %928 = vmatpush.msra.mxu1 %v7261_v39  ;;  %948 = vmatpush.msra.mxu2 %v7284_v45  ;;  %11047 = vst [vmem:[#allocation35_spill] sm:$0xff] %v7572_v35 }
  0x84   :  { %968 = vmatpush.msra.mxu3 %v7298_v50 }
  0x85   :  { %929 = vmatpush.msra.mxu1 %v7279_v44  ;;  %949 = vmatpush.msra.mxu2 %v7296_v49  ;;  %v7585_v49 = vperm.slane %v148_v31, 1 }
  0x86   :  { %969 = vmatpush.msra.mxu3 %v7310_v54 }
  0x87   :  { %930 = vmatpush.msra.mxu1 %v7292_v48  ;;  %950 = vmatpush.msra.mxu2 %v7308_v53  ;;  %11053 = vst [vmem:[#allocation41_spill] sm:$0xff] %v7585_v49 }
  0x88   :  { %970 = vmatpush.msra.mxu3 %v7335_v61 }
  0x89   :  { %931 = vmatpush.msra.mxu1 %v7304_v52  ;;  %951 = vmatpush.msra.mxu2 %v7329_v59 }
  0x8a   :  { %971 = vmatpush.msra.mxu3 %v7347_v1 }
  0x8b   :  { %932 = vmatpush.msra.mxu1 %v7327_v58  ;;  %952 = vmatpush.msra.mxu2 %v7341_v63 }
  0x8c   :  { %972 = vmatpush.msra.mxu3 %v7367_v29 }
  0x8d   :  { %933 = vmatpush.msra.mxu1 %v11031_v2  ;;  %953 = vmatpush.msra.mxu2 %v7353_v6 }
  0x8e   :  { %973 = vmatpush.msra.mxu3 %v7374_v5 }
  0x8f   :  { %934 = vmatpush.msra.mxu1 %v11033_v4  ;;  %954 = vmatpush.msra.mxu2 %v7369_v42 }
  0x90   :  { %974 = vmatpush.msra.mxu3 %v7381_v7  ;;  %v7597_v7 = vperm.slane %v148_v31, 3 }
  0x91   :  { %935 = vmatpush.msra.mxu1 %v7363_v15  ;;  %955 = vmatpush.msra.mxu2 %v7377_v0 }
  0x92   :  { %975 = vmatpush.msra.mxu3 %v7387_v56  ;;  %11058 = vst [vmem:[#allocation46_spill] sm:$0xff] %v7597_v7 }
  0x9c   :  { %v200_v8 = vpop.f32.mrf.mxu0  ;;  %v7529_v9 = vpop.f32.mrf.mxu1 }
  0x9d   :  { %11035 = vst [vmem:[#allocation23_spill] sm:$0xff] %v7529_v9  ;;  %v201_v37 = vadd.f32 %v200_v8, %v7572_v35 }
  0xa3   :  { %v7531_v10 = vpop.f32.mrf.mxu2  ;;  %v7533_v11 = vpop.f32.mrf.mxu3 }
  0xa4   :  { %11036 = vst [vmem:[#allocation24_spill] sm:$0xff] %v7531_v10  ;;  %v7535_v13 = vpop.f32.mrf.mxu0 }
  0xa5   :  { %11037 = vst [vmem:[#allocation25_spill] sm:$0xff] %v7533_v11  ;;  %v241_v12 = vpop.f32.mrf.mxu1  ;;  %v7736_v11 = vld [vmem:[#allocation6 + $0x108] sm:$0xff] }
  0xa6   :  { %v242_v52 = vadd.f32 %v241_v12, %v7585_v49 }
  0xab   :  { %v282_v14 = vpop.f32.mrf.mxu2 }
  0xac   :  { %v323_v16 = vpop.f32.mrf.mxu3  ;;  %v7539_v18 = vpop.f32.mrf.mxu0  ;;  %v283_v60 = vadd.f32 %v282_v14, %v7592_v57 }
  0xad   :  { %v7537_v17 = vpop.f32.mrf.mxu1  ;;  %v324_v56 = vadd.f32 %v323_v16, %v7597_v7  ;;  %v207_v10 = vadd.f32 %v7539_v18, %v7572_v35  ;;  %v7766_v18 = vld [vmem:[#allocation6 + $0xd8] sm:$0xff] }
  0xb3   :  { %v7541_v19 = vpop.f32.mrf.mxu2 }
  0xb4   :  { %v7543_v20 = vpop.f32.mrf.mxu3  ;;  %v7547_v22 = vpop.f32.mrf.mxu0 }
  0xb5   :  { %v7545_v21 = vpop.f32.mrf.mxu1  ;;  %11038 = vst [vmem:[#allocation26_spill] sm:$0xff] %v7547_v22  ;;  %v7798_v22 = vld [vmem:[#allocation6 + $0x78] sm:$0xff] }
  0xb6   :  { %11077 = vst [vmem:[#allocation65_spill] sm:$0xff] %v7798_v22 }
  0xbb   :  { %v7549_v23 = vpop.f32.mrf.mxu2 }
  0xbc   :  { %v7551_v24 = vpop.f32.mrf.mxu3  ;;  %v7555_v26 = vpop.f32.mrf.mxu0 }
  0xbd   :  { %v7553_v25 = vpop.f32.mrf.mxu1  ;;  %11040 = vst [vmem:[#allocation28_spill] sm:$0xff] %v7555_v26  ;;  %v7772_v26 = vld [vmem:[#allocation6 + $0xa8] sm:$0xff] }
  0xbe   :  { %11039 = vst [vmem:[#allocation27_spill] sm:$0xff] %v7553_v25 }
  0xc3   :  { %v7557_v27 = vpop.f32.mrf.mxu2 }
  0xc4   :  { %11041 = vst [vmem:[#allocation29_spill] sm:$0xff] %v7557_v27  ;;  %v7559_v28 = vpop.f32.mrf.mxu3  ;;  %v7776_v27 = vld [vmem:[#allocation6 + $0xb8] sm:$0xff] }
  0xc5   :  { %11042 = vst [vmem:[#allocation30_spill] sm:$0xff] %v7559_v28  ;;  %v7561_v30 = vpop.f32.mrf.mxu1  ;;  %v7774_v28 = vld [vmem:[#allocation6 + $0xb0] sm:$0xff] }
  0xc6   :  { %11043 = vst [vmem:[#allocation31_spill] sm:$0xff] %v7561_v30  ;;  %v470_v36 = vpop.f32.mrf.mxu0 }
  0xc7   :  { %v533_v39 = vadd.f32 %v470_v36, %v201_v37 }
  0xc9   :  { %v6368_v44 = vmul.f32 -1.442695, %v533_v39 }
  0xcb   :  { %v7566_v32 = vpop.f32.mrf.mxu2  ;;  %6456 = vpow2.f32 %v6368_v44 }
  0xcc   :  { %11044 = vst [vmem:[#allocation32_spill] sm:$0xff] %v7566_v32  ;;  %v7568_v33 = vpop.f32.mrf.mxu3  ;;  %v7764_v32 = vld [vmem:[#allocation6 + $0xd0] sm:$0xff] }
  0xcd   :  { %11045 = vst [vmem:[#allocation33_spill] sm:$0xff] %v7568_v33  ;;  %v7570_v34 = vpop.f32.mrf.mxu1  ;;  %v7762_v33 = vld [vmem:[#allocation6 + $0xc8] sm:$0xff] }
  0xce   :  { %11046 = vst [vmem:[#allocation34_spill] sm:$0xff] %v7570_v34 }
  0xd1   :  { %v6457_v48 = vpop.eup %6456 }
  0xd2   :  { %v546_v51 = vadd.f32 1.0, %v6457_v48 }
  0xd4   :  { %v7575_v40 = vpop.f32.mrf.mxu2  ;;  %v7579_v45 = vpop.f32.mrf.mxu3  ;;  %6458 = vrcp.f32 %v546_v51  ;;  %vm554_vm2 = vweird.f32 %v546_v51  ;;  %v560_v37 = vand.u32 2147483648, %v546_v51  ;;  %v558_v44 = vand.u32 2147483647, %v546_v51 }
  0xd5   :  { %11048 = vst [vmem:[#allocation36_spill] sm:$0xff] %v7575_v40  ;;  %v7577_v41 = vpop.f32.mrf.mxu1  ;;  %v7758_v40 = vld [vmem:[#allocation6 + $0xf8] sm:$0xff] }
  0xd6   :  { %11049 = vst [vmem:[#allocation37_spill] sm:$0xff] %v7577_v41  ;;  %vm559_vm7 = vcmp.eq.f32.partialorder %v558_v44, 8.507059e+37  ;;  %v7617_v44 = vld [vmem:[#allocation6 + $0xc0] sm:$0xff]  ;;  %v7750_v41 = vld [vmem:[#allocation6 + $0xf0] sm:$0xff] }
  0xd7   :  { %11050 = vst [vmem:[#allocation38_spill] sm:$0xff] %v7579_v45  ;;  %v248_v45 = vadd.f32 %v7545_v21, %v7585_v49 }
  0xda   :  { %v6459_v63 = vpop.eup %6458 }
  0xdb   :  { %v550_v6 = vmul.f32 %v6459_v63, %v546_v51  ;;  %vm555_vm1 = vweird.f32 %v6459_v63 }
  0xdc   :  { %v7581_v46 = vpop.f32.mrf.mxu2  ;;  %v7587_v50 = vpop.f32.mrf.mxu3  ;;  %vm556_vm4 = vmor %vm554_vm2, %vm555_vm1 }
  0xdd   :  { %11051 = vst [vmem:[#allocation39_spill] sm:$0xff] %v7581_v46  ;;  %v7583_v47 = vpop.f32.mrf.mxu1  ;;  %v551_v29 = vsub.f32 1.0, %v550_v6  ;;  %v7748_v46 = vld [vmem:[#allocation6 + $0xe8] sm:$0xff] }
  0xde   :  { %11052 = vst [vmem:[#allocation40_spill] sm:$0xff] %v7583_v47  ;;  %v7732_v47 = vld [vmem:[#allocation6 + $0x138] sm:$0xff] }
  0xdf   :  { %11054 = vst [vmem:[#allocation42_spill] sm:$0xff] %v7587_v50  ;;  %v552_v38 = vmul.f32 %v6459_v63, %v551_v29  ;;  %v7746_v50 = vld [vmem:[#allocation6 + $0xe0] sm:$0xff] }
  0xe1   :  { %v553_v36 = vadd.f32 %v6459_v63, %v552_v38 }
  0xe4   :  { %v7590_v53 = vpop.f32.mrf.mxu2  ;;  %v7594_v59 = vpop.f32.mrf.mxu3 }
  0xe5   :  { %11055 = vst [vmem:[#allocation43_spill] sm:$0xff] %v7590_v53  ;;  %v490_v54 = vpop.f32.mrf.mxu1  ;;  %v7728_v53 = vld [vmem:[#allocation6 + $0x130] sm:$0xff] }
  0xe6   :  { %v534_v55 = vadd.f32 %v490_v54, %v242_v52  ;;  %11057 = vst [vmem:[#allocation45_spill] sm:$0xff] %v7594_v59  ;;  %v557_v52 = vsel %vm556_vm4, %v6459_v63, %v553_v36  ;;  %v7609_v36 = vld [vmem:[#allocation6 + $0x100] sm:$0xff]  ;;  %v7726_v59 = vld [vmem:[#allocation6 + $0x128] sm:$0xff] }
  0xe7   :  { %907 = vmatpush.msrb.mxu0 %v7609_v36  ;;  %11073 = vst [vmem:[#allocation61_spill] sm:$0xff] %v7726_v59 }
  0xe8   :  { %v6369_v58 = vmul.f32 -1.442695, %v534_v55 }
  0xe9   :  { %908 = vmatpush.msrb.mxu0 %v7276_v43  ;;  %v286_v43 = vadd.f32 %v7541_v19, %v7592_v57 }
  0xea   :  { %6460 = vpow2.f32 %v6369_v58 }
  0xeb   :  { %909 = vmatpush.msrb.mxu0 %v7617_v44 }
  0xec   :  { %v510_v61 = vpop.f32.mrf.mxu2  ;;  %v530_v42 = vpop.f32.mrf.mxu3 }
  0xed   :  { %v535_v0 = vadd.f32 %v510_v61, %v283_v60  ;;  %v536_v3 = vadd.f32 %v530_v42, %v324_v56  ;;  %v561_v61 = vor.u32 1.1754944e-38, %v560_v37 }
  0xef   :  { %v6370_v1 = vmul.f32 -1.442695, %v535_v0 }
  0xf0   :  { %v6461_v5 = vpop.eup %6460 }
  0xf1   :  { %v547_v15 = vadd.f32 1.0, %v6461_v5  ;;  %6462 = vpow2.f32 %v6370_v1  ;;  %v562_v5 = vsel %vm559_vm7, %v561_v61, %v557_v52  ;;  %v7620_v52 = vld [vmem:[#allocation6 + $0xa0] sm:$0xff] }
  0xf2   :  { %910 = vmatpush.msrb.mxu0 %v7620_v52  ;;  %v7631_v61 = vld [vmem:[#allocation6 + $0x40] sm:$0xff] }
  0xf3   :  { %6464 = vrcp.f32 %v547_v15  ;;  %v575_v31 = vand.u32 2147483648, %v547_v15  ;;  %v573_v48 = vand.u32 2147483647, %v547_v15  ;;  %vm569_vm5 = vweird.f32 %v547_v15  ;;  %11060 = vst [vmem:[#allocation48_spill] sm:$0xff] %v7631_v61 }
  0xf5   :  { %v576_v58 = vor.u32 1.1754944e-38, %v575_v31  ;;  %vm574_vm8 = vcmp.eq.f32.partialorder %v573_v48, 8.507059e+37  ;;  %v245_v31 = vadd.f32 %v7537_v17, %v7585_v49  ;;  %v7628_v17 = vld [vmem:[#allocation6 + $0x60] sm:$0xff] }
  0xf7   :  { %v6463_v2 = vpop.eup %6462 }
  0xf8   :  { %v548_v4 = vadd.f32 1.0, %v6463_v2 }
  0xf9   :  { %v6465_v8 = vpop.eup %6464 }
  0xfa   :  { %v565_v12 = vmul.f32 %v6465_v8, %v547_v15  ;;  %6466 = vrcp.f32 %v548_v4  ;;  %vm570_vm3 = vweird.f32 %v6465_v8  ;;  %v590_v63 = vand.u32 2147483648, %v548_v4 }
  0xfb   :  { %6468 = vtanh.f32 %v536_v3  ;;  %vm571_vm6 = vmor %vm569_vm5, %vm570_vm3  ;;  %vm584_vm10 = vweird.f32 %v548_v4  ;;  %v588_v15 = vand.u32 2147483647, %v548_v4 }
  0xfc   :  { %v566_v14 = vsub.f32 1.0, %v565_v12  ;;  %v591_v38 = vor.u32 1.1754944e-38, %v590_v63  ;;  %v327_v63 = vadd.f32 %v7543_v20, %v7597_v7 }
  0xfd   :  { %vm589_vm12 = vcmp.eq.f32.partialorder %v588_v15, 8.507059e+37 }
  0xfe   :  { %v567_v39 = vmul.f32 %v6465_v8, %v566_v14 }
 0x100   :  { %v6467_v16 = vpop.eup %6466  ;;  %v568_v54 = vadd.f32 %v6465_v8, %v567_v39 }
 0x101   :  { %v6469_v55 = vpop.eup %6468  ;;  %v580_v60 = vmul.f32 %v6467_v16, %v548_v4  ;;  %vm585_vm9 = vweird.f32 %v6467_v16  ;;  %v204_v4 = vadd.f32 %v7535_v13, %v7572_v35  ;;  %v7623_v13 = vld [vmem:[#allocation6 + $0x80] sm:$0xff] }
 0x102   :  { %v572_v0 = vsel %vm571_vm6, %v6465_v8, %v568_v54  ;;  %v597_v51 = vmul.f32 %v6469_v55, %v562_v5  ;;  %vm586_vm11 = vmor %vm584_vm10, %vm585_vm9  ;;  %911 = vmatpush.msrb.mxu0 %v7623_v13 }
 0x103   :  { %v581_v1 = vsub.f32 1.0, %v580_v60  ;;  %v577_v6 = vsel %vm574_vm8, %v576_v58, %v572_v0 }
 0x104   :  { %v596_v29 = vmul.f32 0.0, %v577_v6  ;;  %912 = vmatpush.msrb.mxu0 %v7628_v17  ;;  %v7637_v6 = vld [vmem:[#allocation6] sm:$0xff] }
 0x105   :  { %v582_v42 = vmul.f32 %v6467_v16, %v581_v1  ;;  %v7634_v1 = vld [vmem:[#allocation6 + $0x20] sm:$0xff] }
 0x106   :  { %v7600_v56 = vadd.f32 %v597_v51, %v596_v29  ;;  %913 = vmatpush.msrb.mxu0 %v7631_v61 }
 0x107   :  { %v583_v2 = vadd.f32 %v6467_v16, %v582_v42 }
 0x108   :  { %6470 = vtanh.f32 %v7600_v56  ;;  %914 = vmatpush.msrb.mxu0 %v7634_v1 }
 0x109   :  { %v587_v3 = vsel %vm586_vm11, %v6467_v16, %v583_v2 }
 0x10a   :  { %v592_v12 = vsel %vm589_vm12, %v591_v38, %v587_v3  ;;  %915 = vmatpush.msrb.mxu0 %v7637_v6 }
 0x10e   :  { %v6471_v8 = vpop.eup %6470 }
 0x10f   :  { %v7603_v14 = vmul.f32 %v6471_v8, %v592_v12 }
 0x111   :  { %11059 = vst [vmem:[#allocation47_spill] sm:$0xff] %v7603_v14  ;;  %692 = vmatmul.f32.vlgmr.msra.gmra.mxu0 %v7603_v14  ;;  %712 = vmatmul.f32.vlgmr.msrb.gmra.mxu1 %v7603_v14 }
 0x112   :  { %732 = vmatmul.f32.vlgmr.msrb.gmra.mxu2 %v7603_v14  ;;  %752 = vmatmul.f32.vlgmr.msrb.gmra.mxu3 %v7603_v14  ;;  %v7740_v14 = vld [vmem:[#allocation6 + $0x118] sm:$0xff] }
 0x18e   :  { %v693_v37 = vpop.f32.mrf.mxu0  ;;  %v713_v39 = vpop.f32.mrf.mxu1 }
 0x18f   :  { %v756_v48 = vadd.f32 %v693_v37, %v204_v4  ;;  %v757_v16 = vadd.f32 %v713_v39, %v245_v31 }
 0x191   :  { %v6371_v54 = vmul.f32 -1.442695, %v756_v48  ;;  %v6372_v55 = vmul.f32 -1.442695, %v757_v16 }
 0x193   :  { %6472 = vpow2.f32 %v6371_v54 }
 0x194   :  { %6474 = vpow2.f32 %v6372_v55 }
 0x195   :  { %v733_v58 = vpop.f32.mrf.mxu2  ;;  %v753_v42 = vpop.f32.mrf.mxu3 }
 0x196   :  { %v758_v60 = vadd.f32 %v733_v58, %v286_v43  ;;  %v759_v38 = vadd.f32 %v753_v42, %v327_v63 }
 0x198   :  { %v6373_v0 = vmul.f32 -1.442695, %v758_v60 }
 0x199   :  { %v6473_v5 = vpop.eup %6472 }
 0x19a   :  { %v6475_v19 = vpop.eup %6474  ;;  %v769_v29 = vadd.f32 1.0, %v6473_v5  ;;  %6476 = vpow2.f32 %v6373_v0 }
 0x19b   :  { %v770_v51 = vadd.f32 1.0, %v6475_v19 }
 0x19c   :  { %6478 = vrcp.f32 %v769_v29  ;;  %v783_v39 = vand.u32 2147483648, %v769_v29  ;;  %v781_v54 = vand.u32 2147483647, %v769_v29  ;;  %vm777_vm15 = vweird.f32 %v769_v29 }
 0x19d   :  { %6480 = vrcp.f32 %v770_v51  ;;  %v798_v48 = vand.u32 2147483648, %v770_v51  ;;  %v796_v43 = vand.u32 2147483647, %v770_v51  ;;  %vm792_vm0 = vweird.f32 %v770_v51 }
 0x19e   :  { %v784_v0 = vor.u32 1.1754944e-38, %v783_v39  ;;  %vm782_vm3 = vcmp.eq.f32.partialorder %v781_v54, 8.507059e+37 }
 0x19f   :  { %v799_v19 = vor.u32 1.1754944e-38, %v798_v48  ;;  %vm797_vm4 = vcmp.eq.f32.partialorder %v796_v43, 8.507059e+37 }
 0x1a0   :  { %v6477_v2 = vpop.eup %6476 }
 0x1a1   :  { %v771_v15 = vadd.f32 1.0, %v6477_v2 }
 0x1a2   :  { %v6479_v3 = vpop.eup %6478 }
 0x1a3   :  { %v6481_v8 = vpop.eup %6480  ;;  %v773_v12 = vmul.f32 %v6479_v3, %v769_v29  ;;  %6482 = vrcp.f32 %v771_v15  ;;  %vm778_vm13 = vweird.f32 %v6479_v3  ;;  %v813_v39 = vand.u32 2147483648, %v771_v15 }
 0x1a4   :  { %v788_v4 = vmul.f32 %v6481_v8, %v770_v51  ;;  %6484 = vtanh.f32 %v759_v38  ;;  %vm793_vm14 = vweird.f32 %v6481_v8  ;;  %vm779_vm1 = vmor %vm777_vm15, %vm778_vm13  ;;  %vm807_vm6 = vweird.f32 %v771_v15 }
 0x1a5   :  { %v774_v31 = vsub.f32 1.0, %v773_v12  ;;  %vm794_vm2 = vmor %vm792_vm0, %vm793_vm14  ;;  %v814_v54 = vor.u32 1.1754944e-38, %v813_v39  ;;  %v7704_v39 = vld [vmem:[#allocation6 + $0x170] sm:$0xff] }
 0x1a6   :  { %v789_v37 = vsub.f32 1.0, %v788_v4 }
 0x1a7   :  { %v775_v16 = vmul.f32 %v6479_v3, %v774_v31 }
 0x1a8   :  { %v790_v55 = vmul.f32 %v6481_v8, %v789_v37 }
 0x1a9   :  { %v6483_v58 = vpop.eup %6482  ;;  %v776_v20 = vadd.f32 %v6479_v3, %v775_v16 }
 0x1aa   :  { %v803_v60 = vmul.f32 %v6483_v58, %v771_v15  ;;  %v791_v5 = vadd.f32 %v6481_v8, %v790_v55  ;;  %v6485_v2 = vpop.eup %6484  ;;  %vm808_vm5 = vweird.f32 %v6483_v58 }
 0x1ab   :  { %v780_v42 = vsel %vm779_vm1, %v6479_v3, %v776_v20  ;;  %v811_v3 = vand.u32 2147483647, %v771_v15  ;;  %vm809_vm7 = vmor %vm807_vm6, %vm808_vm5  ;;  %v7654_v20 = vld [vmem:[#allocation6 + $0x1e8] sm:$0xff]  ;;  %v7656_v15 = vld [vmem:[#allocation6 + $0x1f0] sm:$0xff] }
 0x1ac   :  { %v804_v63 = vsub.f32 1.0, %v803_v60  ;;  %v785_v38 = vsel %vm782_vm3, %v784_v0, %v780_v42  ;;  %v795_v12 = vsel %vm794_vm2, %v6481_v8, %v791_v5  ;;  %11063 = vst [vmem:[#allocation51_spill] sm:$0xff] %v7656_v15  ;;  %1144 = vmatpush.msrb.mxu1 %v7654_v20  ;;  %1164 = vmatpush.msrb.mxu2 %v7656_v15  ;;  %v7664_v60 = vld [vmem:[#allocation6 + $0x1c0] sm:$0xff]  ;;  %v7666_v0 = vld [vmem:[#allocation6 + $0x1c8] sm:$0xff]  ;;  %v7668_v5 = vld [vmem:[#allocation6 + $0x1d0] sm:$0xff] }
 0x1ad   :  { %v800_v4 = vsel %vm797_vm4, %v799_v19, %v795_v12  ;;  %v820_v31 = vmul.f32 %v6485_v2, %v785_v38  ;;  %vm812_vm8 = vcmp.eq.f32.partialorder %v811_v3, 8.507059e+37  ;;  %11065 = vst [vmem:[#allocation53_spill] sm:$0xff] %v7664_v60  ;;  %v7672_v19 = vld [vmem:[#allocation6 + $0x1d8] sm:$0xff]  ;;  %v7676_v42 = vld [vmem:[#allocation6 + $0x1a0] sm:$0xff]  ;;  %v7678_v2 = vld [vmem:[#allocation6 + $0x1a8] sm:$0xff] }
 0x1ae   :  { %v805_v37 = vmul.f32 %v6483_v58, %v804_v63  ;;  %v819_v16 = vmul.f32 %v800_v4, %v7600_v56  ;;  %v7652_v56 = vld [vmem:[#allocation6 + $0x1e0] sm:$0xff]  ;;  %11066 = vst [vmem:[#allocation54_spill] sm:$0xff] %v7666_v0  ;;  %1145 = vmatpush.msrb.mxu1 %v7666_v0  ;;  %1165 = vmatpush.msrb.mxu2 %v7668_v5  ;;  %v7680_v63 = vld [vmem:[#allocation6 + $0x1b0] sm:$0xff]  ;;  %v7684_v38 = vld [vmem:[#allocation6 + $0x1b8] sm:$0xff] }
 0x1af   :  { %11062 = vst [vmem:[#allocation50_spill] sm:$0xff] %v7652_v56  ;;  %1124 = vmatpush.msra.mxu0 %v7652_v56  ;;  %v7688_v12 = vld [vmem:[#allocation6 + $0x180] sm:$0xff]  ;;  %v7690_v4 = vld [vmem:[#allocation6 + $0x188] sm:$0xff]  ;;  %v7708_v3 = vld [vmem:[#allocation6 + $0x178] sm:$0xff] }
 0x1b0   :  { %v7643_v29 = vadd.f32 %v820_v31, %v819_v16  ;;  %v806_v51 = vadd.f32 %v6483_v58, %v805_v37  ;;  %1146 = vmatpush.msrb.mxu1 %v7678_v2  ;;  %1166 = vmatpush.msrb.mxu2 %v7680_v63  ;;  %11067 = vst [vmem:[#allocation55_spill] sm:$0xff] %v7690_v4  ;;  %v7692_v31 = vld [vmem:[#allocation6 + $0x190] sm:$0xff]  ;;  %v7696_v37 = vld [vmem:[#allocation6 + $0x198] sm:$0xff]  ;;  %v7700_v16 = vld [vmem:[#allocation6 + $0x160] sm:$0xff] }
 0x1b1   :  { %1125 = vmatpush.msra.mxu0 %v7664_v60  ;;  %11068 = vst [vmem:[#allocation56_spill] sm:$0xff] %v7692_v31 }
 0x1b2   :  { %6486 = vtanh.f32 %v7643_v29  ;;  %v810_v48 = vsel %vm809_vm7, %v6483_v58, %v806_v51  ;;  %v7660_v58 = vld [vmem:[#allocation6 + $0x1f8] sm:$0xff]  ;;  %1147 = vmatpush.msrb.mxu1 %v7690_v4  ;;  %1167 = vmatpush.msrb.mxu2 %v7692_v31  ;;  %v7702_v51 = vld [vmem:[#allocation6 + $0x168] sm:$0xff]  ;;  %11069 = vst [vmem:[#allocation57_spill] sm:$0xff] %v7708_v3 }
 0x1b3   :  { %v815_v55 = vsel %vm812_vm8, %v814_v54, %v810_v48  ;;  %11064 = vst [vmem:[#allocation52_spill] sm:$0xff] %v7660_v58  ;;  %1184 = vmatpush.msrb.mxu3 %v7660_v58  ;;  %1126 = vmatpush.msra.mxu0 %v7676_v42  ;;  %v7712_v48 = vld [vmem:[#allocation6 + $0x140] sm:$0xff]  ;;  %v7714_v54 = vld [vmem:[#allocation6 + $0x148] sm:$0xff] }
 0x1b4   :  { %1148 = vmatpush.msrb.mxu1 %v7702_v51  ;;  %1168 = vmatpush.msrb.mxu2 %v7704_v39 }
 0x1b5   :  { %1185 = vmatpush.msrb.mxu3 %v7672_v19  ;;  %1127 = vmatpush.msra.mxu0 %v7688_v12 }
 0x1b6   :  { %1149 = vmatpush.msrb.mxu1 %v7714_v54 }
 0x1b7   :  { %1186 = vmatpush.msrb.mxu3 %v7684_v38  ;;  %1128 = vmatpush.msra.mxu0 %v7700_v16 }
 0x1b8   :  { %v6487_v8 = vpop.eup %6486  ;;  %1150 = vmatpush.msrb.mxu1 %v7726_v59 }
 0x1b9   :  { %v7646_v43 = vmul.f32 %v6487_v8, %v815_v55  ;;  %1187 = vmatpush.msrb.mxu3 %v7696_v37  ;;  %v7716_v8 = vld [vmem:[#allocation6 + $0x150] sm:$0xff]  ;;  %1129 = vmatpush.msra.mxu0 %v7712_v48  ;;  %v7720_v55 = vld [vmem:[#allocation6 + $0x158] sm:$0xff] }
 0x1ba   :  { %11070 = vst [vmem:[#allocation58_spill] sm:$0xff] %v7716_v8  ;;  %1169 = vmatpush.msrb.mxu2 %v7716_v8  ;;  %1151 = vmatpush.msrb.mxu1 %v7736_v11 }
 0x1bb   :  { %11061 = vst [vmem:[#allocation49_spill] sm:$0xff] %v7646_v43  ;;  %916 = vmatmul.f32.vlgmr.msrb.gmra.mxu0 %v7646_v43  ;;  %936 = vmatmul.f32.vlgmr.msra.gmra.mxu1 %v7646_v43 }
 0x1bc   :  { %956 = vmatmul.f32.vlgmr.msra.gmra.mxu2 %v7646_v43  ;;  %976 = vmatmul.f32.vlgmr.msra.gmra.mxu3 %v7646_v43  ;;  %11071 = vst [vmem:[#allocation59_spill] sm:$0xff] %v7720_v55  ;;  %v7738_v43 = vld [vmem:[#allocation6 + $0x110] sm:$0xff] }
 0x1bd   :  { %1188 = vmatpush.msrb.mxu3 %v7708_v3  ;;  %1130 = vmatpush.msra.mxu0 %v7724_v62 }
 0x1be   :  { %1170 = vmatpush.msrb.mxu2 %v7728_v53  ;;  %1152 = vmatpush.msrb.mxu1 %v7748_v46 }
 0x1bf   :  { %1189 = vmatpush.msrb.mxu3 %v7720_v55  ;;  %1131 = vmatpush.msra.mxu0 %v7609_v36 }
 0x1c0   :  { %1171 = vmatpush.msrb.mxu2 %v7738_v43  ;;  %1153 = vmatpush.msrb.mxu1 %v7762_v33 }
 0x1c1   :  { %1190 = vmatpush.msrb.mxu3 %v7732_v47  ;;  %1132 = vmatpush.msra.mxu0 %v7746_v50 }
 0x1c2   :  { %1172 = vmatpush.msrb.mxu2 %v7750_v41  ;;  %1154 = vmatpush.msrb.mxu1 %v7772_v26 }
 0x1c3   :  { %1191 = vmatpush.msrb.mxu3 %v7740_v14  ;;  %1133 = vmatpush.msra.mxu0 %v7617_v44 }
 0x1c4   :  { %1173 = vmatpush.msrb.mxu2 %v7764_v32 }
 0x1c5   :  { %1192 = vmatpush.msrb.mxu3 %v7758_v40  ;;  %1134 = vmatpush.msra.mxu0 %v7620_v52 }
 0x1c6   :  { %1174 = vmatpush.msrb.mxu2 %v7774_v28 }
 0x1c7   :  { %1193 = vmatpush.msrb.mxu3 %v7766_v18  ;;  %1135 = vmatpush.msra.mxu0 %v7623_v13 }
 0x1c9   :  { %1194 = vmatpush.msrb.mxu3 %v7776_v27  ;;  %1136 = vmatpush.msra.mxu0 %v7628_v17 }
 0x1cb   :  { %1137 = vmatpush.msra.mxu0 %v7631_v61  ;;  %v7824_v61 = vld [vmem:[#allocation6 + $0x10] sm:$0xff] }
 0x1cd   :  { %1138 = vmatpush.msra.mxu0 %v7634_v1 }
 0x1cf   :  { %1139 = vmatpush.msra.mxu0 %v7637_v6 }
 0x1d1   :  { %1348 = vmatpush.msrb.mxu0 %v7652_v56 }
 0x1d3   :  { %1349 = vmatpush.msrb.mxu0 %v7664_v60 }
 0x1d5   :  { %1350 = vmatpush.msrb.mxu0 %v7676_v42 }
 0x1d7   :  { %1351 = vmatpush.msrb.mxu0 %v7688_v12 }
 0x1d9   :  { %1352 = vmatpush.msrb.mxu0 %v7700_v16 }
 0x1db   :  { %1353 = vmatpush.msrb.mxu0 %v7712_v48 }
 0x1dd   :  { %1354 = vmatpush.msrb.mxu0 %v7724_v62 }
 0x1df   :  { %1355 = vmatpush.msrb.mxu0 %v7609_v36 }
 0x1e1   :  { %1356 = vmatpush.msrb.mxu0 %v7746_v50 }
 0x1e3   :  { %1357 = vmatpush.msrb.mxu0 %v7617_v44 }
 0x1e5   :  { %1358 = vmatpush.msrb.mxu0 %v7620_v52 }
 0x1e7   :  { %1359 = vmatpush.msrb.mxu0 %v7623_v13  ;;  %v11085_v13 = vld [vmem:[#allocation48_spill] sm:$0xff] }
 0x1e9   :  { %1360 = vmatpush.msrb.mxu0 %v7628_v17  ;;  %v11090_v17 = vld [vmem:[#allocation50_spill] sm:$0xff] }
 0x1eb   :  { %1361 = vmatpush.msrb.mxu0 %v11085_v13 }
 0x1ed   :  { %1362 = vmatpush.msrb.mxu0 %v7634_v1  ;;  %v11091_v1 = vld [vmem:[#allocation51_spill] sm:$0xff] }
 0x1ef   :  { %1363 = vmatpush.msrb.mxu0 %v7637_v6  ;;  %v11095_v6 = vld [vmem:[#allocation55_spill] sm:$0xff] }
 0x238   :  { %v917_v34 = vpop.f32.mrf.mxu0  ;;  %v937_v9 = vpop.f32.mrf.mxu1 }
 0x239   :  { %v980_v30 = vadd.f32 %v917_v34, %v207_v10  ;;  %v981_v21 = vadd.f32 %v937_v9, %v248_v45  ;;  %v7782_v9 = vld [vmem:[#allocation6 + $0x88] sm:$0xff]  ;;  %v7784_v10 = vld [vmem:[#allocation6 + $0x90] sm:$0xff]  ;;  %v7786_v34 = vld [vmem:[#allocation6 + $0x98] sm:$0xff] }
 0x23a   :  { %11074 = vst [vmem:[#allocation62_spill] sm:$0xff] %v7786_v34  ;;  %1155 = vmatpush.msrb.mxu1 %v7782_v9  ;;  %1175 = vmatpush.msrb.mxu2 %v7784_v10  ;;  %v7794_v45 = vld [vmem:[#allocation6 + $0x68] sm:$0xff] }
 0x23b   :  { %v6374_v25 = vmul.f32 -1.442695, %v980_v30  ;;  %v6375_v49 = vmul.f32 -1.442695, %v981_v21  ;;  %v289_v30 = vadd.f32 %v7549_v23, %v7592_v57  ;;  %1195 = vmatpush.msrb.mxu3 %v7786_v34  ;;  %11075 = vst [vmem:[#allocation63_spill] sm:$0xff] %v7794_v45  ;;  %v7796_v21 = vld [vmem:[#allocation6 + $0x70] sm:$0xff] }
 0x23c   :  { %11076 = vst [vmem:[#allocation64_spill] sm:$0xff] %v7796_v21  ;;  %1156 = vmatpush.msrb.mxu1 %v7794_v45  ;;  %1176 = vmatpush.msrb.mxu2 %v7796_v21  ;;  %v7804_v23 = vld [vmem:[#allocation6 + $0x48] sm:$0xff]  ;;  %v7808_v57 = vld [vmem:[#allocation6 + $0x58] sm:$0xff] }
 0x23d   :  { %6488 = vpow2.f32 %v6374_v25  ;;  %1196 = vmatpush.msrb.mxu3 %v7798_v22  ;;  %11078 = vst [vmem:[#allocation66_spill] sm:$0xff] %v7804_v23  ;;  %v7818_v22 = vld [vmem:[#allocation6 + $0x38] sm:$0xff]  ;;  %v7822_v45 = vld [vmem:[#allocation6 + $0x8] sm:$0xff] }
 0x23e   :  { %6490 = vpow2.f32 %v6375_v49  ;;  %v7806_v49 = vld [vmem:[#allocation6 + $0x50] sm:$0xff]  ;;  %11080 = vst [vmem:[#allocation68_spill] sm:$0xff] %v7808_v57  ;;  %1157 = vmatpush.msrb.mxu1 %v7804_v23 }
 0x23f   :  { %v957_v35 = vpop.f32.mrf.mxu2  ;;  %11079 = vst [vmem:[#allocation67_spill] sm:$0xff] %v7806_v49  ;;  %1177 = vmatpush.msrb.mxu2 %v7806_v49  ;;  %1197 = vmatpush.msrb.mxu3 %v7808_v57 }
 0x240   :  { %v982_v25 = vadd.f32 %v957_v35, %v289_v30  ;;  %v7814_v35 = vld [vmem:[#allocation6 + $0x28] sm:$0xff]  ;;  %v7816_v30 = vld [vmem:[#allocation6 + $0x30] sm:$0xff] }
 0x241   :  { %1158 = vmatpush.msrb.mxu1 %v7814_v35  ;;  %1178 = vmatpush.msrb.mxu2 %v7816_v30  ;;  %v11081_v52 = vld [vmem:[#allocation62_spill] sm:$0xff] }
 0x242   :  { %v6376_v34 = vmul.f32 -1.442695, %v982_v25  ;;  %v7826_v25 = vld [vmem:[#allocation6 + $0x18] sm:$0xff]  ;;  %1198 = vmatpush.msrb.mxu3 %v7818_v22 }
 0x243   :  { %v6489_v21 = vpop.eup %6488  ;;  %1159 = vmatpush.msrb.mxu1 %v7822_v45  ;;  %1179 = vmatpush.msrb.mxu2 %v7824_v61 }
 0x244   :  { %v6491_v49 = vpop.eup %6490  ;;  %v7828_v23 = vadd.f32 1.0, %v6489_v21  ;;  %6492 = vpow2.f32 %v6376_v34  ;;  %1199 = vmatpush.msrb.mxu3 %v7826_v25  ;;  %v977_v34 = vpop.f32.mrf.mxu3 }
 0x245   :  { %v7832_v57 = vadd.f32 1.0, %v6491_v49  ;;  %1368 = vmatpush.msra.mxu1 %v7654_v20  ;;  %1388 = vmatpush.msra.mxu2 %v7656_v15  ;;  %v330_v49 = vadd.f32 %v7551_v24, %v7597_v7 }
 0x246   :  { %6494 = vrcp.f32 %v7828_v23  ;;  %1408 = vmatpush.msra.mxu3 %v7660_v58  ;;  %vm1001_vm11 = vweird.f32 %v7828_v23 }
 0x247   :  { %6496 = vrcp.f32 %v7832_v57  ;;  %1369 = vmatpush.msra.mxu1 %v7666_v0  ;;  %1389 = vmatpush.msra.mxu2 %v7668_v5  ;;  %v983_v15 = vadd.f32 %v977_v34, %v330_v49  ;;  %v1007_v49 = vand.u32 2147483648, %v7828_v23  ;;  %v1022_v7 = vand.u32 2147483648, %v7832_v57 }
 0x248   :  { %1409 = vmatpush.msra.mxu3 %v7672_v19  ;;  %vm1016_vm12 = vweird.f32 %v7832_v57 }
 0x249   :  { %1370 = vmatpush.msra.mxu1 %v7678_v2  ;;  %1390 = vmatpush.msra.mxu2 %v7680_v63 }
 0x24a   :  { %v6493_v21 = vpop.eup %6492  ;;  %1410 = vmatpush.msra.mxu3 %v7684_v38 }
 0x24b   :  { %v7850_v56 = vadd.f32 1.0, %v6493_v21  ;;  %1371 = vmatpush.msra.mxu1 %v7690_v4  ;;  %1391 = vmatpush.msra.mxu2 %v7692_v31  ;;  %v1005_v31 = vand.u32 2147483647, %v7828_v23 }
 0x24c   :  { %v6495_v58 = vpop.eup %6494  ;;  %1411 = vmatpush.msra.mxu3 %v7696_v37 }
 0x24d   :  { %v6497_v0 = vpop.eup %6496  ;;  %v997_v60 = vmul.f32 %v6495_v58, %v7828_v23  ;;  %6498 = vrcp.f32 %v7850_v56  ;;  %1372 = vmatpush.msra.mxu1 %v7702_v51  ;;  %1392 = vmatpush.msra.mxu2 %v7704_v39  ;;  %vm1002_vm9 = vweird.f32 %v6495_v58  ;;  %vm1006_vm15 = vcmp.eq.f32.partialorder %v1005_v31, 8.507059e+37 }
 0x24e   :  { %v1012_v24 = vmul.f32 %v6497_v0, %v7832_v57  ;;  %6500 = vtanh.f32 %v983_v15  ;;  %1412 = vmatpush.msra.mxu3 %v7708_v3  ;;  %vm1017_vm10 = vweird.f32 %v6497_v0  ;;  %vm1003_vm13 = vmor %vm1001_vm11, %vm1002_vm9  ;;  %vm1031_vm2 = vweird.f32 %v7850_v56 }
 0x24f   :  { %v998_v34 = vsub.f32 1.0, %v997_v60  ;;  %1373 = vmatpush.msra.mxu1 %v7714_v54  ;;  %1393 = vmatpush.msra.mxu2 %v7716_v8  ;;  %vm1018_vm14 = vmor %vm1016_vm12, %vm1017_vm10  ;;  %v1035_v44 = vand.u32 2147483647, %v7850_v56 }
 0x250   :  { %v1013_v21 = vsub.f32 1.0, %v1012_v24  ;;  %v1020_v24 = vand.u32 2147483647, %v7832_v57  ;;  %1413 = vmatpush.msra.mxu3 %v7720_v55 }
 0x251   :  { %v999_v4 = vmul.f32 %v6495_v58, %v998_v34  ;;  %1374 = vmatpush.msra.mxu1 %v7726_v59  ;;  %1394 = vmatpush.msra.mxu2 %v7728_v53  ;;  %vm1036_vm4 = vcmp.eq.f32.partialorder %v1035_v44, 8.507059e+37 }
 0x252   :  { %v1014_v60 = vmul.f32 %v6497_v0, %v1013_v21  ;;  %v1008_v21 = vor.u32 1.1754944e-38, %v1007_v49  ;;  %1414 = vmatpush.msra.mxu3 %v7732_v47  ;;  %vm1021_vm0 = vcmp.eq.f32.partialorder %v1020_v24, 8.507059e+37 }
 0x253   :  { %v7875_v15 = vpop.eup %6498  ;;  %v1000_v3 = vadd.f32 %v6495_v58, %v999_v4  ;;  %v1023_v4 = vor.u32 1.1754944e-38, %v1022_v7  ;;  %1375 = vmatpush.msra.mxu1 %v7736_v11  ;;  %1395 = vmatpush.msra.mxu2 %v7738_v43 }
 0x254   :  { %v1027_v34 = vmul.f32 %v7875_v15, %v7850_v56  ;;  %v1015_v8 = vadd.f32 %v6497_v0, %v1014_v60  ;;  %v6501_v57 = vpop.eup %6500  ;;  %1415 = vmatpush.msra.mxu3 %v7740_v14  ;;  %vm1032_vm1 = vweird.f32 %v7875_v15 }
 0x255   :  { %v1004_v23 = vsel %vm1003_vm13, %v6495_v58, %v1000_v3  ;;  %1376 = vmatpush.msra.mxu1 %v7748_v46  ;;  %1396 = vmatpush.msra.mxu2 %v7750_v41  ;;  %vm1033_vm3 = vmor %vm1031_vm2, %vm1032_vm1  ;;  %v11083_v3 = vld [vmem:[#allocation64_spill] sm:$0xff] }
 0x256   :  { %v1028_v59 = vsub.f32 1.0, %v1027_v34  ;;  %v1009_v62 = vsel %vm1006_vm15, %v1008_v21, %v1004_v23  ;;  %v1019_v55 = vsel %vm1018_vm14, %v6497_v0, %v1015_v8  ;;  %1416 = vmatpush.msra.mxu3 %v7758_v40  ;;  %v11082_v0 = vld [vmem:[#allocation63_spill] sm:$0xff]  ;;  %v11084_v8 = vld [vmem:[#allocation65_spill] sm:$0xff]  ;;  %v11088_v21 = vld [vmem:[#allocation68_spill] sm:$0xff] }
 0x257   :  { %v1024_v49 = vsel %vm1021_vm0, %v1023_v4, %v1019_v55  ;;  %v1044_v60 = vmul.f32 %v6501_v57, %v1009_v62  ;;  %1377 = vmatpush.msra.mxu1 %v7762_v33  ;;  %1397 = vmatpush.msra.mxu2 %v7764_v32  ;;  %v11087_v34 = vld [vmem:[#allocation67_spill] sm:$0xff]  ;;  %v11092_v4 = vld [vmem:[#allocation52_spill] sm:$0xff]  ;;  %v11093_v23 = vld [vmem:[#allocation53_spill] sm:$0xff] }
 0x258   :  { %v1029_v7 = vmul.f32 %v7875_v15, %v1028_v59  ;;  %v1043_v36 = vmul.f32 %v1024_v49, %v7643_v29  ;;  %1417 = vmatpush.msra.mxu3 %v7766_v18  ;;  %v1037_v59 = vand.u32 2147483648, %v7850_v56  ;;  %v11086_v56 = vld [vmem:[#allocation66_spill] sm:$0xff] }
 0x259   :  { %1378 = vmatpush.msra.mxu1 %v7772_v26  ;;  %1398 = vmatpush.msra.mxu2 %v7774_v28  ;;  %v11094_v57 = vld [vmem:[#allocation54_spill] sm:$0xff] }
 0x25a   :  { %v7899_v58 = vadd.f32 %v1044_v60, %v1043_v36  ;;  %v1030_v62 = vadd.f32 %v7875_v15, %v1029_v7  ;;  %1418 = vmatpush.msra.mxu3 %v7776_v27  ;;  %v1038_v31 = vor.u32 1.1754944e-38, %v1037_v59 }
 0x25b   :  { %1379 = vmatpush.msra.mxu1 %v7782_v9  ;;  %1399 = vmatpush.msra.mxu2 %v7784_v10 }
 0x25c   :  { %6502 = vtanh.f32 %v7899_v58  ;;  %1419 = vmatpush.msra.mxu3 %v11081_v52  ;;  %v1034_v29 = vsel %vm1033_vm3, %v7875_v15, %v1030_v62 }
 0x25d   :  { %1380 = vmatpush.msra.mxu1 %v11082_v0  ;;  %1400 = vmatpush.msra.mxu2 %v11083_v3  ;;  %v1039_v24 = vsel %vm1036_vm4, %v1038_v31, %v1034_v29 }
 0x25e   :  { %1420 = vmatpush.msra.mxu3 %v11084_v8 }
 0x25f   :  { %1381 = vmatpush.msra.mxu1 %v11086_v56  ;;  %1401 = vmatpush.msra.mxu2 %v11087_v34 }
 0x260   :  { %1421 = vmatpush.msra.mxu3 %v11088_v21 }
 0x261   :  { %1382 = vmatpush.msra.mxu1 %v7814_v35  ;;  %1402 = vmatpush.msra.mxu2 %v7816_v30 }
 0x262   :  { %v6503_v55 = vpop.eup %6502  ;;  %1422 = vmatpush.msra.mxu3 %v7818_v22 }
 0x263   :  { %v7926_v15 = vmul.f32 %v6503_v55, %v1039_v24  ;;  %1383 = vmatpush.msra.mxu1 %v7822_v45  ;;  %1403 = vmatpush.msra.mxu2 %v7824_v61 }
 0x264   :  { %1423 = vmatpush.msra.mxu3 %v7826_v25 }
 0x265   :  { %11089 = vst [vmem:[#allocation62_spill] sm:$0xff] %v7926_v15  ;;  %1140 = vmatmul.f32.vlgmr.msra.gmra.mxu0 %v7926_v15  ;;  %1160 = vmatmul.f32.vlgmr.msrb.gmra.mxu1 %v7926_v15 }
 0x266   :  { %1180 = vmatmul.f32.vlgmr.msrb.gmra.mxu2 %v7926_v15  ;;  %1200 = vmatmul.f32.vlgmr.msrb.gmra.mxu3 %v7926_v15  ;;  %v8202_v15 = vld [vmem:[#allocation6 + $0x78] sm:$0xff] }
 0x267   :  { %1572 = vmatpush.msra.mxu0 %v11090_v17  ;;  %1592 = vmatpush.msrb.mxu1 %v7654_v20  ;;  %v11096_v20 = vld [vmem:[#allocation56_spill] sm:$0xff]  ;;  %11122 = vst [vmem:[#allocation67_spill] sm:$0xff] %v8202_v15 }
 0x268   :  { %1612 = vmatpush.msrb.mxu2 %v11091_v1  ;;  %1632 = vmatpush.msrb.mxu3 %v11092_v4 }
 0x269   :  { %1573 = vmatpush.msra.mxu0 %v11093_v23  ;;  %1593 = vmatpush.msrb.mxu1 %v11094_v57 }
 0x26a   :  { %1613 = vmatpush.msrb.mxu2 %v7668_v5  ;;  %1633 = vmatpush.msrb.mxu3 %v7672_v19  ;;  %v11097_v5 = vld [vmem:[#allocation57_spill] sm:$0xff]  ;;  %v11098_v19 = vld [vmem:[#allocation58_spill] sm:$0xff] }
 0x26b   :  { %1574 = vmatpush.msra.mxu0 %v7676_v42  ;;  %1594 = vmatpush.msrb.mxu1 %v7678_v2  ;;  %v11099_v42 = vld [vmem:[#allocation59_spill] sm:$0xff]  ;;  %v11100_v2 = vld [vmem:[#allocation60_spill] sm:$0xff] }
 0x26c   :  { %1614 = vmatpush.msrb.mxu2 %v7680_v63  ;;  %1634 = vmatpush.msrb.mxu3 %v7684_v38  ;;  %v11101_v63 = vld [vmem:[#allocation61_spill] sm:$0xff] }
 0x26d   :  { %1575 = vmatpush.msra.mxu0 %v7688_v12  ;;  %1595 = vmatpush.msrb.mxu1 %v11095_v6 }
 0x26e   :  { %1615 = vmatpush.msrb.mxu2 %v11096_v20  ;;  %1635 = vmatpush.msrb.mxu3 %v7696_v37 }
 0x26f   :  { %1576 = vmatpush.msra.mxu0 %v7700_v16  ;;  %1596 = vmatpush.msrb.mxu1 %v7702_v51 }
 0x270   :  { %1616 = vmatpush.msrb.mxu2 %v7704_v39  ;;  %1636 = vmatpush.msrb.mxu3 %v11097_v5 }
 0x271   :  { %1577 = vmatpush.msra.mxu0 %v7712_v48  ;;  %1597 = vmatpush.msrb.mxu1 %v7714_v54 }
 0x272   :  { %1617 = vmatpush.msrb.mxu2 %v11098_v19  ;;  %1637 = vmatpush.msrb.mxu3 %v11099_v42 }
 0x273   :  { %1578 = vmatpush.msra.mxu0 %v11100_v2  ;;  %1598 = vmatpush.msrb.mxu1 %v11101_v63 }
 0x274   :  { %1618 = vmatpush.msrb.mxu2 %v7728_v53  ;;  %1638 = vmatpush.msrb.mxu3 %v7732_v47 }
 0x275   :  { %1599 = vmatpush.msrb.mxu1 %v7736_v11  ;;  %v11102_v11 = vld [vmem:[#allocation35_spill] sm:$0xff] }
 0x276   :  { %1619 = vmatpush.msrb.mxu2 %v7738_v43  ;;  %1639 = vmatpush.msrb.mxu3 %v7740_v14  ;;  %v11107_v43 = vld [vmem:[#allocation29_spill] sm:$0xff] }
 0x277   :  { %1600 = vmatpush.msrb.mxu1 %v7748_v46 }
 0x278   :  { %1620 = vmatpush.msrb.mxu2 %v7750_v41  ;;  %1640 = vmatpush.msrb.mxu3 %v7758_v40 }
 0x279   :  { %1601 = vmatpush.msrb.mxu1 %v7762_v33 }
 0x27a   :  { %1621 = vmatpush.msrb.mxu2 %v7764_v32  ;;  %1641 = vmatpush.msrb.mxu3 %v7766_v18  ;;  %v11105_v32 = vld [vmem:[#allocation27_spill] sm:$0xff] }
 0x27b   :  { %1602 = vmatpush.msrb.mxu1 %v7772_v26  ;;  %v11103_v26 = vld [vmem:[#allocation26_spill] sm:$0xff] }
 0x27c   :  { %1622 = vmatpush.msrb.mxu2 %v7774_v28  ;;  %1642 = vmatpush.msrb.mxu3 %v7776_v27  ;;  %v210_v27 = vadd.f32 %v11103_v26, %v11102_v11  ;;  %v11104_v28 = vld [vmem:[#allocation41_spill] sm:$0xff] }
 0x27d   :  { %1603 = vmatpush.msrb.mxu1 %v7782_v9  ;;  %v251_v33 = vadd.f32 %v11105_v32, %v11104_v28  ;;  %v11108_v9 = vld [vmem:[#allocation46_spill] sm:$0xff] }
 0x27e   :  { %1623 = vmatpush.msrb.mxu2 %v7784_v10  ;;  %1643 = vmatpush.msrb.mxu3 %v11081_v52  ;;  %v11109_v10 = vld [vmem:[#allocation30_spill] sm:$0xff] }
 0x27f   :  { %1604 = vmatpush.msrb.mxu1 %v11082_v0 }
 0x280   :  { %1624 = vmatpush.msrb.mxu2 %v11083_v3  ;;  %1644 = vmatpush.msrb.mxu3 %v11084_v8 }
 0x281   :  { %1605 = vmatpush.msrb.mxu1 %v11086_v56 }
 0x282   :  { %1625 = vmatpush.msrb.mxu2 %v11087_v34  ;;  %1645 = vmatpush.msrb.mxu3 %v11088_v21 }
 0x283   :  { %1606 = vmatpush.msrb.mxu1 %v7814_v35 }
 0x284   :  { %1626 = vmatpush.msrb.mxu2 %v7816_v30  ;;  %1646 = vmatpush.msrb.mxu3 %v7818_v22  ;;  %v11106_v22 = vld [vmem:[#allocation44_spill] sm:$0xff] }
 0x285   :  { %1607 = vmatpush.msrb.mxu1 %v7822_v45  ;;  %v292_v38 = vadd.f32 %v11107_v43, %v11106_v22  ;;  %v333_v45 = vadd.f32 %v11109_v10, %v11108_v9  ;;  %v8021_v43 = vld [vmem:[#allocation6 + $0xc0] sm:$0xff] }
 0x286   :  { %1627 = vmatpush.msrb.mxu2 %v7824_v61  ;;  %1647 = vmatpush.msrb.mxu3 %v7826_v25  ;;  %v8035_v10 = vld [vmem:[#allocation6 + $0x40] sm:$0xff] }
 0x287   :  { %11114 = vst [vmem:[#allocation64_spill] sm:$0xff] %v8035_v10 }
 0x2e2   :  { %v1141_v40 = vpop.f32.mrf.mxu0  ;;  %v1161_v41 = vpop.f32.mrf.mxu1 }
 0x2e3   :  { %v1204_v46 = vadd.f32 %v1141_v40, %v210_v27  ;;  %v1205_v47 = vadd.f32 %v1161_v41, %v251_v33  ;;  %v11111_v40 = vld [vmem:[#allocation28_spill] sm:$0xff] }
 0x2e4   :  { %v213_v41 = vadd.f32 %v11111_v40, %v11102_v11 }
 0x2e5   :  { %v6377_v53 = vmul.f32 -1.442695, %v1204_v46  ;;  %v6378_v14 = vmul.f32 -1.442695, %v1205_v47  ;;  %v11112_v46 = vld [vmem:[#allocation31_spill] sm:$0xff] }
 0x2e6   :  { %v254_v47 = vadd.f32 %v11112_v46, %v11104_v28 }
 0x2e7   :  { %6504 = vpow2.f32 %v6377_v53 }
 0x2e8   :  { %6506 = vpow2.f32 %v6378_v14 }
 0x2e9   :  { %v1181_v61 = vpop.f32.mrf.mxu2  ;;  %v1201_v54 = vpop.f32.mrf.mxu3 }
 0x2ea   :  { %v1206_v12 = vadd.f32 %v1181_v61, %v292_v38  ;;  %v1207_v25 = vadd.f32 %v1201_v54, %v333_v45 }
 0x2ec   :  { %v6379_v37 = vmul.f32 -1.442695, %v1206_v12  ;;  %v8024_v12 = vld [vmem:[#allocation6 + $0xa0] sm:$0xff] }
 0x2ed   :  { %v6505_v16 = vpop.eup %6504 }
 0x2ee   :  { %v6507_v51 = vpop.eup %6506  ;;  %v1217_v39 = vadd.f32 1.0, %v6505_v16  ;;  %6508 = vpow2.f32 %v6379_v37 }
 0x2ef   :  { %v1218_v48 = vadd.f32 1.0, %v6507_v51  ;;  %v8027_v51 = vld [vmem:[#allocation6 + $0x80] sm:$0xff] }
 0x2f0   :  { %6510 = vrcp.f32 %v1217_v39  ;;  %v1231_v59 = vand.u32 2147483648, %v1217_v39  ;;  %v1229_v29 = vand.u32 2147483647, %v1217_v39  ;;  %vm1225_vm7 = vweird.f32 %v1217_v39 }
 0x2f1   :  { %6512 = vrcp.f32 %v1218_v48  ;;  %v1246_v44 = vand.u32 2147483648, %v1218_v48  ;;  %v1244_v31 = vand.u32 2147483647, %v1218_v48  ;;  %vm1240_vm8 = vweird.f32 %v1218_v48 }
 0x2f2   :  { %v1232_v56 = vor.u32 1.1754944e-38, %v1231_v59  ;;  %vm1230_vm11 = vcmp.eq.f32.partialorder %v1229_v29, 8.507059e+37  ;;  %v11115_v59 = vld [vmem:[#allocation33_spill] sm:$0xff] }
 0x2f3   :  { %v1247_v24 = vor.u32 1.1754944e-38, %v1246_v44  ;;  %vm1245_vm12 = vcmp.eq.f32.partialorder %v1244_v31, 8.507059e+37  ;;  %v336_v44 = vadd.f32 %v11115_v59, %v11108_v9  ;;  %v8084_v59 = vld [vmem:[#allocation6 + $0x1b0] sm:$0xff] }
 0x2f4   :  { %v6509_v18 = vpop.eup %6508 }
 0x2f5   :  { %v1219_v35 = vadd.f32 1.0, %v6509_v18 }
 0x2f6   :  { %v6511_v30 = vpop.eup %6510 }
 0x2f7   :  { %v6513_v49 = vpop.eup %6512  ;;  %v1221_v60 = vmul.f32 %v6511_v30, %v1217_v39  ;;  %6514 = vrcp.f32 %v1219_v35  ;;  %vm1226_vm5 = vweird.f32 %v6511_v30  ;;  %v1261_v42 = vand.u32 2147483648, %v1219_v35 }
 0x2f8   :  { %v1236_v7 = vmul.f32 %v6513_v49, %v1218_v48  ;;  %6516 = vtanh.f32 %v1207_v25  ;;  %vm1241_vm6 = vweird.f32 %v6513_v49  ;;  %vm1227_vm9 = vmor %vm1225_vm7, %vm1226_vm5  ;;  %vm1255_vm14 = vweird.f32 %v1219_v35  ;;  %v8032_v48 = vld [vmem:[#allocation6 + $0x60] sm:$0xff] }
 0x2f9   :  { %v1222_v36 = vsub.f32 1.0, %v1221_v60  ;;  %vm1242_vm10 = vmor %vm1240_vm8, %vm1241_vm6  ;;  %v1259_v2 = vand.u32 2147483647, %v1219_v35  ;;  %v1262_v26 = vor.u32 1.1754944e-38, %v1261_v42  ;;  %v8041_v25 = vld [vmem:[#allocation6] sm:$0xff] }
 0x2fa   :  { %v1237_v62 = vsub.f32 1.0, %v1236_v7 }
 0x2fb   :  { %v1223_v52 = vmul.f32 %v6511_v30, %v1222_v36  ;;  %vm1260_vm0 = vcmp.eq.f32.partialorder %v1259_v2, 8.507059e+37 }
 0x2fc   :  { %v1238_v0 = vmul.f32 %v6513_v49, %v1237_v62 }
 0x2fd   :  { %v6515_v3 = vpop.eup %6514  ;;  %v1224_v8 = vadd.f32 %v6511_v30, %v1223_v52 }
 0x2fe   :  { %v1251_v13 = vmul.f32 %v6515_v3, %v1219_v35  ;;  %v1239_v55 = vadd.f32 %v6513_v49, %v1238_v0  ;;  %v6517_v21 = vpop.eup %6516  ;;  %vm1256_vm13 = vweird.f32 %v6515_v3  ;;  %v8038_v35 = vld [vmem:[#allocation6 + $0x20] sm:$0xff] }
 0x2ff   :  { %v1228_v34 = vsel %vm1227_vm9, %v6511_v30, %v1224_v8  ;;  %vm1257_vm15 = vmor %vm1255_vm14, %vm1256_vm13 }
 0x300   :  { %v1252_v17 = vsub.f32 1.0, %v1251_v13  ;;  %v1233_v1 = vsel %vm1230_vm11, %v1232_v56, %v1228_v34  ;;  %v1243_v4 = vsel %vm1242_vm10, %v6513_v49, %v1239_v55 }
 0x301   :  { %v1248_v23 = vsel %vm1245_vm12, %v1247_v24, %v1243_v4  ;;  %v1268_v57 = vmul.f32 %v6517_v21, %v1233_v1 }
 0x302   :  { %v1253_v6 = vmul.f32 %v6515_v3, %v1252_v17  ;;  %v1267_v20 = vmul.f32 %v1248_v23, %v7899_v58  ;;  %v8013_v58 = vld [vmem:[#allocation6 + $0x100] sm:$0xff] }
 0x303   :  { %1579 = vmatpush.msra.mxu0 %v8013_v58 }
 0x304   :  { %v8004_v5 = vadd.f32 %v1268_v57, %v1267_v20  ;;  %v1254_v19 = vadd.f32 %v6515_v3, %v1253_v6 }
 0x305   :  { %1580 = vmatpush.msra.mxu0 %v7746_v50  ;;  %v11113_v50 = vld [vmem:[#allocation32_spill] sm:$0xff] }
 0x306   :  { %6518 = vtanh.f32 %v8004_v5  ;;  %v1258_v63 = vsel %vm1257_vm15, %v6515_v3, %v1254_v19  ;;  %v295_v39 = vadd.f32 %v11113_v50, %v11106_v22 }
 0x307   :  { %v1263_v32 = vsel %vm1260_vm0, %v1262_v26, %v1258_v63  ;;  %1581 = vmatpush.msra.mxu0 %v8021_v43 }
 0x309   :  { %1582 = vmatpush.msra.mxu0 %v8024_v12 }
 0x30b   :  { %1583 = vmatpush.msra.mxu0 %v8027_v51 }
 0x30c   :  { %v6519_v27 = vpop.eup %6518 }
 0x30d   :  { %v8007_v33 = vmul.f32 %v6519_v27, %v1263_v32  ;;  %1584 = vmatpush.msra.mxu0 %v8032_v48 }
 0x30f   :  { %11110 = vst [vmem:[#allocation63_spill] sm:$0xff] %v8007_v33  ;;  %1364 = vmatmul.f32.vlgmr.msrb.gmra.mxu0 %v8007_v33  ;;  %1384 = vmatmul.f32.vlgmr.msra.gmra.mxu1 %v8007_v33 }
 0x310   :  { %1404 = vmatmul.f32.vlgmr.msra.gmra.mxu2 %v8007_v33  ;;  %1424 = vmatmul.f32.vlgmr.msra.gmra.mxu3 %v8007_v33  ;;  %v8200_v33 = vld [vmem:[#allocation6 + $0x70] sm:$0xff] }
 0x311   :  { %1585 = vmatpush.msra.mxu0 %v8035_v10  ;;  %11121 = vst [vmem:[#allocation66_spill] sm:$0xff] %v8200_v33 }
 0x313   :  { %1586 = vmatpush.msra.mxu0 %v8038_v35 }
 0x315   :  { %1587 = vmatpush.msra.mxu0 %v8041_v25 }
 0x38c   :  { %v1365_v53 = vpop.f32.mrf.mxu0  ;;  %v1385_v14 = vpop.f32.mrf.mxu1 }
 0x38d   :  { %v1428_v38 = vadd.f32 %v1365_v53, %v213_v41  ;;  %v1429_v61 = vadd.f32 %v1385_v14, %v254_v47 }
 0x38f   :  { %v6380_v37 = vmul.f32 -1.442695, %v1428_v38  ;;  %v6381_v16 = vmul.f32 -1.442695, %v1429_v61 }
 0x391   :  { %6520 = vpow2.f32 %v6380_v37 }
 0x392   :  { %6522 = vpow2.f32 %v6381_v16 }
 0x393   :  { %v1405_v54 = vpop.f32.mrf.mxu2  ;;  %v1425_v36 = vpop.f32.mrf.mxu3 }
 0x394   :  { %v1430_v18 = vadd.f32 %v1405_v54, %v295_v39  ;;  %v1431_v0 = vadd.f32 %v1425_v36, %v336_v44  ;;  %v8058_v54 = vld [vmem:[#allocation6 + $0x1e8] sm:$0xff]  ;;  %v8080_v36 = vld [vmem:[#allocation6 + $0x1a0] sm:$0xff]  ;;  %v8088_v44 = vld [vmem:[#allocation6 + $0x1b8] sm:$0xff] }
 0x395   :  { %1816 = vmatpush.msra.mxu1 %v8058_v54 }
 0x396   :  { %v6382_v45 = vmul.f32 -1.442695, %v1430_v18  ;;  %v8060_v18 = vld [vmem:[#allocation6 + $0x1f0] sm:$0xff] }
 0x397   :  { %v6521_v30 = vpop.eup %6520  ;;  %1836 = vmatpush.msra.mxu2 %v8060_v18 }
 0x398   :  { %v6523_v49 = vpop.eup %6522  ;;  %v1441_v60 = vadd.f32 1.0, %v6521_v30  ;;  %6524 = vpow2.f32 %v6382_v45  ;;  %v8064_v45 = vld [vmem:[#allocation6 + $0x1f8] sm:$0xff]  ;;  %v8068_v30 = vld [vmem:[#allocation6 + $0x1c0] sm:$0xff] }
 0x399   :  { %v1442_v7 = vadd.f32 1.0, %v6523_v49  ;;  %1856 = vmatpush.msra.mxu3 %v8064_v45  ;;  %v8070_v49 = vld [vmem:[#allocation6 + $0x1c8] sm:$0xff] }
 0x39a   :  { %6526 = vrcp.f32 %v1441_v60  ;;  %v1455_v55 = vand.u32 2147483648, %v1441_v60  ;;  %v1453_v21 = vand.u32 2147483647, %v1441_v60  ;;  %vm1449_vm3 = vweird.f32 %v1441_v60  ;;  %1817 = vmatpush.msra.mxu1 %v8070_v49 }
 0x39b   :  { %6528 = vrcp.f32 %v1442_v7  ;;  %v1470_v24 = vand.u32 2147483648, %v1442_v7  ;;  %v1468_v1 = vand.u32 2147483647, %v1442_v7  ;;  %vm1464_vm4 = vweird.f32 %v1442_v7 }
 0x39c   :  { %v1456_v6 = vor.u32 1.1754944e-38, %v1455_v55  ;;  %vm1454_vm7 = vcmp.eq.f32.partialorder %v1453_v21, 8.507059e+37  ;;  %v8116_v55 = vld [vmem:[#allocation6 + $0x140] sm:$0xff]  ;;  %v8124_v21 = vld [vmem:[#allocation6 + $0x158] sm:$0xff] }
 0x39d   :  { %v1471_v19 = vor.u32 1.1754944e-38, %v1470_v24  ;;  %vm1469_vm8 = vcmp.eq.f32.partialorder %v1468_v1, 8.507059e+37  ;;  %v8118_v24 = vld [vmem:[#allocation6 + $0x148] sm:$0xff] }
 0x39e   :  { %v6525_v62 = vpop.eup %6524  ;;  %v8130_v1 = vld [vmem:[#allocation6 + $0x128] sm:$0xff] }
 0x39f   :  { %v1443_v52 = vadd.f32 1.0, %v6525_v62  ;;  %v8082_v62 = vld [vmem:[#allocation6 + $0x1a8] sm:$0xff] }
 0x3a0   :  { %v6527_v29 = vpop.eup %6526  ;;  %1818 = vmatpush.msra.mxu1 %v8082_v62 }
 0x3a1   :  { %v6529_v31 = vpop.eup %6528  ;;  %v1445_v3 = vmul.f32 %v6527_v29, %v1441_v60  ;;  %6530 = vrcp.f32 %v1443_v52  ;;  %vm1450_vm1 = vweird.f32 %v6527_v29  ;;  %v1485_v14 = vand.u32 2147483648, %v1443_v52  ;;  %v8072_v60 = vld [vmem:[#allocation6 + $0x1d0] sm:$0xff] }
 0x3a2   :  { %v1460_v8 = vmul.f32 %v6529_v31, %v1442_v7  ;;  %6532 = vtanh.f32 %v1431_v0  ;;  %vm1465_vm2 = vweird.f32 %v6529_v31  ;;  %vm1451_vm5 = vmor %vm1449_vm3, %vm1450_vm1  ;;  %vm1479_vm10 = vweird.f32 %v1443_v52  ;;  %v8076_v7 = vld [vmem:[#allocation6 + $0x1d8] sm:$0xff]  ;;  %1837 = vmatpush.msra.mxu2 %v8072_v60  ;;  %v8096_v0 = vld [vmem:[#allocation6 + $0x190] sm:$0xff] }
 0x3a3   :  { %v1446_v13 = vsub.f32 1.0, %v1445_v3  ;;  %vm1466_vm6 = vmor %vm1464_vm4, %vm1465_vm2  ;;  %v1483_v38 = vand.u32 2147483647, %v1443_v52  ;;  %v1486_v37 = vor.u32 1.1754944e-38, %v1485_v14  ;;  %1857 = vmatpush.msra.mxu3 %v8076_v7  ;;  %v8104_v3 = vld [vmem:[#allocation6 + $0x160] sm:$0xff]  ;;  %v8168_v14 = vld [vmem:[#allocation6 + $0xd0] sm:$0xff] }
 0x3a4   :  { %v1461_v56 = vsub.f32 1.0, %v1460_v8  ;;  %1838 = vmatpush.msra.mxu2 %v8084_v59  ;;  %v8106_v8 = vld [vmem:[#allocation6 + $0x168] sm:$0xff] }
 0x3a5   :  { %v1447_v34 = vmul.f32 %v6527_v29, %v1446_v13  ;;  %vm1484_vm12 = vcmp.eq.f32.partialorder %v1483_v38, 8.507059e+37  ;;  %1858 = vmatpush.msra.mxu3 %v8088_v44  ;;  %v8108_v13 = vld [vmem:[#allocation6 + $0x170] sm:$0xff]  ;;  %v8170_v38 = vld [vmem:[#allocation6 + $0xd8] sm:$0xff] }
 0x3a6   :  { %v1462_v17 = vmul.f32 %v6529_v31, %v1461_v56  ;;  %1839 = vmatpush.msra.mxu2 %v8096_v0  ;;  %v8112_v56 = vld [vmem:[#allocation6 + $0x178] sm:$0xff] }
 0x3a7   :  { %v6531_v4 = vpop.eup %6530  ;;  %v1448_v23 = vadd.f32 %v6527_v29, %v1447_v34  ;;  %v8120_v34 = vld [vmem:[#allocation6 + $0x150] sm:$0xff] }
 0x3a8   :  { %v1475_v57 = vmul.f32 %v6531_v4, %v1443_v52  ;;  %v1463_v20 = vadd.f32 %v6529_v31, %v1462_v17  ;;  %v6533_v2 = vpop.eup %6532  ;;  %vm1480_vm9 = vweird.f32 %v6531_v4  ;;  %v8092_v52 = vld [vmem:[#allocation6 + $0x180] sm:$0xff]  ;;  %1840 = vmatpush.msra.mxu2 %v8108_v13 }
 0x3a9   :  { %v1452_v42 = vsel %vm1451_vm5, %v6527_v29, %v1448_v23  ;;  %vm1481_vm11 = vmor %vm1479_vm10, %vm1480_vm9  ;;  %v8094_v29 = vld [vmem:[#allocation6 + $0x188] sm:$0xff]  ;;  %v8128_v17 = vld [vmem:[#allocation6 + $0x120] sm:$0xff] }
 0x3aa   :  { %v1476_v63 = vsub.f32 1.0, %v1475_v57  ;;  %v1457_v26 = vsel %vm1454_vm7, %v1456_v6, %v1452_v42  ;;  %v1467_v27 = vsel %vm1466_vm6, %v6529_v31, %v1463_v20  ;;  %1819 = vmatpush.msra.mxu1 %v8094_v29  ;;  %v8100_v31 = vld [vmem:[#allocation6 + $0x198] sm:$0xff]  ;;  %1841 = vmatpush.msra.mxu2 %v8120_v34  ;;  %v8140_v57 = vld [vmem:[#allocation6 + $0x108] sm:$0xff]  ;;  %v8142_v6 = vld [vmem:[#allocation6 + $0x110] sm:$0xff] }
 0x3ab   :  { %v1472_v32 = vsel %vm1469_vm8, %v1471_v19, %v1467_v27  ;;  %v1492_v40 = vmul.f32 %v6533_v2, %v1457_v26  ;;  %1859 = vmatpush.msra.mxu3 %v8100_v31  ;;  %v8136_v23 = vld [vmem:[#allocation6 + $0x138] sm:$0xff]  ;;  %v8150_v19 = vld [vmem:[#allocation6 + $0xe0] sm:$0xff]  ;;  %v8152_v42 = vld [vmem:[#allocation6 + $0xe8] sm:$0xff] }
 0x3ac   :  { %v1477_v41 = vmul.f32 %v6531_v4, %v1476_v63  ;;  %v1491_v46 = vmul.f32 %v1472_v32, %v8004_v5  ;;  %v8056_v5 = vld [vmem:[#allocation6 + $0x1e0] sm:$0xff]  ;;  %1820 = vmatpush.msra.mxu1 %v8106_v8  ;;  %v8144_v20 = vld [vmem:[#allocation6 + $0x118] sm:$0xff]  ;;  %v8154_v2 = vld [vmem:[#allocation6 + $0xf0] sm:$0xff] }
 0x3ad   :  { %1796 = vmatpush.msrb.mxu0 %v8056_v5  ;;  %1860 = vmatpush.msra.mxu3 %v8112_v56  ;;  %v11117_v63 = vld [vmem:[#allocation23_spill] sm:$0xff]  ;;  %v11118_v27 = vld [vmem:[#allocation34_spill] sm:$0xff] }
 0x3ae   :  { %v8047_v47 = vadd.f32 %v1492_v40, %v1491_v46  ;;  %v1478_v53 = vadd.f32 %v6531_v4, %v1477_v41  ;;  %1821 = vmatpush.msra.mxu1 %v8118_v24  ;;  %v216_v26 = vadd.f32 %v11117_v63, %v11102_v11  ;;  %v257_v32 = vadd.f32 %v11118_v27, %v11104_v28  ;;  %v8162_v40 = vld [vmem:[#allocation6 + $0xf8] sm:$0xff] }
 0x3af   :  { %1797 = vmatpush.msrb.mxu0 %v8068_v30  ;;  %1861 = vmatpush.msra.mxu3 %v8124_v21  ;;  %v8180_v63 = vld [vmem:[#allocation6 + $0xb8] sm:$0xff] }
 0x3b0   :  { %6534 = vtanh.f32 %v8047_v47  ;;  %v1482_v61 = vsel %vm1481_vm11, %v6531_v4, %v1478_v53  ;;  %v8132_v4 = vld [vmem:[#allocation6 + $0x130] sm:$0xff]  ;;  %1822 = vmatpush.msra.mxu1 %v8130_v1  ;;  %v8166_v53 = vld [vmem:[#allocation6 + $0xc8] sm:$0xff] }
 0x3b1   :  { %v1487_v50 = vsel %vm1484_vm12, %v1486_v37, %v1482_v61  ;;  %1798 = vmatpush.msrb.mxu0 %v8080_v36  ;;  %1842 = vmatpush.msra.mxu2 %v8132_v4 }
 0x3b2   :  { %1862 = vmatpush.msra.mxu3 %v8136_v23  ;;  %1823 = vmatpush.msra.mxu1 %v8140_v57 }
 0x3b3   :  { %1799 = vmatpush.msrb.mxu0 %v8092_v52  ;;  %1843 = vmatpush.msra.mxu2 %v8142_v6 }
 0x3b4   :  { %1863 = vmatpush.msra.mxu3 %v8144_v20  ;;  %1824 = vmatpush.msra.mxu1 %v8152_v42 }
 0x3b5   :  { %1800 = vmatpush.msrb.mxu0 %v8104_v3  ;;  %1844 = vmatpush.msra.mxu2 %v8154_v2 }
 0x3b6   :  { %v6535_v16 = vpop.eup %6534  ;;  %1864 = vmatpush.msra.mxu3 %v8162_v40  ;;  %1825 = vmatpush.msra.mxu1 %v8166_v53 }
 0x3b7   :  { %v8050_v39 = vmul.f32 %v6535_v16, %v1487_v50  ;;  %1801 = vmatpush.msrb.mxu0 %v8116_v55  ;;  %1845 = vmatpush.msra.mxu2 %v8168_v14  ;;  %v8176_v16 = vld [vmem:[#allocation6 + $0xa8] sm:$0xff]  ;;  %v8178_v50 = vld [vmem:[#allocation6 + $0xb0] sm:$0xff] }
 0x3b8   :  { %1865 = vmatpush.msra.mxu3 %v8170_v38  ;;  %1826 = vmatpush.msra.mxu1 %v8176_v16 }
 0x3b9   :  { %11116 = vst [vmem:[#allocation65_spill] sm:$0xff] %v8050_v39  ;;  %1588 = vmatmul.f32.vlgmr.msra.gmra.mxu0 %v8050_v39  ;;  %1608 = vmatmul.f32.vlgmr.msrb.gmra.mxu1 %v8050_v39 }
 0x3ba   :  { %1628 = vmatmul.f32.vlgmr.msrb.gmra.mxu2 %v8050_v39  ;;  %1648 = vmatmul.f32.vlgmr.msrb.gmra.mxu3 %v8050_v39 }
 0x3bb   :  { %1802 = vmatpush.msrb.mxu0 %v8128_v17  ;;  %1846 = vmatpush.msra.mxu2 %v8178_v50 }
 0x3bc   :  { %1866 = vmatpush.msra.mxu3 %v8180_v63 }
 0x3bd   :  { %1803 = vmatpush.msrb.mxu0 %v8013_v58 }
 0x3bf   :  { %1804 = vmatpush.msrb.mxu0 %v8150_v19 }
 0x3c1   :  { %1805 = vmatpush.msrb.mxu0 %v8021_v43 }
 0x3c3   :  { %1806 = vmatpush.msrb.mxu0 %v8024_v12 }
 0x3c5   :  { %1807 = vmatpush.msrb.mxu0 %v8027_v51 }
 0x3c7   :  { %1808 = vmatpush.msrb.mxu0 %v8032_v48 }
 0x3c9   :  { %1809 = vmatpush.msrb.mxu0 %v8035_v10  ;;  %v8228_v10 = vld [vmem:[#allocation6 + $0x10] sm:$0xff] }
 0x3ca   :  { %11126 = vst [vmem:[#allocation52_spill] sm:$0xff] %v8228_v10 }
 0x3cb   :  { %1810 = vmatpush.msrb.mxu0 %v8038_v35 }
 0x3cd   :  { %1811 = vmatpush.msrb.mxu0 %v8041_v25 }
 0x3cf   :  { %2020 = vmatpush.msra.mxu0 %v8056_v5 }
 0x3d1   :  { %2021 = vmatpush.msra.mxu0 %v8068_v30 }
 0x3d3   :  { %2022 = vmatpush.msra.mxu0 %v8080_v36 }
 0x3d5   :  { %2023 = vmatpush.msra.mxu0 %v8092_v52 }
 0x3d7   :  { %2024 = vmatpush.msra.mxu0 %v8104_v3 }
 0x3d9   :  { %2025 = vmatpush.msra.mxu0 %v8116_v55 }
 0x3db   :  { %2026 = vmatpush.msra.mxu0 %v8128_v17 }
 0x3dd   :  { %2027 = vmatpush.msra.mxu0 %v8013_v58 }
 0x3df   :  { %2028 = vmatpush.msra.mxu0 %v8150_v19  ;;  %v11130_v19 = vld [vmem:[#allocation67_spill] sm:$0xff] }
 0x3e1   :  { %2029 = vmatpush.msra.mxu0 %v8021_v43 }
 0x3e3   :  { %2030 = vmatpush.msra.mxu0 %v8024_v12 }
 0x3e5   :  { %2031 = vmatpush.msra.mxu0 %v8027_v51  ;;  %v11131_v51 = vld [vmem:[#allocation64_spill] sm:$0xff] }
 0x3e7   :  { %2032 = vmatpush.msra.mxu0 %v8032_v48  ;;  %v11135_v48 = vld [vmem:[#allocation52_spill] sm:$0xff] }
 0x3e9   :  { %2033 = vmatpush.msra.mxu0 %v11131_v51  ;;  %v2205_v51 = vld [vmem:[#allocation9 + $0xc8] sm:$0xff] }
 0x3eb   :  { %2034 = vmatpush.msra.mxu0 %v8038_v35  ;;  %v2240_v35 = vld [vmem:[#allocation9 + $0x1e0] sm:$0xff] }
 0x3ed   :  { %2035 = vmatpush.msra.mxu0 %v8041_v25  ;;  %v2239_v25 = vld [vmem:[#allocation9 + $0x1d8] sm:$0xff] }
 0x436   :  { %v1589_v41 = vpop.f32.mrf.mxu0  ;;  %v1609_v46 = vpop.f32.mrf.mxu1 }
 0x437   :  { %v1652_v61 = vadd.f32 %v1589_v41, %v216_v26  ;;  %v1653_v37 = vadd.f32 %v1609_v46, %v257_v32  ;;  %v8186_v26 = vld [vmem:[#allocation6 + $0x88] sm:$0xff]  ;;  %v8188_v32 = vld [vmem:[#allocation6 + $0x90] sm:$0xff]  ;;  %v8190_v41 = vld [vmem:[#allocation6 + $0x98] sm:$0xff] }
 0x438   :  { %1827 = vmatpush.msra.mxu1 %v8186_v26  ;;  %v11119_v46 = vld [vmem:[#allocation36_spill] sm:$0xff]  ;;  %1847 = vmatpush.msra.mxu2 %v8188_v32 }
 0x439   :  { %v6383_v27 = vmul.f32 -1.442695, %v1652_v61  ;;  %v6384_v39 = vmul.f32 -1.442695, %v1653_v37  ;;  %v298_v61 = vadd.f32 %v11119_v46, %v11106_v22  ;;  %1867 = vmatpush.msra.mxu3 %v8190_v41  ;;  %v8198_v37 = vld [vmem:[#allocation6 + $0x68] sm:$0xff]  ;;  %v8210_v46 = vld [vmem:[#allocation6 + $0x50] sm:$0xff] }
 0x43a   :  { %11120 = vst [vmem:[#allocation48_spill] sm:$0xff] %v8198_v37  ;;  %1828 = vmatpush.msra.mxu1 %v8198_v37  ;;  %1848 = vmatpush.msra.mxu2 %v8200_v33  ;;  %v8212_v22 = vld [vmem:[#allocation6 + $0x58] sm:$0xff]  ;;  %v8226_v37 = vld [vmem:[#allocation6 + $0x8] sm:$0xff] }
 0x43b   :  { %6536 = vpow2.f32 %v6383_v27  ;;  %1868 = vmatpush.msra.mxu3 %v8202_v15  ;;  %11124 = vst [vmem:[#allocation50_spill] sm:$0xff] %v8210_v46  ;;  %v8222_v15 = vld [vmem:[#allocation6 + $0x38] sm:$0xff] }
 0x43c   :  { %6538 = vpow2.f32 %v6384_v39  ;;  %v8208_v39 = vld [vmem:[#allocation6 + $0x48] sm:$0xff]  ;;  %11125 = vst [vmem:[#allocation51_spill] sm:$0xff] %v8212_v22  ;;  %1849 = vmatpush.msra.mxu2 %v8210_v46 }
 0x43d   :  { %v1629_v28 = vpop.f32.mrf.mxu2  ;;  %11123 = vst [vmem:[#allocation68_spill] sm:$0xff] %v8208_v39  ;;  %1829 = vmatpush.msra.mxu1 %v8208_v39  ;;  %1869 = vmatpush.msra.mxu3 %v8212_v22 }
 0x43e   :  { %v1654_v27 = vadd.f32 %v1629_v28, %v298_v61  ;;  %v8218_v28 = vld [vmem:[#allocation6 + $0x28] sm:$0xff]  ;;  %v8220_v61 = vld [vmem:[#allocation6 + $0x30] sm:$0xff] }
 0x43f   :  { %1830 = vmatpush.msra.mxu1 %v8218_v28  ;;  %1850 = vmatpush.msra.mxu2 %v8220_v61 }
 0x440   :  { %v6385_v11 = vmul.f32 -1.442695, %v1654_v27  ;;  %v8230_v27 = vld [vmem:[#allocation6 + $0x18] sm:$0xff]  ;;  %1870 = vmatpush.msra.mxu3 %v8222_v15 }
 0x441   :  { %v6537_v33 = vpop.eup %6536  ;;  %1831 = vmatpush.msra.mxu1 %v8226_v37  ;;  %1851 = vmatpush.msra.mxu2 %v8228_v10 }
 0x442   :  { %v6539_v46 = vpop.eup %6538  ;;  %v8232_v39 = vadd.f32 1.0, %v6537_v33  ;;  %6540 = vpow2.f32 %v6385_v11  ;;  %1871 = vmatpush.msra.mxu3 %v8230_v27  ;;  %v1649_v11 = vpop.f32.mrf.mxu3 }
 0x443   :  { %v8236_v22 = vadd.f32 1.0, %v6539_v46  ;;  %2040 = vmatpush.msrb.mxu1 %v8058_v54  ;;  %2060 = vmatpush.msrb.mxu2 %v8060_v18  ;;  %v11127_v46 = vld [vmem:[#allocation38_spill] sm:$0xff] }
 0x444   :  { %6542 = vrcp.f32 %v8232_v39  ;;  %2080 = vmatpush.msrb.mxu3 %v8064_v45  ;;  %v339_v10 = vadd.f32 %v11127_v46, %v11108_v9  ;;  %vm1673_vm15 = vweird.f32 %v8232_v39  ;;  %v2224_v46 = vld [vmem:[#allocation9 + $0x160] sm:$0xff] }
 0x445   :  { %6544 = vrcp.f32 %v8236_v22  ;;  %2041 = vmatpush.msrb.mxu1 %v8070_v49  ;;  %2061 = vmatpush.msrb.mxu2 %v8072_v60  ;;  %v1694_v36 = vand.u32 2147483648, %v8236_v22  ;;  %v1692_v52 = vand.u32 2147483647, %v8236_v22  ;;  %vm1688_vm0 = vweird.f32 %v8236_v22 }
 0x446   :  { %2081 = vmatpush.msrb.mxu3 %v8076_v7  ;;  %v1655_v18 = vadd.f32 %v1649_v11, %v339_v10  ;;  %v1679_v7 = vand.u32 2147483648, %v8232_v39  ;;  %v2230_v11 = vld [vmem:[#allocation9 + $0x190] sm:$0xff] }
 0x447   :  { %2042 = vmatpush.msrb.mxu1 %v8082_v62  ;;  %2062 = vmatpush.msrb.mxu2 %v8084_v59  ;;  %v1677_v59 = vand.u32 2147483647, %v8232_v39  ;;  %vm1693_vm4 = vcmp.eq.f32.partialorder %v1692_v52, 8.507059e+37  ;;  %v2222_v52 = vld [vmem:[#allocation9 + $0x150] sm:$0xff] }
 0x448   :  { %v6541_v33 = vpop.eup %6540  ;;  %2082 = vmatpush.msrb.mxu3 %v8088_v44  ;;  %v1680_v3 = vor.u32 1.1754944e-38, %v1679_v7  ;;  %v2227_v7 = vld [vmem:[#allocation9 + $0x178] sm:$0xff] }
 0x449   :  { %v8254_v5 = vadd.f32 1.0, %v6541_v33  ;;  %2043 = vmatpush.msrb.mxu1 %v8094_v29  ;;  %2063 = vmatpush.msrb.mxu2 %v8096_v0  ;;  %vm1678_vm3 = vcmp.eq.f32.partialorder %v1677_v59, 8.507059e+37  ;;  %v2231_v33 = vld [vmem:[#allocation9 + $0x198] sm:$0xff]  ;;  %v2220_v59 = vld [vmem:[#allocation9 + $0x140] sm:$0xff] }
 0x44a   :  { %v6543_v54 = vpop.eup %6542  ;;  %2083 = vmatpush.msrb.mxu3 %v8100_v31 }
 0x44b   :  { %v6545_v45 = vpop.eup %6544  ;;  %v1669_v30 = vmul.f32 %v6543_v54, %v8232_v39  ;;  %6546 = vrcp.f32 %v8254_v5  ;;  %2044 = vmatpush.msrb.mxu1 %v8106_v8  ;;  %2064 = vmatpush.msrb.mxu2 %v8108_v13  ;;  %vm1674_vm13 = vweird.f32 %v6543_v54  ;;  %v1695_v13 = vor.u32 1.1754944e-38, %v1694_v36  ;;  %v2234_v39 = vld [vmem:[#allocation9 + $0x1b0] sm:$0xff] }
 0x44c   :  { %v1684_v49 = vmul.f32 %v6545_v45, %v8236_v22  ;;  %6548 = vtanh.f32 %v1655_v18  ;;  %2084 = vmatpush.msrb.mxu3 %v8112_v56  ;;  %vm1689_vm14 = vweird.f32 %v6545_v45  ;;  %vm1675_vm1 = vmor %vm1673_vm15, %vm1674_vm13  ;;  %vm1703_vm6 = vweird.f32 %v8254_v5  ;;  %v11136_v18 = vld [vmem:[#allocation35_spill] sm:$0xff] }
 0x44d   :  { %v1670_v10 = vsub.f32 1.0, %v1669_v30  ;;  %2045 = vmatpush.msrb.mxu1 %v8118_v24  ;;  %2065 = vmatpush.msrb.mxu2 %v8120_v34  ;;  %vm1690_vm2 = vmor %vm1688_vm0, %vm1689_vm14  ;;  %v1707_v43 = vand.u32 2147483647, %v8254_v5 }
 0x44e   :  { %v1685_v60 = vsub.f32 1.0, %v1684_v49  ;;  %2085 = vmatpush.msrb.mxu3 %v8124_v21  ;;  %v11138_v49 = vld [vmem:[#allocation41_spill] sm:$0xff] }
 0x44f   :  { %v1671_v62 = vmul.f32 %v6543_v54, %v1670_v10  ;;  %2046 = vmatpush.msrb.mxu1 %v8130_v1  ;;  %2066 = vmatpush.msrb.mxu2 %v8132_v4  ;;  %vm1708_vm8 = vcmp.eq.f32.partialorder %v1707_v43, 8.507059e+37  ;;  %v11139_v10 = vld [vmem:[#allocation37_spill] sm:$0xff]  ;;  %v2209_v43 = vld [vmem:[#allocation9 + $0xe8] sm:$0xff] }
 0x450   :  { %v1686_v44 = vmul.f32 %v6545_v45, %v1685_v60  ;;  %2086 = vmatpush.msrb.mxu3 %v8136_v23  ;;  %v260_v60 = vadd.f32 %v11139_v10, %v11138_v49  ;;  %v2187_v10 = vld [vmem:[#allocation9 + $0x38] sm:$0xff] }
 0x451   :  { %v8279_v29 = vpop.eup %6546  ;;  %v1672_v0 = vadd.f32 %v6543_v54, %v1671_v62  ;;  %2047 = vmatpush.msrb.mxu1 %v8140_v57  ;;  %2067 = vmatpush.msrb.mxu2 %v8142_v6  ;;  %v11128_v57 = vld [vmem:[#allocation48_spill] sm:$0xff] }
 0x452   :  { %v1699_v31 = vmul.f32 %v8279_v29, %v8254_v5  ;;  %v1687_v8 = vadd.f32 %v6545_v45, %v1686_v44  ;;  %v6549_v22 = vpop.eup %6548  ;;  %2087 = vmatpush.msrb.mxu3 %v8144_v20  ;;  %vm1704_vm5 = vweird.f32 %v8279_v29  ;;  %v11129_v20 = vld [vmem:[#allocation66_spill] sm:$0xff]  ;;  %v2221_v44 = vld [vmem:[#allocation9 + $0x148] sm:$0xff] }
 0x453   :  { %v1676_v56 = vsel %vm1675_vm1, %v6543_v54, %v1672_v0  ;;  %2048 = vmatpush.msrb.mxu1 %v8152_v42  ;;  %2068 = vmatpush.msrb.mxu2 %v8154_v2  ;;  %vm1705_vm7 = vmor %vm1703_vm6, %vm1704_vm5  ;;  %v11132_v42 = vld [vmem:[#allocation68_spill] sm:$0xff] }
 0x454   :  { %v1700_v55 = vsub.f32 1.0, %v1699_v31  ;;  %v1681_v24 = vsel %vm1678_vm3, %v1680_v3, %v1676_v56  ;;  %v1691_v34 = vsel %vm1690_vm2, %v6545_v45, %v1687_v8  ;;  %2088 = vmatpush.msrb.mxu3 %v8162_v40  ;;  %v2226_v54 = vld [vmem:[#allocation9 + $0x170] sm:$0xff]  ;;  %v2223_v31 = vld [vmem:[#allocation9 + $0x158] sm:$0xff]  ;;  %v2216_v3 = vld [vmem:[#allocation9 + $0x120] sm:$0xff] }
 0x455   :  { %v1696_v21 = vsel %vm1693_vm4, %v1695_v13, %v1691_v34  ;;  %v1716_v17 = vmul.f32 %v6549_v22, %v1681_v24  ;;  %2049 = vmatpush.msrb.mxu1 %v8166_v53  ;;  %2069 = vmatpush.msrb.mxu2 %v8168_v14  ;;  %v11133_v53 = vld [vmem:[#allocation50_spill] sm:$0xff]  ;;  %v11134_v14 = vld [vmem:[#allocation51_spill] sm:$0xff]  ;;  %v11137_v45 = vld [vmem:[#allocation24_spill] sm:$0xff] }
 0x456   :  { %v1701_v1 = vmul.f32 %v8279_v29, %v1700_v55  ;;  %v1715_v58 = vmul.f32 %v1696_v21, %v8047_v47  ;;  %2089 = vmatpush.msrb.mxu3 %v8170_v38  ;;  %v1709_v47 = vand.u32 2147483648, %v8254_v5  ;;  %v2225_v5 = vld [vmem:[#allocation9 + $0x168] sm:$0xff]  ;;  %v219_v30 = vadd.f32 %v11137_v45, %v11136_v18  ;;  %v2218_v13 = vld [vmem:[#allocation9 + $0x130] sm:$0xff]  ;;  %v2219_v55 = vld [vmem:[#allocation9 + $0x138] sm:$0xff] }
 0x457   :  { %2050 = vmatpush.msrb.mxu1 %v8176_v16  ;;  %2070 = vmatpush.msrb.mxu2 %v8178_v50  ;;  %v2241_v16 = vld [vmem:[#allocation9 + $0x1e8] sm:$0xff]  ;;  %v2242_v50 = vld [vmem:[#allocation9 + $0x1f0] sm:$0xff]  ;;  %v2212_v24 = vld [vmem:[#allocation9 + $0x100] sm:$0xff] }
 0x458   :  { %v8303_v4 = vadd.f32 %v1716_v17, %v1715_v58  ;;  %v1702_v23 = vadd.f32 %v8279_v29, %v1701_v1  ;;  %2090 = vmatpush.msrb.mxu3 %v8180_v63  ;;  %v1710_v6 = vor.u32 1.1754944e-38, %v1709_v47  ;;  %v2236_v63 = vld [vmem:[#allocation9 + $0x1c0] sm:$0xff]  ;;  %v2217_v8 = vld [vmem:[#allocation9 + $0x128] sm:$0xff]  ;;  %v2214_v21 = vld [vmem:[#allocation9 + $0x110] sm:$0xff] }
 0x459   :  { %2051 = vmatpush.msrb.mxu1 %v8186_v26  ;;  %2071 = vmatpush.msrb.mxu2 %v8188_v32  ;;  %v2237_v26 = vld [vmem:[#allocation9 + $0x1c8] sm:$0xff]  ;;  %v2238_v32 = vld [vmem:[#allocation9 + $0x1d0] sm:$0xff]  ;;  %v2215_v17 = vld [vmem:[#allocation9 + $0x118] sm:$0xff] }
 0x45a   :  { %6550 = vtanh.f32 %v8303_v4  ;;  %2091 = vmatpush.msrb.mxu3 %v8190_v41  ;;  %v1706_v12 = vsel %vm1705_vm7, %v8279_v29, %v1702_v23  ;;  %v2232_v41 = vld [vmem:[#allocation9 + $0x1a0] sm:$0xff]  ;;  %v2213_v34 = vld [vmem:[#allocation9 + $0x108] sm:$0xff]  ;;  %v11140_v1 = vld [vmem:[#allocation44_spill] sm:$0xff] }
 0x45b   :  { %2052 = vmatpush.msrb.mxu1 %v11128_v57  ;;  %2072 = vmatpush.msrb.mxu2 %v11129_v20  ;;  %v1711_v40 = vsel %vm1708_vm8, %v1710_v6, %v1706_v12  ;;  %v11141_v58 = vld [vmem:[#allocation39_spill] sm:$0xff]  ;;  %v2208_v47 = vld [vmem:[#allocation9 + $0xe0] sm:$0xff]  ;;  %v2210_v12 = vld [vmem:[#allocation9 + $0xf0] sm:$0xff] }
 0x45c   :  { %2092 = vmatpush.msrb.mxu3 %v11130_v19  ;;  %v301_v23 = vadd.f32 %v11141_v58, %v11140_v1  ;;  %v2211_v6 = vld [vmem:[#allocation9 + $0xf8] sm:$0xff]  ;;  %v2204_v19 = vld [vmem:[#allocation9 + $0xc0] sm:$0xff]  ;;  %v2185_v45 = vld [vmem:[#allocation9 + $0x28] sm:$0xff] }
 0x45d   :  { %2053 = vmatpush.msrb.mxu1 %v11132_v42  ;;  %2073 = vmatpush.msrb.mxu2 %v11133_v53  ;;  %v2206_v42 = vld [vmem:[#allocation9 + $0xd0] sm:$0xff]  ;;  %v2200_v53 = vld [vmem:[#allocation9 + $0xa0] sm:$0xff] }
 0x45e   :  { %2093 = vmatpush.msrb.mxu3 %v11134_v14  ;;  %v2201_v14 = vld [vmem:[#allocation9 + $0xa8] sm:$0xff] }
 0x45f   :  { %2054 = vmatpush.msrb.mxu1 %v8218_v28  ;;  %2074 = vmatpush.msrb.mxu2 %v8220_v61  ;;  %v2235_v28 = vld [vmem:[#allocation9 + $0x1b8] sm:$0xff]  ;;  %v2228_v61 = vld [vmem:[#allocation9 + $0x180] sm:$0xff] }
 0x460   :  { %v6551_v2 = vpop.eup %6550  ;;  %2094 = vmatpush.msrb.mxu3 %v8222_v15  ;;  %v2243_v15 = vld [vmem:[#allocation9 + $0x1f8] sm:$0xff] }
 0x461   :  { %v8330_v38 = vmul.f32 %v6551_v2, %v1711_v40  ;;  %2055 = vmatpush.msrb.mxu1 %v8226_v37  ;;  %2075 = vmatpush.msrb.mxu2 %v11135_v48  ;;  %v2233_v37 = vld [vmem:[#allocation9 + $0x1a8] sm:$0xff]  ;;  %v2207_v2 = vld [vmem:[#allocation9 + $0xd8] sm:$0xff]  ;;  %v2202_v48 = vld [vmem:[#allocation9 + $0xb0] sm:$0xff] }
 0x462   :  { %2095 = vmatpush.msrb.mxu3 %v8230_v27  ;;  %v2229_v27 = vld [vmem:[#allocation9 + $0x188] sm:$0xff] }
 0x463   :  { %1812 = vmatmul.f32.vlgmr.msrb.gmra.mxu0 %v8330_v38  ;;  %1832 = vmatmul.f32.vlgmr.msra.gmra.mxu1 %v8330_v38 }
 0x464   :  { %1852 = vmatmul.f32.vlgmr.msra.gmra.mxu2 %v8330_v38  ;;  %1872 = vmatmul.f32.vlgmr.msra.gmra.mxu3 %v8330_v38 }
 0x465   :  { %2254 = vmatpush.msrb.mxu0 %v2240_v35  ;;  %2295 = vmatpush.msra.mxu1 %v2241_v16  ;;  %v2203_v16 = vld [vmem:[#allocation9 + $0xb8] sm:$0xff] }
 0x466   :  { %2336 = vmatpush.msra.mxu2 %v2242_v50  ;;  %2377 = vmatpush.msra.mxu3 %v2243_v15  ;;  %v2196_v50 = vld [vmem:[#allocation9 + $0x80] sm:$0xff]  ;;  %v2197_v15 = vld [vmem:[#allocation9 + $0x88] sm:$0xff] }
 0x467   :  { %2255 = vmatpush.msrb.mxu0 %v2236_v63  ;;  %2296 = vmatpush.msra.mxu1 %v2237_v26 }
 0x468   :  { %2337 = vmatpush.msra.mxu2 %v2238_v32  ;;  %2378 = vmatpush.msra.mxu3 %v2239_v25  ;;  %v2198_v32 = vld [vmem:[#allocation9 + $0x90] sm:$0xff]  ;;  %v2199_v25 = vld [vmem:[#allocation9 + $0x98] sm:$0xff] }
 0x469   :  { %2256 = vmatpush.msrb.mxu0 %v2232_v41  ;;  %2297 = vmatpush.msra.mxu1 %v2233_v37  ;;  %v2192_v37 = vld [vmem:[#allocation9 + $0x60] sm:$0xff] }
 0x46a   :  { %2338 = vmatpush.msra.mxu2 %v2234_v39  ;;  %2379 = vmatpush.msra.mxu3 %v2235_v28  ;;  %v2193_v39 = vld [vmem:[#allocation9 + $0x68] sm:$0xff]  ;;  %v2194_v28 = vld [vmem:[#allocation9 + $0x70] sm:$0xff] }
 0x46b   :  { %2257 = vmatpush.msrb.mxu0 %v2228_v61  ;;  %2298 = vmatpush.msra.mxu1 %v2229_v27  ;;  %v2195_v61 = vld [vmem:[#allocation9 + $0x78] sm:$0xff]  ;;  %v2188_v27 = vld [vmem:[#allocation9 + $0x40] sm:$0xff] }
 0x46c   :  { %2339 = vmatpush.msra.mxu2 %v2230_v11  ;;  %2380 = vmatpush.msra.mxu3 %v2231_v33  ;;  %v2189_v11 = vld [vmem:[#allocation9 + $0x48] sm:$0xff]  ;;  %v2190_v33 = vld [vmem:[#allocation9 + $0x50] sm:$0xff] }
 0x46d   :  { %2258 = vmatpush.msrb.mxu0 %v2224_v46  ;;  %2299 = vmatpush.msra.mxu1 %v2225_v5  ;;  %v2191_v46 = vld [vmem:[#allocation9 + $0x58] sm:$0xff]  ;;  %v2184_v5 = vld [vmem:[#allocation9 + $0x20] sm:$0xff] }
 0x46e   :  { %2340 = vmatpush.msra.mxu2 %v2226_v54  ;;  %2381 = vmatpush.msra.mxu3 %v2227_v7  ;;  %v11142_v7 = vld [vmem:[#allocation42_spill] sm:$0xff] }
 0x46f   :  { %2259 = vmatpush.msrb.mxu0 %v2220_v59  ;;  %2300 = vmatpush.msra.mxu1 %v2221_v44  ;;  %v2181_v59 = vld [vmem:[#allocation9 + $0x8] sm:$0xff] }
 0x470   :  { %2341 = vmatpush.msra.mxu2 %v2222_v52  ;;  %2382 = vmatpush.msra.mxu3 %v2223_v31  ;;  %v2182_v52 = vld [vmem:[#allocation9 + $0x10] sm:$0xff] }
 0x471   :  { %2260 = vmatpush.msrb.mxu0 %v2216_v3  ;;  %2301 = vmatpush.msra.mxu1 %v2217_v8 }
 0x472   :  { %2342 = vmatpush.msra.mxu2 %v2218_v13  ;;  %2383 = vmatpush.msra.mxu3 %v2219_v55 }
 0x473   :  { %2261 = vmatpush.msrb.mxu0 %v2212_v24  ;;  %2302 = vmatpush.msra.mxu1 %v2213_v34 }
 0x474   :  { %2343 = vmatpush.msra.mxu2 %v2214_v21  ;;  %2384 = vmatpush.msra.mxu3 %v2215_v17 }
 0x475   :  { %2262 = vmatpush.msrb.mxu0 %v2208_v47  ;;  %2303 = vmatpush.msra.mxu1 %v2209_v43 }
 0x476   :  { %2344 = vmatpush.msra.mxu2 %v2210_v12  ;;  %2385 = vmatpush.msra.mxu3 %v2211_v6 }
 0x477   :  { %2263 = vmatpush.msrb.mxu0 %v2204_v19  ;;  %2304 = vmatpush.msra.mxu1 %v2205_v51 }
 0x478   :  { %2345 = vmatpush.msra.mxu2 %v2206_v42  ;;  %2386 = vmatpush.msra.mxu3 %v2207_v2 }
 0x479   :  { %2264 = vmatpush.msrb.mxu0 %v2200_v53  ;;  %2305 = vmatpush.msra.mxu1 %v2201_v14 }
 0x47a   :  { %2346 = vmatpush.msra.mxu2 %v2202_v48  ;;  %2387 = vmatpush.msra.mxu3 %v2203_v16 }
 0x47b   :  { %2265 = vmatpush.msrb.mxu0 %v2196_v50  ;;  %2306 = vmatpush.msra.mxu1 %v2197_v15 }
 0x47c   :  { %2347 = vmatpush.msra.mxu2 %v2198_v32  ;;  %2388 = vmatpush.msra.mxu3 %v2199_v25 }
 0x47d   :  { %2266 = vmatpush.msrb.mxu0 %v2192_v37  ;;  %2307 = vmatpush.msra.mxu1 %v2193_v39  ;;  %v11144_v37 = vld [vmem:[#allocation49_spill] sm:$0xff]  ;;  %v11145_v39 = vld [vmem:[#allocation62_spill] sm:$0xff] }
 0x47e   :  { %2348 = vmatpush.msra.mxu2 %v2194_v28  ;;  %2389 = vmatpush.msra.mxu3 %v2195_v61  ;;  %v8382_v28 = vld [vmem:[#allocation11 + $0x1e0] sm:$0xff]  ;;  %v8384_v61 = vld [vmem:[#allocation11 + $0x1e8] sm:$0xff] }
 0x47f   :  { %2267 = vmatpush.msrb.mxu0 %v2188_v27  ;;  %2308 = vmatpush.msra.mxu1 %v2189_v11  ;;  %v8386_v27 = vld [vmem:[#allocation11 + $0x1c0] sm:$0xff]  ;;  %v8390_v11 = vld [vmem:[#allocation11 + $0x1c8] sm:$0xff] }
 0x480   :  { %2349 = vmatpush.msra.mxu2 %v2190_v33  ;;  %2390 = vmatpush.msra.mxu3 %v2191_v46  ;;  %v8392_v33 = vld [vmem:[#allocation11 + $0x1f0] sm:$0xff]  ;;  %v8395_v46 = vld [vmem:[#allocation11 + $0x1a0] sm:$0xff] }
 0x481   :  { %2268 = vmatpush.msrb.mxu0 %v2184_v5  ;;  %2309 = vmatpush.msra.mxu1 %v2185_v45  ;;  %v8397_v5 = vld [vmem:[#allocation11 + $0x1a8] sm:$0xff] }
 0x482   :  { %2391 = vmatpush.msra.mxu3 %v2187_v10  ;;  %v11146_v45 = vld [vmem:[#allocation63_spill] sm:$0xff]  ;;  %v8418_v10 = vld [vmem:[#allocation11 + $0x1f8] sm:$0xff] }
 0x483   :  { %2310 = vmatpush.msra.mxu1 %v2181_v59  ;;  %v8430_v59 = vld [vmem:[#allocation11 + $0x188] sm:$0xff] }
 0x4e0   :  { %v1813_v36 = vpop.f32.mrf.mxu0  ;;  %v1833_v62 = vpop.f32.mrf.mxu1 }
 0x4e1   :  { %v1876_v29 = vadd.f32 %v1813_v36, %v219_v30  ;;  %v1877_v0 = vadd.f32 %v1833_v62, %v260_v60  ;;  %v2186_v30 = vld [vmem:[#allocation9 + $0x30] sm:$0xff]  ;;  %v342_v36 = vadd.f32 %v11142_v7, %v11108_v9  ;;  %v2180_v62 = vld [vmem:[#allocation9] sm:$0xff] }
 0x4e2   :  { %2350 = vmatpush.msra.mxu2 %v2186_v30  ;;  %2269 = vmatpush.msrb.mxu0 %v2180_v62  ;;  %v11147_v30 = vld [vmem:[#allocation65_spill] sm:$0xff]  ;;  %v8424_v7 = vld [vmem:[#allocation11 + $0x1b0] sm:$0xff]  ;;  %v8428_v62 = vld [vmem:[#allocation11 + $0x180] sm:$0xff] }
 0x4e3   :  { %v6386_v56 = vmul.f32 -1.442695, %v1876_v29  ;;  %v6387_v22 = vmul.f32 -1.442695, %v1877_v0  ;;  %v2183_v29 = vld [vmem:[#allocation9 + $0x18] sm:$0xff] }
 0x4e4   :  { %2351 = vmatpush.msra.mxu2 %v2182_v52  ;;  %2392 = vmatpush.msra.mxu3 %v2183_v29  ;;  %v8440_v52 = vld [vmem:[#allocation11 + $0x190] sm:$0xff]  ;;  %v8442_v29 = vld [vmem:[#allocation11 + $0x198] sm:$0xff] }
 0x4e5   :  { %6552 = vpow2.f32 %v6386_v56 }
 0x4e6   :  { %6554 = vpow2.f32 %v6387_v22 }
 0x4e7   :  { %v1853_v57 = vpop.f32.mrf.mxu2  ;;  %v1873_v54 = vpop.f32.mrf.mxu3 }
 0x4e8   :  { %v1878_v20 = vadd.f32 %v1853_v57, %v301_v23  ;;  %v1879_v31 = vadd.f32 %v1873_v54, %v342_v36  ;;  %v8399_v54 = vld [vmem:[#allocation11 + $0x1d0] sm:$0xff]  ;;  %v8426_v36 = vld [vmem:[#allocation11 + $0x1b8] sm:$0xff] }
 0x4ea   :  { %v6388_v40 = vmul.f32 -1.442695, %v1878_v20 }
 0x4eb   :  { %v6553_v35 = vpop.eup %6552 }
 0x4ec   :  { %v6555_v63 = vpop.eup %6554  ;;  %v8350_v26 = vadd.f32 1.0, %v6553_v35  ;;  %6556 = vpow2.f32 %v6388_v40 }
 0x4ed   :  { %v8352_v41 = vadd.f32 1.0, %v6555_v63 }
 0x4ee   :  { %6558 = vrcp.f32 %v8350_v26  ;;  %v1903_v55 = vand.u32 2147483648, %v8350_v26  ;;  %v1901_v21 = vand.u32 2147483647, %v8350_v26  ;;  %vm1897_vm11 = vweird.f32 %v8350_v26 }
 0x4ef   :  { %6560 = vrcp.f32 %v8352_v41  ;;  %v1918_v24 = vand.u32 2147483648, %v8352_v41  ;;  %v1916_v58 = vand.u32 2147483647, %v8352_v41  ;;  %vm1912_vm12 = vweird.f32 %v8352_v41 }
 0x4f0   :  { %v1904_v12 = vor.u32 1.1754944e-38, %v1903_v55  ;;  %vm1902_vm15 = vcmp.eq.f32.partialorder %v1901_v21, 8.507059e+37  ;;  %v8460_v55 = vld [vmem:[#allocation11 + $0x148] sm:$0xff] }
 0x4f1   :  { %v1919_v6 = vor.u32 1.1754944e-38, %v1918_v24  ;;  %vm1917_vm0 = vcmp.eq.f32.partialorder %v1916_v58, 8.507059e+37  ;;  %v8462_v24 = vld [vmem:[#allocation11 + $0x150] sm:$0xff] }
 0x4f2   :  { %v6557_v60 = vpop.eup %6556 }
 0x4f3   :  { %v1891_v44 = vadd.f32 1.0, %v6557_v60  ;;  %v8421_v60 = vld [vmem:[#allocation11 + $0x1d8] sm:$0xff] }
 0x4f4   :  { %v6559_v0 = vpop.eup %6558 }
 0x4f5   :  { %v6561_v3 = vpop.eup %6560  ;;  %v1893_v8 = vmul.f32 %v6559_v0, %v8350_v26  ;;  %6562 = vrcp.f32 %v1891_v44  ;;  %vm1898_vm9 = vweird.f32 %v6559_v0  ;;  %v1933_v50 = vand.u32 2147483648, %v1891_v44 }
 0x4f6   :  { %v1908_v13 = vmul.f32 %v6561_v3, %v8352_v41  ;;  %6564 = vtanh.f32 %v1879_v31  ;;  %vm1913_vm10 = vweird.f32 %v6561_v3  ;;  %vm1899_vm13 = vmor %vm1897_vm11, %vm1898_vm9  ;;  %vm1927_vm2 = vweird.f32 %v1891_v44  ;;  %v8450_v31 = vld [vmem:[#allocation11 + $0x178] sm:$0xff] }
 0x4f7   :  { %v1894_v56 = vsub.f32 1.0, %v1893_v8  ;;  %vm1914_vm14 = vmor %vm1912_vm12, %vm1913_vm10  ;;  %v1931_v15 = vand.u32 2147483647, %v1891_v44  ;;  %v1934_v26 = vor.u32 1.1754944e-38, %v1933_v50 }
 0x4f8   :  { %v1909_v22 = vsub.f32 1.0, %v1908_v13  ;;  %v11149_v13 = vld [vmem:[#allocation40_spill] sm:$0xff] }
 0x4f9   :  { %v1895_v34 = vmul.f32 %v6559_v0, %v1894_v56  ;;  %vm1932_vm4 = vcmp.eq.f32.partialorder %v1931_v15, 8.507059e+37  ;;  %v263_v56 = vadd.f32 %v11149_v13, %v11138_v49  ;;  %v8473_v49 = vld [vmem:[#allocation11 + $0x130] sm:$0xff]  ;;  %v8508_v15 = vld [vmem:[#allocation11 + $0xa0] sm:$0xff] }
 0x4fa   :  { %v1910_v17 = vmul.f32 %v6561_v3, %v1909_v22  ;;  %v8458_v22 = vld [vmem:[#allocation11 + $0x140] sm:$0xff] }
 0x4fb   :  { %v6563_v23 = vpop.eup %6562  ;;  %v1896_v47 = vadd.f32 %v6559_v0, %v1895_v34 }
 0x4fc   :  { %v1923_v43 = vmul.f32 %v6563_v23, %v1891_v44  ;;  %v1911_v57 = vadd.f32 %v6561_v3, %v1910_v17  ;;  %v6565_v19 = vpop.eup %6564  ;;  %vm1928_vm1 = vweird.f32 %v6563_v23  ;;  %v8438_v44 = vld [vmem:[#allocation11 + $0x168] sm:$0xff]  ;;  %v8466_v17 = vld [vmem:[#allocation11 + $0x158] sm:$0xff] }
 0x4fd   :  { %v1900_v20 = vsel %vm1899_vm13, %v6559_v0, %v1896_v47  ;;  %vm1929_vm3 = vmor %vm1927_vm2, %vm1928_vm1  ;;  %v8448_v0 = vld [vmem:[#allocation11 + $0x170] sm:$0xff]  ;;  %v8470_v47 = vld [vmem:[#allocation11 + $0x128] sm:$0xff] }
 0x4fe   :  { %v1924_v51 = vsub.f32 1.0, %v1923_v43  ;;  %v1905_v42 = vsel %vm1902_vm15, %v1904_v12, %v1900_v20  ;;  %v1915_v2 = vsel %vm1914_vm14, %v6561_v3, %v1911_v57  ;;  %v11148_v3 = vld [vmem:[#allocation25_spill] sm:$0xff]  ;;  %v8482_v20 = vld [vmem:[#allocation11 + $0x108] sm:$0xff] }
 0x4ff   :  { %v1920_v40 = vsel %vm1917_vm0, %v1919_v6, %v1915_v2  ;;  %v1940_v53 = vmul.f32 %v6565_v19, %v1905_v42  ;;  %v222_v8 = vadd.f32 %v11148_v3, %v11136_v18  ;;  %v8468_v18 = vld [vmem:[#allocation11 + $0x120] sm:$0xff]  ;;  %v8478_v43 = vld [vmem:[#allocation11 + $0x138] sm:$0xff]  ;;  %v8492_v42 = vld [vmem:[#allocation11 + $0x110] sm:$0xff] }
 0x500   :  { %v1925_v14 = vmul.f32 %v6563_v23, %v1924_v51  ;;  %v1939_v48 = vmul.f32 %v1920_v40, %v8303_v4  ;;  %v11143_v4 = vld [vmem:[#allocation47_spill] sm:$0xff]  ;;  %v8480_v6 = vld [vmem:[#allocation11 + $0x100] sm:$0xff] }
 0x501   :  { %v8488_v19 = vld [vmem:[#allocation11 + $0xe0] sm:$0xff]  ;;  %v8490_v51 = vld [vmem:[#allocation11 + $0xe8] sm:$0xff] }
 0x502   :  { %v8367_v35 = vadd.f32 %v1940_v53, %v1939_v48  ;;  %v1926_v16 = vadd.f32 %v6563_v23, %v1925_v14  ;;  %v8495_v2 = vld [vmem:[#allocation11 + $0xc0] sm:$0xff]  ;;  %v8497_v40 = vld [vmem:[#allocation11 + $0xc8] sm:$0xff]  ;;  %v8499_v53 = vld [vmem:[#allocation11 + $0xf0] sm:$0xff] }
 0x503   :  { %v11150_v14 = vld [vmem:[#allocation43_spill] sm:$0xff]  ;;  %v8534_v3 = vld [vmem:[#allocation11 + $0x60] sm:$0xff] }
 0x504   :  { %6566 = vtanh.f32 %v8367_v35  ;;  %v1930_v63 = vsel %vm1929_vm3, %v6563_v23, %v1926_v16  ;;  %v304_v48 = vadd.f32 %v11150_v14, %v11140_v1  ;;  %v8505_v16 = vld [vmem:[#allocation11 + $0xd0] sm:$0xff]  ;;  %11153 = vst [vmem:[#allocation55_spill] sm:$0xff] %v8534_v3 }
 0x505   :  { %v1935_v25 = vsel %vm1932_vm4, %v1934_v26, %v1930_v63  ;;  %v8510_v63 = vld [vmem:[#allocation11 + $0xa8] sm:$0xff]  ;;  %v8512_v26 = vld [vmem:[#allocation11 + $0x118] sm:$0xff]  ;;  %v8516_v1 = vld [vmem:[#allocation11 + $0xb0] sm:$0xff] }
 0x506   :  { %v8559_v14 = vld [vmem:[#allocation11 + $0x50] sm:$0xff] }
 0x507   :  { %11159 = vst [vmem:[#allocation61_spill] sm:$0xff] %v8559_v14 }
 0x50a   :  { %v6567_v32 = vpop.eup %6566 }
 0x50b   :  { %v1943_v41 = vmul.f32 %v6567_v32, %v1935_v25  ;;  %v8518_v25 = vld [vmem:[#allocation11 + $0xf8] sm:$0xff] }
 0x50d   :  { %2036 = vmatmul.f32.vlgmr.msra.gmra.mxu0 %v1943_v41  ;;  %2056 = vmatmul.f32.vlgmr.msrb.gmra.mxu1 %v1943_v41 }
 0x50e   :  { %2076 = vmatmul.f32.vlgmr.msrb.gmra.mxu2 %v1943_v41  ;;  %2096 = vmatmul.f32.vlgmr.msrb.gmra.mxu3 %v1943_v41 }
 0x50f   :  { %2521 = vmatpush.msra.mxu0 %v8382_v28  ;;  %2541 = vmatpush.msrb.mxu1 %v8384_v61 }
 0x510   :  { %2561 = vmatpush.msrb.mxu2 %v8392_v33  ;;  %2581 = vmatpush.msrb.mxu3 %v8418_v10 }
 0x511   :  { %2522 = vmatpush.msra.mxu0 %v8386_v27  ;;  %2542 = vmatpush.msrb.mxu1 %v8390_v11 }
 0x512   :  { %2562 = vmatpush.msrb.mxu2 %v8399_v54  ;;  %2582 = vmatpush.msrb.mxu3 %v8421_v60 }
 0x513   :  { %2523 = vmatpush.msra.mxu0 %v8395_v46  ;;  %2543 = vmatpush.msrb.mxu1 %v8397_v5 }
 0x514   :  { %2563 = vmatpush.msrb.mxu2 %v8424_v7  ;;  %2583 = vmatpush.msrb.mxu3 %v8426_v36 }
 0x515   :  { %2270 = vmatmul.f32.vlgmr.msrb.gmra.mxu0 %v11143_v4  ;;  %2311 = vmatmul.f32.vlgmr.msra.gmra.mxu1 %v11143_v4 }
 0x516   :  { %2352 = vmatmul.f32.vlgmr.msra.gmra.mxu2 %v11143_v4  ;;  %2393 = vmatmul.f32.vlgmr.msra.gmra.mxu3 %v11143_v4  ;;  %v8524_v4 = vld [vmem:[#allocation11 + $0x88] sm:$0xff] }
 0x517   :  { %2524 = vmatpush.msra.mxu0 %v8428_v62  ;;  %2544 = vmatpush.msrb.mxu1 %v8430_v59  ;;  %11151 = vst [vmem:[#allocation53_spill] sm:$0xff] %v8524_v4 }
 0x518   :  { %2564 = vmatpush.msrb.mxu2 %v8440_v52  ;;  %2584 = vmatpush.msrb.mxu3 %v8442_v29 }
 0x519   :  { %2545 = vmatpush.msrb.mxu1 %v8438_v44 }
 0x51a   :  { %2565 = vmatpush.msrb.mxu2 %v8448_v0  ;;  %2585 = vmatpush.msrb.mxu3 %v8450_v31 }
 0x51b   :  { %2546 = vmatpush.msrb.mxu1 %v8460_v55 }
 0x51c   :  { %2566 = vmatpush.msrb.mxu2 %v8462_v24  ;;  %2586 = vmatpush.msrb.mxu3 %v8466_v17 }
 0x51d   :  { %2273 = vmatmul.f32.gmra.mxu0 %v11144_v37  ;;  %2314 = vmatmul.f32.gmra.mxu1 %v11144_v37 }
 0x51e   :  { %2355 = vmatmul.f32.gmra.mxu2 %v11144_v37  ;;  %2396 = vmatmul.f32.gmra.mxu3 %v11144_v37 }
 0x51f   :  { %2547 = vmatpush.msrb.mxu1 %v8470_v47  ;;  %2567 = vmatpush.msrb.mxu2 %v8473_v49 }
 0x520   :  { %2587 = vmatpush.msrb.mxu3 %v8478_v43 }
 0x521   :  { %2548 = vmatpush.msrb.mxu1 %v8482_v20  ;;  %2568 = vmatpush.msrb.mxu2 %v8492_v42 }
 0x522   :  { %2588 = vmatpush.msrb.mxu3 %v8512_v26 }
 0x523   :  { %2549 = vmatpush.msrb.mxu1 %v8490_v51  ;;  %2569 = vmatpush.msrb.mxu2 %v8499_v53 }
 0x524   :  { %2589 = vmatpush.msrb.mxu3 %v8518_v25 }
 0x525   :  { %2276 = vmatmul.f32.gmra.mxu0 %v11145_v39  ;;  %2317 = vmatmul.f32.gmra.mxu1 %v11145_v39 }
 0x526   :  { %2358 = vmatmul.f32.gmra.mxu2 %v11145_v39  ;;  %2399 = vmatmul.f32.gmra.mxu3 %v11145_v39  ;;  %v8528_v39 = vld [vmem:[#allocation11 + $0x90] sm:$0xff] }
 0x527   :  { %2550 = vmatpush.msrb.mxu1 %v8497_v40  ;;  %2570 = vmatpush.msrb.mxu2 %v8505_v16  ;;  %11152 = vst [vmem:[#allocation54_spill] sm:$0xff] %v8528_v39 }
 0x529   :  { %2551 = vmatpush.msrb.mxu1 %v8510_v63  ;;  %2571 = vmatpush.msrb.mxu2 %v8516_v1 }
 0x52b   :  { %2552 = vmatpush.msrb.mxu1 %v8524_v4  ;;  %2572 = vmatpush.msrb.mxu2 %v8528_v39 }
 0x52d   :  { %2279 = vmatmul.f32.gmra.mxu0 %v11146_v45  ;;  %2320 = vmatmul.f32.gmra.mxu1 %v11146_v45 }
 0x52e   :  { %2361 = vmatmul.f32.gmra.mxu2 %v11146_v45  ;;  %2402 = vmatmul.f32.gmra.mxu3 %v11146_v45  ;;  %v8530_v45 = vld [vmem:[#allocation11 + $0xd8] sm:$0xff] }
 0x52f   :  { %2590 = vmatpush.msrb.mxu3 %v8530_v45 }
 0x535   :  { %2282 = vmatmul.f32.gmra.mxu0 %v11147_v30  ;;  %2323 = vmatmul.f32.gmra.mxu1 %v11147_v30 }
 0x536   :  { %2364 = vmatmul.f32.gmra.mxu2 %v11147_v30  ;;  %2405 = vmatmul.f32.gmra.mxu3 %v11147_v30 }
 0x53d   :  { %2285 = vmatmul.f32.gmra.mxu0 %v8330_v38  ;;  %2326 = vmatmul.f32.gmra.mxu1 %v8330_v38 }
 0x53e   :  { %2367 = vmatmul.f32.gmra.mxu2 %v8330_v38  ;;  %2408 = vmatmul.f32.gmra.mxu3 %v8330_v38  ;;  %v8433_v38 = vld [vmem:[#allocation11 + $0x160] sm:$0xff] }
 0x53f   :  { %2525 = vmatpush.msra.mxu0 %v8433_v38 }
 0x541   :  { %2526 = vmatpush.msra.mxu0 %v8458_v22 }
 0x543   :  { %2527 = vmatpush.msra.mxu0 %v8468_v18 }
 0x545   :  { %2288 = vmatmul.f32.gmra.mxu0 %v1943_v41  ;;  %2329 = vmatmul.f32.gmra.mxu1 %v1943_v41 }
 0x546   :  { %2370 = vmatmul.f32.gmra.mxu2 %v1943_v41  ;;  %2411 = vmatmul.f32.gmra.mxu3 %v1943_v41  ;;  %v8522_v41 = vld [vmem:[#allocation11 + $0x80] sm:$0xff] }
 0x547   :  { %2528 = vmatpush.msra.mxu0 %v8480_v6 }
 0x549   :  { %2529 = vmatpush.msra.mxu0 %v8488_v19 }
 0x54b   :  { %2530 = vmatpush.msra.mxu0 %v8495_v2 }
 0x54d   :  { %2531 = vmatpush.msra.mxu0 %v8508_v15 }
 0x54f   :  { %2532 = vmatpush.msra.mxu0 %v8522_v41 }
 0x551   :  { %2533 = vmatpush.msra.mxu0 %v8534_v3  ;;  %v11164_v3 = vld [vmem:[#allocation45_spill] sm:$0xff] }
 0x552   :  { %v345_v39 = vadd.f32 %v11164_v3, %v11108_v9  ;;  %v8594_v9 = vld [vmem:[#allocation11 + $0x38] sm:$0xff] }
 0x58a   :  { %v2037_v34 = vpop.f32.mrf.mxu0  ;;  %v2057_v21 = vpop.f32.mrf.mxu1 }
 0x58b   :  { %v2100_v58 = vadd.f32 %v2037_v34, %v222_v8  ;;  %v2101_v23 = vadd.f32 %v2057_v21, %v263_v56  ;;  %v8536_v8 = vld [vmem:[#allocation11 + $0x68] sm:$0xff]  ;;  %v8542_v34 = vld [vmem:[#allocation11 + $0x70] sm:$0xff]  ;;  %v8544_v21 = vld [vmem:[#allocation11 + $0xb8] sm:$0xff] }
 0x58c   :  { %11154 = vst [vmem:[#allocation56_spill] sm:$0xff] %v8536_v8  ;;  %2553 = vmatpush.msrb.mxu1 %v8536_v8  ;;  %2573 = vmatpush.msrb.mxu2 %v8542_v34 }
 0x58d   :  { %v6389_v12 = vmul.f32 -1.442695, %v2100_v58  ;;  %v6390_v57 = vmul.f32 -1.442695, %v2101_v23  ;;  %11155 = vst [vmem:[#allocation57_spill] sm:$0xff] %v8542_v34  ;;  %v8550_v23 = vld [vmem:[#allocation11 + $0x40] sm:$0xff]  ;;  %2591 = vmatpush.msrb.mxu3 %v8544_v21 }
 0x58e   :  { %11156 = vst [vmem:[#allocation58_spill] sm:$0xff] %v8550_v23  ;;  %2534 = vmatpush.msra.mxu0 %v8550_v23  ;;  %2574 = vmatpush.msrb.mxu2 %v8559_v14  ;;  %v8578_v34 = vld [vmem:[#allocation11 + $0x30] sm:$0xff] }
 0x58f   :  { %6568 = vpow2.f32 %v6389_v12  ;;  %v8552_v12 = vld [vmem:[#allocation11 + $0x48] sm:$0xff]  ;;  %11163 = vst [vmem:[#allocation46_spill] sm:$0xff] %v8578_v34  ;;  %v8586_v23 = vld [vmem:[#allocation11 + $0x10] sm:$0xff] }
 0x590   :  { %6570 = vpow2.f32 %v6390_v57  ;;  %11157 = vst [vmem:[#allocation59_spill] sm:$0xff] %v8552_v12  ;;  %v8557_v57 = vld [vmem:[#allocation11 + $0x98] sm:$0xff]  ;;  %2554 = vmatpush.msrb.mxu1 %v8552_v12  ;;  %2575 = vmatpush.msrb.mxu2 %v8578_v34 }
 0x591   :  { %v2077_v50 = vpop.f32.mrf.mxu2  ;;  %11158 = vst [vmem:[#allocation60_spill] sm:$0xff] %v8557_v57  ;;  %2592 = vmatpush.msrb.mxu3 %v8557_v57  ;;  %v8584_v12 = vld [vmem:[#allocation11 + $0x58] sm:$0xff] }
 0x592   :  { %v2102_v32 = vadd.f32 %v2077_v50, %v304_v48  ;;  %v8564_v48 = vld [vmem:[#allocation11 + $0x20] sm:$0xff]  ;;  %v8566_v50 = vld [vmem:[#allocation11 + $0x28] sm:$0xff]  ;;  %11165 = vst [vmem:[#allocation30_spill] sm:$0xff] %v8586_v23  ;;  %2576 = vmatpush.msrb.mxu2 %v8586_v23  ;;  %v8601_v34 = vld [vmem:[#allocation11 + $0x18] sm:$0xff] }
 0x593   :  { %11160 = vst [vmem:[#allocation26_spill] sm:$0xff] %v8566_v50  ;;  %2535 = vmatpush.msra.mxu0 %v8564_v48  ;;  %2555 = vmatpush.msrb.mxu1 %v8566_v50 }
 0x594   :  { %v6391_v37 = vmul.f32 -1.442695, %v2102_v32  ;;  %v8570_v32 = vld [vmem:[#allocation11 + $0x78] sm:$0xff]  ;;  %2781 = vmatpush.msra.mxu2 %v8392_v33 }
 0x595   :  { %v6569_v30 = vpop.eup %6568  ;;  %2593 = vmatpush.msrb.mxu3 %v8570_v32 }
 0x596   :  { %v6571_v13 = vpop.eup %6570  ;;  %v8538_v56 = vadd.f32 1.0, %v6569_v30  ;;  %6572 = vpow2.f32 %v6391_v37  ;;  %v2097_v37 = vpop.f32.mrf.mxu3  ;;  %v8574_v30 = vld [vmem:[#allocation11] sm:$0xff]  ;;  %2782 = vmatpush.msra.mxu2 %v8399_v54 }
 0x597   :  { %v8546_v58 = vadd.f32 1.0, %v6571_v13  ;;  %11161 = vst [vmem:[#allocation27_spill] sm:$0xff] %v8574_v30  ;;  %v8576_v13 = vld [vmem:[#allocation11 + $0x8] sm:$0xff]  ;;  %v2103_v4 = vadd.f32 %v2097_v37, %v345_v39  ;;  %2536 = vmatpush.msra.mxu0 %v8574_v30  ;;  %2594 = vmatpush.msrb.mxu3 %v8584_v12 }
 0x598   :  { %6574 = vrcp.f32 %v8538_v56  ;;  %11162 = vst [vmem:[#allocation29_spill] sm:$0xff] %v8576_v13  ;;  %2556 = vmatpush.msrb.mxu1 %v8576_v13  ;;  %v2127_v13 = vand.u32 2147483648, %v8538_v56  ;;  %vm2121_vm7 = vweird.f32 %v8538_v56  ;;  %2783 = vmatpush.msra.mxu2 %v8424_v7 }
 0x599   :  { %6576 = vrcp.f32 %v8546_v58  ;;  %2741 = vmatpush.msrb.mxu0 %v8382_v28  ;;  %2595 = vmatpush.msrb.mxu3 %v8594_v9  ;;  %v2142_v23 = vand.u32 2147483648, %v8546_v58  ;;  %v2125_v28 = vand.u32 2147483647, %v8538_v56  ;;  %v2140_v33 = vand.u32 2147483647, %v8546_v58 }
 0x59a   :  { %2761 = vmatpush.msra.mxu1 %v8384_v61  ;;  %vm2136_vm8 = vweird.f32 %v8546_v58  ;;  %2784 = vmatpush.msra.mxu2 %v8440_v52 }
 0x59b   :  { %2742 = vmatpush.msrb.mxu0 %v8386_v27  ;;  %2596 = vmatpush.msrb.mxu3 %v8601_v34  ;;  %vm2126_vm11 = vcmp.eq.f32.partialorder %v2125_v28, 8.507059e+37  ;;  %vm2141_vm12 = vcmp.eq.f32.partialorder %v2140_v33, 8.507059e+37  ;;  %v11167_v33 = vld [vmem:[#allocation54_spill] sm:$0xff] }
 0x59c   :  { %v6573_v8 = vpop.eup %6572  ;;  %2762 = vmatpush.msra.mxu1 %v8390_v11  ;;  %2785 = vmatpush.msra.mxu2 %v8448_v0 }
 0x59d   :  { %v8588_v57 = vadd.f32 1.0, %v6573_v8  ;;  %2801 = vmatpush.msra.mxu3 %v8418_v10  ;;  %2743 = vmatpush.msrb.mxu0 %v8395_v46  ;;  %v2143_v46 = vor.u32 1.1754944e-38, %v2142_v23 }
 0x59e   :  { %v6575_v14 = vpop.eup %6574  ;;  %2763 = vmatpush.msra.mxu1 %v8397_v5  ;;  %2786 = vmatpush.msra.mxu2 %v8462_v24 }
 0x59f   :  { %v6577_v3 = vpop.eup %6576  ;;  %v2117_v50 = vmul.f32 %v6575_v14, %v8538_v56  ;;  %6578 = vrcp.f32 %v8588_v57  ;;  %vm2122_vm5 = vweird.f32 %v6575_v14  ;;  %2802 = vmatpush.msra.mxu3 %v8421_v60  ;;  %2744 = vmatpush.msrb.mxu0 %v8428_v62  ;;  %vm2151_vm14 = vweird.f32 %v8588_v57 }
 0x5a0   :  { %v2132_v8 = vmul.f32 %v6577_v3, %v8546_v58  ;;  %6580 = vtanh.f32 %v2103_v4  ;;  %vm2137_vm6 = vweird.f32 %v6577_v3  ;;  %vm2123_vm9 = vmor %vm2121_vm7, %vm2122_vm5  ;;  %v2128_v4 = vor.u32 1.1754944e-38, %v2127_v13  ;;  %2764 = vmatpush.msra.mxu1 %v8430_v59  ;;  %2787 = vmatpush.msra.mxu2 %v8473_v49 }
 0x5a1   :  { %v2118_v39 = vsub.f32 1.0, %v2117_v50  ;;  %vm2138_vm10 = vmor %vm2136_vm8, %vm2137_vm6  ;;  %2803 = vmatpush.msra.mxu3 %v8426_v36  ;;  %2745 = vmatpush.msrb.mxu0 %v8433_v38 }
 0x5a2   :  { %v2133_v37 = vsub.f32 1.0, %v2132_v8  ;;  %2765 = vmatpush.msra.mxu1 %v8438_v44  ;;  %v2155_v44 = vand.u32 2147483647, %v8588_v57  ;;  %2788 = vmatpush.msra.mxu2 %v8492_v42 }
 0x5a3   :  { %v2119_v30 = vmul.f32 %v6575_v14, %v2118_v39  ;;  %2804 = vmatpush.msra.mxu3 %v8442_v29  ;;  %2746 = vmatpush.msrb.mxu0 %v8458_v22 }
 0x5a4   :  { %v2134_v61 = vmul.f32 %v6577_v3, %v2133_v37  ;;  %2766 = vmatpush.msra.mxu1 %v8460_v55  ;;  %2789 = vmatpush.msra.mxu2 %v8499_v53  ;;  %vm2156_vm0 = vcmp.eq.f32.partialorder %v2155_v44, 8.507059e+37 }
 0x5a5   :  { %v8617_v27 = vpop.eup %6578  ;;  %v2120_v11 = vadd.f32 %v6575_v14, %v2119_v30  ;;  %2805 = vmatpush.msra.mxu3 %v8450_v31  ;;  %2747 = vmatpush.msrb.mxu0 %v8468_v18 }
 0x5a6   :  { %v2147_v54 = vmul.f32 %v8617_v27, %v8588_v57  ;;  %v2135_v50 = vadd.f32 %v6577_v3, %v2134_v61  ;;  %v6581_v5 = vpop.eup %6580  ;;  %vm2152_vm13 = vweird.f32 %v8617_v27  ;;  %2767 = vmatpush.msra.mxu1 %v8470_v47  ;;  %2790 = vmatpush.msra.mxu2 %v8505_v16  ;;  %v11166_v61 = vld [vmem:[#allocation53_spill] sm:$0xff] }
 0x5a7   :  { %v2124_v56 = vsel %vm2123_vm9, %v6575_v14, %v2120_v11  ;;  %2806 = vmatpush.msra.mxu3 %v8466_v17  ;;  %2748 = vmatpush.msrb.mxu0 %v8480_v6  ;;  %vm2153_vm15 = vmor %vm2151_vm14, %vm2152_vm13  ;;  %v11169_v11 = vld [vmem:[#allocation55_spill] sm:$0xff] }
 0x5a8   :  { %v2148_v58 = vsub.f32 1.0, %v2147_v54  ;;  %v2129_v30 = vsel %vm2126_vm11, %v2128_v4, %v2124_v56  ;;  %v2139_v8 = vsel %vm2138_vm10, %v6577_v3, %v2135_v50  ;;  %2768 = vmatpush.msra.mxu1 %v8482_v20  ;;  %2791 = vmatpush.msra.mxu2 %v8516_v1  ;;  %v11170_v54 = vld [vmem:[#allocation56_spill] sm:$0xff]  ;;  %v11171_v4 = vld [vmem:[#allocation57_spill] sm:$0xff]  ;;  %v11172_v50 = vld [vmem:[#allocation58_spill] sm:$0xff] }
 0x5a9   :  { %v2144_v13 = vsel %vm2141_vm12, %v2143_v46, %v2139_v8  ;;  %v2164_v62 = vmul.f32 %v6581_v5, %v2129_v30  ;;  %2807 = vmatpush.msra.mxu3 %v8478_v43  ;;  %2749 = vmatpush.msrb.mxu0 %v8488_v19  ;;  %v11173_v46 = vld [vmem:[#allocation59_spill] sm:$0xff]  ;;  %v11174_v56 = vld [vmem:[#allocation61_spill] sm:$0xff]  ;;  %v11175_v5 = vmov 0.0   ;;  %v11177_v30 = vld [vmem:[#allocation46_spill] sm:$0xff] }
 0x5aa   :  { %v2163_v23 = vmul.f32 %v2144_v13, %v8367_v35  ;;  %v2149_v59 = vmul.f32 %v8617_v27, %v2148_v58  ;;  %v2157_v35 = vand.u32 2147483648, %v8588_v57  ;;  %2769 = vmatpush.msra.mxu1 %v8490_v51  ;;  %2792 = vmatpush.msra.mxu2 %v11167_v33  ;;  %v11176_v58 = vld [vmem:[#allocation26_spill] sm:$0xff]  ;;  %v11178_v8 = vld [vmem:[#allocation27_spill] sm:$0xff]  ;;  %v11179_v13 = vld [vmem:[#allocation29_spill] sm:$0xff] }
 0x5ab   :  { %2808 = vmatpush.msra.mxu3 %v8512_v26  ;;  %2750 = vmatpush.msrb.mxu0 %v8495_v2 }
 0x5ac   :  { %v2165_v14 = vadd.f32 %v2164_v62, %v2163_v23  ;;  %v2150_v38 = vadd.f32 %v8617_v27, %v2149_v59  ;;  %v2158_v39 = vor.u32 1.1754944e-38, %v2157_v35  ;;  %2770 = vmatpush.msra.mxu1 %v8497_v40  ;;  %2793 = vmatpush.msra.mxu2 %v11171_v4  ;;  %v11180_v62 = vld [vmem:[#allocation30_spill] sm:$0xff] }
 0x5ad   :  { %2809 = vmatpush.msra.mxu3 %v8518_v25  ;;  %2751 = vmatpush.msrb.mxu0 %v8508_v15 }
 0x5ae   :  { %6582 = vtanh.f32 %v2165_v14  ;;  %v2154_v3 = vsel %vm2153_vm15, %v8617_v27, %v2150_v38  ;;  %2771 = vmatpush.msra.mxu1 %v8510_v63  ;;  %v11168_v27 = vld [vmem:[#allocation60_spill] sm:$0xff]  ;;  %2794 = vmatpush.msra.mxu2 %v11174_v56 }
 0x5af   :  { %v2159_v37 = vsel %vm2156_vm0, %v2158_v39, %v2154_v3  ;;  %2810 = vmatpush.msra.mxu3 %v8530_v45  ;;  %2752 = vmatpush.msrb.mxu0 %v8522_v41 }
 0x5b0   :  { %2772 = vmatpush.msra.mxu1 %v11166_v61  ;;  %2795 = vmatpush.msra.mxu2 %v11177_v30 }
 0x5b1   :  { %2811 = vmatpush.msra.mxu3 %v8544_v21  ;;  %2753 = vmatpush.msrb.mxu0 %v11169_v11 }
 0x5b2   :  { %2773 = vmatpush.msra.mxu1 %v11170_v54  ;;  %2796 = vmatpush.msra.mxu2 %v11180_v62 }
 0x5b3   :  { %2812 = vmatpush.msra.mxu3 %v11168_v27  ;;  %2754 = vmatpush.msrb.mxu0 %v11172_v50 }
 0x5b4   :  { %v6583_v57 = vpop.eup %6582  ;;  %2774 = vmatpush.msra.mxu1 %v11173_v46 }
 0x5b5   :  { %v2167_v28 = vmul.f32 %v6583_v57, %v2159_v37  ;;  %2813 = vmatpush.msra.mxu3 %v8570_v32  ;;  %2755 = vmatpush.msrb.mxu0 %v8564_v48 }
 0x5b6   :  { %2775 = vmatpush.msra.mxu1 %v11176_v58 }
 0x5b7   :  { %2291 = vmatmul.f32.gmra.mxu0 %v2167_v28  ;;  %2332 = vmatmul.f32.gmra.mxu1 %v2167_v28 }
 0x5b8   :  { %2373 = vmatmul.f32.gmra.mxu2 %v2167_v28  ;;  %2414 = vmatmul.f32.gmra.mxu3 %v2167_v28 }
 0x5b9   :  { %2814 = vmatpush.msra.mxu3 %v8584_v12  ;;  %2756 = vmatpush.msrb.mxu0 %v11178_v8 }
 0x5ba   :  { %2776 = vmatpush.msra.mxu1 %v11179_v13 }
 0x5bb   :  { %2815 = vmatpush.msra.mxu3 %v8594_v9 }
 0x5bd   :  { %2816 = vmatpush.msra.mxu3 %v8601_v34 }
 0x5bf   :  { %2537 = vmatmul.f32.vlgmr.msra.gmra.mxu0 %v11175_v5  ;;  %2557 = vmatmul.f32.vlgmr.msrb.gmra.mxu1 %v11175_v5 }
 0x5c0   :  { %2577 = vmatmul.f32.vlgmr.msrb.gmra.mxu2 %v11175_v5  ;;  %2597 = vmatmul.f32.vlgmr.msrb.gmra.mxu3 %v11175_v5  ;;  %v2244_v5 = vld [vmem:[%s10808_s6] sm:$0xf] }
 0x5c1   :  { %3021 = vmatpush.msrb.mxu3 %v8418_v10  ;;  %v2271_v10 = vpop.f32.mrf.mxu0 }
 0x5c3   :  { %3022 = vmatpush.msrb.mxu3 %v8421_v60  ;;  %v2312_v60 = vpop.f32.mrf.mxu1 }
 0x5c5   :  { %3023 = vmatpush.msrb.mxu3 %v8426_v36  ;;  %v2353_v36 = vpop.f32.mrf.mxu2 }
 0x5c7   :  { %3024 = vmatpush.msrb.mxu3 %v8442_v29 }
 0x5c9   :  { %3025 = vmatpush.msrb.mxu3 %v8450_v31  ;;  %v8709_v29 = vpop.f32.mrf.mxu0 }
 0x5cb   :  { %3026 = vmatpush.msrb.mxu3 %v8466_v17  ;;  %v8711_v31 = vpop.f32.mrf.mxu1  ;;  %v2394_v17 = vpop.f32.mrf.mxu3 }
 0x5cd   :  { %3027 = vmatpush.msrb.mxu3 %v8478_v43  ;;  %v8713_v43 = vpop.f32.mrf.mxu2 }
 0x5cf   :  { %3028 = vmatpush.msrb.mxu3 %v8512_v26 }
 0x5d1   :  { %3029 = vmatpush.msrb.mxu3 %v8518_v25  ;;  %v8715_v26 = vpop.f32.mrf.mxu0 }
 0x5d2   :  { %11181 = vst [vmem:[#allocation28_spill] sm:$0xff] %v8715_v26 }
 0x5d3   :  { %3030 = vmatpush.msrb.mxu3 %v8530_v45  ;;  %v8717_v25 = vpop.f32.mrf.mxu1  ;;  %v8719_v45 = vpop.f32.mrf.mxu3 }
 0x5d4   :  { %11182 = vst [vmem:[#allocation31_spill] sm:$0xff] %v8717_v25 }
 0x5d5   :  { %3031 = vmatpush.msrb.mxu3 %v8544_v21  ;;  %11183 = vst [vmem:[#allocation32_spill] sm:$0xff] %v8719_v45  ;;  %v8721_v21 = vpop.f32.mrf.mxu2 }
 0x5d6   :  { %11184 = vst [vmem:[#allocation33_spill] sm:$0xff] %v8721_v21 }
 0x5d7   :  { %3032 = vmatpush.msrb.mxu3 %v11168_v27 }
 0x5d9   :  { %3033 = vmatpush.msrb.mxu3 %v8570_v32 }
 0x5db   :  { %3034 = vmatpush.msrb.mxu3 %v8584_v12  ;;  %v8723_v12 = vpop.f32.mrf.mxu0  ;;  %v8727_v32 = vpop.f32.mrf.mxu3 }
 0x5dc   :  { %11185 = vst [vmem:[#allocation23_spill] sm:$0xff] %v8723_v12 }
 0x5dd   :  { %3035 = vmatpush.msrb.mxu3 %v8594_v9  ;;  %11187 = vst [vmem:[#allocation36_spill] sm:$0xff] %v8727_v32  ;;  %v8729_v9 = vpop.f32.mrf.mxu2 }
 0x5de   :  { %11188 = vst [vmem:[#allocation38_spill] sm:$0xff] %v8729_v9  ;;  %v8772_v9 = vperm.slane %v2244_v5, 2 }
 0x5df   :  { %3036 = vmatpush.msrb.mxu3 %v8601_v34  ;;  %v8725_v34 = vpop.f32.mrf.mxu1 }
 0x5e0   :  { %11186 = vst [vmem:[#allocation34_spill] sm:$0xff] %v8725_v34  ;;  %v2354_v34 = vadd.f32 %v2353_v36, %v8772_v9 }
 0x5e1   :  { %11207 = vst [vmem:[#allocation63_spill] sm:$0xff] %v8772_v9 }
 0x5e3   :  { %v8731_v23 = vpop.f32.mrf.mxu0  ;;  %v8735_v14 = vpop.f32.mrf.mxu3 }
 0x5e4   :  { %11189 = vst [vmem:[#allocation48_spill] sm:$0xff] %v8731_v23 }
 0x5e5   :  { %11191 = vst [vmem:[#allocation67_spill] sm:$0xff] %v8735_v14  ;;  %v8737_v38 = vpop.f32.mrf.mxu2 }
 0x5e6   :  { %11192 = vst [vmem:[#allocation64_spill] sm:$0xff] %v8737_v38 }
 0x5e7   :  { %v8733_v59 = vpop.f32.mrf.mxu1 }
 0x5e8   :  { %11190 = vst [vmem:[#allocation66_spill] sm:$0xff] %v8733_v59 }
 0x5eb   :  { %v8739_v35 = vpop.f32.mrf.mxu0  ;;  %v8743_v3 = vpop.f32.mrf.mxu3 }
 0x5ec   :  { %11193 = vst [vmem:[#allocation68_spill] sm:$0xff] %v8739_v35 }
 0x5ed   :  { %11195 = vst [vmem:[#allocation51_spill] sm:$0xff] %v8743_v3  ;;  %v8745_v39 = vpop.f32.mrf.mxu2  ;;  %v8764_v3 = vperm.slane %v2244_v5, 1 }
 0x5ee   :  { %11196 = vst [vmem:[#allocation52_spill] sm:$0xff] %v8745_v39 }
 0x5ef   :  { %v8741_v44 = vpop.f32.mrf.mxu1  ;;  %11204 = vst [vmem:[#allocation47_spill] sm:$0xff] %v8764_v3 }
 0x5f0   :  { %11194 = vst [vmem:[#allocation50_spill] sm:$0xff] %v8741_v44  ;;  %v8762_v44 = vperm.slane %v2244_v5, 0 }
 0x5f2   :  { %11203 = vst [vmem:[#allocation42_spill] sm:$0xff] %v8762_v44 }
 0x5f3   :  { %v8747_v57 = vpop.f32.mrf.mxu0  ;;  %v8751_v28 = vpop.f32.mrf.mxu3 }
 0x5f4   :  { %11197 = vst [vmem:[#allocation35_spill] sm:$0xff] %v8747_v57  ;;  %v2272_v57 = vadd.f32 %v2271_v10, %v8762_v44 }
 0x5f5   :  { %11199 = vst [vmem:[#allocation41_spill] sm:$0xff] %v8751_v28  ;;  %v8753_v27 = vpop.f32.mrf.mxu2 }
 0x5f6   :  { %11200 = vst [vmem:[#allocation37_spill] sm:$0xff] %v8753_v27 }
 0x5f7   :  { %v8749_v37 = vpop.f32.mrf.mxu1 }
 0x5f8   :  { %11198 = vst [vmem:[#allocation24_spill] sm:$0xff] %v8749_v37  ;;  %v2313_v37 = vadd.f32 %v2312_v60, %v8764_v3 }
 0x5fb   :  { %v8768_v39 = vpop.f32.mrf.mxu3 }
 0x5fc   :  { %11205 = vst [vmem:[#allocation49_spill] sm:$0xff] %v8768_v39 }
 0x634   :  { %v8758_v38 = vpop.f32.mrf.mxu0  ;;  %v8760_v35 = vpop.f32.mrf.mxu1 }
 0x635   :  { %11201 = vst [vmem:[#allocation44_spill] sm:$0xff] %v8758_v38 }
 0x636   :  { %11202 = vst [vmem:[#allocation39_spill] sm:$0xff] %v8760_v35 }
 0x63b   :  { %v8770_v28 = vpop.f32.mrf.mxu2  ;;  %v8775_v12 = vpop.f32.mrf.mxu3 }
 0x63c   :  { %11206 = vst [vmem:[#allocation62_spill] sm:$0xff] %v8770_v28  ;;  %v2538_v27 = vpop.f32.mrf.mxu0  ;;  %v2558_v59 = vpop.f32.mrf.mxu1 }
 0x63d   :  { %v2601_v23 = vadd.f32 %v2538_v27, %v2272_v57  ;;  %v2602_v14 = vadd.f32 %v2558_v59, %v2313_v37  ;;  %11208 = vst [vmem:[#allocation65_spill] sm:$0xff] %v8775_v12  ;;  %v8777_v57 = vperm.slane %v2244_v5, 3 }
 0x63f   :  { %v6392_v38 = vmul.f32 -1.442695, %v2601_v23  ;;  %v6393_v35 = vmul.f32 -1.442695, %v2602_v14  ;;  %11209 = vst [vmem:[#allocation25_spill] sm:$0xff] %v8777_v57  ;;  %v2395_v14 = vadd.f32 %v2394_v17, %v8777_v57 }
 0x641   :  { %6584 = vpow2.f32 %v6392_v38 }
 0x642   :  { %6586 = vpow2.f32 %v6393_v35 }
 0x643   :  { %v2578_v10 = vpop.f32.mrf.mxu2  ;;  %v2598_v23 = vpop.f32.mrf.mxu3 }
 0x644   :  { %v2603_v60 = vadd.f32 %v2578_v10, %v2354_v34  ;;  %v2604_v35 = vadd.f32 %v2598_v23, %v2395_v14 }
 0x646   :  { %v6394_v32 = vmul.f32 -1.442695, %v2603_v60 }
 0x647   :  { %v6585_v39 = vpop.eup %6584 }
 0x648   :  { %v6587_v21 = vpop.eup %6586  ;;  %v2614_v28 = vadd.f32 1.0, %v6585_v39  ;;  %6588 = vpow2.f32 %v6394_v32 }
 0x649   :  { %v2615_v25 = vadd.f32 1.0, %v6587_v21 }
 0x64a   :  { %6590 = vrcp.f32 %v2614_v28  ;;  %v2628_v39 = vand.u32 2147483648, %v2614_v28  ;;  %v2626_v32 = vand.u32 2147483647, %v2614_v28  ;;  %vm2622_vm3 = vweird.f32 %v2614_v28 }
 0x64b   :  { %6592 = vrcp.f32 %v2615_v25  ;;  %v2643_v21 = vand.u32 2147483648, %v2615_v25  ;;  %v2641_v26 = vand.u32 2147483647, %v2615_v25  ;;  %vm2637_vm4 = vweird.f32 %v2615_v25 }
 0x64c   :  { %vm2627_vm6 = vcmp.eq.f32.partialorder %v2626_v32, 8.507059e+37  ;;  %v8809_v32 = vld [vmem:[#allocation11 + $0x1a8] sm:$0xff] }
 0x64d   :  { %v2644_v57 = vor.u32 1.1754944e-38, %v2643_v21  ;;  %vm2642_vm8 = vcmp.eq.f32.partialorder %v2641_v26, 8.507059e+37 }
 0x64e   :  { %v6589_v59 = vpop.eup %6588 }
 0x64f   :  { %v2616_v36 = vadd.f32 1.0, %v6589_v59  ;;  %v2629_v59 = vor.u32 1.1754944e-38, %v2628_v39 }
 0x650   :  { %v6591_v38 = vpop.eup %6590 }
 0x651   :  { %v6593_v37 = vpop.eup %6592  ;;  %v2618_v27 = vmul.f32 %v6591_v38, %v2614_v28  ;;  %6594 = vrcp.f32 %v2616_v36  ;;  %vm2623_vm1 = vweird.f32 %v6591_v38  ;;  %v2658_v28 = vand.u32 2147483648, %v2616_v36 }
 0x652   :  { %v2633_v34 = vmul.f32 %v6593_v37, %v2615_v25  ;;  %6596 = vtanh.f32 %v2604_v35  ;;  %vm2638_vm2 = vweird.f32 %v6593_v37  ;;  %vm2624_vm5 = vmor %vm2622_vm3, %vm2623_vm1  ;;  %vm2652_vm10 = vweird.f32 %v2616_v36 }
 0x653   :  { %v2619_v10 = vsub.f32 1.0, %v2618_v27  ;;  %vm2639_vm7 = vmor %vm2637_vm4, %vm2638_vm2  ;;  %v2659_v39 = vor.u32 1.1754944e-38, %v2658_v28 }
 0x654   :  { %v2634_v60 = vsub.f32 1.0, %v2633_v34 }
 0x655   :  { %v2620_v5 = vmul.f32 %v6591_v38, %v2619_v10 }
 0x656   :  { %v2635_v12 = vmul.f32 %v6593_v37, %v2634_v60 }
 0x657   :  { %v6595_v45 = vpop.eup %6594  ;;  %v2621_v17 = vadd.f32 %v6591_v38, %v2620_v5 }
 0x658   :  { %v2648_v23 = vmul.f32 %v6595_v45, %v2616_v36  ;;  %v2636_v14 = vadd.f32 %v6593_v37, %v2635_v12  ;;  %v6597_v35 = vpop.eup %6596  ;;  %vm2653_vm9 = vweird.f32 %v6595_v45  ;;  %v2656_v12 = vand.u32 2147483647, %v2616_v36  ;;  %v8807_v36 = vld [vmem:[#allocation11 + $0x1a0] sm:$0xff] }
 0x659   :  { %v2625_v27 = vsel %vm2624_vm5, %v6591_v38, %v2621_v17  ;;  %vm2654_vm11 = vmor %vm2652_vm10, %vm2653_vm9  ;;  %v8814_v17 = vld [vmem:[#allocation11 + $0x180] sm:$0xff] }
 0x65a   :  { %v2649_v34 = vsub.f32 1.0, %v2648_v23  ;;  %v2630_v10 = vsel %vm2627_vm6, %v2629_v59, %v2625_v27  ;;  %v2640_v62 = vsel %vm2639_vm7, %v6593_v37, %v2636_v14  ;;  %vm2657_vm12 = vcmp.eq.f32.partialorder %v2656_v12, 8.507059e+37  ;;  %v8816_v23 = vld [vmem:[#allocation11 + $0x188] sm:$0xff]  ;;  %v8821_v59 = vld [vmem:[#allocation11 + $0x160] sm:$0xff] }
 0x65b   :  { %v2645_v60 = vsel %vm2642_vm8, %v2644_v57, %v2640_v62  ;;  %v2665_v13 = vmul.f32 %v6597_v35, %v2630_v10  ;;  %v8798_v62 = vld [vmem:[#allocation11 + $0x1c0] sm:$0xff]  ;;  %v8802_v57 = vld [vmem:[#allocation11 + $0x1d0] sm:$0xff]  ;;  %v8823_v14 = vld [vmem:[#allocation11 + $0x168] sm:$0xff] }
 0x65c   :  { %v2650_v8 = vmul.f32 %v6595_v45, %v2649_v34  ;;  %v2664_v30 = vmul.f32 0.0, %v2645_v60 }
 0x65e   :  { %v8780_v5 = vadd.f32 %v2665_v13, %v2664_v30  ;;  %v2651_v25 = vadd.f32 %v6595_v45, %v2650_v8  ;;  %v8789_v30 = vld [vmem:[#allocation11 + $0x1e0] sm:$0xff]  ;;  %v8791_v8 = vld [vmem:[#allocation11 + $0x1e8] sm:$0xff]  ;;  %v8793_v13 = vld [vmem:[#allocation11 + $0x1f0] sm:$0xff] }
 0x65f   :  { %2961 = vmatpush.msra.mxu0 %v8789_v30  ;;  %2981 = vmatpush.msrb.mxu1 %v8791_v8 }
 0x660   :  { %6598 = vtanh.f32 %v8780_v5  ;;  %v2655_v38 = vsel %vm2654_vm11, %v6595_v45, %v2651_v25  ;;  %3001 = vmatpush.msrb.mxu2 %v8793_v13  ;;  %v8800_v45 = vld [vmem:[#allocation11 + $0x1c8] sm:$0xff] }
 0x661   :  { %v2660_v37 = vsel %vm2657_vm12, %v2659_v39, %v2655_v38  ;;  %2962 = vmatpush.msra.mxu0 %v8798_v62  ;;  %2982 = vmatpush.msrb.mxu1 %v8800_v45 }
 0x662   :  { %3002 = vmatpush.msrb.mxu2 %v8802_v57 }
 0x663   :  { %2963 = vmatpush.msra.mxu0 %v8807_v36  ;;  %2983 = vmatpush.msrb.mxu1 %v8809_v32 }
 0x664   :  { %3003 = vmatpush.msrb.mxu2 %v8424_v7  ;;  %v2275_v7 = vadd.f32 %v8709_v29, %v8762_v44 }
 0x665   :  { %2964 = vmatpush.msra.mxu0 %v8814_v17  ;;  %2984 = vmatpush.msrb.mxu1 %v8816_v23 }
 0x666   :  { %v6599_v21 = vpop.eup %6598  ;;  %3004 = vmatpush.msrb.mxu2 %v8440_v52  ;;  %v2316_v52 = vadd.f32 %v8711_v31, %v8764_v3 }
 0x667   :  { %v8783_v26 = vmul.f32 %v6599_v21, %v2660_v37  ;;  %2965 = vmatpush.msra.mxu0 %v8821_v59  ;;  %2985 = vmatpush.msrb.mxu1 %v8823_v14 }
 0x668   :  { %3005 = vmatpush.msrb.mxu2 %v8448_v0 }
 0x669   :  { %11210 = vst [vmem:[#allocation40_spill] sm:$0xff] %v8783_v26  ;;  %2757 = vmatmul.f32.vlgmr.msrb.gmra.mxu0 %v8783_v26  ;;  %2777 = vmatmul.f32.vlgmr.msra.gmra.mxu1 %v8783_v26 }
 0x66a   :  { %2797 = vmatmul.f32.vlgmr.msra.gmra.mxu2 %v8783_v26  ;;  %2817 = vmatmul.f32.vlgmr.msra.gmra.mxu3 %v8783_v26  ;;  %v9025_v26 = vld [vmem:[#allocation11 + $0x58] sm:$0xff] }
 0x66b   :  { %2966 = vmatpush.msra.mxu0 %v8458_v22  ;;  %2986 = vmatpush.msrb.mxu1 %v8460_v55  ;;  %11227 = vst [vmem:[#allocation57_spill] sm:$0xff] %v9025_v26 }
 0x66c   :  { %3006 = vmatpush.msrb.mxu2 %v8462_v24 }
 0x66d   :  { %2967 = vmatpush.msra.mxu0 %v8468_v18  ;;  %2987 = vmatpush.msrb.mxu1 %v8470_v47 }
 0x66e   :  { %3007 = vmatpush.msrb.mxu2 %v8473_v49  ;;  %v2357_v49 = vadd.f32 %v8713_v43, %v8772_v9 }
 0x66f   :  { %2968 = vmatpush.msra.mxu0 %v8480_v6  ;;  %2988 = vmatpush.msrb.mxu1 %v8482_v20 }
 0x670   :  { %3008 = vmatpush.msrb.mxu2 %v8492_v42 }
 0x671   :  { %2969 = vmatpush.msra.mxu0 %v8488_v19  ;;  %2989 = vmatpush.msrb.mxu1 %v8490_v51 }
 0x672   :  { %3009 = vmatpush.msrb.mxu2 %v8499_v53 }
 0x673   :  { %2970 = vmatpush.msra.mxu0 %v8495_v2  ;;  %2990 = vmatpush.msrb.mxu1 %v8497_v40  ;;  %v11211_v40 = vld [vmem:[#allocation46_spill] sm:$0xff] }
 0x674   :  { %3010 = vmatpush.msrb.mxu2 %v8505_v16  ;;  %v11212_v16 = vld [vmem:[#allocation27_spill] sm:$0xff] }
 0x675   :  { %2971 = vmatpush.msra.mxu0 %v8508_v15  ;;  %2991 = vmatpush.msrb.mxu1 %v8510_v63  ;;  %v11213_v15 = vld [vmem:[#allocation29_spill] sm:$0xff]  ;;  %v11214_v63 = vld [vmem:[#allocation30_spill] sm:$0xff] }
 0x676   :  { %3011 = vmatpush.msrb.mxu2 %v8516_v1 }
 0x677   :  { %2972 = vmatpush.msra.mxu0 %v8522_v41  ;;  %2992 = vmatpush.msrb.mxu1 %v11166_v61  ;;  %v11216_v61 = vld [vmem:[#allocation32_spill] sm:$0xff] }
 0x678   :  { %3012 = vmatpush.msrb.mxu2 %v11167_v33 }
 0x679   :  { %2973 = vmatpush.msra.mxu0 %v11169_v11  ;;  %2993 = vmatpush.msrb.mxu1 %v11170_v54 }
 0x67a   :  { %3013 = vmatpush.msrb.mxu2 %v11171_v4 }
 0x67b   :  { %2974 = vmatpush.msra.mxu0 %v11172_v50  ;;  %2994 = vmatpush.msrb.mxu1 %v11173_v46 }
 0x67c   :  { %3014 = vmatpush.msrb.mxu2 %v11174_v56 }
 0x67d   :  { %2975 = vmatpush.msra.mxu0 %v8564_v48  ;;  %2995 = vmatpush.msrb.mxu1 %v11176_v58  ;;  %v11215_v48 = vld [vmem:[#allocation25_spill] sm:$0xff] }
 0x67e   :  { %3015 = vmatpush.msrb.mxu2 %v11211_v40  ;;  %v2398_v33 = vadd.f32 %v11216_v61, %v11215_v48  ;;  %v8911_v61 = vld [vmem:[#allocation11 + $0x178] sm:$0xff] }
 0x67f   :  { %2976 = vmatpush.msra.mxu0 %v11212_v16  ;;  %2996 = vmatpush.msrb.mxu1 %v11213_v15  ;;  %v8897_v16 = vld [vmem:[#allocation11 + $0x1b0] sm:$0xff]  ;;  %v8899_v15 = vld [vmem:[#allocation11 + $0x1b8] sm:$0xff] }
 0x680   :  { %3016 = vmatpush.msrb.mxu2 %v11214_v63  ;;  %v8903_v63 = vld [vmem:[#allocation11 + $0x190] sm:$0xff] }
 0x681   :  { %3181 = vmatpush.msrb.mxu0 %v8789_v30  ;;  %3201 = vmatpush.msra.mxu1 %v8791_v8 }
 0x682   :  { %3221 = vmatpush.msra.mxu2 %v8793_v13 }
 0x683   :  { %3182 = vmatpush.msrb.mxu0 %v8798_v62  ;;  %3202 = vmatpush.msra.mxu1 %v8800_v45 }
 0x684   :  { %3222 = vmatpush.msra.mxu2 %v8802_v57 }
 0x685   :  { %3183 = vmatpush.msrb.mxu0 %v8807_v36  ;;  %3203 = vmatpush.msra.mxu1 %v8809_v32 }
 0x686   :  { %3223 = vmatpush.msra.mxu2 %v8897_v16 }
 0x687   :  { %3184 = vmatpush.msrb.mxu0 %v8814_v17  ;;  %3204 = vmatpush.msra.mxu1 %v8816_v23 }
 0x688   :  { %3224 = vmatpush.msra.mxu2 %v8903_v63 }
 0x689   :  { %3185 = vmatpush.msrb.mxu0 %v8821_v59  ;;  %3205 = vmatpush.msra.mxu1 %v8823_v14 }
 0x6e6   :  { %v2758_v0 = vpop.f32.mrf.mxu0  ;;  %v2778_v22 = vpop.f32.mrf.mxu1 }
 0x6e7   :  { %v2821_v55 = vadd.f32 %v2758_v0, %v2275_v7  ;;  %v2822_v24 = vadd.f32 %v2778_v22, %v2316_v52 }
 0x6e9   :  { %v6395_v18 = vmul.f32 -1.442695, %v2821_v55  ;;  %v6396_v47 = vmul.f32 -1.442695, %v2822_v24 }
 0x6eb   :  { %6600 = vpow2.f32 %v6395_v18 }
 0x6ec   :  { %6602 = vpow2.f32 %v6396_v47 }
 0x6ed   :  { %v2798_v6 = vpop.f32.mrf.mxu2  ;;  %v2818_v1 = vpop.f32.mrf.mxu3 }
 0x6ee   :  { %v2823_v20 = vadd.f32 %v2798_v6, %v2357_v49  ;;  %v2824_v4 = vadd.f32 %v2818_v1, %v2398_v33  ;;  %v8905_v1 = vld [vmem:[#allocation11 + $0x198] sm:$0xff]  ;;  %v8915_v33 = vld [vmem:[#allocation11 + $0x140] sm:$0xff] }
 0x6ef   :  { %3186 = vmatpush.msrb.mxu0 %v8915_v33 }
 0x6f0   :  { %v6397_v19 = vmul.f32 -1.442695, %v2823_v20 }
 0x6f1   :  { %v6601_v51 = vpop.eup %6600 }
 0x6f2   :  { %v6603_v42 = vpop.eup %6602  ;;  %v2834_v2 = vadd.f32 1.0, %v6601_v51  ;;  %6604 = vpow2.f32 %v6397_v19 }
 0x6f3   :  { %v2835_v53 = vadd.f32 1.0, %v6603_v42 }
 0x6f4   :  { %6606 = vrcp.f32 %v2834_v2  ;;  %v2848_v31 = vand.u32 2147483648, %v2834_v2  ;;  %v2846_v35 = vand.u32 2147483647, %v2834_v2  ;;  %vm2842_vm15 = vweird.f32 %v2834_v2 }
 0x6f5   :  { %6608 = vrcp.f32 %v2835_v53  ;;  %v2863_v43 = vand.u32 2147483648, %v2835_v53  ;;  %v2861_v10 = vand.u32 2147483647, %v2835_v53  ;;  %vm2857_vm0 = vweird.f32 %v2835_v53 }
 0x6f6   :  { %v2849_v12 = vor.u32 1.1754944e-38, %v2848_v31  ;;  %vm2847_vm3 = vcmp.eq.f32.partialorder %v2846_v35, 8.507059e+37  ;;  %v8941_v31 = vld [vmem:[#allocation11 + $0x108] sm:$0xff]  ;;  %v8951_v35 = vld [vmem:[#allocation11 + $0xe0] sm:$0xff] }
 0x6f7   :  { %v2864_v39 = vor.u32 1.1754944e-38, %v2863_v43  ;;  %vm2862_vm4 = vcmp.eq.f32.partialorder %v2861_v10, 8.507059e+37  ;;  %v8943_v43 = vld [vmem:[#allocation11 + $0x110] sm:$0xff] }
 0x6f8   :  { %v6605_v41 = vpop.eup %6604  ;;  %v8955_v10 = vld [vmem:[#allocation11 + $0xf0] sm:$0xff] }
 0x6f9   :  { %v2836_v11 = vadd.f32 1.0, %v6605_v41  ;;  %v8909_v41 = vld [vmem:[#allocation11 + $0x170] sm:$0xff] }
 0x6fa   :  { %v6607_v54 = vpop.eup %6606  ;;  %3225 = vmatpush.msra.mxu2 %v8909_v41 }
 0x6fb   :  { %v6609_v50 = vpop.eup %6608  ;;  %v2838_v46 = vmul.f32 %v6607_v54, %v2834_v2  ;;  %6610 = vrcp.f32 %v2836_v11  ;;  %vm2843_vm13 = vweird.f32 %v6607_v54  ;;  %v2878_v6 = vand.u32 2147483648, %v2836_v11 }
 0x6fc   :  { %v2853_v56 = vmul.f32 %v6609_v50, %v2835_v53  ;;  %6612 = vtanh.f32 %v2824_v4  ;;  %vm2858_vm14 = vweird.f32 %v6609_v50  ;;  %vm2844_vm1 = vmor %vm2842_vm15, %vm2843_vm13  ;;  %vm2872_vm6 = vweird.f32 %v2836_v11  ;;  %v8894_v53 = vld [vmem:[#allocation11 + $0x1d8] sm:$0xff] }
 0x6fd   :  { %v2839_v58 = vsub.f32 1.0, %v2838_v46  ;;  %vm2859_vm2 = vmor %vm2857_vm0, %vm2858_vm14  ;;  %v2876_v20 = vand.u32 2147483647, %v2836_v11  ;;  %v2879_v51 = vor.u32 1.1754944e-38, %v2878_v6  ;;  %v8923_v4 = vld [vmem:[#allocation11 + $0x158] sm:$0xff]  ;;  %v8929_v46 = vld [vmem:[#allocation11 + $0x128] sm:$0xff] }
 0x6fe   :  { %v2854_v29 = vsub.f32 1.0, %v2853_v56  ;;  %11218 = vst [vmem:[#allocation45_spill] sm:$0xff] %v8929_v46  ;;  %v8931_v56 = vld [vmem:[#allocation11 + $0x130] sm:$0xff] }
 0x6ff   :  { %v2840_v27 = vmul.f32 %v6607_v54, %v2839_v58  ;;  %vm2877_vm8 = vcmp.eq.f32.partialorder %v2876_v20, 8.507059e+37  ;;  %v8935_v58 = vld [vmem:[#allocation11 + $0x138] sm:$0xff] }
 0x700   :  { %v2855_v34 = vmul.f32 %v6609_v50, %v2854_v29  ;;  %v8939_v29 = vld [vmem:[#allocation11 + $0x100] sm:$0xff] }
 0x701   :  { %v6611_v60 = vpop.eup %6610  ;;  %v2841_v25 = vadd.f32 %v6607_v54, %v2840_v27  ;;  %v8947_v27 = vld [vmem:[#allocation11 + $0x118] sm:$0xff] }
 0x702   :  { %v2868_v28 = vmul.f32 %v6611_v60, %v2836_v11  ;;  %v2856_v38 = vadd.f32 %v6609_v50, %v2855_v34  ;;  %v6613_v37 = vpop.eup %6612  ;;  %vm2873_vm5 = vweird.f32 %v6611_v60  ;;  %v8917_v11 = vld [vmem:[#allocation11 + $0x148] sm:$0xff] }
 0x703   :  { %v2845_v21 = vsel %vm2844_vm1, %v6607_v54, %v2841_v25  ;;  %vm2874_vm7 = vmor %vm2872_vm6, %vm2873_vm5  ;;  %v8919_v54 = vld [vmem:[#allocation11 + $0x150] sm:$0xff]  ;;  %3206 = vmatpush.msra.mxu1 %v8917_v11  ;;  %v8953_v34 = vld [vmem:[#allocation11 + $0xe8] sm:$0xff] }
 0x704   :  { %v2869_v7 = vsub.f32 1.0, %v2868_v28  ;;  %v2850_v52 = vsel %vm2847_vm3, %v2849_v12, %v2845_v21  ;;  %v2860_v0 = vsel %vm2859_vm2, %v6609_v50, %v2856_v38  ;;  %3226 = vmatpush.msra.mxu2 %v8919_v54  ;;  %v8927_v50 = vld [vmem:[#allocation11 + $0x120] sm:$0xff]  ;;  %v11220_v28 = vld [vmem:[#allocation31_spill] sm:$0xff]  ;;  %v8963_v38 = vld [vmem:[#allocation11 + $0xf8] sm:$0xff] }
 0x705   :  { %v2865_v22 = vsel %vm2862_vm4, %v2864_v39, %v2860_v0  ;;  %v2885_v55 = vmul.f32 %v6613_v37, %v2850_v52  ;;  %3187 = vmatpush.msrb.mxu0 %v8927_v50  ;;  %3207 = vmatpush.msra.mxu1 %v8929_v46  ;;  %v2319_v12 = vadd.f32 %v11220_v28, %v8764_v3  ;;  %v8967_v37 = vld [vmem:[#allocation11 + $0xc0] sm:$0xff]  ;;  %v8971_v52 = vld [vmem:[#allocation11 + $0xd0] sm:$0xff] }
 0x706   :  { %v2870_v24 = vmul.f32 %v6611_v60, %v2869_v7  ;;  %v2884_v18 = vmul.f32 %v2865_v22, %v8780_v5  ;;  %v8891_v5 = vld [vmem:[#allocation11 + $0x1f8] sm:$0xff]  ;;  %3227 = vmatpush.msra.mxu2 %v8931_v56  ;;  %v8969_v7 = vld [vmem:[#allocation11 + $0xc8] sm:$0xff]  ;;  %v9033_v3 = vld [vmem:[#allocation11 + $0x30] sm:$0xff] }
 0x707   :  { %3241 = vmatpush.msra.mxu3 %v8891_v5  ;;  %3188 = vmatpush.msrb.mxu0 %v8939_v29 }
 0x708   :  { %v8882_v47 = vadd.f32 %v2885_v55, %v2884_v18  ;;  %v2871_v49 = vadd.f32 %v6611_v60, %v2870_v24  ;;  %3208 = vmatpush.msra.mxu1 %v8941_v31  ;;  %3228 = vmatpush.msra.mxu2 %v8943_v43  ;;  %v8975_v55 = vld [vmem:[#allocation11 + $0xd8] sm:$0xff]  ;;  %v8979_v24 = vld [vmem:[#allocation11 + $0xa0] sm:$0xff]  ;;  %v8981_v18 = vld [vmem:[#allocation11 + $0xa8] sm:$0xff] }
 0x709   :  { %3242 = vmatpush.msra.mxu3 %v8894_v53  ;;  %3189 = vmatpush.msrb.mxu0 %v8951_v35 }
 0x70a   :  { %6614 = vtanh.f32 %v8882_v47  ;;  %v2875_v19 = vsel %vm2874_vm7, %v6611_v60, %v2871_v49  ;;  %v11219_v60 = vld [vmem:[#allocation28_spill] sm:$0xff]  ;;  %3209 = vmatpush.msra.mxu1 %v8953_v34  ;;  %3229 = vmatpush.msra.mxu2 %v8955_v10 }
 0x70b   :  { %v2880_v2 = vsel %vm2877_vm8, %v2879_v51, %v2875_v19  ;;  %3243 = vmatpush.msra.mxu3 %v8899_v15  ;;  %v2278_v25 = vadd.f32 %v11219_v60, %v8762_v44  ;;  %3190 = vmatpush.msrb.mxu0 %v8967_v37  ;;  %v8983_v49 = vld [vmem:[#allocation11 + $0xb0] sm:$0xff]  ;;  %v8987_v19 = vld [vmem:[#allocation11 + $0xb8] sm:$0xff]  ;;  %v8991_v51 = vld [vmem:[#allocation11 + $0x80] sm:$0xff] }
 0x70c   :  { %3210 = vmatpush.msra.mxu1 %v8969_v7  ;;  %3230 = vmatpush.msra.mxu2 %v8971_v52  ;;  %v8999_v60 = vld [vmem:[#allocation11 + $0x98] sm:$0xff] }
 0x70d   :  { %3244 = vmatpush.msra.mxu3 %v8905_v1  ;;  %3191 = vmatpush.msrb.mxu0 %v8979_v24 }
 0x70e   :  { %3211 = vmatpush.msra.mxu1 %v8981_v18  ;;  %3231 = vmatpush.msra.mxu2 %v8983_v49 }
 0x70f   :  { %3245 = vmatpush.msra.mxu3 %v8911_v61  ;;  %3192 = vmatpush.msrb.mxu0 %v8991_v51 }
 0x710   :  { %v6615_v42 = vpop.eup %6614 }
 0x711   :  { %v8885_v40 = vmul.f32 %v6615_v42, %v2880_v2  ;;  %3246 = vmatpush.msra.mxu3 %v8923_v4  ;;  %v8993_v42 = vld [vmem:[#allocation11 + $0x88] sm:$0xff]  ;;  %v8995_v2 = vld [vmem:[#allocation11 + $0x90] sm:$0xff] }
 0x712   :  { %3212 = vmatpush.msra.mxu1 %v8993_v42  ;;  %3232 = vmatpush.msra.mxu2 %v8995_v2 }
 0x713   :  { %11217 = vst [vmem:[#allocation43_spill] sm:$0xff] %v8885_v40  ;;  %2977 = vmatmul.f32.vlgmr.msra.gmra.mxu0 %v8885_v40  ;;  %2997 = vmatmul.f32.vlgmr.msrb.gmra.mxu1 %v8885_v40 }
 0x714   :  { %3017 = vmatmul.f32.vlgmr.msrb.gmra.mxu2 %v8885_v40  ;;  %3037 = vmatmul.f32.vlgmr.msrb.gmra.mxu3 %v8885_v40  ;;  %v9021_v40 = vld [vmem:[#allocation11 + $0x50] sm:$0xff] }
 0x715   :  { %3247 = vmatpush.msra.mxu3 %v8935_v58  ;;  %11226 = vst [vmem:[#allocation56_spill] sm:$0xff] %v9021_v40 }
 0x717   :  { %3248 = vmatpush.msra.mxu3 %v8947_v27 }
 0x719   :  { %3249 = vmatpush.msra.mxu3 %v8963_v38 }
 0x71b   :  { %3250 = vmatpush.msra.mxu3 %v8975_v55 }
 0x71d   :  { %3251 = vmatpush.msra.mxu3 %v8987_v19 }
 0x71f   :  { %3252 = vmatpush.msra.mxu3 %v8999_v60 }
 0x790   :  { %v2978_v39 = vpop.f32.mrf.mxu0  ;;  %v2998_v21 = vpop.f32.mrf.mxu1 }
 0x791   :  { %v3041_v0 = vadd.f32 %v2978_v39, %v2278_v25  ;;  %v3042_v22 = vadd.f32 %v2998_v21, %v2319_v12  ;;  %v11221_v25 = vld [vmem:[#allocation33_spill] sm:$0xff]  ;;  %v9005_v12 = vld [vmem:[#allocation11 + $0x60] sm:$0xff]  ;;  %v9007_v39 = vld [vmem:[#allocation11 + $0x68] sm:$0xff] }
 0x792   :  { %v2360_v28 = vadd.f32 %v11221_v25, %v8772_v9  ;;  %v9009_v21 = vld [vmem:[#allocation11 + $0x70] sm:$0xff]  ;;  %3193 = vmatpush.msrb.mxu0 %v9005_v12  ;;  %3213 = vmatpush.msra.mxu1 %v9007_v39  ;;  %v9019_v25 = vld [vmem:[#allocation11 + $0x48] sm:$0xff] }
 0x793   :  { %v6398_v6 = vmul.f32 -1.442695, %v3041_v0  ;;  %v6399_v20 = vmul.f32 -1.442695, %v3042_v22  ;;  %11222 = vst [vmem:[#allocation53_spill] sm:$0xff] %v9009_v21  ;;  %v9013_v22 = vld [vmem:[#allocation11 + $0x78] sm:$0xff]  ;;  %3233 = vmatpush.msra.mxu2 %v9009_v21 }
 0x794   :  { %11223 = vst [vmem:[#allocation54_spill] sm:$0xff] %v9013_v22  ;;  %3253 = vmatpush.msra.mxu3 %v9013_v22  ;;  %3214 = vmatpush.msra.mxu1 %v9019_v25  ;;  %v9049_v21 = vld [vmem:[#allocation11 + $0x18] sm:$0xff] }
 0x795   :  { %6616 = vpow2.f32 %v6398_v6  ;;  %11225 = vst [vmem:[#allocation55_spill] sm:$0xff] %v9019_v25  ;;  %3234 = vmatpush.msra.mxu2 %v9021_v40  ;;  %v9039_v25 = vld [vmem:[#allocation11] sm:$0xff] }
 0x796   :  { %6618 = vpow2.f32 %v6399_v20  ;;  %v9017_v20 = vld [vmem:[#allocation11 + $0x40] sm:$0xff]  ;;  %3254 = vmatpush.msra.mxu3 %v9025_v26  ;;  %v9047_v26 = vld [vmem:[#allocation11 + $0x10] sm:$0xff] }
 0x797   :  { %v3018_v0 = vpop.f32.mrf.mxu2  ;;  %11224 = vst [vmem:[#allocation60_spill] sm:$0xff] %v9017_v20  ;;  %3194 = vmatpush.msrb.mxu0 %v9017_v20  ;;  %v9037_v20 = vld [vmem:[#allocation11 + $0x38] sm:$0xff]  ;;  %3235 = vmatpush.msra.mxu2 %v9033_v3 }
 0x798   :  { %v3043_v6 = vadd.f32 %v3018_v0, %v2360_v28  ;;  %v9029_v28 = vld [vmem:[#allocation11 + $0x20] sm:$0xff]  ;;  %v9031_v0 = vld [vmem:[#allocation11 + $0x28] sm:$0xff]  ;;  %3255 = vmatpush.msra.mxu3 %v9037_v20  ;;  %11229 = vst [vmem:[#allocation59_spill] sm:$0xff] %v9047_v26 }
 0x799   :  { %11228 = vst [vmem:[#allocation58_spill] sm:$0xff] %v9029_v28  ;;  %3195 = vmatpush.msrb.mxu0 %v9029_v28  ;;  %3215 = vmatpush.msra.mxu1 %v9031_v0 }
 0x79a   :  { %v6400_v9 = vmul.f32 -1.442695, %v3043_v6  ;;  %v9041_v6 = vld [vmem:[#allocation11 + $0x8] sm:$0xff]  ;;  %3236 = vmatpush.msra.mxu2 %v9047_v26  ;;  %3256 = vmatpush.msra.mxu3 %v9049_v21 }
 0x79b   :  { %v6617_v44 = vpop.eup %6616  ;;  %3196 = vmatpush.msrb.mxu0 %v9039_v25  ;;  %3216 = vmatpush.msra.mxu1 %v9041_v6 }
 0x79c   :  { %v6619_v40 = vpop.eup %6618  ;;  %v9043_v22 = vadd.f32 1.0, %v6617_v44  ;;  %6620 = vpow2.f32 %v6400_v9  ;;  %3441 = vmatpush.msrb.mxu2 %v8793_v13  ;;  %3461 = vmatpush.msrb.mxu3 %v8891_v5  ;;  %v3038_v9 = vpop.f32.mrf.mxu3 }
 0x79d   :  { %v9051_v28 = vadd.f32 1.0, %v6619_v40  ;;  %3401 = vmatpush.msra.mxu0 %v8789_v30  ;;  %3421 = vmatpush.msrb.mxu1 %v8791_v8  ;;  %v11230_v40 = vld [vmem:[#allocation36_spill] sm:$0xff] }
 0x79e   :  { %6622 = vrcp.f32 %v9043_v22  ;;  %v2401_v26 = vadd.f32 %v11230_v40, %v11215_v48  ;;  %3442 = vmatpush.msrb.mxu2 %v8802_v57  ;;  %3462 = vmatpush.msrb.mxu3 %v8894_v53  ;;  %vm3062_vm11 = vweird.f32 %v9043_v22 }
 0x79f   :  { %6624 = vrcp.f32 %v9051_v28  ;;  %3402 = vmatpush.msra.mxu0 %v8798_v62  ;;  %3422 = vmatpush.msrb.mxu1 %v8800_v45  ;;  %vm3077_vm12 = vweird.f32 %v9051_v28 }
 0x7a0   :  { %v3044_v13 = vadd.f32 %v3038_v9, %v2401_v26  ;;  %3443 = vmatpush.msrb.mxu2 %v8897_v16  ;;  %3463 = vmatpush.msrb.mxu3 %v8899_v15  ;;  %v3066_v9 = vand.u32 2147483647, %v9043_v22 }
 0x7a1   :  { %3403 = vmatpush.msra.mxu0 %v8807_v36  ;;  %3423 = vmatpush.msrb.mxu1 %v8809_v32  ;;  %v3068_v32 = vand.u32 2147483648, %v9043_v22 }
 0x7a2   :  { %v6621_v44 = vpop.eup %6620  ;;  %3444 = vmatpush.msrb.mxu2 %v8903_v63  ;;  %3464 = vmatpush.msrb.mxu3 %v8905_v1  ;;  %vm3067_vm15 = vcmp.eq.f32.partialorder %v3066_v9, 8.507059e+37 }
 0x7a3   :  { %v9069_v30 = vadd.f32 1.0, %v6621_v44  ;;  %3404 = vmatpush.msra.mxu0 %v8814_v17  ;;  %3424 = vmatpush.msrb.mxu1 %v8816_v23  ;;  %v3083_v17 = vand.u32 2147483648, %v9051_v28 }
 0x7a4   :  { %v6623_v8 = vpop.eup %6622  ;;  %3445 = vmatpush.msrb.mxu2 %v8909_v41  ;;  %3465 = vmatpush.msrb.mxu3 %v8911_v61 }
 0x7a5   :  { %v6625_v62 = vpop.eup %6624  ;;  %v3058_v45 = vmul.f32 %v6623_v8, %v9043_v22  ;;  %6626 = vrcp.f32 %v9069_v30  ;;  %3405 = vmatpush.msra.mxu0 %v8821_v59  ;;  %3425 = vmatpush.msrb.mxu1 %v8823_v14  ;;  %vm3063_vm9 = vweird.f32 %v6623_v8  ;;  %v3081_v14 = vand.u32 2147483647, %v9051_v28 }
 0x7a6   :  { %v3073_v57 = vmul.f32 %v6625_v62, %v9051_v28  ;;  %6628 = vtanh.f32 %v3044_v13  ;;  %vm3078_vm10 = vweird.f32 %v6625_v62  ;;  %3446 = vmatpush.msrb.mxu2 %v8919_v54  ;;  %3466 = vmatpush.msrb.mxu3 %v8923_v4  ;;  %vm3064_vm13 = vmor %vm3062_vm11, %vm3063_vm9  ;;  %v3084_v22 = vor.u32 1.1754944e-38, %v3083_v17 }
 0x7a7   :  { %v3059_v26 = vsub.f32 1.0, %v3058_v45  ;;  %3406 = vmatpush.msra.mxu0 %v8915_v33  ;;  %3426 = vmatpush.msrb.mxu1 %v8917_v11  ;;  %v3069_v45 = vor.u32 1.1754944e-38, %v3068_v32  ;;  %vm3079_vm14 = vmor %vm3077_vm12, %vm3078_vm10  ;;  %vm3082_vm0 = vcmp.eq.f32.partialorder %v3081_v14, 8.507059e+37  ;;  %vm3092_vm2 = vweird.f32 %v9069_v30 }
 0x7a8   :  { %v3074_v36 = vsub.f32 1.0, %v3073_v57  ;;  %3447 = vmatpush.msrb.mxu2 %v8931_v56  ;;  %3467 = vmatpush.msrb.mxu3 %v8935_v58  ;;  %v3096_v9 = vand.u32 2147483647, %v9069_v30 }
 0x7a9   :  { %v3060_v23 = vmul.f32 %v6623_v8, %v3059_v26  ;;  %3407 = vmatpush.msra.mxu0 %v8927_v50  ;;  %3427 = vmatpush.msrb.mxu1 %v8929_v46 }
 0x7aa   :  { %v3075_v59 = vmul.f32 %v6625_v62, %v3074_v36  ;;  %3448 = vmatpush.msrb.mxu2 %v8943_v43  ;;  %3468 = vmatpush.msrb.mxu3 %v8947_v27  ;;  %vm3097_vm4 = vcmp.eq.f32.partialorder %v3096_v9, 8.507059e+37 }
 0x7ab   :  { %v9094_v44 = vpop.eup %6626  ;;  %v3061_v40 = vadd.f32 %v6623_v8, %v3060_v23  ;;  %3408 = vmatpush.msra.mxu0 %v8939_v29  ;;  %3428 = vmatpush.msrb.mxu1 %v8941_v31 }
 0x7ac   :  { %v3088_v13 = vmul.f32 %v9094_v44, %v9069_v30  ;;  %v3076_v57 = vadd.f32 %v6625_v62, %v3075_v59  ;;  %v6629_v28 = vpop.eup %6628  ;;  %3449 = vmatpush.msrb.mxu2 %v8955_v10  ;;  %3469 = vmatpush.msrb.mxu3 %v8963_v38  ;;  %vm3093_vm1 = vweird.f32 %v9094_v44 }
 0x7ad   :  { %v3065_v26 = vsel %vm3064_vm13, %v6623_v8, %v3061_v40  ;;  %3409 = vmatpush.msra.mxu0 %v8951_v35  ;;  %3429 = vmatpush.msrb.mxu1 %v8953_v34  ;;  %vm3094_vm3 = vmor %vm3092_vm2, %vm3093_vm1 }
 0x7ae   :  { %v3089_v36 = vsub.f32 1.0, %v3088_v13  ;;  %v3070_v23 = vsel %vm3067_vm15, %v3069_v45, %v3065_v26  ;;  %v3080_v46 = vsel %vm3079_vm14, %v6625_v62, %v3076_v57  ;;  %3450 = vmatpush.msrb.mxu2 %v8971_v52  ;;  %3470 = vmatpush.msrb.mxu3 %v8975_v55  ;;  %v11231_v13 = vld [vmem:[#allocation53_spill] sm:$0xff]  ;;  %v11232_v45 = vld [vmem:[#allocation54_spill] sm:$0xff]  ;;  %v11234_v57 = vld [vmem:[#allocation55_spill] sm:$0xff] }
 0x7af   :  { %v3085_v32 = vsel %vm3082_vm0, %v3084_v22, %v3080_v46  ;;  %v3105_v59 = vmul.f32 %v6629_v28, %v3070_v23  ;;  %3410 = vmatpush.msra.mxu0 %v8967_v37  ;;  %3430 = vmatpush.msrb.mxu1 %v8969_v7  ;;  %v11235_v28 = vld [vmem:[#allocation56_spill] sm:$0xff]  ;;  %v11238_v23 = vld [vmem:[#allocation58_spill] sm:$0xff] }
 0x7b0   :  { %v3090_v8 = vmul.f32 %v9094_v44, %v3089_v36  ;;  %v3104_v17 = vmul.f32 %v3085_v32, %v8882_v47  ;;  %v3098_v47 = vand.u32 2147483648, %v9069_v30  ;;  %3451 = vmatpush.msrb.mxu2 %v8983_v49  ;;  %3471 = vmatpush.msrb.mxu3 %v8987_v19  ;;  %v11233_v30 = vld [vmem:[#allocation60_spill] sm:$0xff]  ;;  %v11236_v36 = vld [vmem:[#allocation57_spill] sm:$0xff]  ;;  %v11239_v32 = vld [vmem:[#allocation59_spill] sm:$0xff] }
 0x7b1   :  { %3411 = vmatpush.msra.mxu0 %v8979_v24  ;;  %3431 = vmatpush.msrb.mxu1 %v8981_v18 }
 0x7b2   :  { %v9118_v62 = vadd.f32 %v3105_v59, %v3104_v17  ;;  %v3091_v46 = vadd.f32 %v9094_v44, %v3090_v8  ;;  %3452 = vmatpush.msrb.mxu2 %v8995_v2  ;;  %3472 = vmatpush.msrb.mxu3 %v8999_v60  ;;  %v3099_v40 = vor.u32 1.1754944e-38, %v3098_v47  ;;  %v11244_v59 = vld [vmem:[#allocation63_spill] sm:$0xff]  ;;  %v11245_v8 = vld [vmem:[#allocation38_spill] sm:$0xff] }
 0x7b3   :  { %3412 = vmatpush.msra.mxu0 %v8991_v51  ;;  %3432 = vmatpush.msrb.mxu1 %v8993_v42  ;;  %v2363_v17 = vadd.f32 %v11245_v8, %v11244_v59 }
 0x7b4   :  { %6630 = vtanh.f32 %v9118_v62  ;;  %v3095_v14 = vsel %vm3094_vm3, %v9094_v44, %v3091_v46  ;;  %3453 = vmatpush.msrb.mxu2 %v11231_v13  ;;  %3473 = vmatpush.msrb.mxu3 %v11232_v45 }
 0x7b5   :  { %3413 = vmatpush.msra.mxu0 %v9005_v12  ;;  %3433 = vmatpush.msrb.mxu1 %v9007_v39  ;;  %v3100_v26 = vsel %vm3097_vm4, %v3099_v40, %v3095_v14 }
 0x7b6   :  { %3454 = vmatpush.msrb.mxu2 %v11235_v28  ;;  %3474 = vmatpush.msrb.mxu3 %v11236_v36 }
 0x7b7   :  { %3414 = vmatpush.msra.mxu0 %v11233_v30  ;;  %3434 = vmatpush.msrb.mxu1 %v11234_v57 }
 0x7b8   :  { %3455 = vmatpush.msrb.mxu2 %v9033_v3  ;;  %3475 = vmatpush.msrb.mxu3 %v9037_v20 }
 0x7b9   :  { %3415 = vmatpush.msra.mxu0 %v11238_v23  ;;  %3435 = vmatpush.msrb.mxu1 %v9031_v0 }
 0x7ba   :  { %v6631_v22 = vpop.eup %6630  ;;  %3456 = vmatpush.msrb.mxu2 %v11239_v32  ;;  %3476 = vmatpush.msrb.mxu3 %v9049_v21 }
 0x7bb   :  { %v9145_v44 = vmul.f32 %v6631_v22, %v3100_v26  ;;  %3416 = vmatpush.msra.mxu0 %v9039_v25  ;;  %3436 = vmatpush.msrb.mxu1 %v9041_v6  ;;  %v11246_v26 = vld [vmem:[#allocation67_spill] sm:$0xff] }
 0x7bd   :  { %11237 = vst [vmem:[#allocation61_spill] sm:$0xff] %v9145_v44  ;;  %3197 = vmatmul.f32.vlgmr.msrb.gmra.mxu0 %v9145_v44  ;;  %3217 = vmatmul.f32.vlgmr.msra.gmra.mxu1 %v9145_v44 }
 0x7be   :  { %3237 = vmatmul.f32.vlgmr.msra.gmra.mxu2 %v9145_v44  ;;  %3257 = vmatmul.f32.vlgmr.msra.gmra.mxu3 %v9145_v44 }
 0x7bf   :  { %3681 = vmatpush.msra.mxu3 %v8891_v5  ;;  %v11240_v5 = vld [vmem:[#allocation42_spill] sm:$0xff] }
 0x7c1   :  { %3682 = vmatpush.msra.mxu3 %v8894_v53  ;;  %v11241_v53 = vld [vmem:[#allocation23_spill] sm:$0xff] }
 0x7c3   :  { %3683 = vmatpush.msra.mxu3 %v8899_v15  ;;  %v2281_v15 = vadd.f32 %v11241_v53, %v11240_v5 }
 0x7c5   :  { %3684 = vmatpush.msra.mxu3 %v8905_v1  ;;  %v11242_v1 = vld [vmem:[#allocation47_spill] sm:$0xff] }
 0x7c7   :  { %3685 = vmatpush.msra.mxu3 %v8911_v61  ;;  %v11243_v61 = vld [vmem:[#allocation34_spill] sm:$0xff] }
 0x7c9   :  { %3686 = vmatpush.msra.mxu3 %v8923_v4  ;;  %v2322_v4 = vadd.f32 %v11243_v61, %v11242_v1 }
 0x7cb   :  { %3687 = vmatpush.msra.mxu3 %v8935_v58 }
 0x7cd   :  { %3688 = vmatpush.msra.mxu3 %v8947_v27 }
 0x7cf   :  { %3689 = vmatpush.msra.mxu3 %v8963_v38 }
 0x7d1   :  { %3690 = vmatpush.msra.mxu3 %v8975_v55 }
 0x7d3   :  { %3691 = vmatpush.msra.mxu3 %v8987_v19 }
 0x7d5   :  { %3692 = vmatpush.msra.mxu3 %v8999_v60 }
 0x7d7   :  { %3693 = vmatpush.msra.mxu3 %v11232_v45 }
 0x7d9   :  { %3694 = vmatpush.msra.mxu3 %v11236_v36  ;;  %v2404_v36 = vadd.f32 %v11246_v26, %v11215_v48 }
 0x7db   :  { %3695 = vmatpush.msra.mxu3 %v9037_v20 }
 0x7dd   :  { %3696 = vmatpush.msra.mxu3 %v9049_v21 }
 0x83a   :  { %v3198_v58 = vpop.f32.mrf.mxu0  ;;  %v3218_v27 = vpop.f32.mrf.mxu1 }
 0x83b   :  { %v3261_v38 = vadd.f32 %v3198_v58, %v2281_v15  ;;  %v3262_v55 = vadd.f32 %v3218_v27, %v2322_v4 }
 0x83d   :  { %v6401_v19 = vmul.f32 -1.442695, %v3261_v38  ;;  %v6402_v60 = vmul.f32 -1.442695, %v3262_v55 }
 0x83f   :  { %6632 = vpow2.f32 %v6401_v19 }
 0x840   :  { %6634 = vpow2.f32 %v6402_v60 }
 0x841   :  { %v3238_v20 = vpop.f32.mrf.mxu2  ;;  %v3258_v45 = vpop.f32.mrf.mxu3 }
 0x842   :  { %v3263_v46 = vadd.f32 %v3238_v20, %v2363_v17  ;;  %v3264_v61 = vadd.f32 %v3258_v45, %v2404_v36 }
 0x844   :  { %v6403_v21 = vmul.f32 -1.442695, %v3263_v46 }
 0x845   :  { %v6633_v47 = vpop.eup %6632 }
 0x846   :  { %v6635_v9 = vpop.eup %6634  ;;  %v3274_v14 = vadd.f32 1.0, %v6633_v47  ;;  %6636 = vpow2.f32 %v6403_v21 }
 0x847   :  { %v3275_v40 = vadd.f32 1.0, %v6635_v9 }
 0x848   :  { %6638 = vrcp.f32 %v3274_v14  ;;  %v3288_v19 = vand.u32 2147483648, %v3274_v14  ;;  %v3286_v17 = vand.u32 2147483647, %v3274_v14  ;;  %vm3282_vm7 = vweird.f32 %v3274_v14 }
 0x849   :  { %6640 = vrcp.f32 %v3275_v40  ;;  %v3303_v60 = vand.u32 2147483648, %v3275_v40  ;;  %v3301_v46 = vand.u32 2147483647, %v3275_v40  ;;  %vm3297_vm8 = vweird.f32 %v3275_v40 }
 0x84a   :  { %v3289_v45 = vor.u32 1.1754944e-38, %v3288_v19  ;;  %vm3287_vm11 = vcmp.eq.f32.partialorder %v3286_v17, 8.507059e+37 }
 0x84b   :  { %v3304_v26 = vor.u32 1.1754944e-38, %v3303_v60  ;;  %vm3302_vm12 = vcmp.eq.f32.partialorder %v3301_v46, 8.507059e+37 }
 0x84c   :  { %v6637_v22 = vpop.eup %6636 }
 0x84d   :  { %v3276_v53 = vadd.f32 1.0, %v6637_v22 }
 0x84e   :  { %v6639_v15 = vpop.eup %6638 }
 0x84f   :  { %v6641_v4 = vpop.eup %6640  ;;  %v3278_v58 = vmul.f32 %v6639_v15, %v3274_v14  ;;  %6642 = vrcp.f32 %v3276_v53  ;;  %vm3283_vm5 = vweird.f32 %v6639_v15  ;;  %v3318_v19 = vand.u32 2147483648, %v3276_v53 }
 0x850   :  { %v3293_v27 = vmul.f32 %v6641_v4, %v3275_v40  ;;  %6644 = vtanh.f32 %v3264_v61  ;;  %vm3298_vm6 = vweird.f32 %v6641_v4  ;;  %vm3284_vm9 = vmor %vm3282_vm7, %vm3283_vm5  ;;  %vm3312_vm14 = vweird.f32 %v3276_v53 }
 0x851   :  { %v3279_v38 = vsub.f32 1.0, %v3278_v58  ;;  %vm3299_vm10 = vmor %vm3297_vm8, %vm3298_vm6  ;;  %v3319_v17 = vor.u32 1.1754944e-38, %v3318_v19 }
 0x852   :  { %v3294_v55 = vsub.f32 1.0, %v3293_v27 }
 0x853   :  { %v3280_v8 = vmul.f32 %v6639_v15, %v3279_v38 }
 0x854   :  { %v3295_v20 = vmul.f32 %v6641_v4, %v3294_v55 }
 0x855   :  { %v6643_v21 = vpop.eup %6642  ;;  %v3281_v47 = vadd.f32 %v6639_v15, %v3280_v8 }
 0x856   :  { %v3308_v9 = vmul.f32 %v6643_v21, %v3276_v53  ;;  %v3296_v22 = vadd.f32 %v6641_v4, %v3295_v20  ;;  %v6645_v61 = vpop.eup %6644  ;;  %vm3313_vm13 = vweird.f32 %v6643_v21 }
 0x857   :  { %v3285_v36 = vsel %vm3284_vm9, %v6639_v15, %v3281_v47  ;;  %v3316_v15 = vand.u32 2147483647, %v3276_v53  ;;  %vm3314_vm15 = vmor %vm3312_vm14, %vm3313_vm13  ;;  %v9202_v53 = vld [vmem:[#allocation11 + $0x1c0] sm:$0xff]  ;;  %v9206_v47 = vld [vmem:[#allocation11 + $0x1d0] sm:$0xff] }
 0x858   :  { %v3309_v58 = vsub.f32 1.0, %v3308_v9  ;;  %v3290_v27 = vsel %vm3287_vm11, %v3289_v45, %v3285_v36  ;;  %v3300_v38 = vsel %vm3299_vm10, %v6641_v4, %v3296_v22  ;;  %v9211_v9 = vld [vmem:[#allocation11 + $0x1a0] sm:$0xff]  ;;  %v9213_v45 = vld [vmem:[#allocation11 + $0x1a8] sm:$0xff] }
 0x859   :  { %v3305_v55 = vsel %vm3302_vm12, %v3304_v26, %v3300_v38  ;;  %v3325_v44 = vmul.f32 %v6645_v61, %v3290_v27  ;;  %vm3317_vm0 = vcmp.eq.f32.partialorder %v3316_v15, 8.507059e+37  ;;  %v9218_v22 = vld [vmem:[#allocation11 + $0x180] sm:$0xff]  ;;  %v9220_v26 = vld [vmem:[#allocation11 + $0x188] sm:$0xff] }
 0x85a   :  { %v3310_v48 = vmul.f32 %v6643_v21, %v3309_v58  ;;  %v3324_v8 = vmul.f32 %v3305_v55, %v9118_v62  ;;  %v9195_v62 = vld [vmem:[#allocation11 + $0x1e8] sm:$0xff]  ;;  %v9225_v36 = vld [vmem:[#allocation11 + $0x160] sm:$0xff] }
 0x85b   :  { %3641 = vmatpush.msra.mxu1 %v9195_v62  ;;  %v9227_v61 = vld [vmem:[#allocation11 + $0x168] sm:$0xff] }
 0x85c   :  { %v9184_v14 = vadd.f32 %v3325_v44, %v3324_v8  ;;  %v3311_v40 = vadd.f32 %v6643_v21, %v3310_v48  ;;  %v9193_v48 = vld [vmem:[#allocation11 + $0x1e0] sm:$0xff]  ;;  %v9197_v44 = vld [vmem:[#allocation11 + $0x1f0] sm:$0xff] }
 0x85d   :  { %3621 = vmatpush.msrb.mxu0 %v9193_v48  ;;  %3661 = vmatpush.msra.mxu2 %v9197_v44 }
 0x85e   :  { %6646 = vtanh.f32 %v9184_v14  ;;  %v3315_v60 = vsel %vm3314_vm15, %v6643_v21, %v3311_v40  ;;  %v9204_v21 = vld [vmem:[#allocation11 + $0x1c8] sm:$0xff] }
 0x85f   :  { %v3320_v20 = vsel %vm3317_vm0, %v3319_v17, %v3315_v60  ;;  %3622 = vmatpush.msrb.mxu0 %v9202_v53  ;;  %3642 = vmatpush.msra.mxu1 %v9204_v21 }
 0x860   :  { %3662 = vmatpush.msra.mxu2 %v9206_v47 }
 0x861   :  { %3623 = vmatpush.msrb.mxu0 %v9211_v9  ;;  %3643 = vmatpush.msra.mxu1 %v9213_v45 }
 0x862   :  { %3663 = vmatpush.msra.mxu2 %v8897_v16  ;;  %v11248_v16 = vld [vmem:[#allocation45_spill] sm:$0xff] }
 0x863   :  { %3624 = vmatpush.msrb.mxu0 %v9218_v22  ;;  %3644 = vmatpush.msra.mxu1 %v9220_v26 }
 0x864   :  { %v6647_v4 = vpop.eup %6646  ;;  %3664 = vmatpush.msra.mxu2 %v8903_v63  ;;  %v11249_v63 = vld [vmem:[#allocation48_spill] sm:$0xff] }
 0x865   :  { %v9187_v46 = vmul.f32 %v6647_v4, %v3320_v20  ;;  %3625 = vmatpush.msrb.mxu0 %v9225_v36  ;;  %3645 = vmatpush.msra.mxu1 %v9227_v61 }
 0x866   :  { %3665 = vmatpush.msra.mxu2 %v8909_v41  ;;  %v2284_v41 = vadd.f32 %v11249_v63, %v11240_v5 }
 0x867   :  { %11247 = vst [vmem:[#allocation26_spill] sm:$0xff] %v9187_v46  ;;  %3417 = vmatmul.f32.vlgmr.msra.gmra.mxu0 %v9187_v46  ;;  %3437 = vmatmul.f32.vlgmr.msrb.gmra.mxu1 %v9187_v46 }
 0x868   :  { %3457 = vmatmul.f32.vlgmr.msrb.gmra.mxu2 %v9187_v46  ;;  %3477 = vmatmul.f32.vlgmr.msrb.gmra.mxu3 %v9187_v46  ;;  %v9429_v46 = vld [vmem:[#allocation11 + $0x58] sm:$0xff] }
 0x869   :  { %3626 = vmatpush.msrb.mxu0 %v8915_v33  ;;  %3646 = vmatpush.msra.mxu1 %v8917_v11  ;;  %v11250_v33 = vld [vmem:[#allocation66_spill] sm:$0xff]  ;;  %11263 = vst [vmem:[#allocation31_spill] sm:$0xff] %v9429_v46 }
 0x86a   :  { %3666 = vmatpush.msra.mxu2 %v8919_v54  ;;  %v2325_v11 = vadd.f32 %v11250_v33, %v11242_v1 }
 0x86b   :  { %3627 = vmatpush.msrb.mxu0 %v8927_v50  ;;  %3647 = vmatpush.msra.mxu1 %v11248_v16 }
 0x86c   :  { %3667 = vmatpush.msra.mxu2 %v8931_v56 }
 0x86d   :  { %3628 = vmatpush.msrb.mxu0 %v8939_v29  ;;  %3648 = vmatpush.msra.mxu1 %v8941_v31 }
 0x86e   :  { %3668 = vmatpush.msra.mxu2 %v8943_v43 }
 0x86f   :  { %3629 = vmatpush.msrb.mxu0 %v8951_v35  ;;  %3649 = vmatpush.msra.mxu1 %v8953_v34  ;;  %v11251_v35 = vld [vmem:[#allocation64_spill] sm:$0xff] }
 0x870   :  { %3669 = vmatpush.msra.mxu2 %v8955_v10  ;;  %v2366_v34 = vadd.f32 %v11251_v35, %v11244_v59 }
 0x871   :  { %3630 = vmatpush.msrb.mxu0 %v8967_v37  ;;  %3650 = vmatpush.msra.mxu1 %v8969_v7 }
 0x872   :  { %3670 = vmatpush.msra.mxu2 %v8971_v52 }
 0x873   :  { %3631 = vmatpush.msrb.mxu0 %v8979_v24  ;;  %3651 = vmatpush.msra.mxu1 %v8981_v18 }
 0x874   :  { %3671 = vmatpush.msra.mxu2 %v8983_v49 }
 0x875   :  { %3632 = vmatpush.msrb.mxu0 %v8991_v51  ;;  %3652 = vmatpush.msra.mxu1 %v8993_v42  ;;  %v11252_v42 = vld [vmem:[#allocation25_spill] sm:$0xff] }
 0x876   :  { %3672 = vmatpush.msra.mxu2 %v8995_v2  ;;  %v11253_v2 = vld [vmem:[#allocation51_spill] sm:$0xff] }
 0x877   :  { %3633 = vmatpush.msrb.mxu0 %v9005_v12  ;;  %3653 = vmatpush.msra.mxu1 %v9007_v39  ;;  %v2407_v12 = vadd.f32 %v11253_v2, %v11252_v42  ;;  %v9315_v2 = vld [vmem:[#allocation11 + $0x178] sm:$0xff] }
 0x878   :  { %3673 = vmatpush.msra.mxu2 %v11231_v13 }
 0x879   :  { %3634 = vmatpush.msrb.mxu0 %v11233_v30  ;;  %3654 = vmatpush.msra.mxu1 %v11234_v57 }
 0x87a   :  { %3674 = vmatpush.msra.mxu2 %v11235_v28 }
 0x87b   :  { %3635 = vmatpush.msrb.mxu0 %v11238_v23  ;;  %3655 = vmatpush.msra.mxu1 %v9031_v0 }
 0x87c   :  { %3675 = vmatpush.msra.mxu2 %v9033_v3 }
 0x87d   :  { %3636 = vmatpush.msrb.mxu0 %v9039_v25  ;;  %3656 = vmatpush.msra.mxu1 %v9041_v6 }
 0x87e   :  { %3676 = vmatpush.msra.mxu2 %v11239_v32 }
 0x87f   :  { %3841 = vmatpush.msra.mxu0 %v9193_v48  ;;  %3861 = vmatpush.msrb.mxu1 %v9195_v62 }
 0x880   :  { %3881 = vmatpush.msrb.mxu2 %v9197_v44 }
 0x881   :  { %3842 = vmatpush.msra.mxu0 %v9202_v53  ;;  %3862 = vmatpush.msrb.mxu1 %v9204_v21 }
 0x882   :  { %3882 = vmatpush.msrb.mxu2 %v9206_v47 }
 0x883   :  { %3843 = vmatpush.msra.mxu0 %v9211_v9  ;;  %3863 = vmatpush.msrb.mxu1 %v9213_v45 }
 0x885   :  { %3844 = vmatpush.msra.mxu0 %v9218_v22  ;;  %3864 = vmatpush.msrb.mxu1 %v9220_v26 }
 0x887   :  { %3845 = vmatpush.msra.mxu0 %v9225_v36  ;;  %3865 = vmatpush.msrb.mxu1 %v9227_v61 }
 0x8e4   :  { %v3418_v54 = vpop.f32.mrf.mxu0  ;;  %v3438_v50 = vpop.f32.mrf.mxu1 }
 0x8e5   :  { %v3481_v56 = vadd.f32 %v3418_v54, %v2284_v41  ;;  %v3482_v29 = vadd.f32 %v3438_v50, %v2325_v11 }
 0x8e7   :  { %v6404_v31 = vmul.f32 -1.442695, %v3481_v56  ;;  %v6405_v43 = vmul.f32 -1.442695, %v3482_v29 }
 0x8e9   :  { %6648 = vpow2.f32 %v6404_v31 }
 0x8ea   :  { %6650 = vpow2.f32 %v6405_v43 }
 0x8eb   :  { %v3458_v10 = vpop.f32.mrf.mxu2  ;;  %v3478_v51 = vpop.f32.mrf.mxu3 }
 0x8ec   :  { %v3483_v37 = vadd.f32 %v3458_v10, %v2366_v34  ;;  %v3484_v0 = vadd.f32 %v3478_v51, %v2407_v12  ;;  %v9309_v51 = vld [vmem:[#allocation11 + $0x198] sm:$0xff]  ;;  %v9319_v12 = vld [vmem:[#allocation11 + $0x140] sm:$0xff] }
 0x8ed   :  { %3846 = vmatpush.msra.mxu0 %v9319_v12 }
 0x8ee   :  { %v6406_v7 = vmul.f32 -1.442695, %v3483_v37 }
 0x8ef   :  { %v6649_v52 = vpop.eup %6648 }
 0x8f0   :  { %v6651_v24 = vpop.eup %6650  ;;  %v3494_v18 = vadd.f32 1.0, %v6649_v52  ;;  %6652 = vpow2.f32 %v6406_v7  ;;  %v9298_v52 = vld [vmem:[#allocation11 + $0x1d8] sm:$0xff] }
 0x8f1   :  { %v3495_v49 = vadd.f32 1.0, %v6651_v24  ;;  %v9301_v24 = vld [vmem:[#allocation11 + $0x1b0] sm:$0xff] }
 0x8f2   :  { %6654 = vrcp.f32 %v3494_v18  ;;  %v3508_v23 = vand.u32 2147483648, %v3494_v18  ;;  %v3506_v27 = vand.u32 2147483647, %v3494_v18  ;;  %vm3502_vm3 = vweird.f32 %v3494_v18  ;;  %3883 = vmatpush.msrb.mxu2 %v9301_v24 }
 0x8f3   :  { %6656 = vrcp.f32 %v3495_v49  ;;  %v3523_v32 = vand.u32 2147483648, %v3495_v49  ;;  %v3521_v55 = vand.u32 2147483647, %v3495_v49  ;;  %vm3517_vm4 = vweird.f32 %v3495_v49 }
 0x8f4   :  { %v3509_v15 = vor.u32 1.1754944e-38, %v3508_v23  ;;  %vm3507_vm7 = vcmp.eq.f32.partialorder %v3506_v27, 8.507059e+37  ;;  %v9345_v23 = vld [vmem:[#allocation11 + $0x108] sm:$0xff]  ;;  %v9355_v27 = vld [vmem:[#allocation11 + $0xe0] sm:$0xff] }
 0x8f5   :  { %v3524_v17 = vor.u32 1.1754944e-38, %v3523_v32  ;;  %vm3522_vm8 = vcmp.eq.f32.partialorder %v3521_v55, 8.507059e+37  ;;  %v9347_v32 = vld [vmem:[#allocation11 + $0x110] sm:$0xff] }
 0x8f6   :  { %v6653_v3 = vpop.eup %6652  ;;  %v9359_v55 = vld [vmem:[#allocation11 + $0xf0] sm:$0xff] }
 0x8f7   :  { %v3496_v39 = vadd.f32 1.0, %v6653_v3  ;;  %v9313_v3 = vld [vmem:[#allocation11 + $0x170] sm:$0xff] }
 0x8f8   :  { %v6655_v25 = vpop.eup %6654 }
 0x8f9   :  { %v6657_v6 = vpop.eup %6656  ;;  %v3498_v13 = vmul.f32 %v6655_v25, %v3494_v18  ;;  %6658 = vrcp.f32 %v3496_v39  ;;  %vm3503_vm1 = vweird.f32 %v6655_v25  ;;  %v3538_v31 = vand.u32 2147483648, %v3496_v39  ;;  %v9303_v18 = vld [vmem:[#allocation11 + $0x1b8] sm:$0xff] }
 0x8fa   :  { %v3513_v30 = vmul.f32 %v6657_v6, %v3495_v49  ;;  %6660 = vtanh.f32 %v3484_v0  ;;  %vm3518_vm2 = vweird.f32 %v6657_v6  ;;  %vm3504_vm5 = vmor %vm3502_vm3, %vm3503_vm1  ;;  %vm3532_vm10 = vweird.f32 %v3496_v39  ;;  %v9307_v49 = vld [vmem:[#allocation11 + $0x190] sm:$0xff]  ;;  %v9327_v0 = vld [vmem:[#allocation11 + $0x158] sm:$0xff] }
 0x8fb   :  { %v3499_v57 = vsub.f32 1.0, %v3498_v13  ;;  %vm3519_vm6 = vmor %vm3517_vm4, %vm3518_vm2  ;;  %v3536_v43 = vand.u32 2147483647, %v3496_v39  ;;  %v3539_v34 = vor.u32 1.1754944e-38, %v3538_v31  ;;  %3884 = vmatpush.msrb.mxu2 %v9307_v49  ;;  %v9333_v13 = vld [vmem:[#allocation11 + $0x128] sm:$0xff] }
 0x8fc   :  { %v3514_v28 = vsub.f32 1.0, %v3513_v30  ;;  %v9335_v30 = vld [vmem:[#allocation11 + $0x130] sm:$0xff] }
 0x8fd   :  { %v3500_v58 = vmul.f32 %v6655_v25, %v3499_v57  ;;  %vm3537_vm12 = vcmp.eq.f32.partialorder %v3536_v43, 8.507059e+37  ;;  %3885 = vmatpush.msrb.mxu2 %v9313_v3  ;;  %v9339_v57 = vld [vmem:[#allocation11 + $0x138] sm:$0xff] }
 0x8fe   :  { %v3515_v38 = vmul.f32 %v6657_v6, %v3514_v28  ;;  %v9343_v28 = vld [vmem:[#allocation11 + $0x100] sm:$0xff] }
 0x8ff   :  { %v6659_v8 = vpop.eup %6658  ;;  %v3501_v40 = vadd.f32 %v6655_v25, %v3500_v58  ;;  %v9351_v58 = vld [vmem:[#allocation11 + $0x118] sm:$0xff] }
 0x900   :  { %v3528_v19 = vmul.f32 %v6659_v8, %v3496_v39  ;;  %v3516_v60 = vadd.f32 %v6657_v6, %v3515_v38  ;;  %v6661_v20 = vpop.eup %6660  ;;  %vm3533_vm9 = vweird.f32 %v6659_v8  ;;  %v9321_v39 = vld [vmem:[#allocation11 + $0x148] sm:$0xff] }
 0x901   :  { %v3505_v4 = vsel %vm3504_vm5, %v6655_v25, %v3501_v40  ;;  %vm3534_vm11 = vmor %vm3532_vm10, %vm3533_vm9  ;;  %v9323_v25 = vld [vmem:[#allocation11 + $0x150] sm:$0xff]  ;;  %3866 = vmatpush.msrb.mxu1 %v9321_v39  ;;  %v9357_v38 = vld [vmem:[#allocation11 + $0xe8] sm:$0xff] }
 0x902   :  { %v3529_v16 = vsub.f32 1.0, %v3528_v19  ;;  %v3510_v63 = vsel %vm3507_vm7, %v3509_v15, %v3505_v4  ;;  %v3520_v41 = vsel %vm3519_vm6, %v6657_v6, %v3516_v60  ;;  %3886 = vmatpush.msrb.mxu2 %v9323_v25  ;;  %v9331_v6 = vld [vmem:[#allocation11 + $0x120] sm:$0xff]  ;;  %v9367_v60 = vld [vmem:[#allocation11 + $0xf8] sm:$0xff] }
 0x903   :  { %v3525_v33 = vsel %vm3522_vm8, %v3524_v17, %v3520_v41  ;;  %v3545_v11 = vmul.f32 %v6661_v20, %v3510_v63  ;;  %3847 = vmatpush.msra.mxu0 %v9331_v6  ;;  %3867 = vmatpush.msrb.mxu1 %v9333_v13  ;;  %v11256_v19 = vld [vmem:[#allocation50_spill] sm:$0xff]  ;;  %v9375_v63 = vld [vmem:[#allocation11 + $0xd0] sm:$0xff] }
 0x904   :  { %v3530_v54 = vmul.f32 %v6659_v8, %v3529_v16  ;;  %v3544_v50 = vmul.f32 %v3525_v33, %v9184_v14  ;;  %v9295_v14 = vld [vmem:[#allocation11 + $0x1f8] sm:$0xff]  ;;  %3887 = vmatpush.msrb.mxu2 %v9335_v30  ;;  %v2328_v15 = vadd.f32 %v11256_v19, %v11242_v1  ;;  %v9371_v20 = vld [vmem:[#allocation11 + $0xc0] sm:$0xff]  ;;  %v9373_v16 = vld [vmem:[#allocation11 + $0xc8] sm:$0xff] }
 0x905   :  { %3901 = vmatpush.msrb.mxu3 %v9295_v14  ;;  %3848 = vmatpush.msra.mxu0 %v9343_v28  ;;  %v9437_v1 = vld [vmem:[#allocation11 + $0x30] sm:$0xff] }
 0x906   :  { %v9286_v56 = vadd.f32 %v3545_v11, %v3544_v50  ;;  %v3531_v29 = vadd.f32 %v6659_v8, %v3530_v54  ;;  %3868 = vmatpush.msrb.mxu1 %v9345_v23  ;;  %3888 = vmatpush.msrb.mxu2 %v9347_v32  ;;  %v9379_v11 = vld [vmem:[#allocation11 + $0xd8] sm:$0xff]  ;;  %v9383_v54 = vld [vmem:[#allocation11 + $0xa0] sm:$0xff]  ;;  %v9385_v50 = vld [vmem:[#allocation11 + $0xa8] sm:$0xff] }
 0x907   :  { %3902 = vmatpush.msrb.mxu3 %v9298_v52  ;;  %3849 = vmatpush.msra.mxu0 %v9355_v27 }
 0x908   :  { %6662 = vtanh.f32 %v9286_v56  ;;  %v3535_v35 = vsel %vm3534_vm11, %v6659_v8, %v3531_v29  ;;  %v11255_v8 = vld [vmem:[#allocation68_spill] sm:$0xff]  ;;  %3869 = vmatpush.msrb.mxu1 %v9357_v38  ;;  %3889 = vmatpush.msrb.mxu2 %v9359_v55 }
 0x909   :  { %v3540_v37 = vsel %vm3537_vm12, %v3539_v34, %v3535_v35  ;;  %3903 = vmatpush.msrb.mxu3 %v9303_v18  ;;  %v2287_v40 = vadd.f32 %v11255_v8, %v11240_v5  ;;  %3850 = vmatpush.msra.mxu0 %v9371_v20  ;;  %v9387_v29 = vld [vmem:[#allocation11 + $0xb0] sm:$0xff]  ;;  %v9391_v35 = vld [vmem:[#allocation11 + $0xb8] sm:$0xff]  ;;  %v9395_v34 = vld [vmem:[#allocation11 + $0x80] sm:$0xff] }
 0x90a   :  { %3870 = vmatpush.msrb.mxu1 %v9373_v16  ;;  %3890 = vmatpush.msrb.mxu2 %v9375_v63  ;;  %v9403_v8 = vld [vmem:[#allocation11 + $0x98] sm:$0xff] }
 0x90b   :  { %3904 = vmatpush.msrb.mxu3 %v9309_v51  ;;  %3851 = vmatpush.msra.mxu0 %v9383_v54 }
 0x90c   :  { %3871 = vmatpush.msrb.mxu1 %v9385_v50  ;;  %3891 = vmatpush.msrb.mxu2 %v9387_v29 }
 0x90d   :  { %3905 = vmatpush.msrb.mxu3 %v9315_v2  ;;  %3852 = vmatpush.msra.mxu0 %v9395_v34 }
 0x90e   :  { %v6663_v10 = vpop.eup %6662 }
 0x90f   :  { %v9289_v7 = vmul.f32 %v6663_v10, %v3540_v37  ;;  %3906 = vmatpush.msrb.mxu3 %v9327_v0  ;;  %v9397_v10 = vld [vmem:[#allocation11 + $0x88] sm:$0xff]  ;;  %v9399_v37 = vld [vmem:[#allocation11 + $0x90] sm:$0xff] }
 0x910   :  { %3872 = vmatpush.msrb.mxu1 %v9397_v10  ;;  %3892 = vmatpush.msrb.mxu2 %v9399_v37 }
 0x911   :  { %11254 = vst [vmem:[#allocation46_spill] sm:$0xff] %v9289_v7  ;;  %3637 = vmatmul.f32.vlgmr.msrb.gmra.mxu0 %v9289_v7  ;;  %3657 = vmatmul.f32.vlgmr.msra.gmra.mxu1 %v9289_v7 }
 0x912   :  { %3677 = vmatmul.f32.vlgmr.msra.gmra.mxu2 %v9289_v7  ;;  %3697 = vmatmul.f32.vlgmr.msra.gmra.mxu3 %v9289_v7  ;;  %v9425_v7 = vld [vmem:[#allocation11 + $0x50] sm:$0xff] }
 0x913   :  { %3907 = vmatpush.msrb.mxu3 %v9339_v57  ;;  %11262 = vst [vmem:[#allocation28_spill] sm:$0xff] %v9425_v7 }
 0x915   :  { %3908 = vmatpush.msrb.mxu3 %v9351_v58 }
 0x917   :  { %3909 = vmatpush.msrb.mxu3 %v9367_v60 }
 0x919   :  { %3910 = vmatpush.msrb.mxu3 %v9379_v11 }
 0x91b   :  { %3911 = vmatpush.msrb.mxu3 %v9391_v35 }
 0x91d   :  { %3912 = vmatpush.msrb.mxu3 %v9403_v8 }
 0x98e   :  { %v3638_v17 = vpop.f32.mrf.mxu0  ;;  %v3658_v4 = vpop.f32.mrf.mxu1 }
 0x98f   :  { %v3701_v41 = vadd.f32 %v3638_v17, %v2287_v40  ;;  %v3702_v33 = vadd.f32 %v3658_v4, %v2328_v15  ;;  %v11257_v40 = vld [vmem:[#allocation52_spill] sm:$0xff]  ;;  %v9409_v15 = vld [vmem:[#allocation11 + $0x60] sm:$0xff]  ;;  %v9411_v17 = vld [vmem:[#allocation11 + $0x68] sm:$0xff] }
 0x990   :  { %v2369_v19 = vadd.f32 %v11257_v40, %v11244_v59  ;;  %v9413_v4 = vld [vmem:[#allocation11 + $0x70] sm:$0xff]  ;;  %3853 = vmatpush.msra.mxu0 %v9409_v15  ;;  %3873 = vmatpush.msrb.mxu1 %v9411_v17  ;;  %v9423_v40 = vld [vmem:[#allocation11 + $0x48] sm:$0xff] }
 0x991   :  { %v6407_v31 = vmul.f32 -1.442695, %v3701_v41  ;;  %v6408_v43 = vmul.f32 -1.442695, %v3702_v33  ;;  %11258 = vst [vmem:[#allocation27_spill] sm:$0xff] %v9413_v4  ;;  %v9417_v33 = vld [vmem:[#allocation11 + $0x78] sm:$0xff]  ;;  %3893 = vmatpush.msrb.mxu2 %v9413_v4 }
 0x992   :  { %11259 = vst [vmem:[#allocation29_spill] sm:$0xff] %v9417_v33  ;;  %3913 = vmatpush.msrb.mxu3 %v9417_v33  ;;  %3874 = vmatpush.msrb.mxu1 %v9423_v40  ;;  %v9453_v4 = vld [vmem:[#allocation11 + $0x18] sm:$0xff] }
 0x993   :  { %6664 = vpow2.f32 %v6407_v31  ;;  %11261 = vst [vmem:[#allocation32_spill] sm:$0xff] %v9423_v40  ;;  %3894 = vmatpush.msrb.mxu2 %v9425_v7  ;;  %v9443_v40 = vld [vmem:[#allocation11] sm:$0xff] }
 0x994   :  { %6666 = vpow2.f32 %v6408_v43  ;;  %v9421_v43 = vld [vmem:[#allocation11 + $0x40] sm:$0xff]  ;;  %3914 = vmatpush.msrb.mxu3 %v9429_v46  ;;  %v9451_v46 = vld [vmem:[#allocation11 + $0x10] sm:$0xff] }
 0x995   :  { %v3678_v41 = vpop.f32.mrf.mxu2  ;;  %11260 = vst [vmem:[#allocation30_spill] sm:$0xff] %v9421_v43  ;;  %3854 = vmatpush.msra.mxu0 %v9421_v43  ;;  %v9441_v43 = vld [vmem:[#allocation11 + $0x38] sm:$0xff]  ;;  %3895 = vmatpush.msrb.mxu2 %v9437_v1 }
 0x996   :  { %v3703_v31 = vadd.f32 %v3678_v41, %v2369_v19  ;;  %v9433_v19 = vld [vmem:[#allocation11 + $0x20] sm:$0xff]  ;;  %v9435_v41 = vld [vmem:[#allocation11 + $0x28] sm:$0xff]  ;;  %3915 = vmatpush.msrb.mxu3 %v9441_v43  ;;  %11265 = vst [vmem:[#allocation36_spill] sm:$0xff] %v9451_v46 }
 0x997   :  { %11264 = vst [vmem:[#allocation33_spill] sm:$0xff] %v9433_v19  ;;  %3855 = vmatpush.msra.mxu0 %v9433_v19  ;;  %3875 = vmatpush.msrb.mxu1 %v9435_v41 }
 0x998   :  { %v6409_v59 = vmul.f32 -1.442695, %v3703_v31  ;;  %v9445_v31 = vld [vmem:[#allocation11 + $0x8] sm:$0xff]  ;;  %3896 = vmatpush.msrb.mxu2 %v9451_v46  ;;  %3916 = vmatpush.msrb.mxu3 %v9453_v4 }
 0x999   :  { %v6665_v5 = vpop.eup %6664  ;;  %3856 = vmatpush.msra.mxu0 %v9443_v40  ;;  %3876 = vmatpush.msrb.mxu1 %v9445_v31 }
 0x99a   :  { %v6667_v7 = vpop.eup %6666  ;;  %v9447_v33 = vadd.f32 1.0, %v6665_v5  ;;  %6668 = vpow2.f32 %v6409_v59  ;;  %4101 = vmatpush.msra.mxu2 %v9197_v44  ;;  %4121 = vmatpush.msra.mxu3 %v9295_v14  ;;  %v3698_v5 = vpop.f32.mrf.mxu3 }
 0x99b   :  { %v9455_v19 = vadd.f32 1.0, %v6667_v7  ;;  %4061 = vmatpush.msrb.mxu0 %v9193_v48  ;;  %4081 = vmatpush.msra.mxu1 %v9195_v62  ;;  %v11266_v7 = vld [vmem:[#allocation41_spill] sm:$0xff] }
 0x99c   :  { %6670 = vrcp.f32 %v9447_v33  ;;  %v2410_v46 = vadd.f32 %v11266_v7, %v11252_v42  ;;  %4102 = vmatpush.msra.mxu2 %v9206_v47  ;;  %4122 = vmatpush.msra.mxu3 %v9298_v52  ;;  %v3726_v14 = vand.u32 2147483647, %v9447_v33  ;;  %vm3722_vm15 = vweird.f32 %v9447_v33  ;;  %v4264_v7 = vld [vmem:[#allocation12 + $0x160] sm:$0xff] }
 0x99d   :  { %6672 = vrcp.f32 %v9455_v19  ;;  %4062 = vmatpush.msrb.mxu0 %v9202_v53  ;;  %4082 = vmatpush.msra.mxu1 %v9204_v21  ;;  %vm3737_vm0 = vweird.f32 %v9455_v19 }
 0x99e   :  { %v3704_v44 = vadd.f32 %v3698_v5, %v2410_v46  ;;  %4103 = vmatpush.msra.mxu2 %v9301_v24  ;;  %4123 = vmatpush.msra.mxu3 %v9303_v18  ;;  %vm3727_vm3 = vcmp.eq.f32.partialorder %v3726_v14, 8.507059e+37  ;;  %v4270_v5 = vld [vmem:[#allocation12 + $0x190] sm:$0xff]  ;;  %v4260_v14 = vld [vmem:[#allocation12 + $0x140] sm:$0xff] }
 0x99f   :  { %4063 = vmatpush.msrb.mxu0 %v9211_v9  ;;  %4083 = vmatpush.msra.mxu1 %v9213_v45  ;;  %v3728_v45 = vand.u32 2147483648, %v9447_v33 }
 0x9a0   :  { %v6669_v59 = vpop.eup %6668  ;;  %4104 = vmatpush.msra.mxu2 %v9307_v49  ;;  %4124 = vmatpush.msra.mxu3 %v9309_v51 }
 0x9a1   :  { %v9473_v48 = vadd.f32 1.0, %v6669_v59  ;;  %4064 = vmatpush.msrb.mxu0 %v9218_v22  ;;  %4084 = vmatpush.msra.mxu1 %v9220_v26  ;;  %v3743_v22 = vand.u32 2147483648, %v9455_v19  ;;  %v3729_v49 = vor.u32 1.1754944e-38, %v3728_v45  ;;  %v4271_v59 = vld [vmem:[#allocation12 + $0x198] sm:$0xff] }
 0x9a2   :  { %v6671_v62 = vpop.eup %6670  ;;  %4105 = vmatpush.msra.mxu2 %v9313_v3  ;;  %4125 = vmatpush.msra.mxu3 %v9315_v2  ;;  %v4267_v45 = vld [vmem:[#allocation12 + $0x178] sm:$0xff] }
 0x9a3   :  { %v6673_v53 = vpop.eup %6672  ;;  %v3718_v21 = vmul.f32 %v6671_v62, %v9447_v33  ;;  %6674 = vrcp.f32 %v9473_v48  ;;  %4065 = vmatpush.msrb.mxu0 %v9225_v36  ;;  %4085 = vmatpush.msra.mxu1 %v9227_v61  ;;  %vm3723_vm13 = vweird.f32 %v6671_v62  ;;  %v3741_v61 = vand.u32 2147483647, %v9455_v19  ;;  %v4279_v33 = vld [vmem:[#allocation12 + $0x1d8] sm:$0xff] }
 0x9a4   :  { %v3733_v47 = vmul.f32 %v6673_v53, %v9455_v19  ;;  %6676 = vtanh.f32 %v3704_v44  ;;  %vm3738_vm14 = vweird.f32 %v6673_v53  ;;  %4106 = vmatpush.msra.mxu2 %v9323_v25  ;;  %4126 = vmatpush.msra.mxu3 %v9327_v0  ;;  %vm3724_vm1 = vmor %vm3722_vm15, %vm3723_vm13  ;;  %v3744_v3 = vor.u32 1.1754944e-38, %v3743_v22  ;;  %v4274_v19 = vld [vmem:[#allocation12 + $0x1b0] sm:$0xff]  ;;  %v11275_v44 = vld [vmem:[#allocation42_spill] sm:$0xff] }
 0x9a5   :  { %v3719_v46 = vsub.f32 1.0, %v3718_v21  ;;  %4066 = vmatpush.msrb.mxu0 %v9319_v12  ;;  %4086 = vmatpush.msra.mxu1 %v9321_v39  ;;  %vm3739_vm2 = vmor %vm3737_vm0, %vm3738_vm14  ;;  %vm3742_vm4 = vcmp.eq.f32.partialorder %v3741_v61, 8.507059e+37  ;;  %vm3752_vm6 = vweird.f32 %v9473_v48  ;;  %v4262_v61 = vld [vmem:[#allocation12 + $0x150] sm:$0xff] }
 0x9a6   :  { %v3734_v9 = vsub.f32 1.0, %v3733_v47  ;;  %4107 = vmatpush.msra.mxu2 %v9335_v30  ;;  %4127 = vmatpush.msra.mxu3 %v9339_v57  ;;  %v11277_v47 = vld [vmem:[#allocation47_spill] sm:$0xff] }
 0x9a7   :  { %v3720_v26 = vmul.f32 %v6671_v62, %v3719_v46  ;;  %4067 = vmatpush.msrb.mxu0 %v9331_v6  ;;  %4087 = vmatpush.msra.mxu1 %v9333_v13  ;;  %v11278_v46 = vld [vmem:[#allocation24_spill] sm:$0xff] }
 0x9a8   :  { %v3735_v36 = vmul.f32 %v6673_v53, %v3734_v9  ;;  %4108 = vmatpush.msra.mxu2 %v9347_v32  ;;  %4128 = vmatpush.msra.mxu3 %v9351_v58  ;;  %v3756_v32 = vand.u32 2147483647, %v9473_v48  ;;  %v2331_v9 = vadd.f32 %v11278_v46, %v11277_v47  ;;  %v4227_v46 = vld [vmem:[#allocation12 + $0x38] sm:$0xff] }
 0x9a9   :  { %v9498_v52 = vpop.eup %6674  ;;  %v3721_v24 = vadd.f32 %v6671_v62, %v3720_v26  ;;  %4068 = vmatpush.msrb.mxu0 %v9343_v28  ;;  %4088 = vmatpush.msra.mxu1 %v9345_v23 }
 0x9aa   :  { %v3748_v18 = vmul.f32 %v9498_v52, %v9473_v48  ;;  %v3736_v51 = vadd.f32 %v6673_v53, %v3735_v36  ;;  %v6677_v12 = vpop.eup %6676  ;;  %4109 = vmatpush.msra.mxu2 %v9359_v55  ;;  %4129 = vmatpush.msra.mxu3 %v9367_v60  ;;  %vm3753_vm5 = vweird.f32 %v9498_v52  ;;  %v11268_v55 = vld [vmem:[#allocation29_spill] sm:$0xff]  ;;  %vm3757_vm8 = vcmp.eq.f32.partialorder %v3756_v32, 8.507059e+37  ;;  %v11269_v60 = vld [vmem:[#allocation30_spill] sm:$0xff]  ;;  %v4261_v36 = vld [vmem:[#allocation12 + $0x148] sm:$0xff] }
 0x9ab   :  { %v3725_v2 = vsel %vm3724_vm1, %v6671_v62, %v3721_v24  ;;  %4069 = vmatpush.msrb.mxu0 %v9355_v27  ;;  %4089 = vmatpush.msra.mxu1 %v9357_v38  ;;  %vm3754_vm7 = vmor %vm3752_vm6, %vm3753_vm5  ;;  %v11267_v38 = vld [vmem:[#allocation27_spill] sm:$0xff]  ;;  %v4266_v62 = vld [vmem:[#allocation12 + $0x170] sm:$0xff] }
 0x9ac   :  { %v3749_v39 = vsub.f32 1.0, %v3748_v18  ;;  %v3730_v25 = vsel %vm3727_vm3, %v3729_v49, %v3725_v2  ;;  %v3740_v0 = vsel %vm3739_vm2, %v6673_v53, %v3736_v51  ;;  %4110 = vmatpush.msra.mxu2 %v9375_v63  ;;  %4130 = vmatpush.msra.mxu3 %v9379_v11  ;;  %v11271_v11 = vld [vmem:[#allocation28_spill] sm:$0xff]  ;;  %v11276_v53 = vld [vmem:[#allocation35_spill] sm:$0xff]  ;;  %v4263_v18 = vld [vmem:[#allocation12 + $0x158] sm:$0xff] }
 0x9ad   :  { %v3745_v6 = vsel %vm3742_vm4, %v3744_v3, %v3740_v0  ;;  %v3765_v13 = vmul.f32 %v6677_v12, %v3730_v25  ;;  %4070 = vmatpush.msrb.mxu0 %v9371_v20  ;;  %4090 = vmatpush.msra.mxu1 %v9373_v16  ;;  %v11270_v20 = vld [vmem:[#allocation32_spill] sm:$0xff]  ;;  %v2290_v21 = vadd.f32 %v11276_v53, %v11275_v44  ;;  %v4256_v49 = vld [vmem:[#allocation12 + $0x120] sm:$0xff]  ;;  %v4257_v51 = vld [vmem:[#allocation12 + $0x128] sm:$0xff] }
 0x9ae   :  { %v3750_v30 = vmul.f32 %v9498_v52, %v3749_v39  ;;  %v3764_v57 = vmul.f32 %v3745_v6, %v9286_v56  ;;  %v3758_v56 = vand.u32 2147483648, %v9473_v48  ;;  %4111 = vmatpush.msra.mxu2 %v9387_v29  ;;  %4131 = vmatpush.msra.mxu3 %v9391_v35  ;;  %v11273_v29 = vld [vmem:[#allocation33_spill] sm:$0xff]  ;;  %v11274_v35 = vld [vmem:[#allocation36_spill] sm:$0xff]  ;;  %v4265_v48 = vld [vmem:[#allocation12 + $0x168] sm:$0xff] }
 0x9af   :  { %4071 = vmatpush.msrb.mxu0 %v9383_v54  ;;  %4091 = vmatpush.msra.mxu1 %v9385_v50  ;;  %v11272_v54 = vld [vmem:[#allocation31_spill] sm:$0xff]  ;;  %v4258_v3 = vld [vmem:[#allocation12 + $0x130] sm:$0xff]  ;;  %v4259_v39 = vld [vmem:[#allocation12 + $0x138] sm:$0xff] }
 0x9b0   :  { %v9522_v28 = vadd.f32 %v3765_v13, %v3764_v57  ;;  %v3751_v23 = vadd.f32 %v9498_v52, %v3750_v30  ;;  %4112 = vmatpush.msra.mxu2 %v9399_v37  ;;  %4132 = vmatpush.msra.mxu3 %v9403_v8  ;;  %v3759_v27 = vor.u32 1.1754944e-38, %v3758_v56  ;;  %v4283_v37 = vld [vmem:[#allocation12 + $0x1f8] sm:$0xff]  ;;  %v4276_v8 = vld [vmem:[#allocation12 + $0x1c0] sm:$0xff]  ;;  %v4253_v0 = vld [vmem:[#allocation12 + $0x108] sm:$0xff] }
 0x9b1   :  { %4072 = vmatpush.msrb.mxu0 %v9395_v34  ;;  %4092 = vmatpush.msra.mxu1 %v9397_v10  ;;  %v4280_v34 = vld [vmem:[#allocation12 + $0x1e0] sm:$0xff]  ;;  %v4282_v10 = vld [vmem:[#allocation12 + $0x1f0] sm:$0xff]  ;;  %v4255_v13 = vld [vmem:[#allocation12 + $0x118] sm:$0xff] }
 0x9b2   :  { %6678 = vtanh.f32 %v9522_v28  ;;  %v3755_v58 = vsel %vm3754_vm7, %v9498_v52, %v3751_v23  ;;  %4113 = vmatpush.msra.mxu2 %v11267_v38  ;;  %4133 = vmatpush.msra.mxu3 %v11268_v55  ;;  %v4252_v25 = vld [vmem:[#allocation12 + $0x100] sm:$0xff]  ;;  %v4254_v6 = vld [vmem:[#allocation12 + $0x110] sm:$0xff]  ;;  %v11279_v30 = vld [vmem:[#allocation63_spill] sm:$0xff] }
 0x9b3   :  { %4073 = vmatpush.msrb.mxu0 %v9409_v15  ;;  %4093 = vmatpush.msra.mxu1 %v9411_v17  ;;  %v3760_v63 = vsel %vm3757_vm8, %v3759_v27, %v3755_v58  ;;  %v4277_v15 = vld [vmem:[#allocation12 + $0x1c8] sm:$0xff]  ;;  %v4278_v17 = vld [vmem:[#allocation12 + $0x1d0] sm:$0xff]  ;;  %v11280_v57 = vld [vmem:[#allocation37_spill] sm:$0xff] }
 0x9b4   :  { %4114 = vmatpush.msra.mxu2 %v11271_v11  ;;  %4134 = vmatpush.msra.mxu3 %v11272_v54  ;;  %v2372_v23 = vadd.f32 %v11280_v57, %v11279_v30  ;;  %v4248_v56 = vld [vmem:[#allocation12 + $0xe0] sm:$0xff]  ;;  %v4249_v32 = vld [vmem:[#allocation12 + $0xe8] sm:$0xff]  ;;  %v4250_v58 = vld [vmem:[#allocation12 + $0xf0] sm:$0xff] }
 0x9b5   :  { %4074 = vmatpush.msrb.mxu0 %v11269_v60  ;;  %4094 = vmatpush.msra.mxu1 %v11270_v20  ;;  %v4251_v38 = vld [vmem:[#allocation12 + $0xf8] sm:$0xff]  ;;  %v4244_v60 = vld [vmem:[#allocation12 + $0xc0] sm:$0xff]  ;;  %v4245_v20 = vld [vmem:[#allocation12 + $0xc8] sm:$0xff] }
 0x9b6   :  { %4115 = vmatpush.msra.mxu2 %v9437_v1  ;;  %4135 = vmatpush.msra.mxu3 %v9441_v43  ;;  %v4281_v1 = vld [vmem:[#allocation12 + $0x1e8] sm:$0xff]  ;;  %v4272_v43 = vld [vmem:[#allocation12 + $0x1a0] sm:$0xff] }
 0x9b7   :  { %4075 = vmatpush.msrb.mxu0 %v11273_v29  ;;  %4095 = vmatpush.msra.mxu1 %v9435_v41  ;;  %v4268_v41 = vld [vmem:[#allocation12 + $0x180] sm:$0xff]  ;;  %v4241_v29 = vld [vmem:[#allocation12 + $0xa8] sm:$0xff] }
 0x9b8   :  { %v6679_v16 = vpop.eup %6678  ;;  %4116 = vmatpush.msra.mxu2 %v11274_v35  ;;  %4136 = vmatpush.msra.mxu3 %v9453_v4  ;;  %v4275_v4 = vld [vmem:[#allocation12 + $0x1b8] sm:$0xff]  ;;  %v4240_v54 = vld [vmem:[#allocation12 + $0xa0] sm:$0xff]  ;;  %v4242_v35 = vld [vmem:[#allocation12 + $0xb0] sm:$0xff] }
 0x9b9   :  { %v9549_v50 = vmul.f32 %v6679_v16, %v3760_v63  ;;  %4076 = vmatpush.msrb.mxu0 %v9443_v40  ;;  %4096 = vmatpush.msra.mxu1 %v9445_v31  ;;  %v4273_v40 = vld [vmem:[#allocation12 + $0x1a8] sm:$0xff]  ;;  %v4246_v16 = vld [vmem:[#allocation12 + $0xd0] sm:$0xff]  ;;  %v4247_v63 = vld [vmem:[#allocation12 + $0xd8] sm:$0xff] }
 0x9ba   :  { %v4269_v31 = vld [vmem:[#allocation12 + $0x188] sm:$0xff] }
 0x9bb   :  { %3857 = vmatmul.f32.vlgmr.msra.gmra.mxu0 %v9549_v50  ;;  %3877 = vmatmul.f32.vlgmr.msrb.gmra.mxu1 %v9549_v50  ;;  %v4225_v53 = vld [vmem:[#allocation12 + $0x28] sm:$0xff] }
 0x9bc   :  { %3897 = vmatmul.f32.vlgmr.msrb.gmra.mxu2 %v9549_v50  ;;  %3917 = vmatmul.f32.vlgmr.msrb.gmra.mxu3 %v9549_v50 }
 0x9bd   :  { %4294 = vmatpush.msra.mxu0 %v4280_v34  ;;  %4335 = vmatpush.msrb.mxu1 %v4281_v1  ;;  %v4243_v1 = vld [vmem:[#allocation12 + $0xb8] sm:$0xff] }
 0x9be   :  { %4376 = vmatpush.msrb.mxu2 %v4282_v10  ;;  %4417 = vmatpush.msrb.mxu3 %v4283_v37  ;;  %v4236_v10 = vld [vmem:[#allocation12 + $0x80] sm:$0xff]  ;;  %v4237_v37 = vld [vmem:[#allocation12 + $0x88] sm:$0xff] }
 0x9bf   :  { %4295 = vmatpush.msra.mxu0 %v4276_v8  ;;  %4336 = vmatpush.msrb.mxu1 %v4277_v15 }
 0x9c0   :  { %4377 = vmatpush.msrb.mxu2 %v4278_v17  ;;  %4418 = vmatpush.msrb.mxu3 %v4279_v33  ;;  %v4238_v17 = vld [vmem:[#allocation12 + $0x90] sm:$0xff]  ;;  %v4239_v33 = vld [vmem:[#allocation12 + $0x98] sm:$0xff] }
 0x9c1   :  { %4296 = vmatpush.msra.mxu0 %v4272_v43  ;;  %4337 = vmatpush.msrb.mxu1 %v4273_v40  ;;  %v4232_v40 = vld [vmem:[#allocation12 + $0x60] sm:$0xff] }
 0x9c2   :  { %4378 = vmatpush.msrb.mxu2 %v4274_v19  ;;  %4419 = vmatpush.msrb.mxu3 %v4275_v4  ;;  %v4233_v19 = vld [vmem:[#allocation12 + $0x68] sm:$0xff]  ;;  %v4234_v4 = vld [vmem:[#allocation12 + $0x70] sm:$0xff] }
 0x9c3   :  { %4297 = vmatpush.msra.mxu0 %v4268_v41  ;;  %4338 = vmatpush.msrb.mxu1 %v4269_v31  ;;  %v4235_v41 = vld [vmem:[#allocation12 + $0x78] sm:$0xff]  ;;  %v4228_v31 = vld [vmem:[#allocation12 + $0x40] sm:$0xff] }
 0x9c4   :  { %4379 = vmatpush.msrb.mxu2 %v4270_v5  ;;  %4420 = vmatpush.msrb.mxu3 %v4271_v59  ;;  %v4229_v5 = vld [vmem:[#allocation12 + $0x48] sm:$0xff]  ;;  %v4230_v59 = vld [vmem:[#allocation12 + $0x50] sm:$0xff] }
 0x9c5   :  { %4298 = vmatpush.msra.mxu0 %v4264_v7  ;;  %4339 = vmatpush.msrb.mxu1 %v4265_v48  ;;  %v4231_v7 = vld [vmem:[#allocation12 + $0x58] sm:$0xff]  ;;  %v4224_v48 = vld [vmem:[#allocation12 + $0x20] sm:$0xff] }
 0x9c6   :  { %4380 = vmatpush.msrb.mxu2 %v4266_v62  ;;  %4421 = vmatpush.msrb.mxu3 %v4267_v45  ;;  %v11281_v45 = vld [vmem:[#allocation49_spill] sm:$0xff] }
 0x9c7   :  { %4299 = vmatpush.msra.mxu0 %v4260_v14  ;;  %4340 = vmatpush.msrb.mxu1 %v4261_v36  ;;  %v4221_v14 = vld [vmem:[#allocation12 + $0x8] sm:$0xff] }
 0x9c8   :  { %4381 = vmatpush.msrb.mxu2 %v4262_v61  ;;  %4422 = vmatpush.msrb.mxu3 %v4263_v18  ;;  %v4222_v61 = vld [vmem:[#allocation12 + $0x10] sm:$0xff] }
 0x9c9   :  { %4300 = vmatpush.msra.mxu0 %v4256_v49  ;;  %4341 = vmatpush.msrb.mxu1 %v4257_v51 }
 0x9ca   :  { %4382 = vmatpush.msrb.mxu2 %v4258_v3  ;;  %4423 = vmatpush.msrb.mxu3 %v4259_v39 }
 0x9cb   :  { %4301 = vmatpush.msra.mxu0 %v4252_v25  ;;  %4342 = vmatpush.msrb.mxu1 %v4253_v0 }
 0x9cc   :  { %4383 = vmatpush.msrb.mxu2 %v4254_v6  ;;  %4424 = vmatpush.msrb.mxu3 %v4255_v13 }
 0x9cd   :  { %4302 = vmatpush.msra.mxu0 %v4248_v56  ;;  %4343 = vmatpush.msrb.mxu1 %v4249_v32 }
 0x9ce   :  { %4384 = vmatpush.msrb.mxu2 %v4250_v58  ;;  %4425 = vmatpush.msrb.mxu3 %v4251_v38 }
 0x9cf   :  { %4303 = vmatpush.msra.mxu0 %v4244_v60  ;;  %4344 = vmatpush.msrb.mxu1 %v4245_v20 }
 0x9d0   :  { %4385 = vmatpush.msrb.mxu2 %v4246_v16  ;;  %4426 = vmatpush.msrb.mxu3 %v4247_v63 }
 0x9d1   :  { %4304 = vmatpush.msra.mxu0 %v4240_v54  ;;  %4345 = vmatpush.msrb.mxu1 %v4241_v29 }
 0x9d2   :  { %4386 = vmatpush.msrb.mxu2 %v4242_v35  ;;  %4427 = vmatpush.msrb.mxu3 %v4243_v1 }
 0x9d3   :  { %4305 = vmatpush.msra.mxu0 %v4236_v10  ;;  %4346 = vmatpush.msrb.mxu1 %v4237_v37 }
 0x9d4   :  { %4387 = vmatpush.msrb.mxu2 %v4238_v17  ;;  %4428 = vmatpush.msrb.mxu3 %v4239_v33 }
 0x9d5   :  { %4306 = vmatpush.msra.mxu0 %v4232_v40  ;;  %4347 = vmatpush.msrb.mxu1 %v4233_v19  ;;  %v11283_v40 = vld [vmem:[#allocation43_spill] sm:$0xff]  ;;  %v11284_v19 = vld [vmem:[#allocation61_spill] sm:$0xff] }
 0x9d6   :  { %4388 = vmatpush.msrb.mxu2 %v4234_v4  ;;  %4429 = vmatpush.msrb.mxu3 %v4235_v41  ;;  %v9601_v4 = vld [vmem:[#allocation14 + $0x1e0] sm:$0xff]  ;;  %v9603_v41 = vld [vmem:[#allocation14 + $0x1e8] sm:$0xff] }
 0x9d7   :  { %4307 = vmatpush.msra.mxu0 %v4228_v31  ;;  %4348 = vmatpush.msrb.mxu1 %v4229_v5  ;;  %v9605_v31 = vld [vmem:[#allocation14 + $0x1c0] sm:$0xff]  ;;  %v9609_v5 = vld [vmem:[#allocation14 + $0x1c8] sm:$0xff] }
 0x9d8   :  { %4389 = vmatpush.msrb.mxu2 %v4230_v59  ;;  %4430 = vmatpush.msrb.mxu3 %v4231_v7  ;;  %v9611_v59 = vld [vmem:[#allocation14 + $0x1f0] sm:$0xff]  ;;  %v9614_v7 = vld [vmem:[#allocation14 + $0x1a0] sm:$0xff] }
 0x9d9   :  { %4308 = vmatpush.msra.mxu0 %v4224_v48  ;;  %4349 = vmatpush.msrb.mxu1 %v4225_v53  ;;  %v9616_v48 = vld [vmem:[#allocation14 + $0x1a8] sm:$0xff]  ;;  %v11285_v53 = vld [vmem:[#allocation26_spill] sm:$0xff] }
 0x9da   :  { %4431 = vmatpush.msrb.mxu3 %v4227_v46  ;;  %v9637_v46 = vld [vmem:[#allocation14 + $0x1f8] sm:$0xff] }
 0x9db   :  { %4350 = vmatpush.msrb.mxu1 %v4221_v14  ;;  %v9649_v14 = vld [vmem:[#allocation14 + $0x188] sm:$0xff] }
 0xa38   :  { %v3858_v22 = vpop.f32.mrf.mxu0  ;;  %v3878_v26 = vpop.f32.mrf.mxu1 }
 0xa39   :  { %v3921_v52 = vadd.f32 %v3858_v22, %v2290_v21  ;;  %v3922_v24 = vadd.f32 %v3878_v26, %v2331_v9  ;;  %v4226_v21 = vld [vmem:[#allocation12 + $0x30] sm:$0xff]  ;;  %v2413_v22 = vadd.f32 %v11281_v45, %v11252_v42  ;;  %v4220_v26 = vld [vmem:[#allocation12] sm:$0xff] }
 0xa3a   :  { %4390 = vmatpush.msrb.mxu2 %v4226_v21  ;;  %4309 = vmatpush.msra.mxu0 %v4220_v26  ;;  %v11286_v21 = vld [vmem:[#allocation46_spill] sm:$0xff]  ;;  %v9643_v45 = vld [vmem:[#allocation14 + $0x1b0] sm:$0xff] }
 0xa3b   :  { %v6410_v2 = vmul.f32 -1.442695, %v3921_v52  ;;  %v6411_v12 = vmul.f32 -1.442695, %v3922_v24  ;;  %v4223_v52 = vld [vmem:[#allocation12 + $0x18] sm:$0xff]  ;;  %v9647_v26 = vld [vmem:[#allocation14 + $0x180] sm:$0xff] }
 0xa3c   :  { %4391 = vmatpush.msrb.mxu2 %v4222_v61  ;;  %4432 = vmatpush.msrb.mxu3 %v4223_v52  ;;  %v9659_v61 = vld [vmem:[#allocation14 + $0x190] sm:$0xff]  ;;  %v9661_v52 = vld [vmem:[#allocation14 + $0x198] sm:$0xff] }
 0xa3d   :  { %6680 = vpow2.f32 %v6410_v2 }
 0xa3e   :  { %6682 = vpow2.f32 %v6411_v12 }
 0xa3f   :  { %v3898_v27 = vpop.f32.mrf.mxu2  ;;  %v3918_v62 = vpop.f32.mrf.mxu3 }
 0xa40   :  { %v3923_v55 = vadd.f32 %v3898_v27, %v2372_v23  ;;  %v3924_v18 = vadd.f32 %v3918_v62, %v2413_v22  ;;  %v9618_v62 = vld [vmem:[#allocation14 + $0x1d0] sm:$0xff]  ;;  %v9645_v22 = vld [vmem:[#allocation14 + $0x1b8] sm:$0xff] }
 0xa42   :  { %v6412_v11 = vmul.f32 -1.442695, %v3923_v55 }
 0xa43   :  { %v6681_v34 = vpop.eup %6680 }
 0xa44   :  { %v6683_v8 = vpop.eup %6682  ;;  %v9569_v15 = vadd.f32 1.0, %v6681_v34  ;;  %6684 = vpow2.f32 %v6412_v11 }
 0xa45   :  { %v9571_v43 = vadd.f32 1.0, %v6683_v8 }
 0xa46   :  { %6686 = vrcp.f32 %v9569_v15  ;;  %v3948_v39 = vand.u32 2147483648, %v9569_v15  ;;  %v3946_v6 = vand.u32 2147483647, %v9569_v15  ;;  %vm3942_vm11 = vweird.f32 %v9569_v15 }
 0xa47   :  { %6688 = vrcp.f32 %v9571_v43  ;;  %v3963_v25 = vand.u32 2147483648, %v9571_v43  ;;  %v3961_v57 = vand.u32 2147483647, %v9571_v43  ;;  %vm3957_vm12 = vweird.f32 %v9571_v43 }
 0xa48   :  { %v3949_v58 = vor.u32 1.1754944e-38, %v3948_v39  ;;  %vm3947_vm15 = vcmp.eq.f32.partialorder %v3946_v6, 8.507059e+37  ;;  %v9679_v39 = vld [vmem:[#allocation14 + $0x148] sm:$0xff] }
 0xa49   :  { %v3964_v38 = vor.u32 1.1754944e-38, %v3963_v25  ;;  %vm3962_vm0 = vcmp.eq.f32.partialorder %v3961_v57, 8.507059e+37  ;;  %v9681_v25 = vld [vmem:[#allocation14 + $0x150] sm:$0xff] }
 0xa4a   :  { %v6685_v9 = vpop.eup %6684 }
 0xa4b   :  { %v3936_v36 = vadd.f32 1.0, %v6685_v9  ;;  %v9640_v9 = vld [vmem:[#allocation14 + $0x1d8] sm:$0xff] }
 0xa4c   :  { %v6687_v24 = vpop.eup %6686 }
 0xa4d   :  { %v6689_v49 = vpop.eup %6688  ;;  %v3938_v51 = vmul.f32 %v6687_v24, %v9569_v15  ;;  %6690 = vrcp.f32 %v3936_v36  ;;  %vm3943_vm9 = vweird.f32 %v6687_v24  ;;  %v3978_v10 = vand.u32 2147483648, %v3936_v36 }
 0xa4e   :  { %v3953_v3 = vmul.f32 %v6689_v49, %v9571_v43  ;;  %6692 = vtanh.f32 %v3924_v18  ;;  %vm3958_vm10 = vweird.f32 %v6689_v49  ;;  %vm3944_vm13 = vmor %vm3942_vm11, %vm3943_vm9  ;;  %vm3972_vm2 = vweird.f32 %v3936_v36  ;;  %v9669_v18 = vld [vmem:[#allocation14 + $0x178] sm:$0xff] }
 0xa4f   :  { %v3939_v2 = vsub.f32 1.0, %v3938_v51  ;;  %vm3959_vm14 = vmor %vm3957_vm12, %vm3958_vm10  ;;  %v3976_v37 = vand.u32 2147483647, %v3936_v36  ;;  %v3979_v15 = vor.u32 1.1754944e-38, %v3978_v10 }
 0xa50   :  { %v3954_v12 = vsub.f32 1.0, %v3953_v3  ;;  %v11288_v3 = vld [vmem:[#allocation39_spill] sm:$0xff] }
 0xa51   :  { %v3940_v0 = vmul.f32 %v6687_v24, %v3939_v2  ;;  %vm3977_vm4 = vcmp.eq.f32.partialorder %v3976_v37, 8.507059e+37  ;;  %v2334_v2 = vadd.f32 %v11288_v3, %v11277_v47  ;;  %v9692_v47 = vld [vmem:[#allocation14 + $0x130] sm:$0xff]  ;;  %v9727_v37 = vld [vmem:[#allocation14 + $0xa0] sm:$0xff] }
 0xa52   :  { %v3955_v13 = vmul.f32 %v6689_v49, %v3954_v12  ;;  %v9677_v12 = vld [vmem:[#allocation14 + $0x140] sm:$0xff] }
 0xa53   :  { %v6691_v23 = vpop.eup %6690  ;;  %v3941_v56 = vadd.f32 %v6687_v24, %v3940_v0 }
 0xa54   :  { %v3968_v32 = vmul.f32 %v6691_v23, %v3936_v36  ;;  %v3956_v27 = vadd.f32 %v6689_v49, %v3955_v13  ;;  %v6693_v60 = vpop.eup %6692  ;;  %vm3973_vm1 = vweird.f32 %v6691_v23  ;;  %v9657_v36 = vld [vmem:[#allocation14 + $0x168] sm:$0xff]  ;;  %v9685_v13 = vld [vmem:[#allocation14 + $0x158] sm:$0xff] }
 0xa55   :  { %v3945_v55 = vsel %vm3944_vm13, %v6687_v24, %v3941_v56  ;;  %vm3974_vm3 = vmor %vm3972_vm2, %vm3973_vm1  ;;  %v9667_v24 = vld [vmem:[#allocation14 + $0x170] sm:$0xff]  ;;  %v9689_v56 = vld [vmem:[#allocation14 + $0x128] sm:$0xff] }
 0xa56   :  { %v3969_v20 = vsub.f32 1.0, %v3968_v32  ;;  %v3950_v16 = vsel %vm3947_vm15, %v3949_v58, %v3945_v55  ;;  %v3960_v63 = vsel %vm3959_vm14, %v6689_v49, %v3956_v27  ;;  %v11287_v49 = vld [vmem:[#allocation44_spill] sm:$0xff]  ;;  %v9697_v32 = vld [vmem:[#allocation14 + $0x138] sm:$0xff]  ;;  %v9701_v55 = vld [vmem:[#allocation14 + $0x108] sm:$0xff] }
 0xa57   :  { %v3965_v11 = vsel %vm3962_vm0, %v3964_v38, %v3960_v63  ;;  %v3985_v54 = vmul.f32 %v6693_v60, %v3950_v16  ;;  %v2293_v51 = vadd.f32 %v11287_v49, %v11275_v44  ;;  %v9687_v44 = vld [vmem:[#allocation14 + $0x120] sm:$0xff]  ;;  %v9711_v16 = vld [vmem:[#allocation14 + $0x110] sm:$0xff] }
 0xa58   :  { %v3970_v29 = vmul.f32 %v6691_v23, %v3969_v20  ;;  %v3984_v35 = vmul.f32 %v3965_v11, %v9522_v28  ;;  %v11282_v28 = vld [vmem:[#allocation40_spill] sm:$0xff]  ;;  %v9699_v38 = vld [vmem:[#allocation14 + $0x100] sm:$0xff]  ;;  %v9709_v20 = vld [vmem:[#allocation14 + $0xe8] sm:$0xff] }
 0xa59   :  { %v9707_v60 = vld [vmem:[#allocation14 + $0xe0] sm:$0xff]  ;;  %v9716_v11 = vld [vmem:[#allocation14 + $0xc8] sm:$0xff] }
 0xa5a   :  { %v9586_v34 = vadd.f32 %v3985_v54, %v3984_v35  ;;  %v3971_v1 = vadd.f32 %v6691_v23, %v3970_v29  ;;  %v9714_v63 = vld [vmem:[#allocation14 + $0xc0] sm:$0xff]  ;;  %v9718_v54 = vld [vmem:[#allocation14 + $0xf0] sm:$0xff] }
 0xa5b   :  { %v11289_v29 = vld [vmem:[#allocation62_spill] sm:$0xff] }
 0xa5c   :  { %6694 = vtanh.f32 %v9586_v34  ;;  %v3975_v8 = vsel %vm3974_vm3, %v6691_v23, %v3971_v1  ;;  %v2375_v35 = vadd.f32 %v11289_v29, %v11279_v30  ;;  %v9724_v1 = vld [vmem:[#allocation14 + $0xd0] sm:$0xff]  ;;  %v9753_v49 = vld [vmem:[#allocation14 + $0x60] sm:$0xff] }
 0xa5d   :  { %v3980_v33 = vsel %vm3977_vm4, %v3979_v15, %v3975_v8  ;;  %v9729_v8 = vld [vmem:[#allocation14 + $0xa8] sm:$0xff]  ;;  %v9731_v15 = vld [vmem:[#allocation14 + $0x118] sm:$0xff]  ;;  %v9735_v30 = vld [vmem:[#allocation14 + $0xb0] sm:$0xff]  ;;  %11292 = vst [vmem:[#allocation60_spill] sm:$0xff] %v9753_v49 }
 0xa5e   :  { %v9778_v29 = vld [vmem:[#allocation14 + $0x50] sm:$0xff] }
 0xa5f   :  { %11298 = vst [vmem:[#allocation23_spill] sm:$0xff] %v9778_v29 }
 0xa62   :  { %v6695_v17 = vpop.eup %6694 }
 0xa63   :  { %v3988_v43 = vmul.f32 %v6695_v17, %v3980_v33  ;;  %v9737_v33 = vld [vmem:[#allocation14 + $0xf8] sm:$0xff] }
 0xa65   :  { %4077 = vmatmul.f32.vlgmr.msrb.gmra.mxu0 %v3988_v43  ;;  %4097 = vmatmul.f32.vlgmr.msra.gmra.mxu1 %v3988_v43 }
 0xa66   :  { %4117 = vmatmul.f32.vlgmr.msra.gmra.mxu2 %v3988_v43  ;;  %4137 = vmatmul.f32.vlgmr.msra.gmra.mxu3 %v3988_v43 }
 0xa67   :  { %4561 = vmatpush.msrb.mxu0 %v9601_v4  ;;  %4581 = vmatpush.msra.mxu1 %v9603_v41 }
 0xa68   :  { %4601 = vmatpush.msra.mxu2 %v9611_v59  ;;  %4621 = vmatpush.msra.mxu3 %v9637_v46 }
 0xa69   :  { %4562 = vmatpush.msrb.mxu0 %v9605_v31  ;;  %4582 = vmatpush.msra.mxu1 %v9609_v5 }
 0xa6a   :  { %4602 = vmatpush.msra.mxu2 %v9618_v62  ;;  %4622 = vmatpush.msra.mxu3 %v9640_v9 }
 0xa6b   :  { %4563 = vmatpush.msrb.mxu0 %v9614_v7  ;;  %4583 = vmatpush.msra.mxu1 %v9616_v48 }
 0xa6c   :  { %4603 = vmatpush.msra.mxu2 %v9643_v45  ;;  %4623 = vmatpush.msra.mxu3 %v9645_v22 }
 0xa6d   :  { %4310 = vmatmul.f32.vlgmr.msra.gmra.mxu0 %v11282_v28  ;;  %4351 = vmatmul.f32.vlgmr.msrb.gmra.mxu1 %v11282_v28 }
 0xa6e   :  { %4392 = vmatmul.f32.vlgmr.msrb.gmra.mxu2 %v11282_v28  ;;  %4433 = vmatmul.f32.vlgmr.msrb.gmra.mxu3 %v11282_v28  ;;  %v9743_v28 = vld [vmem:[#allocation14 + $0x88] sm:$0xff] }
 0xa6f   :  { %4564 = vmatpush.msrb.mxu0 %v9647_v26  ;;  %4584 = vmatpush.msra.mxu1 %v9649_v14  ;;  %11290 = vst [vmem:[#allocation53_spill] sm:$0xff] %v9743_v28 }
 0xa70   :  { %4604 = vmatpush.msra.mxu2 %v9659_v61  ;;  %4624 = vmatpush.msra.mxu3 %v9661_v52 }
 0xa71   :  { %4585 = vmatpush.msra.mxu1 %v9657_v36 }
 0xa72   :  { %4605 = vmatpush.msra.mxu2 %v9667_v24  ;;  %4625 = vmatpush.msra.mxu3 %v9669_v18 }
 0xa73   :  { %4586 = vmatpush.msra.mxu1 %v9679_v39 }
 0xa74   :  { %4606 = vmatpush.msra.mxu2 %v9681_v25  ;;  %4626 = vmatpush.msra.mxu3 %v9685_v13 }
 0xa75   :  { %4313 = vmatmul.f32.gmra.mxu0 %v11283_v40  ;;  %4354 = vmatmul.f32.gmra.mxu1 %v11283_v40 }
 0xa76   :  { %4395 = vmatmul.f32.gmra.mxu2 %v11283_v40  ;;  %4436 = vmatmul.f32.gmra.mxu3 %v11283_v40 }
 0xa77   :  { %4587 = vmatpush.msra.mxu1 %v9689_v56  ;;  %4607 = vmatpush.msra.mxu2 %v9692_v47 }
 0xa78   :  { %4627 = vmatpush.msra.mxu3 %v9697_v32 }
 0xa79   :  { %4588 = vmatpush.msra.mxu1 %v9701_v55  ;;  %4608 = vmatpush.msra.mxu2 %v9711_v16 }
 0xa7a   :  { %4628 = vmatpush.msra.mxu3 %v9731_v15 }
 0xa7b   :  { %4589 = vmatpush.msra.mxu1 %v9709_v20  ;;  %4609 = vmatpush.msra.mxu2 %v9718_v54 }
 0xa7c   :  { %4629 = vmatpush.msra.mxu3 %v9737_v33 }
 0xa7d   :  { %4316 = vmatmul.f32.gmra.mxu0 %v11284_v19  ;;  %4357 = vmatmul.f32.gmra.mxu1 %v11284_v19 }
 0xa7e   :  { %4398 = vmatmul.f32.gmra.mxu2 %v11284_v19  ;;  %4439 = vmatmul.f32.gmra.mxu3 %v11284_v19  ;;  %v9747_v19 = vld [vmem:[#allocation14 + $0x90] sm:$0xff] }
 0xa7f   :  { %4590 = vmatpush.msra.mxu1 %v9716_v11  ;;  %4610 = vmatpush.msra.mxu2 %v9724_v1  ;;  %11291 = vst [vmem:[#allocation54_spill] sm:$0xff] %v9747_v19 }
 0xa81   :  { %4591 = vmatpush.msra.mxu1 %v9729_v8  ;;  %4611 = vmatpush.msra.mxu2 %v9735_v30 }
 0xa83   :  { %4592 = vmatpush.msra.mxu1 %v9743_v28  ;;  %4612 = vmatpush.msra.mxu2 %v9747_v19 }
 0xa85   :  { %4319 = vmatmul.f32.gmra.mxu0 %v11285_v53  ;;  %4360 = vmatmul.f32.gmra.mxu1 %v11285_v53 }
 0xa86   :  { %4401 = vmatmul.f32.gmra.mxu2 %v11285_v53  ;;  %4442 = vmatmul.f32.gmra.mxu3 %v11285_v53  ;;  %v9749_v53 = vld [vmem:[#allocation14 + $0xd8] sm:$0xff] }
 0xa87   :  { %4630 = vmatpush.msra.mxu3 %v9749_v53 }
 0xa8d   :  { %4322 = vmatmul.f32.gmra.mxu0 %v11286_v21  ;;  %4363 = vmatmul.f32.gmra.mxu1 %v11286_v21 }
 0xa8e   :  { %4404 = vmatmul.f32.gmra.mxu2 %v11286_v21  ;;  %4445 = vmatmul.f32.gmra.mxu3 %v11286_v21 }
 0xa95   :  { %4325 = vmatmul.f32.gmra.mxu0 %v9549_v50  ;;  %4366 = vmatmul.f32.gmra.mxu1 %v9549_v50 }
 0xa96   :  { %4407 = vmatmul.f32.gmra.mxu2 %v9549_v50  ;;  %4448 = vmatmul.f32.gmra.mxu3 %v9549_v50  ;;  %v9652_v50 = vld [vmem:[#allocation14 + $0x160] sm:$0xff] }
 0xa97   :  { %4565 = vmatpush.msrb.mxu0 %v9652_v50 }
 0xa99   :  { %4566 = vmatpush.msrb.mxu0 %v9677_v12 }
 0xa9b   :  { %4567 = vmatpush.msrb.mxu0 %v9687_v44 }
 0xa9d   :  { %4328 = vmatmul.f32.gmra.mxu0 %v3988_v43  ;;  %4369 = vmatmul.f32.gmra.mxu1 %v3988_v43 }
 0xa9e   :  { %4410 = vmatmul.f32.gmra.mxu2 %v3988_v43  ;;  %4451 = vmatmul.f32.gmra.mxu3 %v3988_v43  ;;  %v9741_v43 = vld [vmem:[#allocation14 + $0x80] sm:$0xff] }
 0xa9f   :  { %4568 = vmatpush.msrb.mxu0 %v9699_v38 }
 0xaa1   :  { %4569 = vmatpush.msrb.mxu0 %v9707_v60 }
 0xaa3   :  { %4570 = vmatpush.msrb.mxu0 %v9714_v63 }
 0xaa5   :  { %4571 = vmatpush.msrb.mxu0 %v9727_v37 }
 0xaa7   :  { %4572 = vmatpush.msrb.mxu0 %v9741_v43 }
 0xaa9   :  { %4573 = vmatpush.msrb.mxu0 %v9753_v49  ;;  %v11304_v49 = vld [vmem:[#allocation65_spill] sm:$0xff] }
 0xaaa   :  { %v2416_v19 = vadd.f32 %v11304_v49, %v11252_v42  ;;  %v9813_v42 = vld [vmem:[#allocation14 + $0x38] sm:$0xff] }
 0xae2   :  { %v4078_v0 = vpop.f32.mrf.mxu0  ;;  %v4098_v6 = vpop.f32.mrf.mxu1 }
 0xae3   :  { %v4141_v57 = vadd.f32 %v4078_v0, %v2293_v51  ;;  %v4142_v23 = vadd.f32 %v4098_v6, %v2334_v2  ;;  %v9755_v51 = vld [vmem:[#allocation14 + $0x68] sm:$0xff]  ;;  %v9761_v0 = vld [vmem:[#allocation14 + $0x70] sm:$0xff]  ;;  %v9763_v6 = vld [vmem:[#allocation14 + $0xb8] sm:$0xff] }
 0xae4   :  { %11293 = vst [vmem:[#allocation55_spill] sm:$0xff] %v9755_v51  ;;  %4593 = vmatpush.msra.mxu1 %v9755_v51  ;;  %4613 = vmatpush.msra.mxu2 %v9761_v0 }
 0xae5   :  { %v6413_v58 = vmul.f32 -1.442695, %v4141_v57  ;;  %v6414_v27 = vmul.f32 -1.442695, %v4142_v23  ;;  %11294 = vst [vmem:[#allocation56_spill] sm:$0xff] %v9761_v0  ;;  %v9769_v23 = vld [vmem:[#allocation14 + $0x40] sm:$0xff]  ;;  %4631 = vmatpush.msra.mxu3 %v9763_v6 }
 0xae6   :  { %11295 = vst [vmem:[#allocation57_spill] sm:$0xff] %v9769_v23  ;;  %4574 = vmatpush.msrb.mxu0 %v9769_v23  ;;  %4614 = vmatpush.msra.mxu2 %v9778_v29  ;;  %v9797_v0 = vld [vmem:[#allocation14 + $0x30] sm:$0xff] }
 0xae7   :  { %6696 = vpow2.f32 %v6413_v58  ;;  %v9771_v58 = vld [vmem:[#allocation14 + $0x48] sm:$0xff]  ;;  %11303 = vst [vmem:[#allocation48_spill] sm:$0xff] %v9797_v0  ;;  %v9805_v23 = vld [vmem:[#allocation14 + $0x10] sm:$0xff] }
 0xae8   :  { %6698 = vpow2.f32 %v6414_v27  ;;  %11296 = vst [vmem:[#allocation58_spill] sm:$0xff] %v9771_v58  ;;  %v9776_v27 = vld [vmem:[#allocation14 + $0x98] sm:$0xff]  ;;  %4594 = vmatpush.msra.mxu1 %v9771_v58  ;;  %4615 = vmatpush.msra.mxu2 %v9797_v0 }
 0xae9   :  { %v4118_v10 = vpop.f32.mrf.mxu2  ;;  %11297 = vst [vmem:[#allocation59_spill] sm:$0xff] %v9776_v27  ;;  %4632 = vmatpush.msra.mxu3 %v9776_v27  ;;  %v9803_v58 = vld [vmem:[#allocation14 + $0x58] sm:$0xff] }
 0xaea   :  { %v4143_v17 = vadd.f32 %v4118_v10, %v2375_v35  ;;  %v9783_v35 = vld [vmem:[#allocation14 + $0x20] sm:$0xff]  ;;  %v9785_v10 = vld [vmem:[#allocation14 + $0x28] sm:$0xff]  ;;  %11305 = vst [vmem:[#allocation66_spill] sm:$0xff] %v9805_v23  ;;  %4616 = vmatpush.msra.mxu2 %v9805_v23  ;;  %v9820_v0 = vld [vmem:[#allocation14 + $0x18] sm:$0xff] }
 0xaeb   :  { %11299 = vst [vmem:[#allocation34_spill] sm:$0xff] %v9783_v35  ;;  %4575 = vmatpush.msrb.mxu0 %v9783_v35  ;;  %4595 = vmatpush.msra.mxu1 %v9785_v10 }
 0xaec   :  { %v6415_v40 = vmul.f32 -1.442695, %v4143_v17  ;;  %11300 = vst [vmem:[#allocation38_spill] sm:$0xff] %v9785_v10  ;;  %v9789_v17 = vld [vmem:[#allocation14 + $0x78] sm:$0xff]  ;;  %4821 = vmatpush.msrb.mxu2 %v9611_v59 }
 0xaed   :  { %v6697_v21 = vpop.eup %6696  ;;  %4633 = vmatpush.msra.mxu3 %v9789_v17 }
 0xaee   :  { %v6699_v3 = vpop.eup %6698  ;;  %v9757_v2 = vadd.f32 1.0, %v6697_v21  ;;  %6700 = vpow2.f32 %v6415_v40  ;;  %v4138_v40 = vpop.f32.mrf.mxu3  ;;  %v9793_v21 = vld [vmem:[#allocation14] sm:$0xff]  ;;  %4822 = vmatpush.msrb.mxu2 %v9618_v62 }
 0xaef   :  { %v9765_v57 = vadd.f32 1.0, %v6699_v3  ;;  %11301 = vst [vmem:[#allocation67_spill] sm:$0xff] %v9793_v21  ;;  %v9795_v3 = vld [vmem:[#allocation14 + $0x8] sm:$0xff]  ;;  %v4144_v28 = vadd.f32 %v4138_v40, %v2416_v19  ;;  %4576 = vmatpush.msrb.mxu0 %v9793_v21  ;;  %4634 = vmatpush.msra.mxu3 %v9803_v58 }
 0xaf0   :  { %6702 = vrcp.f32 %v9757_v2  ;;  %11302 = vst [vmem:[#allocation45_spill] sm:$0xff] %v9795_v3  ;;  %4596 = vmatpush.msra.mxu1 %v9795_v3  ;;  %v4168_v3 = vand.u32 2147483648, %v9757_v2  ;;  %vm4162_vm7 = vweird.f32 %v9757_v2  ;;  %4823 = vmatpush.msrb.mxu2 %v9643_v45 }
 0xaf1   :  { %6704 = vrcp.f32 %v9765_v57  ;;  %4781 = vmatpush.msra.mxu0 %v9601_v4  ;;  %4635 = vmatpush.msra.mxu3 %v9813_v42  ;;  %v4183_v23 = vand.u32 2147483648, %v9765_v57  ;;  %v4166_v4 = vand.u32 2147483647, %v9757_v2  ;;  %v4181_v59 = vand.u32 2147483647, %v9765_v57 }
 0xaf2   :  { %4801 = vmatpush.msrb.mxu1 %v9603_v41  ;;  %vm4177_vm8 = vweird.f32 %v9765_v57  ;;  %4824 = vmatpush.msrb.mxu2 %v9659_v61 }
 0xaf3   :  { %4782 = vmatpush.msra.mxu0 %v9605_v31  ;;  %4636 = vmatpush.msra.mxu3 %v9820_v0  ;;  %vm4167_vm11 = vcmp.eq.f32.partialorder %v4166_v4, 8.507059e+37  ;;  %vm4182_vm12 = vcmp.eq.f32.partialorder %v4181_v59, 8.507059e+37 }
 0xaf4   :  { %v6701_v51 = vpop.eup %6700  ;;  %4802 = vmatpush.msrb.mxu1 %v9609_v5  ;;  %4825 = vmatpush.msrb.mxu2 %v9667_v24 }
 0xaf5   :  { %v9807_v27 = vadd.f32 1.0, %v6701_v51  ;;  %4841 = vmatpush.msrb.mxu3 %v9637_v46  ;;  %4783 = vmatpush.msra.mxu0 %v9614_v7  ;;  %v4184_v7 = vor.u32 1.1754944e-38, %v4183_v23 }
 0xaf6   :  { %v6703_v29 = vpop.eup %6702  ;;  %4803 = vmatpush.msrb.mxu1 %v9616_v48  ;;  %4826 = vmatpush.msrb.mxu2 %v9681_v25 }
 0xaf7   :  { %v6705_v49 = vpop.eup %6704  ;;  %v4158_v10 = vmul.f32 %v6703_v29, %v9757_v2  ;;  %6706 = vrcp.f32 %v9807_v27  ;;  %vm4163_vm5 = vweird.f32 %v6703_v29  ;;  %4842 = vmatpush.msrb.mxu3 %v9640_v9  ;;  %4784 = vmatpush.msra.mxu0 %v9647_v26  ;;  %vm4192_vm14 = vweird.f32 %v9807_v27 }
 0xaf8   :  { %v4173_v51 = vmul.f32 %v6705_v49, %v9765_v57  ;;  %6708 = vtanh.f32 %v4144_v28  ;;  %vm4178_vm6 = vweird.f32 %v6705_v49  ;;  %vm4164_vm9 = vmor %vm4162_vm7, %vm4163_vm5  ;;  %v4169_v28 = vor.u32 1.1754944e-38, %v4168_v3  ;;  %4804 = vmatpush.msrb.mxu1 %v9649_v14  ;;  %4827 = vmatpush.msrb.mxu2 %v9692_v47 }
 0xaf9   :  { %v4159_v19 = vsub.f32 1.0, %v4158_v10  ;;  %vm4179_vm10 = vmor %vm4177_vm8, %vm4178_vm6  ;;  %4843 = vmatpush.msrb.mxu3 %v9645_v22  ;;  %4785 = vmatpush.msra.mxu0 %v9652_v50  ;;  %v4196_v4 = vand.u32 2147483647, %v9807_v27 }
 0xafa   :  { %v4174_v40 = vsub.f32 1.0, %v4173_v51  ;;  %4805 = vmatpush.msrb.mxu1 %v9657_v36  ;;  %4828 = vmatpush.msrb.mxu2 %v9711_v16 }
 0xafb   :  { %v4160_v21 = vmul.f32 %v6703_v29, %v4159_v19  ;;  %4844 = vmatpush.msrb.mxu3 %v9661_v52  ;;  %4786 = vmatpush.msra.mxu0 %v9677_v12  ;;  %vm4197_vm0 = vcmp.eq.f32.partialorder %v4196_v4, 8.507059e+37 }
 0xafc   :  { %v4175_v41 = vmul.f32 %v6705_v49, %v4174_v40  ;;  %4806 = vmatpush.msrb.mxu1 %v9679_v39  ;;  %4829 = vmatpush.msrb.mxu2 %v9718_v54 }
 0xafd   :  { %v9836_v31 = vpop.eup %6706  ;;  %v4161_v5 = vadd.f32 %v6703_v29, %v4160_v21  ;;  %4845 = vmatpush.msrb.mxu3 %v9669_v18  ;;  %4787 = vmatpush.msra.mxu0 %v9687_v44 }
 0xafe   :  { %v4188_v62 = vmul.f32 %v9836_v31, %v9807_v27  ;;  %v4176_v10 = vadd.f32 %v6705_v49, %v4175_v41  ;;  %v6709_v48 = vpop.eup %6708  ;;  %vm4193_vm13 = vweird.f32 %v9836_v31  ;;  %4807 = vmatpush.msrb.mxu1 %v9689_v56  ;;  %4830 = vmatpush.msrb.mxu2 %v9724_v1 }
 0xaff   :  { %v4165_v2 = vsel %vm4164_vm9, %v6703_v29, %v4161_v5  ;;  %4846 = vmatpush.msrb.mxu3 %v9685_v13  ;;  %4788 = vmatpush.msra.mxu0 %v9699_v38  ;;  %vm4194_vm15 = vmor %vm4192_vm14, %vm4193_vm13 }
 0xb00   :  { %v4189_v57 = vsub.f32 1.0, %v4188_v62  ;;  %v4170_v21 = vsel %vm4167_vm11, %v4169_v28, %v4165_v2  ;;  %v4180_v51 = vsel %vm4179_vm10, %v6705_v49, %v4176_v10  ;;  %4808 = vmatpush.msrb.mxu1 %v9701_v55  ;;  %4831 = vmatpush.msrb.mxu2 %v9735_v30  ;;  %v11306_v62 = vld [vmem:[#allocation53_spill] sm:$0xff]  ;;  %v11307_v28 = vld [vmem:[#allocation54_spill] sm:$0xff]  ;;  %v11308_v10 = vld [vmem:[#allocation59_spill] sm:$0xff] }
 0xb01   :  { %v4185_v3 = vsel %vm4182_vm12, %v4184_v7, %v4180_v51  ;;  %v4205_v19 = vmul.f32 %v6709_v48, %v4170_v21  ;;  %4847 = vmatpush.msrb.mxu3 %v9697_v32  ;;  %4789 = vmatpush.msra.mxu0 %v9707_v60  ;;  %v11309_v7 = vld [vmem:[#allocation60_spill] sm:$0xff]  ;;  %v11310_v2 = vld [vmem:[#allocation55_spill] sm:$0xff]  ;;  %v11313_v21 = vld [vmem:[#allocation58_spill] sm:$0xff] }
 0xb02   :  { %v4204_v23 = vmul.f32 %v4185_v3, %v9586_v34  ;;  %v4190_v29 = vmul.f32 %v9836_v31, %v4189_v57  ;;  %v4198_v34 = vand.u32 2147483648, %v9807_v27  ;;  %4809 = vmatpush.msrb.mxu1 %v9709_v20  ;;  %4832 = vmatpush.msrb.mxu2 %v11307_v28  ;;  %v11311_v48 = vld [vmem:[#allocation56_spill] sm:$0xff]  ;;  %v11312_v57 = vld [vmem:[#allocation57_spill] sm:$0xff]  ;;  %v11314_v51 = vld [vmem:[#allocation23_spill] sm:$0xff]  ;;  %v11315_v3 = vmov 0.0  }
 0xb03   :  { %4848 = vmatpush.msrb.mxu3 %v9731_v15  ;;  %4790 = vmatpush.msra.mxu0 %v9714_v63 }
 0xb04   :  { %v4206_v49 = vadd.f32 %v4205_v19, %v4204_v23  ;;  %v4191_v40 = vadd.f32 %v9836_v31, %v4190_v29  ;;  %v4199_v59 = vor.u32 1.1754944e-38, %v4198_v34  ;;  %4810 = vmatpush.msrb.mxu1 %v9716_v11  ;;  %4833 = vmatpush.msrb.mxu2 %v11311_v48  ;;  %v11316_v19 = vld [vmem:[#allocation38_spill] sm:$0xff]  ;;  %v11317_v23 = vld [vmem:[#allocation48_spill] sm:$0xff]  ;;  %v11318_v29 = vld [vmem:[#allocation67_spill] sm:$0xff] }
 0xb05   :  { %4849 = vmatpush.msrb.mxu3 %v9737_v33  ;;  %4791 = vmatpush.msra.mxu0 %v9727_v37 }
 0xb06   :  { %6710 = vtanh.f32 %v4206_v49  ;;  %v4195_v41 = vsel %vm4194_vm15, %v9836_v31, %v4191_v40  ;;  %4811 = vmatpush.msrb.mxu1 %v9729_v8  ;;  %4834 = vmatpush.msrb.mxu2 %v11314_v51  ;;  %v11319_v49 = vld [vmem:[#allocation45_spill] sm:$0xff]  ;;  %v11320_v40 = vld [vmem:[#allocation66_spill] sm:$0xff] }
 0xb07   :  { %v4200_v5 = vsel %vm4197_vm0, %v4199_v59, %v4195_v41  ;;  %4850 = vmatpush.msrb.mxu3 %v9749_v53  ;;  %4792 = vmatpush.msra.mxu0 %v9741_v43 }
 0xb08   :  { %4812 = vmatpush.msrb.mxu1 %v11306_v62  ;;  %4835 = vmatpush.msrb.mxu2 %v11317_v23 }
 0xb09   :  { %4851 = vmatpush.msrb.mxu3 %v9763_v6  ;;  %4793 = vmatpush.msra.mxu0 %v11309_v7 }
 0xb0a   :  { %4813 = vmatpush.msrb.mxu1 %v11310_v2  ;;  %4836 = vmatpush.msrb.mxu2 %v11320_v40 }
 0xb0b   :  { %4852 = vmatpush.msrb.mxu3 %v11308_v10  ;;  %4794 = vmatpush.msra.mxu0 %v11312_v57 }
 0xb0c   :  { %v6711_v27 = vpop.eup %6710  ;;  %4814 = vmatpush.msrb.mxu1 %v11313_v21 }
 0xb0d   :  { %v4208_v31 = vmul.f32 %v6711_v27, %v4200_v5  ;;  %4853 = vmatpush.msrb.mxu3 %v9789_v17  ;;  %4795 = vmatpush.msra.mxu0 %v9783_v35 }
 0xb0e   :  { %4815 = vmatpush.msrb.mxu1 %v11316_v19 }
 0xb0f   :  { %4331 = vmatmul.f32.gmra.mxu0 %v4208_v31  ;;  %4372 = vmatmul.f32.gmra.mxu1 %v4208_v31 }
 0xb10   :  { %4413 = vmatmul.f32.gmra.mxu2 %v4208_v31  ;;  %4454 = vmatmul.f32.gmra.mxu3 %v4208_v31 }
 0xb11   :  { %4854 = vmatpush.msrb.mxu3 %v9803_v58  ;;  %4796 = vmatpush.msra.mxu0 %v11318_v29 }
 0xb12   :  { %4816 = vmatpush.msrb.mxu1 %v11319_v49 }
 0xb13   :  { %4855 = vmatpush.msrb.mxu3 %v9813_v42 }
 0xb15   :  { %4856 = vmatpush.msrb.mxu3 %v9820_v0 }
 0xb17   :  { %4577 = vmatmul.f32.vlgmr.msrb.gmra.mxu0 %v11315_v3  ;;  %4597 = vmatmul.f32.vlgmr.msra.gmra.mxu1 %v11315_v3 }
 0xb18   :  { %4617 = vmatmul.f32.vlgmr.msra.gmra.mxu2 %v11315_v3  ;;  %4637 = vmatmul.f32.vlgmr.msra.gmra.mxu3 %v11315_v3 }
 0xb19   :  { %5061 = vmatpush.msra.mxu3 %v9637_v46  ;;  %v4311_v46 = vpop.f32.mrf.mxu0 }
 0xb1b   :  { %5062 = vmatpush.msra.mxu3 %v9640_v9  ;;  %v4352_v9 = vpop.f32.mrf.mxu1 }
 0xb1d   :  { %5063 = vmatpush.msra.mxu3 %v9645_v22  ;;  %v4393_v22 = vpop.f32.mrf.mxu2 }
 0xb1f   :  { %5064 = vmatpush.msra.mxu3 %v9661_v52 }
 0xb21   :  { %5065 = vmatpush.msra.mxu3 %v9669_v18  ;;  %v9928_v52 = vpop.f32.mrf.mxu0 }
 0xb23   :  { %5066 = vmatpush.msra.mxu3 %v9685_v13  ;;  %v9930_v18 = vpop.f32.mrf.mxu1  ;;  %v4434_v13 = vpop.f32.mrf.mxu3 }
 0xb25   :  { %5067 = vmatpush.msra.mxu3 %v9697_v32  ;;  %v9932_v32 = vpop.f32.mrf.mxu2 }
 0xb27   :  { %5068 = vmatpush.msra.mxu3 %v9731_v15 }
 0xb29   :  { %5069 = vmatpush.msra.mxu3 %v9737_v33  ;;  %v9934_v15 = vpop.f32.mrf.mxu0 }
 0xb2a   :  { %11321 = vst [vmem:[#allocation64_spill] sm:$0xff] %v9934_v15 }
 0xb2b   :  { %5070 = vmatpush.msra.mxu3 %v9749_v53  ;;  %v9936_v33 = vpop.f32.mrf.mxu1  ;;  %v9938_v53 = vpop.f32.mrf.mxu3 }
 0xb2c   :  { %11322 = vst [vmem:[#allocation25_spill] sm:$0xff] %v9936_v33 }
 0xb2d   :  { %5071 = vmatpush.msra.mxu3 %v9763_v6  ;;  %11323 = vst [vmem:[#allocation51_spill] sm:$0xff] %v9938_v53  ;;  %v9940_v6 = vpop.f32.mrf.mxu2 }
 0xb2e   :  { %11324 = vst [vmem:[#allocation68_spill] sm:$0xff] %v9940_v6 }
 0xb2f   :  { %5072 = vmatpush.msra.mxu3 %v11308_v10 }
 0xb31   :  { %5073 = vmatpush.msra.mxu3 %v9789_v17 }
 0xb33   :  { %5074 = vmatpush.msra.mxu3 %v9803_v58  ;;  %v9942_v58 = vpop.f32.mrf.mxu0  ;;  %v9946_v17 = vpop.f32.mrf.mxu3 }
 0xb34   :  { %11325 = vst [vmem:[#allocation50_spill] sm:$0xff] %v9942_v58 }
 0xb35   :  { %5075 = vmatpush.msra.mxu3 %v9813_v42  ;;  %11327 = vst [vmem:[#allocation41_spill] sm:$0xff] %v9946_v17  ;;  %v9948_v42 = vpop.f32.mrf.mxu2 }
 0xb36   :  { %11328 = vst [vmem:[#allocation27_spill] sm:$0xff] %v9948_v42 }
 0xb37   :  { %5076 = vmatpush.msra.mxu3 %v9820_v0  ;;  %v9944_v0 = vpop.f32.mrf.mxu1 }
 0xb38   :  { %11326 = vst [vmem:[#allocation52_spill] sm:$0xff] %v9944_v0 }
 0xb3b   :  { %v9950_v34 = vpop.f32.mrf.mxu0  ;;  %v9954_v41 = vpop.f32.mrf.mxu3 }
 0xb3c   :  { %11329 = vst [vmem:[#allocation29_spill] sm:$0xff] %v9950_v34 }
 0xb3d   :  { %11331 = vst [vmem:[#allocation32_spill] sm:$0xff] %v9954_v41  ;;  %v9956_v59 = vpop.f32.mrf.mxu2 }
 0xb3e   :  { %11332 = vst [vmem:[#allocation28_spill] sm:$0xff] %v9956_v59  ;;  %v4284_v59 = vld [vmem:[%s10811_s9] sm:$0xf] }
 0xb3f   :  { %v9952_v4 = vpop.f32.mrf.mxu1  ;;  %v9991_v6 = vperm.slane %v4284_v59, 2 }
 0xb40   :  { %11330 = vst [vmem:[#allocation30_spill] sm:$0xff] %v9952_v4 }
 0xb41   :  { %11347 = vst [vmem:[#allocation46_spill] sm:$0xff] %v9991_v6  ;;  %v4394_v33 = vadd.f32 %v4393_v22, %v9991_v6 }
 0xb43   :  { %v9958_v27 = vpop.f32.mrf.mxu0  ;;  %v9962_v31 = vpop.f32.mrf.mxu3 }
 0xb44   :  { %11333 = vst [vmem:[#allocation31_spill] sm:$0xff] %v9958_v27 }
 0xb45   :  { %11335 = vst [vmem:[#allocation36_spill] sm:$0xff] %v9962_v31  ;;  %v9964_v10 = vpop.f32.mrf.mxu2  ;;  %v9983_v31 = vperm.slane %v4284_v59, 1 }
 0xb46   :  { %11336 = vst [vmem:[#allocation42_spill] sm:$0xff] %v9964_v10 }
 0xb47   :  { %v9960_v5 = vpop.f32.mrf.mxu1  ;;  %11344 = vst [vmem:[#allocation43_spill] sm:$0xff] %v9983_v31 }
 0xb48   :  { %11334 = vst [vmem:[#allocation33_spill] sm:$0xff] %v9960_v5  ;;  %v9981_v5 = vperm.slane %v4284_v59, 0 }
 0xb4a   :  { %11343 = vst [vmem:[#allocation40_spill] sm:$0xff] %v9981_v5 }
 0xb4b   :  { %v9966_v3 = vpop.f32.mrf.mxu0  ;;  %v9970_v42 = vpop.f32.mrf.mxu3 }
 0xb4c   :  { %11337 = vst [vmem:[#allocation35_spill] sm:$0xff] %v9966_v3  ;;  %v4312_v3 = vadd.f32 %v4311_v46, %v9981_v5 }
 0xb4d   :  { %11339 = vst [vmem:[#allocation24_spill] sm:$0xff] %v9970_v42  ;;  %v9972_v34 = vpop.f32.mrf.mxu2 }
 0xb4e   :  { %11340 = vst [vmem:[#allocation63_spill] sm:$0xff] %v9972_v34 }
 0xb4f   :  { %v9968_v0 = vpop.f32.mrf.mxu1 }
 0xb50   :  { %11338 = vst [vmem:[#allocation47_spill] sm:$0xff] %v9968_v0  ;;  %v4353_v0 = vadd.f32 %v4352_v9, %v9983_v31 }
 0xb53   :  { %v9987_v10 = vpop.f32.mrf.mxu3 }
 0xb54   :  { %11345 = vst [vmem:[#allocation61_spill] sm:$0xff] %v9987_v10 }
 0xb8c   :  { %v9977_v4 = vpop.f32.mrf.mxu0  ;;  %v9979_v27 = vpop.f32.mrf.mxu1 }
 0xb8d   :  { %11341 = vst [vmem:[#allocation37_spill] sm:$0xff] %v9977_v4 }
 0xb8e   :  { %11342 = vst [vmem:[#allocation49_spill] sm:$0xff] %v9979_v27 }
 0xb93   :  { %v9989_v42 = vpop.f32.mrf.mxu2  ;;  %v9994_v15 = vpop.f32.mrf.mxu3 }
 0xb94   :  { %11346 = vst [vmem:[#allocation26_spill] sm:$0xff] %v9989_v42  ;;  %v4578_v34 = vpop.f32.mrf.mxu0  ;;  %v4598_v41 = vpop.f32.mrf.mxu1 }
 0xb95   :  { %v4641_v58 = vadd.f32 %v4578_v34, %v4312_v3  ;;  %v4642_v17 = vadd.f32 %v4598_v41, %v4353_v0  ;;  %11348 = vst [vmem:[#allocation44_spill] sm:$0xff] %v9994_v15  ;;  %v9996_v34 = vperm.slane %v4284_v59, 3 }
 0xb97   :  { %v6416_v4 = vmul.f32 -1.442695, %v4641_v58  ;;  %v6417_v27 = vmul.f32 -1.442695, %v4642_v17  ;;  %11349 = vst [vmem:[#allocation39_spill] sm:$0xff] %v9996_v34  ;;  %v4435_v17 = vadd.f32 %v4434_v13, %v9996_v34 }
 0xb99   :  { %6712 = vpow2.f32 %v6416_v4 }
 0xb9a   :  { %6714 = vpow2.f32 %v6417_v27 }
 0xb9b   :  { %v4618_v46 = vpop.f32.mrf.mxu2  ;;  %v4638_v58 = vpop.f32.mrf.mxu3 }
 0xb9c   :  { %v4643_v9 = vadd.f32 %v4618_v46, %v4394_v33  ;;  %v4644_v41 = vadd.f32 %v4638_v58, %v4435_v17 }
 0xb9e   :  { %v6418_v53 = vmul.f32 -1.442695, %v4643_v9 }
 0xb9f   :  { %v6713_v10 = vpop.eup %6712 }
 0xba0   :  { %v6715_v40 = vpop.eup %6714  ;;  %v4654_v42 = vadd.f32 1.0, %v6713_v10  ;;  %6716 = vpow2.f32 %v6418_v53 }
 0xba1   :  { %v4655_v49 = vadd.f32 1.0, %v6715_v40 }
 0xba2   :  { %6718 = vrcp.f32 %v4654_v42  ;;  %v4668_v10 = vand.u32 2147483648, %v4654_v42  ;;  %v4666_v59 = vand.u32 2147483647, %v4654_v42  ;;  %vm4662_vm3 = vweird.f32 %v4654_v42 }
 0xba3   :  { %6720 = vrcp.f32 %v4655_v49  ;;  %v4683_v40 = vand.u32 2147483648, %v4655_v49  ;;  %v4681_v29 = vand.u32 2147483647, %v4655_v49  ;;  %vm4677_vm4 = vweird.f32 %v4655_v49 }
 0xba4   :  { %vm4667_vm6 = vcmp.eq.f32.partialorder %v4666_v59, 8.507059e+37  ;;  %v10028_v59 = vld [vmem:[#allocation14 + $0x1a8] sm:$0xff] }
 0xba5   :  { %v4684_v34 = vor.u32 1.1754944e-38, %v4683_v40  ;;  %vm4682_vm8 = vcmp.eq.f32.partialorder %v4681_v29, 8.507059e+37 }
 0xba6   :  { %v6717_v0 = vpop.eup %6716 }
 0xba7   :  { %v4656_v22 = vadd.f32 1.0, %v6717_v0  ;;  %v4669_v0 = vor.u32 1.1754944e-38, %v4668_v10 }
 0xba8   :  { %v6719_v4 = vpop.eup %6718 }
 0xba9   :  { %v6721_v27 = vpop.eup %6720  ;;  %v4658_v3 = vmul.f32 %v6719_v4, %v4654_v42  ;;  %6722 = vrcp.f32 %v4656_v22  ;;  %vm4663_vm1 = vweird.f32 %v6719_v4  ;;  %v4698_v42 = vand.u32 2147483648, %v4656_v22 }
 0xbaa   :  { %v4673_v33 = vmul.f32 %v6721_v27, %v4655_v49  ;;  %6724 = vtanh.f32 %v4644_v41  ;;  %vm4678_vm2 = vweird.f32 %v6721_v27  ;;  %vm4664_vm5 = vmor %vm4662_vm3, %vm4663_vm1  ;;  %vm4692_vm10 = vweird.f32 %v4656_v22 }
 0xbab   :  { %v4659_v46 = vsub.f32 1.0, %v4658_v3  ;;  %vm4679_vm7 = vmor %vm4677_vm4, %vm4678_vm2  ;;  %v4699_v10 = vor.u32 1.1754944e-38, %v4698_v42 }
 0xbac   :  { %v4674_v9 = vsub.f32 1.0, %v4673_v33 }
 0xbad   :  { %v4660_v53 = vmul.f32 %v6719_v4, %v4659_v46 }
 0xbae   :  { %v4675_v15 = vmul.f32 %v6721_v27, %v4674_v9 }
 0xbaf   :  { %v6723_v23 = vpop.eup %6722  ;;  %v4661_v13 = vadd.f32 %v6719_v4, %v4660_v53 }
 0xbb0   :  { %v4688_v58 = vmul.f32 %v6723_v23, %v4656_v22  ;;  %v4676_v17 = vadd.f32 %v6721_v27, %v4675_v15  ;;  %v6725_v41 = vpop.eup %6724  ;;  %vm4693_vm9 = vweird.f32 %v6723_v23  ;;  %v4696_v15 = vand.u32 2147483647, %v4656_v22  ;;  %v10026_v22 = vld [vmem:[#allocation14 + $0x1a0] sm:$0xff] }
 0xbb1   :  { %v4665_v3 = vsel %vm4664_vm5, %v6719_v4, %v4661_v13  ;;  %vm4694_vm11 = vmor %vm4692_vm10, %vm4693_vm9 }
 0xbb2   :  { %v4689_v33 = vsub.f32 1.0, %v4688_v58  ;;  %v4670_v46 = vsel %vm4667_vm6, %v4669_v0, %v4665_v3  ;;  %v4680_v19 = vsel %vm4679_vm7, %v6721_v27, %v4676_v17  ;;  %vm4697_vm12 = vcmp.eq.f32.partialorder %v4696_v15, 8.507059e+37 }
 0xbb3   :  { %v4685_v9 = vsel %vm4682_vm8, %v4684_v34, %v4680_v19  ;;  %v4705_v35 = vmul.f32 %v6725_v41, %v4670_v46  ;;  %v10017_v19 = vld [vmem:[#allocation14 + $0x1c0] sm:$0xff]  ;;  %v10021_v34 = vld [vmem:[#allocation14 + $0x1d0] sm:$0xff] }
 0xbb4   :  { %v4690_v51 = vmul.f32 %v6723_v23, %v4689_v33  ;;  %v4704_v21 = vmul.f32 0.0, %v4685_v9 }
 0xbb6   :  { %v9999_v53 = vadd.f32 %v4705_v35, %v4704_v21  ;;  %v4691_v49 = vadd.f32 %v6723_v23, %v4690_v51  ;;  %v10008_v35 = vld [vmem:[#allocation14 + $0x1e0] sm:$0xff]  ;;  %v10010_v21 = vld [vmem:[#allocation14 + $0x1e8] sm:$0xff]  ;;  %v10012_v51 = vld [vmem:[#allocation14 + $0x1f0] sm:$0xff] }
 0xbb7   :  { %5001 = vmatpush.msrb.mxu0 %v10008_v35  ;;  %5021 = vmatpush.msra.mxu1 %v10010_v21 }
 0xbb8   :  { %6726 = vtanh.f32 %v9999_v53  ;;  %v4695_v4 = vsel %vm4694_vm11, %v6723_v23, %v4691_v49  ;;  %5041 = vmatpush.msra.mxu2 %v10012_v51  ;;  %v10019_v23 = vld [vmem:[#allocation14 + $0x1c8] sm:$0xff] }
 0xbb9   :  { %v4700_v27 = vsel %vm4697_vm12, %v4699_v10, %v4695_v4  ;;  %5002 = vmatpush.msrb.mxu0 %v10017_v19  ;;  %5022 = vmatpush.msra.mxu1 %v10019_v23 }
 0xbba   :  { %5042 = vmatpush.msra.mxu2 %v10021_v34 }
 0xbbb   :  { %5003 = vmatpush.msrb.mxu0 %v10026_v22  ;;  %5023 = vmatpush.msra.mxu1 %v10028_v59 }
 0xbbc   :  { %5043 = vmatpush.msra.mxu2 %v9643_v45  ;;  %v4315_v45 = vadd.f32 %v9928_v52, %v9981_v5 }
 0xbbd   :  { %5004 = vmatpush.msrb.mxu0 %v9647_v26  ;;  %5024 = vmatpush.msra.mxu1 %v9649_v14  ;;  %v4356_v26 = vadd.f32 %v9930_v18, %v9983_v31 }
 0xbbe   :  { %v6727_v40 = vpop.eup %6726  ;;  %5044 = vmatpush.msra.mxu2 %v9659_v61 }
 0xbbf   :  { %v10002_v29 = vmul.f32 %v6727_v40, %v4700_v27  ;;  %5005 = vmatpush.msrb.mxu0 %v9652_v50  ;;  %5025 = vmatpush.msra.mxu1 %v9657_v36 }
 0xbc0   :  { %5045 = vmatpush.msra.mxu2 %v9667_v24 }
 0xbc1   :  { %11350 = vst [vmem:[#allocation62_spill] sm:$0xff] %v10002_v29  ;;  %4797 = vmatmul.f32.vlgmr.msra.gmra.mxu0 %v10002_v29  ;;  %4817 = vmatmul.f32.vlgmr.msrb.gmra.mxu1 %v10002_v29 }
 0xbc2   :  { %4837 = vmatmul.f32.vlgmr.msrb.gmra.mxu2 %v10002_v29  ;;  %4857 = vmatmul.f32.vlgmr.msrb.gmra.mxu3 %v10002_v29  ;;  %v10250_v29 = vld [vmem:[#allocation14 + $0x30] sm:$0xff] }
 0xbc3   :  { %5006 = vmatpush.msrb.mxu0 %v9677_v12  ;;  %5026 = vmatpush.msra.mxu1 %v9679_v39  ;;  %v4397_v39 = vadd.f32 %v9932_v32, %v9991_v6 }
 0xbc4   :  { %5046 = vmatpush.msra.mxu2 %v9681_v25 }
 0xbc5   :  { %5007 = vmatpush.msrb.mxu0 %v9687_v44  ;;  %5027 = vmatpush.msra.mxu1 %v9689_v56  ;;  %v11351_v56 = vld [vmem:[#allocation58_spill] sm:$0xff] }
 0xbc6   :  { %5047 = vmatpush.msra.mxu2 %v9692_v47 }
 0xbc7   :  { %5008 = vmatpush.msrb.mxu0 %v9699_v38  ;;  %5028 = vmatpush.msra.mxu1 %v9701_v55  ;;  %v11352_v38 = vld [vmem:[#allocation23_spill] sm:$0xff] }
 0xbc8   :  { %5048 = vmatpush.msra.mxu2 %v9711_v16 }
 0xbc9   :  { %5009 = vmatpush.msrb.mxu0 %v9707_v60  ;;  %5029 = vmatpush.msra.mxu1 %v9709_v20  ;;  %v11353_v60 = vld [vmem:[#allocation34_spill] sm:$0xff] }
 0xbca   :  { %5049 = vmatpush.msra.mxu2 %v9718_v54  ;;  %v11354_v20 = vld [vmem:[#allocation38_spill] sm:$0xff] }
 0xbcb   :  { %5010 = vmatpush.msrb.mxu0 %v9714_v63  ;;  %5030 = vmatpush.msra.mxu1 %v9716_v11  ;;  %v11355_v11 = vld [vmem:[#allocation48_spill] sm:$0xff] }
 0xbcc   :  { %5050 = vmatpush.msra.mxu2 %v9724_v1  ;;  %v11356_v1 = vld [vmem:[#allocation67_spill] sm:$0xff] }
 0xbcd   :  { %5011 = vmatpush.msrb.mxu0 %v9727_v37  ;;  %5031 = vmatpush.msra.mxu1 %v9729_v8  ;;  %v11357_v37 = vld [vmem:[#allocation45_spill] sm:$0xff]  ;;  %v11358_v8 = vld [vmem:[#allocation66_spill] sm:$0xff] }
 0xbce   :  { %5051 = vmatpush.msra.mxu2 %v9735_v30 }
 0xbcf   :  { %5012 = vmatpush.msrb.mxu0 %v9741_v43  ;;  %5032 = vmatpush.msra.mxu1 %v11306_v62  ;;  %v11359_v62 = vld [vmem:[#allocation39_spill] sm:$0xff] }
 0xbd0   :  { %5052 = vmatpush.msra.mxu2 %v11307_v28  ;;  %v11360_v28 = vld [vmem:[#allocation51_spill] sm:$0xff] }
 0xbd1   :  { %5013 = vmatpush.msrb.mxu0 %v11309_v7  ;;  %5033 = vmatpush.msra.mxu1 %v11310_v2  ;;  %v4438_v7 = vadd.f32 %v11360_v28, %v11359_v62  ;;  %v10130_v28 = vld [vmem:[#allocation14 + $0x178] sm:$0xff] }
 0xbd2   :  { %5053 = vmatpush.msra.mxu2 %v11311_v48 }
 0xbd3   :  { %5014 = vmatpush.msrb.mxu0 %v11312_v57  ;;  %5034 = vmatpush.msra.mxu1 %v11351_v56 }
 0xbd4   :  { %5054 = vmatpush.msra.mxu2 %v11352_v38 }
 0xbd5   :  { %5015 = vmatpush.msrb.mxu0 %v11353_v60  ;;  %5035 = vmatpush.msra.mxu1 %v11354_v20  ;;  %v10101_v20 = vld [vmem:[#allocation14 + $0x1d8] sm:$0xff] }
 0xbd6   :  { %5055 = vmatpush.msra.mxu2 %v11355_v11  ;;  %v10110_v11 = vld [vmem:[#allocation14 + $0x180] sm:$0xff] }
 0xbd7   :  { %5016 = vmatpush.msrb.mxu0 %v11356_v1  ;;  %5036 = vmatpush.msra.mxu1 %v11357_v37  ;;  %v10114_v1 = vld [vmem:[#allocation14 + $0x190] sm:$0xff]  ;;  %v10118_v37 = vld [vmem:[#allocation14 + $0x198] sm:$0xff] }
 0xbd8   :  { %5056 = vmatpush.msra.mxu2 %v11358_v8  ;;  %v10122_v8 = vld [vmem:[#allocation14 + $0x160] sm:$0xff] }
 0xbd9   :  { %5221 = vmatpush.msra.mxu0 %v10008_v35  ;;  %5241 = vmatpush.msrb.mxu1 %v10010_v21 }
 0xbda   :  { %5261 = vmatpush.msrb.mxu2 %v10012_v51 }
 0xbdb   :  { %5222 = vmatpush.msra.mxu0 %v10017_v19  ;;  %5242 = vmatpush.msrb.mxu1 %v10019_v23 }
 0xbdc   :  { %5262 = vmatpush.msrb.mxu2 %v10021_v34 }
 0xbdd   :  { %5223 = vmatpush.msra.mxu0 %v10026_v22  ;;  %5243 = vmatpush.msrb.mxu1 %v10028_v59 }
 0xbdf   :  { %5224 = vmatpush.msra.mxu0 %v10110_v11 }
 0xbe1   :  { %5225 = vmatpush.msra.mxu0 %v10122_v8 }
 0xc3e   :  { %v4798_v14 = vpop.f32.mrf.mxu0  ;;  %v4818_v50 = vpop.f32.mrf.mxu1 }
 0xc3f   :  { %v4861_v36 = vadd.f32 %v4798_v14, %v4315_v45  ;;  %v4862_v61 = vadd.f32 %v4818_v50, %v4356_v26 }
 0xc41   :  { %v6419_v24 = vmul.f32 -1.442695, %v4861_v36  ;;  %v6420_v12 = vmul.f32 -1.442695, %v4862_v61 }
 0xc43   :  { %6728 = vpow2.f32 %v6419_v24 }
 0xc44   :  { %6730 = vpow2.f32 %v6420_v12 }
 0xc45   :  { %v4838_v25 = vpop.f32.mrf.mxu2  ;;  %v4858_v30 = vpop.f32.mrf.mxu3 }
 0xc46   :  { %v4863_v44 = vadd.f32 %v4838_v25, %v4397_v39  ;;  %v4864_v57 = vadd.f32 %v4858_v30, %v4438_v7  ;;  %v10124_v30 = vld [vmem:[#allocation14 + $0x168] sm:$0xff]  ;;  %v10134_v7 = vld [vmem:[#allocation14 + $0x140] sm:$0xff] }
 0xc47   :  { %5226 = vmatpush.msra.mxu0 %v10134_v7 }
 0xc48   :  { %v6421_v47 = vmul.f32 -1.442695, %v4863_v44 }
 0xc49   :  { %v6729_v55 = vpop.eup %6728 }
 0xc4a   :  { %v6731_v16 = vpop.eup %6730  ;;  %v4874_v63 = vadd.f32 1.0, %v6729_v55  ;;  %6732 = vpow2.f32 %v6421_v47 }
 0xc4b   :  { %v4875_v54 = vadd.f32 1.0, %v6731_v16  ;;  %v10104_v16 = vld [vmem:[#allocation14 + $0x1b0] sm:$0xff] }
 0xc4c   :  { %6734 = vrcp.f32 %v4874_v63  ;;  %v4888_v0 = vand.u32 2147483648, %v4874_v63  ;;  %v4886_v41 = vand.u32 2147483647, %v4874_v63  ;;  %vm4882_vm15 = vweird.f32 %v4874_v63  ;;  %5263 = vmatpush.msrb.mxu2 %v10104_v16 }
 0xc4d   :  { %6736 = vrcp.f32 %v4875_v54  ;;  %v4903_v17 = vand.u32 2147483648, %v4875_v54  ;;  %v4901_v46 = vand.u32 2147483647, %v4875_v54  ;;  %vm4897_vm0 = vweird.f32 %v4875_v54 }
 0xc4e   :  { %v4889_v15 = vor.u32 1.1754944e-38, %v4888_v0  ;;  %vm4887_vm3 = vcmp.eq.f32.partialorder %v4886_v41, 8.507059e+37  ;;  %5264 = vmatpush.msrb.mxu2 %v10114_v1  ;;  %v10160_v0 = vld [vmem:[#allocation14 + $0x108] sm:$0xff]  ;;  %v10170_v41 = vld [vmem:[#allocation14 + $0xe0] sm:$0xff] }
 0xc4f   :  { %v4904_v10 = vor.u32 1.1754944e-38, %v4903_v17  ;;  %vm4902_vm4 = vcmp.eq.f32.partialorder %v4901_v46, 8.507059e+37  ;;  %v10162_v17 = vld [vmem:[#allocation14 + $0x110] sm:$0xff] }
 0xc50   :  { %v6733_v43 = vpop.eup %6732  ;;  %v10174_v46 = vld [vmem:[#allocation14 + $0xf0] sm:$0xff] }
 0xc51   :  { %v4876_v2 = vadd.f32 1.0, %v6733_v43  ;;  %v10126_v43 = vld [vmem:[#allocation14 + $0x170] sm:$0xff] }
 0xc52   :  { %v6735_v48 = vpop.eup %6734  ;;  %11362 = vst [vmem:[#allocation53_spill] sm:$0xff] %v10126_v43  ;;  %5265 = vmatpush.msrb.mxu2 %v10126_v43 }
 0xc53   :  { %v6737_v52 = vpop.eup %6736  ;;  %v4878_v18 = vmul.f32 %v6735_v48, %v4874_v63  ;;  %6738 = vrcp.f32 %v4876_v2  ;;  %vm4883_vm13 = vweird.f32 %v6735_v48  ;;  %v4918_v25 = vand.u32 2147483648, %v4876_v2  ;;  %v10106_v63 = vld [vmem:[#allocation14 + $0x1b8] sm:$0xff] }
 0xc54   :  { %v4893_v32 = vmul.f32 %v6737_v52, %v4875_v54  ;;  %6740 = vtanh.f32 %v4864_v57  ;;  %vm4898_vm14 = vweird.f32 %v6737_v52  ;;  %vm4884_vm1 = vmor %vm4882_vm15, %vm4883_vm13  ;;  %vm4912_vm6 = vweird.f32 %v4876_v2  ;;  %v10112_v54 = vld [vmem:[#allocation14 + $0x188] sm:$0xff]  ;;  %v10142_v57 = vld [vmem:[#allocation14 + $0x158] sm:$0xff] }
 0xc55   :  { %v4879_v13 = vsub.f32 1.0, %v4878_v18  ;;  %vm4899_vm2 = vmor %vm4897_vm0, %vm4898_vm14  ;;  %v4916_v44 = vand.u32 2147483647, %v4876_v2  ;;  %v4919_v47 = vor.u32 1.1754944e-38, %v4918_v25  ;;  %5244 = vmatpush.msrb.mxu1 %v10112_v54  ;;  %v10148_v18 = vld [vmem:[#allocation14 + $0x128] sm:$0xff] }
 0xc56   :  { %v4894_v58 = vsub.f32 1.0, %v4893_v32  ;;  %11366 = vst [vmem:[#allocation55_spill] sm:$0xff] %v10148_v18  ;;  %v10150_v32 = vld [vmem:[#allocation14 + $0x130] sm:$0xff] }
 0xc57   :  { %v4880_v3 = vmul.f32 %v6735_v48, %v4879_v13  ;;  %vm4917_vm8 = vcmp.eq.f32.partialorder %v4916_v44, 8.507059e+37  ;;  %5245 = vmatpush.msrb.mxu1 %v10124_v30  ;;  %v10154_v13 = vld [vmem:[#allocation14 + $0x138] sm:$0xff] }
 0xc58   :  { %v4895_v33 = vmul.f32 %v6737_v52, %v4894_v58  ;;  %v10158_v58 = vld [vmem:[#allocation14 + $0x100] sm:$0xff] }
 0xc59   :  { %v6739_v9 = vpop.eup %6738  ;;  %v4881_v49 = vadd.f32 %v6735_v48, %v4880_v3  ;;  %v10166_v3 = vld [vmem:[#allocation14 + $0x118] sm:$0xff] }
 0xc5a   :  { %v4908_v42 = vmul.f32 %v6739_v9, %v4876_v2  ;;  %v4896_v4 = vadd.f32 %v6737_v52, %v4895_v33  ;;  %v6741_v27 = vpop.eup %6740  ;;  %vm4913_vm5 = vweird.f32 %v6739_v9  ;;  %v10136_v2 = vld [vmem:[#allocation14 + $0x148] sm:$0xff] }
 0xc5b   :  { %v4885_v40 = vsel %vm4884_vm1, %v6735_v48, %v4881_v49  ;;  %vm4914_vm7 = vmor %vm4912_vm6, %vm4913_vm5  ;;  %11363 = vst [vmem:[#allocation54_spill] sm:$0xff] %v10136_v2  ;;  %v10138_v48 = vld [vmem:[#allocation14 + $0x150] sm:$0xff]  ;;  %5246 = vmatpush.msrb.mxu1 %v10136_v2  ;;  %v10172_v33 = vld [vmem:[#allocation14 + $0xe8] sm:$0xff] }
 0xc5c   :  { %v4909_v45 = vsub.f32 1.0, %v4908_v42  ;;  %v4890_v26 = vsel %vm4887_vm3, %v4889_v15, %v4885_v40  ;;  %v4900_v14 = vsel %vm4899_vm2, %v6737_v52, %v4896_v4  ;;  %11364 = vst [vmem:[#allocation59_spill] sm:$0xff] %v10138_v48  ;;  %5266 = vmatpush.msrb.mxu2 %v10138_v48  ;;  %v10146_v52 = vld [vmem:[#allocation14 + $0x120] sm:$0xff]  ;;  %v11368_v42 = vld [vmem:[#allocation25_spill] sm:$0xff] }
 0xc5d   :  { %v4905_v50 = vsel %vm4902_vm4, %v4904_v10, %v4900_v14  ;;  %v4925_v36 = vmul.f32 %v6741_v27, %v4890_v26  ;;  %11365 = vst [vmem:[#allocation60_spill] sm:$0xff] %v10146_v52  ;;  %5227 = vmatpush.msra.mxu0 %v10146_v52  ;;  %5247 = vmatpush.msrb.mxu1 %v10148_v18  ;;  %v10182_v4 = vld [vmem:[#allocation14 + $0xf8] sm:$0xff]  ;;  %v10186_v27 = vld [vmem:[#allocation14 + $0xc0] sm:$0xff]  ;;  %v10190_v26 = vld [vmem:[#allocation14 + $0xd0] sm:$0xff] }
 0xc5e   :  { %v4910_v61 = vmul.f32 %v6739_v9, %v4909_v45  ;;  %v4924_v24 = vmul.f32 %v4905_v50, %v9999_v53  ;;  %v10098_v53 = vld [vmem:[#allocation14 + $0x1f8] sm:$0xff]  ;;  %5267 = vmatpush.msrb.mxu2 %v10150_v32  ;;  %v4359_v15 = vadd.f32 %v11368_v42, %v9983_v31  ;;  %v10188_v45 = vld [vmem:[#allocation14 + $0xc8] sm:$0xff] }
 0xc5f   :  { %5281 = vmatpush.msrb.mxu3 %v10098_v53  ;;  %5228 = vmatpush.msra.mxu0 %v10158_v58  ;;  %v10222_v42 = vld [vmem:[#allocation14 + $0x68] sm:$0xff] }
 0xc60   :  { %v10089_v12 = vadd.f32 %v4925_v36, %v4924_v24  ;;  %v4911_v39 = vadd.f32 %v6739_v9, %v4910_v61  ;;  %5248 = vmatpush.msrb.mxu1 %v10160_v0  ;;  %5268 = vmatpush.msrb.mxu2 %v10162_v17  ;;  %v10194_v36 = vld [vmem:[#allocation14 + $0xd8] sm:$0xff]  ;;  %v10198_v61 = vld [vmem:[#allocation14 + $0xa0] sm:$0xff]  ;;  %v10200_v24 = vld [vmem:[#allocation14 + $0xa8] sm:$0xff]  ;;  %11371 = vst [vmem:[#allocation58_spill] sm:$0xff] %v10222_v42 }
 0xc61   :  { %5282 = vmatpush.msrb.mxu3 %v10101_v20  ;;  %5229 = vmatpush.msra.mxu0 %v10170_v41  ;;  %v10236_v31 = vld [vmem:[#allocation14 + $0x48] sm:$0xff] }
 0xc62   :  { %6742 = vtanh.f32 %v10089_v12  ;;  %v4915_v56 = vsel %vm4914_vm7, %v6739_v9, %v4911_v39  ;;  %v11367_v9 = vld [vmem:[#allocation64_spill] sm:$0xff]  ;;  %5249 = vmatpush.msrb.mxu1 %v10172_v33  ;;  %5269 = vmatpush.msrb.mxu2 %v10174_v46  ;;  %11376 = vst [vmem:[#allocation48_spill] sm:$0xff] %v10236_v31 }
 0xc63   :  { %v4920_v55 = vsel %vm4917_vm8, %v4919_v47, %v4915_v56  ;;  %5283 = vmatpush.msrb.mxu3 %v10106_v63  ;;  %v4318_v49 = vadd.f32 %v11367_v9, %v9981_v5  ;;  %5230 = vmatpush.msra.mxu0 %v10186_v27  ;;  %v10202_v39 = vld [vmem:[#allocation14 + $0xb0] sm:$0xff]  ;;  %v10206_v56 = vld [vmem:[#allocation14 + $0xb8] sm:$0xff]  ;;  %v10210_v47 = vld [vmem:[#allocation14 + $0x80] sm:$0xff] }
 0xc64   :  { %5250 = vmatpush.msrb.mxu1 %v10188_v45  ;;  %5270 = vmatpush.msrb.mxu2 %v10190_v26  ;;  %v10218_v9 = vld [vmem:[#allocation14 + $0x98] sm:$0xff]  ;;  %v10238_v5 = vld [vmem:[#allocation14 + $0x50] sm:$0xff] }
 0xc65   :  { %5284 = vmatpush.msrb.mxu3 %v10118_v37  ;;  %5231 = vmatpush.msra.mxu0 %v10198_v61  ;;  %11369 = vst [vmem:[#allocation56_spill] sm:$0xff] %v10218_v9 }
 0xc66   :  { %5251 = vmatpush.msrb.mxu1 %v10200_v24  ;;  %5271 = vmatpush.msrb.mxu2 %v10202_v39 }
 0xc67   :  { %5285 = vmatpush.msrb.mxu3 %v10130_v28  ;;  %5232 = vmatpush.msra.mxu0 %v10210_v47 }
 0xc68   :  { %v6743_v38 = vpop.eup %6742 }
 0xc69   :  { %v10092_v60 = vmul.f32 %v6743_v38, %v4920_v55  ;;  %5286 = vmatpush.msrb.mxu3 %v10142_v57  ;;  %v10212_v38 = vld [vmem:[#allocation14 + $0x88] sm:$0xff]  ;;  %v10214_v55 = vld [vmem:[#allocation14 + $0x90] sm:$0xff] }
 0xc6a   :  { %5252 = vmatpush.msrb.mxu1 %v10212_v38  ;;  %5272 = vmatpush.msrb.mxu2 %v10214_v55 }
 0xc6b   :  { %11361 = vst [vmem:[#allocation65_spill] sm:$0xff] %v10092_v60  ;;  %5017 = vmatmul.f32.vlgmr.msrb.gmra.mxu0 %v10092_v60  ;;  %5037 = vmatmul.f32.vlgmr.msra.gmra.mxu1 %v10092_v60 }
 0xc6c   :  { %5057 = vmatmul.f32.vlgmr.msra.gmra.mxu2 %v10092_v60  ;;  %5077 = vmatmul.f32.vlgmr.msra.gmra.mxu3 %v10092_v60  ;;  %v10246_v60 = vld [vmem:[#allocation14 + $0x28] sm:$0xff] }
 0xc6d   :  { %5287 = vmatpush.msrb.mxu3 %v10154_v13  ;;  %5253 = vmatpush.msrb.mxu1 %v10222_v42  ;;  %v10252_v42 = vld [vmem:[#allocation14 + $0x38] sm:$0xff] }
 0xc6f   :  { %5288 = vmatpush.msrb.mxu3 %v10166_v3  ;;  %5254 = vmatpush.msrb.mxu1 %v10236_v31  ;;  %v10264_v31 = vld [vmem:[#allocation14 + $0x18] sm:$0xff] }
 0xc71   :  { %5289 = vmatpush.msrb.mxu3 %v10182_v4  ;;  %5255 = vmatpush.msrb.mxu1 %v10246_v60 }
 0xc73   :  { %5290 = vmatpush.msrb.mxu3 %v10194_v36 }
 0xc75   :  { %5291 = vmatpush.msrb.mxu3 %v10206_v56 }
 0xc77   :  { %5292 = vmatpush.msrb.mxu3 %v10218_v9 }
 0xce8   :  { %v5018_v10 = vpop.f32.mrf.mxu0  ;;  %v5038_v40 = vpop.f32.mrf.mxu1 }
 0xce9   :  { %v5081_v14 = vadd.f32 %v5018_v10, %v4318_v49  ;;  %v5082_v50 = vadd.f32 %v5038_v40, %v4359_v15  ;;  %v10220_v49 = vld [vmem:[#allocation14 + $0x60] sm:$0xff]  ;;  %v11372_v15 = vld [vmem:[#allocation68_spill] sm:$0xff] }
 0xcea   :  { %11370 = vst [vmem:[#allocation57_spill] sm:$0xff] %v10220_v49  ;;  %v4400_v10 = vadd.f32 %v11372_v15, %v9991_v6  ;;  %v10228_v40 = vld [vmem:[#allocation14 + $0x70] sm:$0xff]  ;;  %5233 = vmatpush.msra.mxu0 %v10220_v49  ;;  %v10244_v6 = vld [vmem:[#allocation14 + $0x20] sm:$0xff] }
 0xceb   :  { %v6422_v25 = vmul.f32 -1.442695, %v5081_v14  ;;  %v6423_v44 = vmul.f32 -1.442695, %v5082_v50  ;;  %11373 = vst [vmem:[#allocation23_spill] sm:$0xff] %v10228_v40  ;;  %v10230_v14 = vld [vmem:[#allocation14 + $0x78] sm:$0xff]  ;;  %5273 = vmatpush.msrb.mxu2 %v10228_v40 }
 0xcec   :  { %11374 = vst [vmem:[#allocation34_spill] sm:$0xff] %v10230_v14  ;;  %v10232_v50 = vld [vmem:[#allocation14 + $0x40] sm:$0xff]  ;;  %5293 = vmatpush.msrb.mxu3 %v10230_v14 }
 0xced   :  { %6744 = vpow2.f32 %v6422_v25  ;;  %11375 = vst [vmem:[#allocation38_spill] sm:$0xff] %v10232_v50  ;;  %5234 = vmatpush.msra.mxu0 %v10232_v50  ;;  %5274 = vmatpush.msrb.mxu2 %v10238_v5  ;;  %v10262_v50 = vld [vmem:[#allocation14 + $0x10] sm:$0xff] }
 0xcee   :  { %6746 = vpow2.f32 %v6423_v44  ;;  %v10240_v44 = vld [vmem:[#allocation14 + $0x58] sm:$0xff]  ;;  %11377 = vst [vmem:[#allocation67_spill] sm:$0xff] %v10262_v50 }
 0xcef   :  { %v5058_v25 = vpop.f32.mrf.mxu2  ;;  %5294 = vmatpush.msrb.mxu3 %v10240_v44  ;;  %5235 = vmatpush.msra.mxu0 %v10244_v6 }
 0xcf0   :  { %v5083_v15 = vadd.f32 %v5058_v25, %v4400_v10  ;;  %v10256_v10 = vld [vmem:[#allocation14] sm:$0xff]  ;;  %v10258_v25 = vld [vmem:[#allocation14 + $0x8] sm:$0xff]  ;;  %5275 = vmatpush.msrb.mxu2 %v10250_v29 }
 0xcf1   :  { %5295 = vmatpush.msrb.mxu3 %v10252_v42  ;;  %5236 = vmatpush.msra.mxu0 %v10256_v10 }
 0xcf2   :  { %v6424_v49 = vmul.f32 -1.442695, %v5083_v15  ;;  %5256 = vmatpush.msrb.mxu1 %v10258_v25  ;;  %5276 = vmatpush.msrb.mxu2 %v10262_v50 }
 0xcf3   :  { %v6745_v14 = vpop.eup %6744  ;;  %5296 = vmatpush.msrb.mxu3 %v10264_v31  ;;  %5441 = vmatpush.msrb.mxu0 %v10008_v35 }
 0xcf4   :  { %v6747_v40 = vpop.eup %6746  ;;  %v10266_v9 = vadd.f32 1.0, %v6745_v14  ;;  %6748 = vpow2.f32 %v6424_v49  ;;  %5461 = vmatpush.msra.mxu1 %v10010_v21  ;;  %5481 = vmatpush.msra.mxu2 %v10012_v51  ;;  %v5078_v49 = vpop.f32.mrf.mxu3  ;;  %v11378_v14 = vld [vmem:[#allocation41_spill] sm:$0xff] }
 0xcf5   :  { %v10270_v15 = vadd.f32 1.0, %v6747_v40  ;;  %5501 = vmatpush.msra.mxu3 %v10098_v53  ;;  %5442 = vmatpush.msrb.mxu0 %v10017_v19  ;;  %v4441_v50 = vadd.f32 %v11378_v14, %v11359_v62 }
 0xcf6   :  { %6750 = vrcp.f32 %v10266_v9  ;;  %5462 = vmatpush.msra.mxu1 %v10019_v23  ;;  %5482 = vmatpush.msra.mxu2 %v10021_v34  ;;  %v5106_v14 = vand.u32 2147483647, %v10266_v9  ;;  %vm5102_vm11 = vweird.f32 %v10266_v9 }
 0xcf7   :  { %6752 = vrcp.f32 %v10270_v15  ;;  %5502 = vmatpush.msra.mxu3 %v10101_v20  ;;  %5443 = vmatpush.msrb.mxu0 %v10026_v22  ;;  %v5084_v51 = vadd.f32 %v5078_v49, %v4441_v50  ;;  %v5108_v50 = vand.u32 2147483648, %v10266_v9  ;;  %v5123_v49 = vand.u32 2147483648, %v10270_v15 }
 0xcf8   :  { %5463 = vmatpush.msra.mxu1 %v10028_v59  ;;  %5483 = vmatpush.msra.mxu2 %v10104_v16  ;;  %vm5117_vm12 = vweird.f32 %v10270_v15  ;;  %vm5107_vm15 = vcmp.eq.f32.partialorder %v5106_v14, 8.507059e+37  ;;  %v11381_v14 = vld [vmem:[#allocation58_spill] sm:$0xff] }
 0xcf9   :  { %5503 = vmatpush.msra.mxu3 %v10106_v63  ;;  %5444 = vmatpush.msrb.mxu0 %v10110_v11 }
 0xcfa   :  { %v6749_v40 = vpop.eup %6748  ;;  %5464 = vmatpush.msra.mxu1 %v10112_v54  ;;  %5484 = vmatpush.msra.mxu2 %v10114_v1 }
 0xcfb   :  { %v10288_v35 = vadd.f32 1.0, %v6749_v40  ;;  %5504 = vmatpush.msra.mxu3 %v10118_v37  ;;  %5445 = vmatpush.msrb.mxu0 %v10122_v8 }
 0xcfc   :  { %v6751_v21 = vpop.eup %6750  ;;  %5465 = vmatpush.msra.mxu1 %v10124_v30  ;;  %5485 = vmatpush.msra.mxu2 %v10126_v43 }
 0xcfd   :  { %v6753_v19 = vpop.eup %6752  ;;  %v5098_v23 = vmul.f32 %v6751_v21, %v10266_v9  ;;  %6754 = vrcp.f32 %v10288_v35  ;;  %5505 = vmatpush.msra.mxu3 %v10130_v28  ;;  %vm5103_vm9 = vweird.f32 %v6751_v21  ;;  %5446 = vmatpush.msrb.mxu0 %v10134_v7  ;;  %v5124_v9 = vor.u32 1.1754944e-38, %v5123_v49  ;;  %v11380_v49 = vld [vmem:[#allocation57_spill] sm:$0xff] }
 0xcfe   :  { %v5113_v34 = vmul.f32 %v6753_v19, %v10270_v15  ;;  %6756 = vtanh.f32 %v5084_v51  ;;  %5466 = vmatpush.msra.mxu1 %v10136_v2  ;;  %vm5118_vm10 = vweird.f32 %v6753_v19  ;;  %5486 = vmatpush.msra.mxu2 %v10138_v48  ;;  %vm5104_vm13 = vmor %vm5102_vm11, %vm5103_vm9  ;;  %vm5132_vm2 = vweird.f32 %v10288_v35 }
 0xcff   :  { %v5099_v22 = vsub.f32 1.0, %v5098_v23  ;;  %5506 = vmatpush.msra.mxu3 %v10142_v57  ;;  %5447 = vmatpush.msrb.mxu0 %v10146_v52  ;;  %vm5119_vm14 = vmor %vm5117_vm12, %vm5118_vm10 }
 0xd00   :  { %v5114_v59 = vsub.f32 1.0, %v5113_v34  ;;  %v5121_v34 = vand.u32 2147483647, %v10270_v15  ;;  %5467 = vmatpush.msra.mxu1 %v10148_v18  ;;  %5487 = vmatpush.msra.mxu2 %v10150_v32 }
 0xd01   :  { %v5100_v40 = vmul.f32 %v6751_v21, %v5099_v22  ;;  %5507 = vmatpush.msra.mxu3 %v10154_v13  ;;  %5448 = vmatpush.msrb.mxu0 %v10158_v58 }
 0xd02   :  { %v5115_v23 = vmul.f32 %v6753_v19, %v5114_v59  ;;  %v5109_v59 = vor.u32 1.1754944e-38, %v5108_v50  ;;  %5468 = vmatpush.msra.mxu1 %v10160_v0  ;;  %vm5122_vm0 = vcmp.eq.f32.partialorder %v5121_v34, 8.507059e+37  ;;  %5488 = vmatpush.msra.mxu2 %v10162_v17 }
 0xd03   :  { %v10313_v51 = vpop.eup %6754  ;;  %v5101_v43 = vadd.f32 %v6751_v21, %v5100_v40  ;;  %5508 = vmatpush.msra.mxu3 %v10166_v3  ;;  %5449 = vmatpush.msrb.mxu0 %v10170_v41 }
 0xd04   :  { %v5128_v22 = vmul.f32 %v10313_v51, %v10288_v35  ;;  %v5116_v48 = vadd.f32 %v6753_v19, %v5115_v23  ;;  %v6757_v15 = vpop.eup %6756  ;;  %5469 = vmatpush.msra.mxu1 %v10172_v33  ;;  %5489 = vmatpush.msra.mxu2 %v10174_v46  ;;  %vm5133_vm1 = vweird.f32 %v10313_v51 }
 0xd05   :  { %v5105_v40 = vsel %vm5104_vm13, %v6751_v21, %v5101_v43  ;;  %5509 = vmatpush.msra.mxu3 %v10182_v4  ;;  %5450 = vmatpush.msrb.mxu0 %v10186_v27  ;;  %vm5134_vm3 = vmor %vm5132_vm2, %vm5133_vm1 }
 0xd06   :  { %v5129_v18 = vsub.f32 1.0, %v5128_v22  ;;  %v5110_v52 = vsel %vm5107_vm15, %v5109_v59, %v5105_v40  ;;  %v5120_v2 = vsel %vm5119_vm14, %v6753_v19, %v5116_v48  ;;  %5470 = vmatpush.msra.mxu1 %v10188_v45  ;;  %5490 = vmatpush.msra.mxu2 %v10190_v26  ;;  %v11382_v22 = vld [vmem:[#allocation23_spill] sm:$0xff]  ;;  %v11383_v59 = vld [vmem:[#allocation34_spill] sm:$0xff] }
 0xd07   :  { %v5125_v50 = vsel %vm5122_vm0, %v5124_v9, %v5120_v2  ;;  %v5145_v23 = vmul.f32 %v6757_v15, %v5110_v52  ;;  %5510 = vmatpush.msra.mxu3 %v10194_v36  ;;  %5451 = vmatpush.msrb.mxu0 %v10198_v61  ;;  %v5136_v52 = vand.u32 2147483647, %v10288_v35  ;;  %v11385_v9 = vld [vmem:[#allocation48_spill] sm:$0xff] }
 0xd08   :  { %v5130_v43 = vmul.f32 %v10313_v51, %v5129_v18  ;;  %v5144_v21 = vmul.f32 %v5125_v50, %v10089_v12  ;;  %5471 = vmatpush.msra.mxu1 %v10200_v24  ;;  %v5138_v12 = vand.u32 2147483648, %v10288_v35  ;;  %5491 = vmatpush.msra.mxu2 %v10202_v39  ;;  %v11379_v18 = vld [vmem:[#allocation56_spill] sm:$0xff]  ;;  %v11384_v35 = vld [vmem:[#allocation38_spill] sm:$0xff] }
 0xd09   :  { %5511 = vmatpush.msra.mxu3 %v10206_v56  ;;  %5452 = vmatpush.msrb.mxu0 %v10210_v47  ;;  %vm5137_vm4 = vcmp.eq.f32.partialorder %v5136_v52, 8.507059e+37  ;;  %v11386_v50 = vld [vmem:[#allocation62_spill] sm:$0xff] }
 0xd0a   :  { %v10337_v48 = vadd.f32 %v5145_v23, %v5144_v21  ;;  %v5131_v2 = vadd.f32 %v10313_v51, %v5130_v43  ;;  %5472 = vmatpush.msra.mxu1 %v10212_v38  ;;  %5492 = vmatpush.msra.mxu2 %v10214_v55  ;;  %v5139_v34 = vor.u32 1.1754944e-38, %v5138_v12  ;;  %v11387_v23 = vld [vmem:[#allocation65_spill] sm:$0xff]  ;;  %v11393_v52 = vld [vmem:[#allocation46_spill] sm:$0xff] }
 0xd0b   :  { %5512 = vmatpush.msra.mxu3 %v11379_v18  ;;  %5453 = vmatpush.msrb.mxu0 %v11380_v49  ;;  %v6254_v43 = vadd.f32 %v11387_v23, %v11386_v50  ;;  %v11395_v23 = vld [vmem:[#allocation32_spill] sm:$0xff] }
 0xd0c   :  { %6758 = vtanh.f32 %v10337_v48  ;;  %v5135_v19 = vsel %vm5134_vm3, %v10313_v51, %v5131_v2  ;;  %5473 = vmatpush.msra.mxu1 %v11381_v14  ;;  %5493 = vmatpush.msra.mxu2 %v11382_v22  ;;  %v11388_v2 = vld [vmem:[#allocation67_spill] sm:$0xff] }
 0xd0d   :  { %5513 = vmatpush.msra.mxu3 %v11383_v59  ;;  %5454 = vmatpush.msrb.mxu0 %v11384_v35  ;;  %v5140_v15 = vsel %vm5137_vm4, %v5139_v34, %v5135_v19 }
 0xd0e   :  { %5474 = vmatpush.msra.mxu1 %v11385_v9  ;;  %5494 = vmatpush.msra.mxu2 %v10238_v5 }
 0xd0f   :  { %5514 = vmatpush.msra.mxu3 %v10240_v44  ;;  %5455 = vmatpush.msrb.mxu0 %v10244_v6 }
 0xd10   :  { %5475 = vmatpush.msra.mxu1 %v10246_v60  ;;  %5495 = vmatpush.msra.mxu2 %v10250_v29 }
 0xd11   :  { %5515 = vmatpush.msra.mxu3 %v10252_v42  ;;  %5456 = vmatpush.msrb.mxu0 %v10256_v10 }
 0xd12   :  { %v6759_v40 = vpop.eup %6758  ;;  %5476 = vmatpush.msra.mxu1 %v10258_v25  ;;  %5496 = vmatpush.msra.mxu2 %v11388_v2 }
 0xd13   :  { %v5148_v51 = vmul.f32 %v6759_v40, %v5140_v15  ;;  %5516 = vmatpush.msra.mxu3 %v10264_v31 }
 0xd15   :  { %5237 = vmatmul.f32.vlgmr.msra.gmra.mxu0 %v5148_v51  ;;  %5257 = vmatmul.f32.vlgmr.msrb.gmra.mxu1 %v5148_v51  ;;  %v10370_v21 = vadd.f32 %v6254_v43, %v5148_v51  ;;  %v4444_v43 = vadd.f32 %v11395_v23, %v11359_v62 }
 0xd16   :  { %5277 = vmatmul.f32.vlgmr.msrb.gmra.mxu2 %v5148_v51  ;;  %5297 = vmatmul.f32.vlgmr.msrb.gmra.mxu3 %v5148_v51 }
 0xd17   :  { %5721 = vmatpush.msrb.mxu3 %v10098_v53  ;;  %v11389_v53 = vld [vmem:[#allocation40_spill] sm:$0xff] }
 0xd19   :  { %5722 = vmatpush.msrb.mxu3 %v10101_v20  ;;  %v11390_v20 = vld [vmem:[#allocation50_spill] sm:$0xff] }
 0xd1b   :  { %5723 = vmatpush.msrb.mxu3 %v10106_v63  ;;  %v4321_v63 = vadd.f32 %v11390_v20, %v11389_v53 }
 0xd1d   :  { %5724 = vmatpush.msrb.mxu3 %v10118_v37  ;;  %v11391_v37 = vld [vmem:[#allocation43_spill] sm:$0xff] }
 0xd1f   :  { %5725 = vmatpush.msrb.mxu3 %v10130_v28  ;;  %v11392_v28 = vld [vmem:[#allocation52_spill] sm:$0xff] }
 0xd21   :  { %5726 = vmatpush.msrb.mxu3 %v10142_v57  ;;  %v4362_v57 = vadd.f32 %v11392_v28, %v11391_v37 }
 0xd23   :  { %5727 = vmatpush.msrb.mxu3 %v10154_v13 }
 0xd25   :  { %5728 = vmatpush.msrb.mxu3 %v10166_v3 }
 0xd27   :  { %5729 = vmatpush.msrb.mxu3 %v10182_v4 }
 0xd29   :  { %5730 = vmatpush.msrb.mxu3 %v10194_v36 }
 0xd2b   :  { %5731 = vmatpush.msrb.mxu3 %v10206_v56 }
 0xd2d   :  { %5732 = vmatpush.msrb.mxu3 %v11379_v18  ;;  %v11394_v18 = vld [vmem:[#allocation27_spill] sm:$0xff] }
 0xd2f   :  { %5733 = vmatpush.msrb.mxu3 %v11383_v59 }
 0xd31   :  { %5734 = vmatpush.msrb.mxu3 %v10240_v44  ;;  %v4403_v44 = vadd.f32 %v11394_v18, %v11393_v52 }
 0xd33   :  { %5735 = vmatpush.msrb.mxu3 %v10252_v42 }
 0xd35   :  { %5736 = vmatpush.msrb.mxu3 %v10264_v31 }
 0xd92   :  { %v5238_v13 = vpop.f32.mrf.mxu0  ;;  %v5258_v3 = vpop.f32.mrf.mxu1 }
 0xd93   :  { %v5301_v4 = vadd.f32 %v5238_v13, %v4321_v63  ;;  %v5302_v36 = vadd.f32 %v5258_v3, %v4362_v57 }
 0xd95   :  { %v6425_v56 = vmul.f32 -1.442695, %v5301_v4  ;;  %v6426_v12 = vmul.f32 -1.442695, %v5302_v36 }
 0xd97   :  { %6760 = vpow2.f32 %v6425_v56 }
 0xd98   :  { %6762 = vpow2.f32 %v6426_v12 }
 0xd99   :  { %v5278_v42 = vpop.f32.mrf.mxu2  ;;  %v5298_v51 = vpop.f32.mrf.mxu3 }
 0xd9a   :  { %v5303_v19 = vadd.f32 %v5278_v42, %v4403_v44  ;;  %v5304_v28 = vadd.f32 %v5298_v51, %v4444_v43 }
 0xd9c   :  { %v6427_v31 = vmul.f32 -1.442695, %v5303_v19 }
 0xd9d   :  { %v6761_v34 = vpop.eup %6760 }
 0xd9e   :  { %v6763_v59 = vpop.eup %6762  ;;  %v5314_v40 = vadd.f32 1.0, %v6761_v34  ;;  %6764 = vpow2.f32 %v6427_v31 }
 0xd9f   :  { %v5315_v15 = vadd.f32 1.0, %v6763_v59 }
 0xda0   :  { %6766 = vrcp.f32 %v5314_v40  ;;  %v5328_v56 = vand.u32 2147483648, %v5314_v40  ;;  %v5326_v44 = vand.u32 2147483647, %v5314_v40  ;;  %vm5322_vm7 = vweird.f32 %v5314_v40 }
 0xda1   :  { %6768 = vrcp.f32 %v5315_v15  ;;  %v5343_v12 = vand.u32 2147483648, %v5315_v15  ;;  %v5341_v19 = vand.u32 2147483647, %v5315_v15  ;;  %vm5337_vm8 = vweird.f32 %v5315_v15 }
 0xda2   :  { %v5329_v51 = vor.u32 1.1754944e-38, %v5328_v56  ;;  %vm5327_vm11 = vcmp.eq.f32.partialorder %v5326_v44, 8.507059e+37 }
 0xda3   :  { %v5344_v23 = vor.u32 1.1754944e-38, %v5343_v12  ;;  %vm5342_vm12 = vcmp.eq.f32.partialorder %v5341_v19, 8.507059e+37 }
 0xda4   :  { %v6765_v50 = vpop.eup %6764 }
 0xda5   :  { %v5316_v20 = vadd.f32 1.0, %v6765_v50 }
 0xda6   :  { %v6767_v63 = vpop.eup %6766 }
 0xda7   :  { %v6769_v57 = vpop.eup %6768  ;;  %v5318_v13 = vmul.f32 %v6767_v63, %v5314_v40  ;;  %6770 = vrcp.f32 %v5316_v20  ;;  %vm5323_vm5 = vweird.f32 %v6767_v63  ;;  %v5358_v56 = vand.u32 2147483648, %v5316_v20 }
 0xda8   :  { %v5333_v3 = vmul.f32 %v6769_v57, %v5315_v15  ;;  %6772 = vtanh.f32 %v5304_v28  ;;  %vm5338_vm6 = vweird.f32 %v6769_v57  ;;  %vm5324_vm9 = vmor %vm5322_vm7, %vm5323_vm5  ;;  %vm5352_vm14 = vweird.f32 %v5316_v20 }
 0xda9   :  { %v5319_v4 = vsub.f32 1.0, %v5318_v13  ;;  %vm5339_vm10 = vmor %vm5337_vm8, %vm5338_vm6  ;;  %v5359_v44 = vor.u32 1.1754944e-38, %v5358_v56 }
 0xdaa   :  { %v5334_v36 = vsub.f32 1.0, %v5333_v3 }
 0xdab   :  { %v5320_v18 = vmul.f32 %v6767_v63, %v5319_v4 }
 0xdac   :  { %v5335_v42 = vmul.f32 %v6769_v57, %v5334_v36 }
 0xdad   :  { %v6771_v31 = vpop.eup %6770  ;;  %v5321_v34 = vadd.f32 %v6767_v63, %v5320_v18 }
 0xdae   :  { %v5348_v59 = vmul.f32 %v6771_v31, %v5316_v20  ;;  %v5336_v50 = vadd.f32 %v6769_v57, %v5335_v42  ;;  %v6773_v28 = vpop.eup %6772  ;;  %vm5353_vm13 = vweird.f32 %v6771_v31 }
 0xdaf   :  { %v5325_v43 = vsel %vm5324_vm9, %v6767_v63, %v5321_v34  ;;  %v5356_v63 = vand.u32 2147483647, %v5316_v20  ;;  %vm5354_vm15 = vmor %vm5352_vm14, %vm5353_vm13  ;;  %v10411_v34 = vld [vmem:[#allocation14 + $0x1f0] sm:$0xff]  ;;  %v10416_v20 = vld [vmem:[#allocation14 + $0x1c0] sm:$0xff] }
 0xdb0   :  { %v5349_v13 = vsub.f32 1.0, %v5348_v59  ;;  %v5330_v3 = vsel %vm5327_vm11, %v5329_v51, %v5325_v43  ;;  %v5340_v4 = vsel %vm5339_vm10, %v6769_v57, %v5336_v50  ;;  %5701 = vmatpush.msrb.mxu2 %v10411_v34  ;;  %v10425_v59 = vld [vmem:[#allocation14 + $0x1a0] sm:$0xff]  ;;  %v10427_v51 = vld [vmem:[#allocation14 + $0x1a8] sm:$0xff]  ;;  %v11396_v50 = vld [vmem:[#allocation53_spill] sm:$0xff] }
 0xdb1   :  { %v5345_v36 = vsel %vm5342_vm12, %v5344_v23, %v5340_v4  ;;  %v5365_v62 = vmul.f32 %v6773_v28, %v5330_v3  ;;  %vm5357_vm0 = vcmp.eq.f32.partialorder %v5356_v63, 8.507059e+37  ;;  %v11397_v23 = vld [vmem:[#allocation54_spill] sm:$0xff]  ;;  %v11398_v43 = vld [vmem:[#allocation59_spill] sm:$0xff]  ;;  %v11399_v28 = vld [vmem:[#allocation60_spill] sm:$0xff] }
 0xdb2   :  { %v5350_v2 = vmul.f32 %v6771_v31, %v5349_v13  ;;  %v5364_v18 = vmul.f32 %v5345_v36, %v10337_v48 }
 0xdb4   :  { %v10401_v40 = vadd.f32 %v5365_v62, %v5364_v18  ;;  %v5351_v15 = vadd.f32 %v6771_v31, %v5350_v2  ;;  %v10407_v62 = vld [vmem:[#allocation14 + $0x1e0] sm:$0xff]  ;;  %v10409_v2 = vld [vmem:[#allocation14 + $0x1e8] sm:$0xff] }
 0xdb5   :  { %5661 = vmatpush.msra.mxu0 %v10407_v62  ;;  %5681 = vmatpush.msrb.mxu1 %v10409_v2 }
 0xdb6   :  { %6774 = vtanh.f32 %v10401_v40  ;;  %v5355_v12 = vsel %vm5354_vm15, %v6771_v31, %v5351_v15  ;;  %v10418_v31 = vld [vmem:[#allocation14 + $0x1c8] sm:$0xff] }
 0xdb7   :  { %v5360_v42 = vsel %vm5357_vm0, %v5359_v44, %v5355_v12  ;;  %5662 = vmatpush.msra.mxu0 %v10416_v20  ;;  %5682 = vmatpush.msrb.mxu1 %v10418_v31 }
 0xdb9   :  { %5663 = vmatpush.msra.mxu0 %v10425_v59  ;;  %5683 = vmatpush.msrb.mxu1 %v10427_v51 }
 0xdbb   :  { %5664 = vmatpush.msra.mxu0 %v10110_v11  ;;  %5684 = vmatpush.msrb.mxu1 %v10112_v54  ;;  %v11401_v11 = vld [vmem:[#allocation29_spill] sm:$0xff] }
 0xdbc   :  { %v6775_v57 = vpop.eup %6774  ;;  %v4324_v54 = vadd.f32 %v11401_v11, %v11389_v53 }
 0xdbd   :  { %v5368_v19 = vmul.f32 %v6775_v57, %v5360_v42  ;;  %5665 = vmatpush.msra.mxu0 %v10122_v8  ;;  %5685 = vmatpush.msrb.mxu1 %v10124_v30 }
 0xdbf   :  { %5457 = vmatmul.f32.vlgmr.msrb.gmra.mxu0 %v5368_v19  ;;  %5477 = vmatmul.f32.vlgmr.msra.gmra.mxu1 %v5368_v19  ;;  %v10405_v48 = vadd.f32 %v10370_v21, %v5368_v19  ;;  %v10420_v21 = vld [vmem:[#allocation14 + $0x1d0] sm:$0xff] }
 0xdc0   :  { %5497 = vmatmul.f32.vlgmr.msra.gmra.mxu2 %v5368_v19  ;;  %5517 = vmatmul.f32.vlgmr.msra.gmra.mxu3 %v5368_v19 }
 0xdc1   :  { %5702 = vmatpush.msrb.mxu2 %v10420_v21  ;;  %5666 = vmatpush.msra.mxu0 %v10134_v7 }
 0xdc2   :  { %5686 = vmatpush.msrb.mxu1 %v11397_v23 }
 0xdc3   :  { %5703 = vmatpush.msrb.mxu2 %v10104_v16  ;;  %5667 = vmatpush.msra.mxu0 %v11399_v28  ;;  %v11400_v16 = vld [vmem:[#allocation55_spill] sm:$0xff] }
 0xdc4   :  { %5687 = vmatpush.msrb.mxu1 %v11400_v16 }
 0xdc5   :  { %5704 = vmatpush.msrb.mxu2 %v10114_v1  ;;  %5668 = vmatpush.msra.mxu0 %v10158_v58  ;;  %v11402_v1 = vld [vmem:[#allocation30_spill] sm:$0xff] }
 0xdc6   :  { %5688 = vmatpush.msrb.mxu1 %v10160_v0  ;;  %v4365_v8 = vadd.f32 %v11402_v1, %v11391_v37 }
 0xdc7   :  { %5705 = vmatpush.msrb.mxu2 %v11396_v50  ;;  %5669 = vmatpush.msra.mxu0 %v10170_v41  ;;  %v11403_v41 = vld [vmem:[#allocation28_spill] sm:$0xff] }
 0xdc8   :  { %5689 = vmatpush.msrb.mxu1 %v10172_v33  ;;  %v4406_v33 = vadd.f32 %v11403_v41, %v11393_v52 }
 0xdc9   :  { %5706 = vmatpush.msrb.mxu2 %v11398_v43  ;;  %5670 = vmatpush.msra.mxu0 %v10186_v27 }
 0xdca   :  { %5690 = vmatpush.msrb.mxu1 %v10188_v45 }
 0xdcb   :  { %5707 = vmatpush.msrb.mxu2 %v10150_v32  ;;  %5671 = vmatpush.msra.mxu0 %v10198_v61 }
 0xdcc   :  { %5691 = vmatpush.msrb.mxu1 %v10200_v24 }
 0xdcd   :  { %5708 = vmatpush.msrb.mxu2 %v10162_v17  ;;  %5672 = vmatpush.msra.mxu0 %v10210_v47  ;;  %v11404_v47 = vld [vmem:[#allocation67_spill] sm:$0xff] }
 0xdce   :  { %5692 = vmatpush.msrb.mxu1 %v10212_v38 }
 0xdcf   :  { %5709 = vmatpush.msrb.mxu2 %v10174_v46  ;;  %5673 = vmatpush.msra.mxu0 %v11380_v49 }
 0xdd0   :  { %5693 = vmatpush.msrb.mxu1 %v11381_v14 }
 0xdd1   :  { %5710 = vmatpush.msrb.mxu2 %v10190_v26  ;;  %5674 = vmatpush.msra.mxu0 %v11384_v35 }
 0xdd2   :  { %5694 = vmatpush.msrb.mxu1 %v11385_v9 }
 0xdd3   :  { %5711 = vmatpush.msrb.mxu2 %v10202_v39  ;;  %5675 = vmatpush.msra.mxu0 %v10244_v6 }
 0xdd4   :  { %5695 = vmatpush.msrb.mxu1 %v10246_v60  ;;  %v11406_v60 = vld [vmem:[#allocation36_spill] sm:$0xff] }
 0xdd5   :  { %5712 = vmatpush.msrb.mxu2 %v10214_v55  ;;  %5676 = vmatpush.msra.mxu0 %v10256_v10 }
 0xdd6   :  { %5696 = vmatpush.msrb.mxu1 %v10258_v25 }
 0xdd7   :  { %5713 = vmatpush.msrb.mxu2 %v11382_v22  ;;  %5881 = vmatpush.msrb.mxu0 %v10407_v62 }
 0xdd8   :  { %5901 = vmatpush.msra.mxu1 %v10409_v2 }
 0xdd9   :  { %5714 = vmatpush.msrb.mxu2 %v10238_v5  ;;  %5882 = vmatpush.msrb.mxu0 %v10416_v20 }
 0xdda   :  { %5902 = vmatpush.msra.mxu1 %v10418_v31 }
 0xddb   :  { %5715 = vmatpush.msrb.mxu2 %v10250_v29  ;;  %v11405_v29 = vld [vmem:[#allocation39_spill] sm:$0xff]  ;;  %5883 = vmatpush.msrb.mxu0 %v10425_v59 }
 0xddc   :  { %v4447_v38 = vadd.f32 %v11406_v60, %v11405_v29  ;;  %5903 = vmatpush.msra.mxu1 %v10427_v51  ;;  %v10526_v60 = vld [vmem:[#allocation14 + $0x178] sm:$0xff] }
 0xddd   :  { %5716 = vmatpush.msrb.mxu2 %v11404_v47  ;;  %v10518_v47 = vld [vmem:[#allocation14 + $0x160] sm:$0xff] }
 0xddf   :  { %5921 = vmatpush.msra.mxu2 %v10411_v34 }
 0xde1   :  { %5922 = vmatpush.msra.mxu2 %v10420_v21 }
 0xe3c   :  { %v5458_v30 = vpop.f32.mrf.mxu0  ;;  %v5478_v7 = vpop.f32.mrf.mxu1 }
 0xe3d   :  { %v5521_v32 = vadd.f32 %v5458_v30, %v4324_v54  ;;  %v5522_v58 = vadd.f32 %v5478_v7, %v4365_v8 }
 0xe3f   :  { %v6428_v0 = vmul.f32 -1.442695, %v5521_v32  ;;  %v6429_v17 = vmul.f32 -1.442695, %v5522_v58 }
 0xe41   :  { %6776 = vpow2.f32 %v6428_v0 }
 0xe42   :  { %6778 = vpow2.f32 %v6429_v17 }
 0xe43   :  { %v5498_v46 = vpop.f32.mrf.mxu2  ;;  %v5518_v6 = vpop.f32.mrf.mxu3 }
 0xe44   :  { %v5523_v27 = vadd.f32 %v5498_v46, %v4406_v33  ;;  %v5524_v25 = vadd.f32 %v5518_v6, %v4447_v38  ;;  %v10494_v46 = vld [vmem:[#allocation14 + $0x1f8] sm:$0xff]  ;;  %v10520_v6 = vld [vmem:[#allocation14 + $0x168] sm:$0xff]  ;;  %v10530_v38 = vld [vmem:[#allocation14 + $0x140] sm:$0xff] }
 0xe45   :  { %5941 = vmatpush.msra.mxu3 %v10494_v46 }
 0xe46   :  { %v6430_v45 = vmul.f32 -1.442695, %v5523_v27  ;;  %v10497_v27 = vld [vmem:[#allocation14 + $0x1d8] sm:$0xff] }
 0xe47   :  { %v6777_v26 = vpop.eup %6776  ;;  %5942 = vmatpush.msra.mxu3 %v10497_v27 }
 0xe48   :  { %v6779_v61 = vpop.eup %6778  ;;  %v5534_v24 = vadd.f32 1.0, %v6777_v26  ;;  %6780 = vpow2.f32 %v6430_v45  ;;  %v10500_v45 = vld [vmem:[#allocation14 + $0x1b0] sm:$0xff]  ;;  %v10502_v26 = vld [vmem:[#allocation14 + $0x1b8] sm:$0xff] }
 0xe49   :  { %v5535_v39 = vadd.f32 1.0, %v6779_v61  ;;  %5923 = vmatpush.msra.mxu2 %v10500_v45  ;;  %5943 = vmatpush.msra.mxu3 %v10502_v26  ;;  %v10508_v61 = vld [vmem:[#allocation14 + $0x188] sm:$0xff] }
 0xe4a   :  { %6782 = vrcp.f32 %v5534_v24  ;;  %v5548_v13 = vand.u32 2147483648, %v5534_v24  ;;  %v5546_v36 = vand.u32 2147483647, %v5534_v24  ;;  %vm5542_vm3 = vweird.f32 %v5534_v24  ;;  %5904 = vmatpush.msra.mxu1 %v10508_v61 }
 0xe4b   :  { %6784 = vrcp.f32 %v5535_v39  ;;  %v5563_v3 = vand.u32 2147483648, %v5535_v39  ;;  %v5561_v15 = vand.u32 2147483647, %v5535_v39  ;;  %vm5557_vm4 = vweird.f32 %v5535_v39 }
 0xe4c   :  { %v5549_v44 = vor.u32 1.1754944e-38, %v5548_v13  ;;  %vm5547_vm7 = vcmp.eq.f32.partialorder %v5546_v36, 8.507059e+37  ;;  %5905 = vmatpush.msra.mxu1 %v10520_v6  ;;  %v10556_v13 = vld [vmem:[#allocation14 + $0x108] sm:$0xff]  ;;  %v10566_v36 = vld [vmem:[#allocation14 + $0xe0] sm:$0xff] }
 0xe4d   :  { %v5564_v42 = vor.u32 1.1754944e-38, %v5563_v3  ;;  %vm5562_vm8 = vcmp.eq.f32.partialorder %v5561_v15, 8.507059e+37  ;;  %v10558_v3 = vld [vmem:[#allocation14 + $0x110] sm:$0xff] }
 0xe4e   :  { %v6781_v5 = vpop.eup %6780  ;;  %v10570_v15 = vld [vmem:[#allocation14 + $0xf0] sm:$0xff] }
 0xe4f   :  { %v5536_v55 = vadd.f32 1.0, %v6781_v5  ;;  %v10522_v5 = vld [vmem:[#allocation14 + $0x170] sm:$0xff] }
 0xe50   :  { %v6783_v10 = vpop.eup %6782 }
 0xe51   :  { %v6785_v49 = vpop.eup %6784  ;;  %v5538_v14 = vmul.f32 %v6783_v10, %v5534_v24  ;;  %6786 = vrcp.f32 %v5536_v55  ;;  %vm5543_vm1 = vweird.f32 %v6783_v10  ;;  %v5578_v7 = vand.u32 2147483648, %v5536_v55  ;;  %v10510_v24 = vld [vmem:[#allocation14 + $0x190] sm:$0xff] }
 0xe52   :  { %v5553_v22 = vmul.f32 %v6785_v49, %v5535_v39  ;;  %6788 = vtanh.f32 %v5524_v25  ;;  %vm5558_vm2 = vweird.f32 %v6785_v49  ;;  %vm5544_vm5 = vmor %vm5542_vm3, %vm5543_vm1  ;;  %vm5572_vm10 = vweird.f32 %v5536_v55  ;;  %v10514_v39 = vld [vmem:[#allocation14 + $0x198] sm:$0xff]  ;;  %5924 = vmatpush.msra.mxu2 %v10510_v24 }
 0xe53   :  { %v5539_v35 = vsub.f32 1.0, %v5538_v14  ;;  %vm5559_vm6 = vmor %vm5557_vm4, %vm5558_vm2  ;;  %v5576_v32 = vand.u32 2147483647, %v5536_v55  ;;  %v5579_v0 = vor.u32 1.1754944e-38, %v5578_v7  ;;  %5944 = vmatpush.msra.mxu3 %v10514_v39  ;;  %v10538_v25 = vld [vmem:[#allocation14 + $0x158] sm:$0xff]  ;;  %v10544_v14 = vld [vmem:[#allocation14 + $0x128] sm:$0xff] }
 0xe54   :  { %v5554_v9 = vsub.f32 1.0, %v5553_v22  ;;  %5925 = vmatpush.msra.mxu2 %v10522_v5  ;;  %v10546_v22 = vld [vmem:[#allocation14 + $0x130] sm:$0xff] }
 0xe55   :  { %v5540_v4 = vmul.f32 %v6783_v10, %v5539_v35  ;;  %vm5577_vm12 = vcmp.eq.f32.partialorder %v5576_v32, 8.507059e+37  ;;  %5945 = vmatpush.msra.mxu3 %v10526_v60  ;;  %v10550_v35 = vld [vmem:[#allocation14 + $0x138] sm:$0xff] }
 0xe56   :  { %v5555_v18 = vmul.f32 %v6785_v49, %v5554_v9  ;;  %v10554_v9 = vld [vmem:[#allocation14 + $0x100] sm:$0xff] }
 0xe57   :  { %v6787_v56 = vpop.eup %6786  ;;  %v5541_v63 = vadd.f32 %v6783_v10, %v5540_v4  ;;  %5946 = vmatpush.msra.mxu3 %v10538_v25  ;;  %v10562_v4 = vld [vmem:[#allocation14 + $0x118] sm:$0xff] }
 0xe58   :  { %v5568_v12 = vmul.f32 %v6787_v56, %v5536_v55  ;;  %v5556_v57 = vadd.f32 %v6785_v49, %v5555_v18  ;;  %v6789_v50 = vpop.eup %6788  ;;  %vm5573_vm9 = vweird.f32 %v6787_v56  ;;  %v10532_v55 = vld [vmem:[#allocation14 + $0x148] sm:$0xff] }
 0xe59   :  { %v5545_v19 = vsel %vm5544_vm5, %v6783_v10, %v5541_v63  ;;  %vm5574_vm11 = vmor %vm5572_vm10, %vm5573_vm9  ;;  %v10534_v10 = vld [vmem:[#allocation14 + $0x150] sm:$0xff]  ;;  %5906 = vmatpush.msra.mxu1 %v10532_v55  ;;  %5947 = vmatpush.msra.mxu3 %v10550_v35  ;;  %v10568_v18 = vld [vmem:[#allocation14 + $0xe8] sm:$0xff] }
 0xe5a   :  { %v5569_v23 = vsub.f32 1.0, %v5568_v12  ;;  %v5550_v43 = vsel %vm5547_vm7, %v5549_v44, %v5545_v19  ;;  %v5560_v28 = vsel %vm5559_vm6, %v6785_v49, %v5556_v57  ;;  %5926 = vmatpush.msra.mxu2 %v10534_v10  ;;  %v10542_v49 = vld [vmem:[#allocation14 + $0x120] sm:$0xff]  ;;  %v11409_v12 = vld [vmem:[#allocation33_spill] sm:$0xff] }
 0xe5b   :  { %v5565_v16 = vsel %vm5562_vm8, %v5564_v42, %v5560_v28  ;;  %v5585_v11 = vmul.f32 %v6789_v50, %v5550_v43  ;;  %5907 = vmatpush.msra.mxu1 %v10544_v14  ;;  %5948 = vmatpush.msra.mxu3 %v10562_v4  ;;  %v4368_v44 = vadd.f32 %v11409_v12, %v11391_v37  ;;  %v10578_v57 = vld [vmem:[#allocation14 + $0xf8] sm:$0xff]  ;;  %v10582_v50 = vld [vmem:[#allocation14 + $0xc0] sm:$0xff]  ;;  %v10586_v43 = vld [vmem:[#allocation14 + $0xd0] sm:$0xff] }
 0xe5c   :  { %v5570_v54 = vmul.f32 %v6787_v56, %v5569_v23  ;;  %v5584_v1 = vmul.f32 %v5565_v16, %v10401_v40  ;;  %5927 = vmatpush.msra.mxu2 %v10546_v22  ;;  %v10584_v23 = vld [vmem:[#allocation14 + $0xc8] sm:$0xff]  ;;  %v11413_v12 = vld [vmem:[#allocation42_spill] sm:$0xff]  ;;  %v10634_v37 = vld [vmem:[#allocation14 + $0x50] sm:$0xff] }
 0xe5d   :  { %5908 = vmatpush.msra.mxu1 %v10556_v13  ;;  %5949 = vmatpush.msra.mxu3 %v10578_v57 }
 0xe5e   :  { %v10488_v8 = vadd.f32 %v5585_v11, %v5584_v1  ;;  %v5571_v30 = vadd.f32 %v6787_v56, %v5570_v54  ;;  %5928 = vmatpush.msra.mxu2 %v10558_v3  ;;  %v10590_v11 = vld [vmem:[#allocation14 + $0xd8] sm:$0xff]  ;;  %v10594_v54 = vld [vmem:[#allocation14 + $0xa0] sm:$0xff]  ;;  %v10596_v1 = vld [vmem:[#allocation14 + $0xa8] sm:$0xff] }
 0xe5f   :  { %5909 = vmatpush.msra.mxu1 %v10568_v18  ;;  %5950 = vmatpush.msra.mxu3 %v10590_v11 }
 0xe60   :  { %6790 = vtanh.f32 %v10488_v8  ;;  %v5575_v58 = vsel %vm5574_vm11, %v6787_v56, %v5571_v30  ;;  %v11408_v56 = vld [vmem:[#allocation31_spill] sm:$0xff]  ;;  %5929 = vmatpush.msra.mxu2 %v10570_v15  ;;  %v10598_v30 = vld [vmem:[#allocation14 + $0xb0] sm:$0xff] }
 0xe61   :  { %v5580_v41 = vsel %vm5577_vm12, %v5579_v0, %v5575_v58  ;;  %v4327_v63 = vadd.f32 %v11408_v56, %v11389_v53  ;;  %5910 = vmatpush.msra.mxu1 %v10584_v23  ;;  %v10602_v58 = vld [vmem:[#allocation14 + $0xb8] sm:$0xff]  ;;  %v10606_v0 = vld [vmem:[#allocation14 + $0x80] sm:$0xff]  ;;  %v10642_v53 = vld [vmem:[#allocation14 + $0x28] sm:$0xff] }
 0xe62   :  { %5930 = vmatpush.msra.mxu2 %v10586_v43  ;;  %5951 = vmatpush.msra.mxu3 %v10602_v58  ;;  %v10616_v56 = vld [vmem:[#allocation14 + $0x60] sm:$0xff] }
 0xe63   :  { %5911 = vmatpush.msra.mxu1 %v10596_v1  ;;  %11411 = vst [vmem:[#allocation51_spill] sm:$0xff] %v10616_v56 }
 0xe64   :  { %5931 = vmatpush.msra.mxu2 %v10598_v30 }
 0xe66   :  { %v6791_v17 = vpop.eup %6790 }
 0xe67   :  { %v5588_v33 = vmul.f32 %v6791_v17, %v5580_v41  ;;  %v10608_v17 = vld [vmem:[#allocation14 + $0x88] sm:$0xff]  ;;  %v10610_v41 = vld [vmem:[#allocation14 + $0x90] sm:$0xff] }
 0xe68   :  { %5912 = vmatpush.msra.mxu1 %v10608_v17  ;;  %5932 = vmatpush.msra.mxu2 %v10610_v41 }
 0xe69   :  { %5677 = vmatmul.f32.vlgmr.msra.gmra.mxu0 %v5588_v33  ;;  %5697 = vmatmul.f32.vlgmr.msrb.gmra.mxu1 %v5588_v33  ;;  %v10492_v40 = vadd.f32 %v10405_v48, %v5588_v33  ;;  %v10506_v48 = vld [vmem:[#allocation14 + $0x180] sm:$0xff] }
 0xe6a   :  { %5717 = vmatmul.f32.vlgmr.msrb.gmra.mxu2 %v5588_v33  ;;  %5737 = vmatmul.f32.vlgmr.msrb.gmra.mxu3 %v5588_v33  ;;  %v10614_v33 = vld [vmem:[#allocation14 + $0x98] sm:$0xff] }
 0xe6b   :  { %11407 = vst [vmem:[#allocation45_spill] sm:$0xff] %v10492_v40  ;;  %5884 = vmatpush.msrb.mxu0 %v10506_v48  ;;  %5952 = vmatpush.msra.mxu3 %v10614_v33  ;;  %v10646_v40 = vld [vmem:[#allocation14 + $0x30] sm:$0xff] }
 0xe6c   :  { %11410 = vst [vmem:[#allocation66_spill] sm:$0xff] %v10614_v33 }
 0xe6d   :  { %5885 = vmatpush.msrb.mxu0 %v10518_v47 }
 0xe6f   :  { %5886 = vmatpush.msrb.mxu0 %v10530_v38 }
 0xe71   :  { %5887 = vmatpush.msrb.mxu0 %v10542_v49 }
 0xe73   :  { %5888 = vmatpush.msrb.mxu0 %v10554_v9 }
 0xe75   :  { %5889 = vmatpush.msrb.mxu0 %v10566_v36 }
 0xe77   :  { %5890 = vmatpush.msrb.mxu0 %v10582_v50 }
 0xe79   :  { %5891 = vmatpush.msrb.mxu0 %v10594_v54 }
 0xe7b   :  { %5892 = vmatpush.msrb.mxu0 %v10606_v0 }
 0xe7d   :  { %5893 = vmatpush.msrb.mxu0 %v10616_v56 }
 0xee6   :  { %v5678_v42 = vpop.f32.mrf.mxu0  ;;  %v5698_v19 = vpop.f32.mrf.mxu1 }
 0xee7   :  { %v5741_v28 = vadd.f32 %v5678_v42, %v4327_v63  ;;  %v5742_v16 = vadd.f32 %v5698_v19, %v4368_v44  ;;  %v10618_v63 = vld [vmem:[#allocation14 + $0x68] sm:$0xff]  ;;  %v4409_v44 = vadd.f32 %v11413_v12, %v11393_v52  ;;  %v10624_v42 = vld [vmem:[#allocation14 + $0x70] sm:$0xff]  ;;  %v10626_v19 = vld [vmem:[#allocation14 + $0x78] sm:$0xff] }
 0xee8   :  { %11412 = vst [vmem:[#allocation64_spill] sm:$0xff] %v10618_v63  ;;  %5913 = vmatpush.msra.mxu1 %v10618_v63  ;;  %5933 = vmatpush.msra.mxu2 %v10624_v42  ;;  %v10640_v52 = vld [vmem:[#allocation14 + $0x20] sm:$0xff]  ;;  %v10648_v63 = vld [vmem:[#allocation14 + $0x38] sm:$0xff] }
 0xee9   :  { %v6431_v7 = vmul.f32 -1.442695, %v5741_v28  ;;  %v6432_v32 = vmul.f32 -1.442695, %v5742_v16  ;;  %11414 = vst [vmem:[#allocation25_spill] sm:$0xff] %v10624_v42  ;;  %v10628_v28 = vld [vmem:[#allocation14 + $0x40] sm:$0xff]  ;;  %5953 = vmatpush.msra.mxu3 %v10626_v19 }
 0xeea   :  { %11415 = vst [vmem:[#allocation68_spill] sm:$0xff] %v10626_v19  ;;  %5894 = vmatpush.msrb.mxu0 %v10628_v28  ;;  %5934 = vmatpush.msra.mxu2 %v10634_v37 }
 0xeeb   :  { %6792 = vpow2.f32 %v6431_v7  ;;  %11416 = vst [vmem:[#allocation41_spill] sm:$0xff] %v10628_v28  ;;  %v10632_v7 = vld [vmem:[#allocation14 + $0x48] sm:$0xff]  ;;  %v10658_v28 = vld [vmem:[#allocation14 + $0x10] sm:$0xff] }
 0xeec   :  { %6794 = vpow2.f32 %v6432_v32  ;;  %11417 = vst [vmem:[#allocation56_spill] sm:$0xff] %v10632_v7  ;;  %v10636_v32 = vld [vmem:[#allocation14 + $0x58] sm:$0xff]  ;;  %5914 = vmatpush.msra.mxu1 %v10632_v7  ;;  %5895 = vmatpush.msrb.mxu0 %v10640_v52 }
 0xeed   :  { %v5718_v16 = vpop.f32.mrf.mxu2  ;;  %5954 = vmatpush.msra.mxu3 %v10636_v32  ;;  %11418 = vst [vmem:[#allocation57_spill] sm:$0xff] %v10658_v28  ;;  %v10660_v7 = vld [vmem:[#allocation14 + $0x18] sm:$0xff]  ;;  %5935 = vmatpush.msra.mxu2 %v10646_v40 }
 0xeee   :  { %v5743_v12 = vadd.f32 %v5718_v16, %v4409_v44  ;;  %v10652_v44 = vld [vmem:[#allocation14] sm:$0xff]  ;;  %v10654_v16 = vld [vmem:[#allocation14 + $0x8] sm:$0xff]  ;;  %5915 = vmatpush.msra.mxu1 %v10642_v53 }
 0xeef   :  { %5955 = vmatpush.msra.mxu3 %v10648_v63  ;;  %5896 = vmatpush.msrb.mxu0 %v10652_v44 }
 0xef0   :  { %v6433_v56 = vmul.f32 -1.442695, %v5743_v12  ;;  %5916 = vmatpush.msra.mxu1 %v10654_v16  ;;  %5936 = vmatpush.msra.mxu2 %v10658_v28 }
 0xef1   :  { %v6793_v19 = vpop.eup %6792  ;;  %5956 = vmatpush.msra.mxu3 %v10660_v7  ;;  %6101 = vmatpush.msra.mxu0 %v10407_v62 }
 0xef2   :  { %v6795_v42 = vpop.eup %6794  ;;  %v10662_v33 = vadd.f32 1.0, %v6793_v19  ;;  %6796 = vpow2.f32 %v6433_v56  ;;  %6121 = vmatpush.msrb.mxu1 %v10409_v2  ;;  %6141 = vmatpush.msrb.mxu2 %v10411_v34  ;;  %v5738_v56 = vpop.f32.mrf.mxu3  ;;  %v11419_v19 = vld [vmem:[#allocation24_spill] sm:$0xff] }
 0xef3   :  { %v10666_v12 = vadd.f32 1.0, %v6795_v42  ;;  %6161 = vmatpush.msrb.mxu3 %v10494_v46  ;;  %6102 = vmatpush.msra.mxu0 %v10416_v20  ;;  %v4450_v28 = vadd.f32 %v11419_v19, %v11405_v29 }
 0xef4   :  { %6798 = vrcp.f32 %v10662_v33  ;;  %6122 = vmatpush.msrb.mxu1 %v10418_v31  ;;  %6142 = vmatpush.msrb.mxu2 %v10420_v21  ;;  %v5768_v46 = vand.u32 2147483648, %v10662_v33  ;;  %vm5762_vm15 = vweird.f32 %v10662_v33 }
 0xef5   :  { %6800 = vrcp.f32 %v10666_v12  ;;  %6162 = vmatpush.msrb.mxu3 %v10497_v27  ;;  %6103 = vmatpush.msra.mxu0 %v10425_v59  ;;  %v5744_v34 = vadd.f32 %v5738_v56, %v4450_v28  ;;  %v5783_v27 = vand.u32 2147483648, %v10666_v12  ;;  %vm5777_vm0 = vweird.f32 %v10666_v12 }
 0xef6   :  { %6123 = vmatpush.msrb.mxu1 %v10427_v51  ;;  %6143 = vmatpush.msrb.mxu2 %v10500_v45 }
 0xef7   :  { %6163 = vmatpush.msrb.mxu3 %v10502_v26  ;;  %6104 = vmatpush.msra.mxu0 %v10506_v48  ;;  %v5766_v26 = vand.u32 2147483647, %v10662_v33 }
 0xef8   :  { %v6797_v42 = vpop.eup %6796  ;;  %6124 = vmatpush.msrb.mxu1 %v10508_v61  ;;  %6144 = vmatpush.msrb.mxu2 %v10510_v24  ;;  %v5781_v61 = vand.u32 2147483647, %v10666_v12 }
 0xef9   :  { %v10684_v62 = vadd.f32 1.0, %v6797_v42  ;;  %6164 = vmatpush.msrb.mxu3 %v10514_v39  ;;  %6105 = vmatpush.msra.mxu0 %v10518_v47  ;;  %vm5767_vm3 = vcmp.eq.f32.partialorder %v5766_v26, 8.507059e+37 }
 0xefa   :  { %v6799_v2 = vpop.eup %6798  ;;  %6125 = vmatpush.msrb.mxu1 %v10520_v6  ;;  %6145 = vmatpush.msrb.mxu2 %v10522_v5  ;;  %v5769_v6 = vor.u32 1.1754944e-38, %v5768_v46  ;;  %vm5782_vm4 = vcmp.eq.f32.partialorder %v5781_v61, 8.507059e+37 }
 0xefb   :  { %v6801_v20 = vpop.eup %6800  ;;  %v5758_v31 = vmul.f32 %v6799_v2, %v10662_v33  ;;  %6802 = vrcp.f32 %v10684_v62  ;;  %6165 = vmatpush.msrb.mxu3 %v10526_v60  ;;  %vm5763_vm13 = vweird.f32 %v6799_v2  ;;  %6106 = vmatpush.msra.mxu0 %v10530_v38  ;;  %v5784_v60 = vor.u32 1.1754944e-38, %v5783_v27  ;;  %v11432_v33 = vld [vmem:[#allocation47_spill] sm:$0xff]  ;;  %v11435_v27 = vld [vmem:[#allocation61_spill] sm:$0xff] }
 0xefc   :  { %v5773_v21 = vmul.f32 %v6801_v20, %v10666_v12  ;;  %6804 = vtanh.f32 %v5744_v34  ;;  %6126 = vmatpush.msrb.mxu1 %v10532_v55  ;;  %vm5778_vm14 = vweird.f32 %v6801_v20  ;;  %6146 = vmatpush.msrb.mxu2 %v10534_v10  ;;  %vm5764_vm1 = vmor %vm5762_vm15, %vm5763_vm13  ;;  %vm5792_vm6 = vweird.f32 %v10684_v62 }
 0xefd   :  { %v5759_v59 = vsub.f32 1.0, %v5758_v31  ;;  %6166 = vmatpush.msrb.mxu3 %v10538_v25  ;;  %6107 = vmatpush.msra.mxu0 %v10542_v49  ;;  %vm5779_vm2 = vmor %vm5777_vm0, %vm5778_vm14 }
 0xefe   :  { %v5774_v51 = vsub.f32 1.0, %v5773_v21  ;;  %6127 = vmatpush.msrb.mxu1 %v10544_v14  ;;  %6147 = vmatpush.msrb.mxu2 %v10546_v22 }
 0xeff   :  { %v5760_v45 = vmul.f32 %v6799_v2, %v5759_v59  ;;  %6167 = vmatpush.msrb.mxu3 %v10550_v35  ;;  %6108 = vmatpush.msra.mxu0 %v10554_v9 }
 0xf00   :  { %v5775_v48 = vmul.f32 %v6801_v20, %v5774_v51  ;;  %6128 = vmatpush.msrb.mxu1 %v10556_v13  ;;  %6148 = vmatpush.msrb.mxu2 %v10558_v3 }
 0xf01   :  { %v10709_v24 = vpop.eup %6802  ;;  %v5761_v39 = vadd.f32 %v6799_v2, %v5760_v45  ;;  %6168 = vmatpush.msrb.mxu3 %v10562_v4  ;;  %6109 = vmatpush.msra.mxu0 %v10566_v36  ;;  %v5796_v4 = vand.u32 2147483647, %v10684_v62  ;;  %v11420_v36 = vld [vmem:[#allocation66_spill] sm:$0xff]  ;;  %v4453_v45 = vadd.f32 %v11435_v27, %v11405_v29  ;;  %v6274_v27 = vld [vmem:[#allocation15 + $0x30] sm:$0xff] }
 0xf02   :  { %v5788_v47 = vmul.f32 %v10709_v24, %v10684_v62  ;;  %v5776_v5 = vadd.f32 %v6801_v20, %v5775_v48  ;;  %v6805_v55 = vpop.eup %6804  ;;  %6129 = vmatpush.msrb.mxu1 %v10568_v18  ;;  %6149 = vmatpush.msrb.mxu2 %v10570_v15  ;;  %vm5793_vm5 = vweird.f32 %v10709_v24  ;;  %v11421_v15 = vld [vmem:[#allocation51_spill] sm:$0xff] }
 0xf03   :  { %v5765_v38 = vsel %vm5764_vm1, %v6799_v2, %v5761_v39  ;;  %6169 = vmatpush.msrb.mxu3 %v10578_v57  ;;  %6110 = vmatpush.msra.mxu0 %v10582_v50  ;;  %vm5794_vm7 = vmor %vm5792_vm6, %vm5793_vm5  ;;  %v11422_v57 = vld [vmem:[#allocation64_spill] sm:$0xff]  ;;  %vm5797_vm8 = vcmp.eq.f32.partialorder %v5796_v4, 8.507059e+37 }
 0xf04   :  { %v5789_v10 = vsub.f32 1.0, %v5788_v47  ;;  %v5770_v25 = vsel %vm5767_vm3, %v5769_v6, %v5765_v38  ;;  %v5780_v49 = vsel %vm5779_vm2, %v6801_v20, %v5776_v5  ;;  %6130 = vmatpush.msrb.mxu1 %v10584_v23  ;;  %6150 = vmatpush.msrb.mxu2 %v10586_v43  ;;  %v11423_v23 = vld [vmem:[#allocation25_spill] sm:$0xff]  ;;  %v11424_v43 = vld [vmem:[#allocation68_spill] sm:$0xff] }
 0xf05   :  { %v5785_v14 = vsel %vm5782_vm4, %v5784_v60, %v5780_v49  ;;  %v5805_v22 = vmul.f32 %v6805_v55, %v5770_v25  ;;  %6170 = vmatpush.msrb.mxu3 %v10590_v11  ;;  %6111 = vmatpush.msra.mxu0 %v10594_v54  ;;  %v11425_v11 = vld [vmem:[#allocation41_spill] sm:$0xff]  ;;  %v11426_v54 = vld [vmem:[#allocation56_spill] sm:$0xff] }
 0xf06   :  { %v5790_v35 = vmul.f32 %v10709_v24, %v5789_v10  ;;  %v5804_v9 = vmul.f32 %v5785_v14, %v10488_v8  ;;  %6131 = vmatpush.msrb.mxu1 %v10596_v1  ;;  %v5798_v8 = vand.u32 2147483648, %v10684_v62  ;;  %6151 = vmatpush.msrb.mxu2 %v10598_v30  ;;  %v11434_v62 = vld [vmem:[#allocation63_spill] sm:$0xff] }
 0xf07   :  { %6171 = vmatpush.msrb.mxu3 %v10602_v58  ;;  %6112 = vmatpush.msra.mxu0 %v10606_v0  ;;  %v11427_v0 = vld [vmem:[#allocation45_spill] sm:$0xff] }
 0xf08   :  { %v10733_v13 = vadd.f32 %v5805_v22, %v5804_v9  ;;  %v5791_v3 = vadd.f32 %v10709_v24, %v5790_v35  ;;  %6132 = vmatpush.msrb.mxu1 %v10608_v17  ;;  %6152 = vmatpush.msrb.mxu2 %v10610_v41  ;;  %v5799_v50 = vor.u32 1.1754944e-38, %v5798_v8  ;;  %v11431_v41 = vld [vmem:[#allocation43_spill] sm:$0xff] }
 0xf09   :  { %6172 = vmatpush.msrb.mxu3 %v11420_v36  ;;  %6113 = vmatpush.msra.mxu0 %v11421_v15 }
 0xf0a   :  { %6806 = vtanh.f32 %v10733_v13  ;;  %v5795_v18 = vsel %vm5794_vm7, %v10709_v24, %v5791_v3  ;;  %6133 = vmatpush.msrb.mxu1 %v11422_v57  ;;  %6153 = vmatpush.msrb.mxu2 %v11423_v23 }
 0xf0b   :  { %6173 = vmatpush.msrb.mxu3 %v11424_v43  ;;  %6114 = vmatpush.msra.mxu0 %v11425_v11  ;;  %v5800_v30 = vsel %vm5797_vm8, %v5799_v50, %v5795_v18 }
 0xf0c   :  { %6134 = vmatpush.msrb.mxu1 %v11426_v54  ;;  %6154 = vmatpush.msrb.mxu2 %v10634_v37  ;;  %v11428_v37 = vld [vmem:[#allocation57_spill] sm:$0xff] }
 0xf0d   :  { %6174 = vmatpush.msrb.mxu3 %v10636_v32  ;;  %6115 = vmatpush.msra.mxu0 %v10640_v52  ;;  %v11430_v52 = vld [vmem:[#allocation35_spill] sm:$0xff] }
 0xf0e   :  { %6135 = vmatpush.msrb.mxu1 %v10642_v53  ;;  %6155 = vmatpush.msrb.mxu2 %v10646_v40  ;;  %v11429_v53 = vld [vmem:[#allocation40_spill] sm:$0xff] }
 0xf0f   :  { %6175 = vmatpush.msrb.mxu3 %v10648_v63  ;;  %6116 = vmatpush.msra.mxu0 %v10652_v44  ;;  %v4330_v40 = vadd.f32 %v11430_v52, %v11429_v53  ;;  %v4371_v63 = vadd.f32 %v11432_v33, %v11431_v41  ;;  %v11433_v44 = vld [vmem:[#allocation46_spill] sm:$0xff] }
 0xf10   :  { %v6807_v1 = vpop.eup %6806  ;;  %6136 = vmatpush.msrb.mxu1 %v10654_v16  ;;  %6156 = vmatpush.msrb.mxu2 %v11428_v37  ;;  %v4412_v16 = vadd.f32 %v11434_v62, %v11433_v44  ;;  %v11436_v62 = vld [vmem:[#allocation37_spill] sm:$0xff] }
 0xf11   :  { %v5808_v58 = vmul.f32 %v6807_v1, %v5800_v30  ;;  %6176 = vmatpush.msrb.mxu3 %v10660_v7 }
 0xf13   :  { %5897 = vmatmul.f32.vlgmr.msrb.gmra.mxu0 %v5808_v58  ;;  %5917 = vmatmul.f32.vlgmr.msra.gmra.mxu1 %v5808_v58  ;;  %v10765_v17 = vadd.f32 %v11427_v0, %v5808_v58 }
 0xf14   :  { %5937 = vmatmul.f32.vlgmr.msra.gmra.mxu2 %v5808_v58  ;;  %5957 = vmatmul.f32.vlgmr.msra.gmra.mxu3 %v5808_v58 }
 0xf90   :  { %v5898_v28 = vpop.f32.mrf.mxu0  ;;  %v5918_v32 = vpop.f32.mrf.mxu1 }
 0xf91   :  { %v5961_v12 = vadd.f32 %v5898_v28, %v4330_v40  ;;  %v5962_v56 = vadd.f32 %v5918_v32, %v4371_v63  ;;  %v6283_v63 = vld [vmem:[#allocation15 + $0x78] sm:$0xff]  ;;  %v6282_v28 = vld [vmem:[#allocation15 + $0x70] sm:$0xff]  ;;  %v6281_v32 = vld [vmem:[#allocation15 + $0x68] sm:$0xff] }
 0xf92   :  { %6288 = vmatpush.msrb.mxu0 %v6283_v63 }
 0xf93   :  { %v6434_v42 = vmul.f32 -1.442695, %v5961_v12  ;;  %v6435_v19 = vmul.f32 -1.442695, %v5962_v56  ;;  %v6280_v12 = vld [vmem:[#allocation15 + $0x60] sm:$0xff]  ;;  %v6279_v56 = vld [vmem:[#allocation15 + $0x58] sm:$0xff] }
 0xf94   :  { %6289 = vmatpush.msrb.mxu0 %v6282_v28 }
 0xf95   :  { %6808 = vpow2.f32 %v6434_v42  ;;  %v6278_v42 = vld [vmem:[#allocation15 + $0x50] sm:$0xff] }
 0xf96   :  { %6810 = vpow2.f32 %v6435_v19  ;;  %6290 = vmatpush.msrb.mxu0 %v6281_v32  ;;  %v6277_v19 = vld [vmem:[#allocation15 + $0x48] sm:$0xff] }
 0xf97   :  { %v5938_v2 = vpop.f32.mrf.mxu2  ;;  %v5958_v51 = vpop.f32.mrf.mxu3 }
 0xf98   :  { %v5963_v34 = vadd.f32 %v5938_v2, %v4412_v16  ;;  %v5964_v61 = vadd.f32 %v5958_v51, %v4453_v45  ;;  %6291 = vmatpush.msrb.mxu0 %v6280_v12  ;;  %v4333_v16 = vadd.f32 %v11436_v62, %v11429_v53  ;;  %v6273_v45 = vld [vmem:[#allocation15 + $0x28] sm:$0xff]  ;;  %v11438_v53 = vld [vmem:[#allocation26_spill] sm:$0xff] }
 0xf9a   :  { %v6436_v7 = vmul.f32 -1.442695, %v5963_v34  ;;  %6292 = vmatpush.msrb.mxu0 %v6279_v56 }
 0xf9b   :  { %v6809_v20 = vpop.eup %6808 }
 0xf9c   :  { %v6811_v31 = vpop.eup %6810  ;;  %v5974_v21 = vadd.f32 1.0, %v6809_v20  ;;  %6812 = vpow2.f32 %v6436_v7  ;;  %6293 = vmatpush.msrb.mxu0 %v6278_v42  ;;  %v6276_v20 = vld [vmem:[#allocation15 + $0x40] sm:$0xff] }
 0xf9d   :  { %v5975_v59 = vadd.f32 1.0, %v6811_v31 }
 0xf9e   :  { %6814 = vrcp.f32 %v5974_v21  ;;  %v5988_v60 = vand.u32 2147483648, %v5974_v21  ;;  %v5986_v10 = vand.u32 2147483647, %v5974_v21  ;;  %vm5982_vm11 = vweird.f32 %v5974_v21  ;;  %6294 = vmatpush.msrb.mxu0 %v6277_v19 }
 0xf9f   :  { %6816 = vrcp.f32 %v5975_v59  ;;  %v6003_v38 = vand.u32 2147483648, %v5975_v59  ;;  %v6001_v49 = vand.u32 2147483647, %v5975_v59  ;;  %vm5997_vm12 = vweird.f32 %v5975_v59 }
 0xfa0   :  { %v5989_v9 = vor.u32 1.1754944e-38, %v5988_v60  ;;  %vm5987_vm15 = vcmp.eq.f32.partialorder %v5986_v10, 8.507059e+37  ;;  %6295 = vmatpush.msrb.mxu0 %v6276_v20  ;;  %v6268_v10 = vld [vmem:[#allocation15] sm:$0xff] }
 0xfa1   :  { %v6004_v8 = vor.u32 1.1754944e-38, %v6003_v38  ;;  %vm6002_vm0 = vcmp.eq.f32.partialorder %v6001_v49, 8.507059e+37  ;;  %v6269_v38 = vld [vmem:[#allocation15 + $0x8] sm:$0xff]  ;;  %v11439_v49 = vld [vmem:[#allocation44_spill] sm:$0xff] }
 0xfa2   :  { %v6813_v46 = vpop.eup %6812 }
 0xfa3   :  { %v5976_v26 = vadd.f32 1.0, %v6813_v46 }
 0xfa4   :  { %v6815_v48 = vpop.eup %6814 }
 0xfa5   :  { %v6817_v24 = vpop.eup %6816  ;;  %v5978_v39 = vmul.f32 %v6815_v48, %v5974_v21  ;;  %6818 = vrcp.f32 %v5976_v26  ;;  %vm5983_vm9 = vweird.f32 %v6815_v48  ;;  %v6018_v30 = vand.u32 2147483648, %v5976_v26 }
 0xfa6   :  { %v5993_v47 = vmul.f32 %v6817_v24, %v5975_v59  ;;  %6820 = vtanh.f32 %v5964_v61  ;;  %vm5998_vm10 = vweird.f32 %v6817_v24  ;;  %vm5984_vm13 = vmor %vm5982_vm11, %vm5983_vm9  ;;  %vm6012_vm2 = vweird.f32 %v5976_v26  ;;  %v6275_v59 = vld [vmem:[#allocation15 + $0x38] sm:$0xff] }
 0xfa7   :  { %v5979_v6 = vsub.f32 1.0, %v5978_v39  ;;  %vm5999_vm14 = vmor %vm5997_vm12, %vm5998_vm10  ;;  %v6016_v58 = vand.u32 2147483647, %v5976_v26  ;;  %v6019_v37 = vor.u32 1.1754944e-38, %v6018_v30  ;;  %6296 = vmatpush.msrb.mxu0 %v6275_v59 }
 0xfa8   :  { %v5994_v5 = vsub.f32 1.0, %v5993_v47  ;;  %v6270_v47 = vld [vmem:[#allocation15 + $0x10] sm:$0xff] }
 0xfa9   :  { %v5980_v55 = vmul.f32 %v6815_v48, %v5979_v6  ;;  %vm6017_vm4 = vcmp.eq.f32.partialorder %v6016_v58, 8.507059e+37  ;;  %6297 = vmatpush.msrb.mxu0 %v6274_v27 }
 0xfaa   :  { %v5995_v25 = vmul.f32 %v6817_v24, %v5994_v5 }
 0xfab   :  { %v6819_v14 = vpop.eup %6818  ;;  %v5981_v22 = vadd.f32 %v6815_v48, %v5980_v55  ;;  %6298 = vmatpush.msrb.mxu0 %v6273_v45 }
 0xfac   :  { %v6008_v35 = vmul.f32 %v6819_v14, %v5976_v26  ;;  %v5996_v3 = vadd.f32 %v6817_v24, %v5995_v25  ;;  %v6821_v36 = vpop.eup %6820  ;;  %vm6013_vm1 = vweird.f32 %v6819_v14  ;;  %v4415_v26 = vadd.f32 %v11438_v53, %v11433_v44 }
 0xfad   :  { %v5985_v4 = vsel %vm5984_vm13, %v6815_v48, %v5981_v22  ;;  %vm6014_vm3 = vmor %vm6012_vm2, %vm6013_vm1 }
 0xfae   :  { %v6009_v18 = vsub.f32 1.0, %v6008_v35  ;;  %v5990_v15 = vsel %vm5987_vm15, %v5989_v9, %v5985_v4  ;;  %v6000_v57 = vsel %vm5999_vm14, %v6817_v24, %v5996_v3  ;;  %v6271_v24 = vld [vmem:[#allocation15 + $0x18] sm:$0xff] }
 0xfaf   :  { %v6005_v50 = vsel %vm6002_vm0, %v6004_v8, %v6000_v57  ;;  %v6025_v23 = vmul.f32 %v6821_v36, %v5990_v15 }
 0xfb0   :  { %v6010_v43 = vmul.f32 %v6819_v14, %v6009_v18  ;;  %v6024_v11 = vmul.f32 %v6005_v50, %v10733_v13 }
 0xfb2   :  { %v10780_v54 = vadd.f32 %v6025_v23, %v6024_v11  ;;  %v6011_v1 = vadd.f32 %v6819_v14, %v6010_v43 }
 0xfb4   :  { %6822 = vtanh.f32 %v10780_v54  ;;  %v6015_v0 = vsel %vm6014_vm3, %v6819_v14, %v6011_v1  ;;  %v4456_v14 = vadd.f32 %v11439_v49, %v11405_v29 }
 0xfb5   :  { %v6020_v40 = vsel %vm6017_vm4, %v6019_v37, %v6015_v0 }
 0xfba   :  { %v6823_v52 = vpop.eup %6822 }
 0xfbb   :  { %v6028_v33 = vmul.f32 %v6823_v52, %v6020_v40 }
 0xfbd   :  { %6117 = vmatmul.f32.vlgmr.msra.gmra.mxu0 %v6028_v33  ;;  %6137 = vmatmul.f32.vlgmr.msrb.gmra.mxu1 %v6028_v33  ;;  %v10784_v13 = vadd.f32 %v10765_v17, %v6028_v33  ;;  %v11437_v17 = vld [vmem:[#allocation49_spill] sm:$0xff] }
 0xfbe   :  { %6157 = vmatmul.f32.vlgmr.msrb.gmra.mxu2 %v6028_v33  ;;  %6177 = vmatmul.f32.vlgmr.msrb.gmra.mxu3 %v6028_v33  ;;  %v4374_v2 = vadd.f32 %v11437_v17, %v11431_v41  ;;  %v6272_v41 = vld [vmem:[#allocation15 + $0x20] sm:$0xff] }
 0xfbf   :  { %6299 = vmatpush.msrb.mxu0 %v6272_v41 }
 0xfc1   :  { %6300 = vmatpush.msrb.mxu0 %v6271_v24 }
 0xfc3   :  { %6301 = vmatpush.msrb.mxu0 %v6270_v47 }
 0xfc5   :  { %6302 = vmatpush.msrb.mxu0 %v6269_v38 }
 0xfc7   :  { %6303 = vmatpush.msrb.mxu0 %v6268_v10 }
0x103a   :  { %v6118_v34 = vpop.f32.mrf.mxu0  ;;  %v6138_v7 = vpop.f32.mrf.mxu1 }
0x103b   :  { %v6181_v31 = vadd.f32 %v6118_v34, %v4333_v16  ;;  %v6182_v21 = vadd.f32 %v6138_v7, %v4374_v2 }
0x103d   :  { %v6437_v51 = vmul.f32 -1.442695, %v6181_v31  ;;  %v6438_v46 = vmul.f32 -1.442695, %v6182_v21 }
0x103f   :  { %6824 = vpow2.f32 %v6437_v51 }
0x1040   :  { %6826 = vpow2.f32 %v6438_v46 }
0x1041   :  { %v6158_v48 = vpop.f32.mrf.mxu2  ;;  %v6178_v44 = vpop.f32.mrf.mxu3 }
0x1042   :  { %v6183_v61 = vadd.f32 %v6158_v48, %v4415_v26  ;;  %v6184_v9 = vadd.f32 %v6178_v44, %v4456_v14 }
0x1044   :  { %v6439_v39 = vmul.f32 -1.442695, %v6183_v61 }
0x1045   :  { %v6825_v6 = vpop.eup %6824 }
0x1046   :  { %v6827_v5 = vpop.eup %6826  ;;  %v6194_v60 = vadd.f32 1.0, %v6825_v6  ;;  %6828 = vpow2.f32 %v6439_v39 }
0x1047   :  { %v6195_v55 = vadd.f32 1.0, %v6827_v5 }
0x1048   :  { %6830 = vrcp.f32 %v6194_v60  ;;  %v6208_v15 = vand.u32 2147483648, %v6194_v60  ;;  %v6206_v23 = vand.u32 2147483647, %v6194_v60  ;;  %vm6202_vm7 = vweird.f32 %v6194_v60 }
0x1049   :  { %6832 = vrcp.f32 %v6195_v55  ;;  %v6223_v57 = vand.u32 2147483648, %v6195_v55  ;;  %v6221_v11 = vand.u32 2147483647, %v6195_v55  ;;  %vm6217_vm8 = vweird.f32 %v6195_v55 }
0x104a   :  { %v6209_v58 = vor.u32 1.1754944e-38, %v6208_v15  ;;  %vm6207_vm11 = vcmp.eq.f32.partialorder %v6206_v23, 8.507059e+37 }
0x104b   :  { %v6224_v37 = vor.u32 1.1754944e-38, %v6223_v57  ;;  %vm6222_vm12 = vcmp.eq.f32.partialorder %v6221_v11, 8.507059e+37 }
0x104c   :  { %v6829_v25 = vpop.eup %6828 }
0x104d   :  { %v6196_v22 = vadd.f32 1.0, %v6829_v25 }
0x104e   :  { %v6831_v35 = vpop.eup %6830 }
0x104f   :  { %v6833_v3 = vpop.eup %6832  ;;  %v6198_v8 = vmul.f32 %v6831_v35, %v6194_v60  ;;  %6834 = vrcp.f32 %v6196_v22  ;;  %vm6203_vm5 = vweird.f32 %v6831_v35  ;;  %v6238_v16 = vand.u32 2147483648, %v6196_v22 }
0x1050   :  { %v6213_v4 = vmul.f32 %v6833_v3, %v6195_v55  ;;  %6836 = vtanh.f32 %v6184_v9  ;;  %vm6218_vm6 = vweird.f32 %v6833_v3  ;;  %vm6204_vm9 = vmor %vm6202_vm7, %vm6203_vm5  ;;  %vm6232_vm14 = vweird.f32 %v6196_v22 }
0x1051   :  { %v6199_v36 = vsub.f32 1.0, %v6198_v8  ;;  %vm6219_vm10 = vmor %vm6217_vm8, %vm6218_vm6  ;;  %v6236_v17 = vand.u32 2147483647, %v6196_v22  ;;  %v6239_v34 = vor.u32 1.1754944e-38, %v6238_v16 }
0x1052   :  { %v6214_v18 = vsub.f32 1.0, %v6213_v4 }
0x1053   :  { %v6200_v50 = vmul.f32 %v6831_v35, %v6199_v36  ;;  %vm6237_vm0 = vcmp.eq.f32.partialorder %v6236_v17, 8.507059e+37 }
0x1054   :  { %v6215_v43 = vmul.f32 %v6833_v3, %v6214_v18 }
0x1055   :  { %v6835_v1 = vpop.eup %6834  ;;  %v6201_v29 = vadd.f32 %v6831_v35, %v6200_v50 }
0x1056   :  { %v6228_v30 = vmul.f32 %v6835_v1, %v6196_v22  ;;  %v6216_v0 = vadd.f32 %v6833_v3, %v6215_v43  ;;  %v6837_v40 = vpop.eup %6836  ;;  %vm6233_vm13 = vweird.f32 %v6835_v1 }
0x1057   :  { %v6205_v52 = vsel %vm6204_vm9, %v6831_v35, %v6201_v29  ;;  %vm6234_vm15 = vmor %vm6232_vm14, %vm6233_vm13 }
0x1058   :  { %v6229_v33 = vsub.f32 1.0, %v6228_v30  ;;  %v6210_v63 = vsel %vm6207_vm11, %v6209_v58, %v6205_v52  ;;  %v6220_v28 = vsel %vm6219_vm10, %v6833_v3, %v6216_v0 }
0x1059   :  { %v6225_v32 = vsel %vm6222_vm12, %v6224_v37, %v6220_v28  ;;  %v6245_v12 = vmul.f32 %v6837_v40, %v6210_v63 }
0x105a   :  { %v6230_v56 = vmul.f32 %v6835_v1, %v6229_v33  ;;  %v6244_v42 = vmul.f32 %v6225_v32, %v10780_v54  ;;  %v6455_v54 = vld [vmem:[%s10813_s11] ss:$0 sm:$0xff] }
0x105c   :  { %v6246_v19 = vadd.f32 %v6245_v12, %v6244_v42  ;;  %v6231_v62 = vadd.f32 %v6835_v1, %v6230_v56 }
0x105e   :  { %6838 = vtanh.f32 %v6246_v19  ;;  %v6235_v2 = vsel %vm6234_vm15, %v6835_v1, %v6231_v62 }
0x105f   :  { %v6240_v20 = vsel %vm6237_vm0, %v6239_v34, %v6235_v2 }
0x1064   :  { %v6839_v7 = vpop.eup %6838 }
0x1065   :  { %v6248_v31 = vmul.f32 %v6839_v7, %v6240_v20 }
0x1067   :  { %v6266_v21 = vadd.f32 %v10784_v13, %v6248_v31 }
0x1069   :  { %v6267_v59 = vmul.f32 0.125, %v6266_v21 }
0x106b   :  { %6304 = vmatmul.f32.vlgmr.msrb.gmra.mxu0 %v6267_v59 }
0x10e8   :  { %v6305_v51 = vpop.f32.mrf.mxu0 }
0x10e9   :  { %v6306_v46 = vadd.f32 %v6455_v54, %v6305_v51 }
0x10eb   :  { %6308 = vst [vmem:[#allocation17] sm:$0xff] %v6306_v46 }
0x10ec   :  { %6319 = dma.vmem_to_hbm [thread:$0]  %s6315_s30, 128, %s6317_s18, [#allocation8]  }
0x10ed   :  { %7016 = dma.done.wait [#allocation8], 128  }
0x10ee   :  { %7017 = vsyncadd [#allocation8], 4294967168 }
0x10ef   :  { %6324 = vsyncpa [#allocation7], 1 }
0x10f0   :  { %6325 = vsyncpa [#allocation10], 1 }
0x10f1   :  { %6326 = vsyncpa [#allocation13], 1 }
0x10f2   :  { %6327 = vsyncpa [#allocation16], 1 }
0x10f3   :  { %6328 = vsyncpa [#allocation8], 1 }

</bundles_post_ra>
